<compile_context>
chip_gen: v6e
topology: v6e:2x2x1
jax: 0.10.0
libtpu: 0.0.40
codegen_flags: <defaults>
</compile_context>

<pallas_src>
import functools

import numpy as np
import jax
import jax.numpy as jnp
from jax.experimental import pallas as pl
from jax.experimental.pallas import tpu as pltpu

# ----------------------------- hyper-parameters ------------------------------
B, T = 2, 8                   # batch / time
NB_ERB = 16                   # erb bins (divisible by 4)
NB_DF = 8                     # df bins
CONV_CH = 16                  # layer_width (p.conv_ch)
WF = 1                        # p.conv_width_f
EMB_HIDDEN = 256              # p.emb_hidden_dim
EMB_DIM = CONV_CH * NB_ERB // 4 * WF ** 2   # 64
DF_FC_IN = CONV_CH * NB_DF // 2             # 64
LSNR_MAX, LSNR_MIN = 35.0, -15.0
LSNR_SCALE = LSNR_MAX - LSNR_MIN
LSNR_OFFSET = LSNR_MIN
BN_EPS = 1e-5

# --------------------- packed-parameter buffer layout ------------------------
# f32 weight slab with 64 lanes (rows are multiples of 8):
W64_E2, W64_E3, W64_D1, W64_FC = (0, 256), (256, 384), (384, 640), (640, 704)
W64_ROWS = 704
# f32 weight slab with 128 lanes (lsnr weight padded to 128 lanes, column 0 real):
W128_E1, W128_D0, W128_LS = (0, 512), (512, 544), (544, 800)
W128_ROWS = 800
# bf16 GRU weight slab with 768 lanes, DMA'd manually inside the kernel:
GRU_IH, GRU_HH = (0, EMB_DIM), (EMB_DIM, EMB_DIM + EMB_HIDDEN)
GRU_ROWS = EMB_DIM + EMB_HIDDEN                      # 320
# all biases packed into one (1, BIAS_LANES) row; every segment starts 128-aligned:
B_E0, B_E1, B_E2, B_E3 = (0, 256), (256, 384), (384, 448), (512, 576)
B_D0, B_D1, B_FC = (640, 768), (768, 832), (896, 960)
B_IH, B_HH, B_LS = (1024, 1792), (1792, 2560), (2560, 2688)
BIAS_LANES = 2688


# ------------------------------- Pallas kernel --------------------------------
def _encoder_kernel(
    x_erb_ref, x_spec_ref, e0w_ref, w128_ref, w64_ref, bias_ref, gruw_hbm_ref,
    e0_out, e1_out, e23_out, c0_out, emb_out, lsnr_out,
    gruw_vmem, dma_sem,
    *, batch, time, hidden,
):
    f32 = jnp.float32
    tb = batch * time

    # Start the GRU-weight DMA (HBM -> VMEM) immediately so it overlaps the conv
    # chain; we only .wait() right before the GRU input projection needs it.
    gru_cp = pltpu.make_async_copy(gruw_hbm_ref, gruw_vmem, dma_sem)
    gru_cp.start()

    def bias(seg):
        return bias_ref[:, seg[0]:seg[1]]

    def conv(x, w, b):
        # Rows are ordered (t, b): the causal one-frame shift is a shift by `batch`
        # rows with zero fill for t == 0, done with a sublane slice + concat
        # (no MXU work), then ONE fused matmul over both time taps.
        x_prev = jnp.concatenate(
            [jnp.zeros((batch, x.shape[1]), x.dtype), x[: tb - batch, :]], axis=0)
        xcat = jnp.concatenate([x_prev, x], axis=-1)          # (tb, 2*Cin*F_in)
        y = jnp.dot(xcat, w, preferred_element_type=f32) + b
        return jnp.maximum(y, 0.0)                            # folded BN -> bias+ReLU

    # ---- conv stacks: all activations stay in VMEM, lane-dense (T*B, C*F) ------
    e0 = conv(x_erb_ref[...], e0w_ref[...], bias(B_E0))
    e1 = conv(e0, w128_ref[W128_E1[0]:W128_E1[1], :], bias(B_E1))
    e2 = conv(e1, w64_ref[W64_E2[0]:W64_E2[1], :], bias(B_E2))
    e3 = conv(e2, w64_ref[W64_E3[0]:W64_E3[1], :], bias(B_E3))
    c0 = conv(x_spec_ref[...], w128_ref[W128_D0[0]:W128_D0[1], :], bias(B_D0))
    c1 = conv(c0, w64_ref[W64_D1[0]:W64_D1[1], :], bias(B_D1))

    e0_out[...] = e0
    e1_out[...] = e1
    e23_out[...] = jnp.concatenate([e2, e3], axis=-1)         # merged lane-dense store
    c0_out[...] = c0

    # ---- df_fc_emb fused with the residual add ----------------------------------
    emb0 = (e3
            + jnp.dot(c1, w64_ref[W64_FC[0]:W64_FC[1], :], preferred_element_type=f32)
            + bias(B_FC))

    # ---- GRU ---------------------------------------------------------------------
    gru_cp.wait()
    wih = gruw_vmem[GRU_IH[0]:GRU_IH[1], :].astype(f32)
    whh = gruw_vmem[GRU_HH[0]:GRU_HH[1], :].astype(f32)

    # input projection hoisted out of the recurrence (one matmul for all T steps)
    gi = jnp.dot(emb0, wih, preferred_element_type=f32) + bias(B_IH)
    bhh = bias(B_HH)

    # TODO(synk): Whh could be held resident in the MXU across the 8 steps via
    # pltpu.matmul_push_rhs / matmul_acc_lhs; kept as plain dots for portability.
    h = jnp.zeros((batch, hidden), f32)
    hs = []
    for t in range(time):                                     # fully unrolled (T=8)
        gi_t = gi[t * batch:(t + 1) * batch, :]
        gh = jnp.dot(h, whh, preferred_element_type=f32) + bhh
        r = jax.nn.sigmoid(gi_t[:, :hidden] + gh[:, :hidden])
        z = jax.nn.sigmoid(gi_t[:, hidden:2 * hidden] + gh[:, hidden:2 * hidden])
        n = jnp.tanh(gi_t[:, 2 * hidden:] + r * gh[:, 2 * hidden:])
        h = (1.0 - z) * n + z * h
        hs.append(h)
    all_h = jnp.concatenate(hs, axis=0)                       # (tb, hidden) in regs
    emb_out[...] = all_h                                      # single unmasked store

    # ---- lsnr head (weight padded to 128 lanes; wrapper keeps column 0) ---------
    lsnr = jax.nn.sigmoid(
        jnp.dot(all_h, w128_ref[W128_LS[0]:W128_LS[1], :], preferred_element_type=f32)
        + bias(B_LS))
    lsnr_out[...] = lsnr * LSNR_SCALE + LSNR_OFFSET


def fused_encoder(x_erb, x_spec, p, batch, time):
    tb = batch * time
    vmem = pl.BlockSpec(memory_space=pltpu.MemorySpace.VMEM)
    any_spec = pl.BlockSpec(memory_space=pl.ANY)
    args = (x_erb, x_spec, p["e0w"], p["w128"], p["w64"], p["bias"], p["gruw"])
    out_shape = (
        jax.ShapeDtypeStruct((tb, CONV_CH * NB_ERB), jnp.float32),        # e0
        jax.ShapeDtypeStruct((tb, CONV_CH * NB_ERB // 2), jnp.float32),   # e1
        jax.ShapeDtypeStruct((tb, CONV_CH * NB_ERB // 2), jnp.float32),   # e2 | e3
        jax.ShapeDtypeStruct((tb, CONV_CH * NB_DF), jnp.float32),         # c0
        jax.ShapeDtypeStruct((tb, EMB_HIDDEN), jnp.float32),              # emb (GRU)
        jax.ShapeDtypeStruct((tb, 128), jnp.float32),                     # lsnr (col 0)
    )
    return pl.pallas_call(
        functools.partial(_encoder_kernel, batch=batch, time=time, hidden=EMB_HIDDEN),
        out_shape=out_shape,
        in_specs=[vmem] * 6 + [any_spec],
        out_specs=[vmem] * len(out_shape),
        scratch_shapes=[pltpu.VMEM((GRU_ROWS, 3 * EMB_HIDDEN), jnp.bfloat16),
                        pltpu.SemaphoreType.DMA(())],
    )(*args)


# ------------------------------- encoder forward ------------------------------
def encoder_forward(params, feat_erb, feat_spec):
    b, _, t, f_erb = feat_erb.shape
    f_df = feat_spec.shape[-1]
    # NCHW -> (T*B, C*F): rows ordered (t, b), features ordered (c, f)
    x_erb = jnp.transpose(feat_erb, (2, 0, 1, 3)).reshape(t * b, -1)
    x_spec = jnp.transpose(feat_spec, (2, 0, 1, 3)).reshape(t * b, -1)

    e0f, e1f, e23f, c0f, embf, lsnrf = fused_encoder(x_erb, x_spec, params, b, t)

    def to_nchw(xf, f_dim):
        return jnp.transpose(xf.reshape(t, b, CONV_CH, f_dim), (1, 2, 0, 3))

    half = CONV_CH * (f_erb // 4)
    e0 = to_nchw(e0f, f_erb)
    e1 = to_nchw(e1f, f_erb // 2)
    e2 = to_nchw(e23f[:, :half], f_erb // 4)
    e3 = to_nchw(e23f[:, half:], f_erb // 4)
    c0 = to_nchw(c0f, f_df)
    emb = jnp.transpose(embf.reshape(t, b, EMB_HIDDEN), (1, 0, 2))   # (B, T, H)
    lsnr = jnp.transpose(lsnrf[:, :1].reshape(t, b, 1), (1, 0, 2))   # (B, T, 1)
    return e0, e1, e2, e3, emb, c0, lsnr


# ------------------------------- param init ----------------------------------
def _init_conv_layer(key, cin, cout, f_in, fstride, k=2, f=3, depthwise=True):
    """convkxf (causal kx3 conv [+ 1x1 mix when grouped]) + eval-mode BN + ReLU,
    folded into one fused matmul matrix (k*cin*f_in, cout*f_out) plus a bias."""
    kw, k1, kg, kb, km, kv = jax.random.split(key, 6)
    groups = min(cin, cout) if depthwise else 1
    if cin % groups != 0 or cout % groups != 0:
        groups = 1
    cin_g, cout_g = cin // groups, cout // groups
    wg = np.asarray(jax.random.normal(kw, (cout, cin_g, k, f), jnp.float32)) * 0.1
    dense = np.zeros((cout, cin, k, f), np.float32)
    for co in range(cout):
        g = co // cout_g
        dense[co, g * cin_g:(g + 1) * cin_g] = wg[co]
    if groups > 1:   # convkxf appends a pointwise 1x1 conv (no bias) when grouped
        w1 = np.asarray(jax.random.normal(k1, (cout, cout), jnp.float32)) * 0.1
        dense = np.einsum("om,mikf->oikf", w1, dense).astype(np.float32)
    gamma = np.asarray(jax.random.uniform(kg, (cout,), jnp.float32, 0.5, 1.5))
    beta = np.asarray(jax.random.normal(kb, (cout,), jnp.float32)) * 0.1
    mean = np.asarray(jax.random.normal(km, (cout,), jnp.float32)) * 0.1
    var = np.asarray(jax.random.uniform(kv, (cout,), jnp.float32, 0.5, 1.5))
    scale = gamma / np.sqrt(var + BN_EPS)
    shift = beta - mean * scale
    folded = dense * scale[:, None, None, None]        # BN scale folded into weights

    fpad = (f - 1) // 2
    f_out = (f_in + 2 * fpad - f) // fstride + 1
    # mats[kt, ci*F_in + fi, co*F_out + fo] = folded[co, ci, kt, kf]
    #   with fi = fo*fstride - fpad + kf   (dropped when outside [0, F_in))
    mats = np.zeros((k, cin * f_in, cout * f_out), np.float32)
    ci_idx = np.arange(cin)
    co_idx = np.arange(cout)
    for kt in range(k):
        for kf in range(f):
            for fo in range(f_out):
                fi = fo * fstride - fpad + kf
                if 0 <= fi < f_in:
                    mats[kt][np.ix_(ci_idx * f_in + fi, co_idx * f_out + fo)] += \
                        folded[:, :, kt, kf].T
    fused = np.concatenate([mats[0], mats[1]], axis=0)   # (2*cin*f_in, cout*f_out)
    bias = np.repeat(shift, f_out)                       # (cout*f_out,)
    ref = (jnp.asarray(dense), jnp.asarray(scale), jnp.asarray(shift), fstride)
    return fused, bias, ref, f_out


def init_encoder_params(key):
    ks = jax.random.split(key, 16)
    rp = {}
    e0w, e0b, rp["erb0"], f0 = _init_conv_layer(ks[0], 1, CONV_CH, NB_ERB, 1)
    e1w, e1b, rp["erb1"], f1 = _init_conv_layer(ks[1], CONV_CH, CONV_CH, f0, 2)
    e2w, e2b, rp["erb2"], f2 = _init_conv_layer(ks[2], CONV_CH, CONV_CH, f1, 2)
    e3w, e3b, rp["erb3"], _ = _init_conv_layer(ks[3], CONV_CH, CONV_CH, f2, 1)
    d0w, d0b, rp["df0"], g0 = _init_conv_layer(ks[4], 2, CONV_CH, NB_DF, 1)
    d1w, d1b, rp["df1"], _ = _init_conv_layer(ks[5], CONV_CH, CONV_CH, g0, 2)

    H = EMB_HIDDEN
    fcw = np.asarray(jax.random.normal(ks[6], (DF_FC_IN, EMB_DIM), jnp.float32)) * 0.1
    fcb = np.asarray(jax.random.normal(ks[7], (EMB_DIM,), jnp.float32)) * 0.1
    wih = np.asarray(jax.random.normal(ks[8], (EMB_DIM, 3 * H), jnp.float32)) * 0.05
    whh = np.asarray(jax.random.normal(ks[9], (H, 3 * H), jnp.float32)) * 0.05
    bih = np.asarray(jax.random.normal(ks[10], (3 * H,), jnp.float32)) * 0.05
    bhh = np.asarray(jax.random.normal(ks[11], (3 * H,), jnp.float32)) * 0.05
    lsw = np.asarray(jax.random.normal(ks[12], (H, 1), jnp.float32)) * 0.05
    lsb = np.asarray(jax.random.normal(ks[13], (1,), jnp.float32)) * 0.05

    # GRU weights shipped to the kernel as bf16 (halves the dominant HBM->VMEM
    # bytes).  Both kernel and reference use the *same* bf16-representable values,
    # so this does not perturb the numerics comparison.
    wih_bf = jnp.asarray(wih, jnp.float32).astype(jnp.bfloat16)
    whh_bf = jnp.asarray(whh, jnp.float32).astype(jnp.bfloat16)
    wih = np.asarray(wih_bf.astype(jnp.float32))
    whh = np.asarray(whh_bf.astype(jnp.float32))

    # ---- pack weights / biases into a few aligned buffers -----------------------
    w64 = np.zeros((W64_ROWS, 64), np.float32)
    w64[W64_E2[0]:W64_E2[1]] = e2w
    w64[W64_E3[0]:W64_E3[1]] = e3w
    w64[W64_D1[0]:W64_D1[1]] = d1w
    w64[W64_FC[0]:W64_FC[1]] = fcw
    w128 = np.zeros((W128_ROWS, 128), np.float32)
    w128[W128_E1[0]:W128_E1[1]] = e1w
    w128[W128_D0[0]:W128_D0[1]] = d0w
    w128[W128_LS[0]:W128_LS[1], 0:1] = lsw
    gruw = jnp.concatenate([wih_bf, whh_bf], axis=0)          # (320, 768) bf16

    bias = np.zeros((1, BIAS_LANES), np.float32)
    bias[0, B_E0[0]:B_E0[1]] = e0b
    bias[0, B_E1[0]:B_E1[1]] = e1b
    bias[0, B_E2[0]:B_E2[1]] = e2b
    bias[0, B_E3[0]:B_E3[1]] = e3b
    bias[0, B_D0[0]:B_D0[1]] = d0b
    bias[0, B_D1[0]:B_D1[1]] = d1b
    bias[0, B_FC[0]:B_FC[1]] = fcb
    bias[0, B_IH[0]:B_IH[1]] = bih
    bias[0, B_HH[0]:B_HH[1]] = bhh
    bias[0, B_LS[0]:B_LS[1]] = lsb[0]                          # broadcast; col 0 used

    p = dict(e0w=jnp.asarray(e0w), w128=jnp.asarray(w128), w64=jnp.asarray(w64),
             bias=jnp.asarray(bias), gruw=gruw)
    rp.update(fcw=jnp.asarray(fcw), fcb=jnp.asarray(fcb),
              wih=jnp.asarray(wih), whh=jnp.asarray(whh),
              bih=jnp.asarray(bih), bhh=jnp.asarray(bhh),
              lsw=jnp.asarray(lsw), lsb=jnp.asarray(lsb))
    return p, rp


# --------------------------- pure-JAX reference -------------------------------
def _ref_conv(x, layer):
    w, scale, shift, fstride = layer
    xp = jnp.pad(x, ((0, 0), (0, 0), (1, 0), (1, 1)))   # causal time pad + freq pad 1
    y = jax.lax.conv_general_dilated(
        xp, w, window_strides=(1, fstride), padding="VALID",
        dimension_numbers=("NCHW", "OIHW", "NCHW"))
    y = y * scale[None, :, None, None] + shift[None, :, None, None]
    return jnp.maximum(y, 0.0)


def reference_forward(rp, feat_erb, feat_spec):
    """Non-Pallas reference of the same forward pass, used for validation only."""
    b, _, t, _ = feat_erb.shape
    e0 = _ref_conv(feat_erb, rp["erb0"])
    e1 = _ref_conv(e0, rp["erb1"])
    e2 = _ref_conv(e1, rp["erb2"])
    e3 = _ref_conv(e2, rp["erb3"])
    c0 = _ref_conv(feat_spec, rp["df0"])
    c1 = _ref_conv(c0, rp["df1"])

    cemb = jnp.transpose(c1, (2, 0, 1, 3)).reshape(t, b, -1)
    cemb = cemb @ rp["fcw"] + rp["fcb"]
    emb0 = jnp.transpose(e3, (2, 0, 1, 3)).reshape(t, b, -1) + cemb

    H = EMB_HIDDEN

    def step(h, x_t):
        gi = x_t @ rp["wih"] + rp["bih"]
        gh = h @ rp["whh"] + rp["bhh"]
        r = jax.nn.sigmoid(gi[:, :H] + gh[:, :H])
        z = jax.nn.sigmoid(gi[:, H:2 * H] + gh[:, H:2 * H])
        n = jnp.tanh(gi[:, 2 * H:] + r * gh[:, 2 * H:])
        h_new = (1.0 - z) * n + z * h
        return h_new, h_new

    h0 = jnp.zeros((b, H), jnp.float32)
    _, hs = jax.lax.scan(step, h0, emb0)
    emb = jnp.transpose(hs, (1, 0, 2))
    lsnr = jax.nn.sigmoid(emb @ rp["lsw"] + rp["lsb"]) * LSNR_SCALE + LSNR_OFFSET
    return e0, e1, e2, e3, emb, c0, lsnr


# ----------------------------------- main -------------------------------------
if __name__ == "__main__":
    root = jax.random.PRNGKey(0)
    k_param, k_erb, k_spec = jax.random.split(root, 3)
    params, ref_params = init_encoder_params(k_param)

    feat_erb = jax.random.normal(k_erb, (B, 1, T, NB_ERB), jnp.float32)
    feat_spec = jax.random.normal(k_spec, (B, 2, T, NB_DF), jnp.float32)

    fwd = jax.jit(encoder_forward)
    outs = jax.block_until_ready(fwd(params, feat_erb, feat_spec))

    expected = [
        (B, CONV_CH, T, NB_ERB),
        (B, CONV_CH, T, NB_ERB // 2),
        (B, CONV_CH, T, NB_ERB // 4),
        (B, CONV_CH, T, NB_ERB // 4),
        (B, T, EMB_HIDDEN),
        (B, CONV_CH, T, NB_DF),
        (B, T, 1),
    ]
    got = [tuple(o.shape) for o in outs]
    assert got == expected, (got, expected)
    assert all(bool(jnp.all(jnp.isfinite(o))) for o in outs)

    # Numerical check against a pure-JAX reference of the same forward pass.
    refs = reference_forward(ref_params, feat_erb, feat_spec)
    names = ["e0", "e1", "e2", "e3", "emb", "c0", "lsnr"]
    for name, o, r in zip(names, outs, refs):
        atol = 0.2 if name == "lsnr" else 1e-2          # lsnr output is scaled by 50
        np.testing.assert_allclose(np.asarray(o), np.asarray(r),
                                   rtol=1e-2, atol=atol, err_msg=name)

    print("KERNEL_OK")
</pallas_src>

<mosaic_0001>
module attributes {stable_mosaic.version = 11 : i64} {
  func.func @_encoder_kernel(%arg0: memref<16x16xf32, #tpu.memory_space<vmem>>, %arg1: memref<16x16xf32, #tpu.memory_space<vmem>>, %arg2: memref<32x256xf32, #tpu.memory_space<vmem>>, %arg3: memref<800x128xf32, #tpu.memory_space<vmem>>, %arg4: memref<704x64xf32, #tpu.memory_space<vmem>>, %arg5: memref<1x2688xf32, #tpu.memory_space<vmem>>, %arg6: memref<320x768xbf16, #tpu.memory_space<any>>, %arg7: memref<16x256xf32, #tpu.memory_space<vmem>>, %arg8: memref<16x128xf32, #tpu.memory_space<vmem>>, %arg9: memref<16x128xf32, #tpu.memory_space<vmem>>, %arg10: memref<16x128xf32, #tpu.memory_space<vmem>>, %arg11: memref<16x256xf32, #tpu.memory_space<vmem>>, %arg12: memref<16x128xf32, #tpu.memory_space<vmem>>, %arg13: memref<320x768xbf16, #tpu.memory_space<vmem>>, %arg14: memref<!tpu.dma_semaphore, #tpu.memory_space<semaphore_mem>>) attributes {dimension_semantics = [], scalar_prefetch = 0 : i64, scratch_operands = 2 : i64, tpu.core_type = #tpu.core_type<tc>} {
    tpu.enqueue_dma source(%arg6 : memref<320x768xbf16, #tpu.memory_space<any>>) target(%arg13 : memref<320x768xbf16, #tpu.memory_space<vmem>>) target_semaphore(%arg14 : memref<!tpu.dma_semaphore, #tpu.memory_space<semaphore_mem>>)
    %c0 = arith.constant 0 : index
    %c0_0 = arith.constant 0 : index
    %0 = vector.load %arg0[%c0, %c0_0] : memref<16x16xf32, #tpu.memory_space<vmem>>, vector<16x16xf32>
    %c0_1 = arith.constant 0 : index
    %c0_2 = arith.constant 0 : index
    %1 = vector.load %arg2[%c0_1, %c0_2] : memref<32x256xf32, #tpu.memory_space<vmem>>, vector<32x256xf32>
    %c0_3 = arith.constant 0 : index
    %c0_4 = arith.constant 0 : index
    %2 = vector.load %arg5[%c0_3, %c0_4] : memref<1x2688xf32, #tpu.memory_space<vmem>>, vector<1x256xf32>
    %cst = arith.constant 0.000000e+00 : f32
    %3 = vector.broadcast %cst : f32 to vector<2x16xf32>
    %4 = vector.extract_strided_slice %0 {offsets = [0, 0], sizes = [14, 16], strides = [1, 1]} : vector<16x16xf32> to vector<14x16xf32>
    %5 = tpu.concatenate %3, %4 in 0 : vector<2x16xf32>, vector<14x16xf32> -> vector<16x16xf32>
    %6 = tpu.concatenate %5, %0 in 1 : vector<16x16xf32>, vector<16x16xf32> -> vector<16x32xf32>
    %cst_5 = arith.constant dense<0.000000e+00> : vector<16x256xf32>
    %7 = tpu.matmul %6, %1, %cst_5 {dimension_numbers = #tpu.dot_dimension_numbers<[1], [0], [0], [1], [0, 0, 1, 1], [], []>} : vector<16x32xf32>, vector<32x256xf32>, vector<16x256xf32> -> vector<16x256xf32>
    %8 = vector.broadcast %2 : vector<1x256xf32> to vector<16x256xf32>
    %9 = arith.addf %7, %8 : vector<16x256xf32>
    %cst_6 = arith.constant 0.000000e+00 : f32
    %10 = vector.broadcast %cst_6 : f32 to vector<16x256xf32>
    %11 = arith.maximumf %9, %10 : vector<16x256xf32>
    %c0_7 = arith.constant 0 : index
    %c0_8 = arith.constant 0 : index
    %12 = vector.load %arg3[%c0_7, %c0_8] : memref<800x128xf32, #tpu.memory_space<vmem>>, vector<512x128xf32>
    %c0_9 = arith.constant 0 : index
    %c256 = arith.constant 256 : index
    %13 = vector.load %arg5[%c0_9, %c256] : memref<1x2688xf32, #tpu.memory_space<vmem>>, vector<1x128xf32>
    %cst_10 = arith.constant 0.000000e+00 : f32
    %14 = vector.broadcast %cst_10 : f32 to vector<2x256xf32>
    %15 = vector.extract_strided_slice %11 {offsets = [0, 0], sizes = [14, 256], strides = [1, 1]} : vector<16x256xf32> to vector<14x256xf32>
    %16 = tpu.concatenate %14, %15 in 0 : vector<2x256xf32>, vector<14x256xf32> -> vector<16x256xf32>
    %17 = tpu.concatenate %16, %11 in 1 : vector<16x256xf32>, vector<16x256xf32> -> vector<16x512xf32>
    %cst_11 = arith.constant dense<0.000000e+00> : vector<16x128xf32>
    %18 = tpu.matmul %17, %12, %cst_11 {dimension_numbers = #tpu.dot_dimension_numbers<[1], [0], [0], [1], [0, 0, 1, 1], [], []>} : vector<16x512xf32>, vector<512x128xf32>, vector<16x128xf32> -> vector<16x128xf32>
    %19 = vector.broadcast %13 : vector<1x128xf32> to vector<16x128xf32>
    %20 = arith.addf %18, %19 : vector<16x128xf32>
    %cst_12 = arith.constant 0.000000e+00 : f32
    %21 = vector.broadcast %cst_12 : f32 to vector<16x128xf32>
    %22 = arith.maximumf %20, %21 : vector<16x128xf32>
    %c0_13 = arith.constant 0 : index
    %c0_14 = arith.constant 0 : index
    %23 = vector.load %arg4[%c0_13, %c0_14] : memref<704x64xf32, #tpu.memory_space<vmem>>, vector<256x64xf32>
    %c0_15 = arith.constant 0 : index
    %c384 = arith.constant 384 : index
    %24 = vector.load %arg5[%c0_15, %c384] : memref<1x2688xf32, #tpu.memory_space<vmem>>, vector<1x64xf32>
    %cst_16 = arith.constant 0.000000e+00 : f32
    %25 = vector.broadcast %cst_16 : f32 to vector<2x128xf32>
    %26 = vector.extract_strided_slice %22 {offsets = [0, 0], sizes = [14, 128], strides = [1, 1]} : vector<16x128xf32> to vector<14x128xf32>
    %27 = tpu.concatenate %25, %26 in 0 : vector<2x128xf32>, vector<14x128xf32> -> vector<16x128xf32>
    %28 = tpu.concatenate %27, %22 in 1 : vector<16x128xf32>, vector<16x128xf32> -> vector<16x256xf32>
    %cst_17 = arith.constant dense<0.000000e+00> : vector<16x64xf32>
    %29 = tpu.matmul %28, %23, %cst_17 {dimension_numbers = #tpu.dot_dimension_numbers<[1], [0], [0], [1], [0, 0, 1, 1], [], []>} : vector<16x256xf32>, vector<256x64xf32>, vector<16x64xf32> -> vector<16x64xf32>
    %30 = vector.broadcast %24 : vector<1x64xf32> to vector<16x64xf32>
    %31 = arith.addf %29, %30 : vector<16x64xf32>
    %cst_18 = arith.constant 0.000000e+00 : f32
    %32 = vector.broadcast %cst_18 : f32 to vector<16x64xf32>
    %33 = arith.maximumf %31, %32 : vector<16x64xf32>
    %c256_19 = arith.constant 256 : index
    %c0_20 = arith.constant 0 : index
    %34 = vector.load %arg4[%c256_19, %c0_20] : memref<704x64xf32, #tpu.memory_space<vmem>>, vector<128x64xf32>
    %c0_21 = arith.constant 0 : index
    %c512 = arith.constant 512 : index
    %35 = vector.load %arg5[%c0_21, %c512] : memref<1x2688xf32, #tpu.memory_space<vmem>>, vector<1x64xf32>
    %cst_22 = arith.constant 0.000000e+00 : f32
    %36 = vector.broadcast %cst_22 : f32 to vector<2x64xf32>
    %37 = vector.extract_strided_slice %33 {offsets = [0, 0], sizes = [14, 64], strides = [1, 1]} : vector<16x64xf32> to vector<14x64xf32>
    %38 = tpu.concatenate %36, %37 in 0 : vector<2x64xf32>, vector<14x64xf32> -> vector<16x64xf32>
    %39 = tpu.concatenate %38, %33 in 1 : vector<16x64xf32>, vector<16x64xf32> -> vector<16x128xf32>
    %cst_23 = arith.constant dense<0.000000e+00> : vector<16x64xf32>
    %40 = tpu.matmul %39, %34, %cst_23 {dimension_numbers = #tpu.dot_dimension_numbers<[1], [0], [0], [1], [0, 0, 1, 1], [], []>} : vector<16x128xf32>, vector<128x64xf32>, vector<16x64xf32> -> vector<16x64xf32>
    %41 = vector.broadcast %35 : vector<1x64xf32> to vector<16x64xf32>
    %42 = arith.addf %40, %41 : vector<16x64xf32>
    %cst_24 = arith.constant 0.000000e+00 : f32
    %43 = vector.broadcast %cst_24 : f32 to vector<16x64xf32>
    %44 = arith.maximumf %42, %43 : vector<16x64xf32>
    %c0_25 = arith.constant 0 : index
    %c0_26 = arith.constant 0 : index
    %45 = vector.load %arg1[%c0_25, %c0_26] : memref<16x16xf32, #tpu.memory_space<vmem>>, vector<16x16xf32>
    %c512_27 = arith.constant 512 : index
    %c0_28 = arith.constant 0 : index
    %46 = vector.load %arg3[%c512_27, %c0_28] : memref<800x128xf32, #tpu.memory_space<vmem>>, vector<32x128xf32>
    %c0_29 = arith.constant 0 : index
    %c640 = arith.constant 640 : index
    %47 = vector.load %arg5[%c0_29, %c640] : memref<1x2688xf32, #tpu.memory_space<vmem>>, vector<1x128xf32>
    %cst_30 = arith.constant 0.000000e+00 : f32
    %48 = vector.broadcast %cst_30 : f32 to vector<2x16xf32>
    %49 = vector.extract_strided_slice %45 {offsets = [0, 0], sizes = [14, 16], strides = [1, 1]} : vector<16x16xf32> to vector<14x16xf32>
    %50 = tpu.concatenate %48, %49 in 0 : vector<2x16xf32>, vector<14x16xf32> -> vector<16x16xf32>
    %51 = tpu.concatenate %50, %45 in 1 : vector<16x16xf32>, vector<16x16xf32> -> vector<16x32xf32>
    %cst_31 = arith.constant dense<0.000000e+00> : vector<16x128xf32>
    %52 = tpu.matmul %51, %46, %cst_31 {dimension_numbers = #tpu.dot_dimension_numbers<[1], [0], [0], [1], [0, 0, 1, 1], [], []>} : vector<16x32xf32>, vector<32x128xf32>, vector<16x128xf32> -> vector<16x128xf32>
    %53 = vector.broadcast %47 : vector<1x128xf32> to vector<16x128xf32>
    %54 = arith.addf %52, %53 : vector<16x128xf32>
    %cst_32 = arith.constant 0.000000e+00 : f32
    %55 = vector.broadcast %cst_32 : f32 to vector<16x128xf32>
    %56 = arith.maximumf %54, %55 : vector<16x128xf32>
    %c384_33 = arith.constant 384 : index
    %c0_34 = arith.constant 0 : index
    %57 = vector.load %arg4[%c384_33, %c0_34] : memref<704x64xf32, #tpu.memory_space<vmem>>, vector<256x64xf32>
    %c0_35 = arith.constant 0 : index
    %c768 = arith.constant 768 : index
    %58 = vector.load %arg5[%c0_35, %c768] : memref<1x2688xf32, #tpu.memory_space<vmem>>, vector<1x64xf32>
    %cst_36 = arith.constant 0.000000e+00 : f32
    %59 = vector.broadcast %cst_36 : f32 to vector<2x128xf32>
    %60 = vector.extract_strided_slice %56 {offsets = [0, 0], sizes = [14, 128], strides = [1, 1]} : vector<16x128xf32> to vector<14x128xf32>
    %61 = tpu.concatenate %59, %60 in 0 : vector<2x128xf32>, vector<14x128xf32> -> vector<16x128xf32>
    %62 = tpu.concatenate %61, %56 in 1 : vector<16x128xf32>, vector<16x128xf32> -> vector<16x256xf32>
    %cst_37 = arith.constant dense<0.000000e+00> : vector<16x64xf32>
    %63 = tpu.matmul %62, %57, %cst_37 {dimension_numbers = #tpu.dot_dimension_numbers<[1], [0], [0], [1], [0, 0, 1, 1], [], []>} : vector<16x256xf32>, vector<256x64xf32>, vector<16x64xf32> -> vector<16x64xf32>
    %64 = vector.broadcast %58 : vector<1x64xf32> to vector<16x64xf32>
    %65 = arith.addf %63, %64 : vector<16x64xf32>
    %cst_38 = arith.constant 0.000000e+00 : f32
    %66 = vector.broadcast %cst_38 : f32 to vector<16x64xf32>
    %67 = arith.maximumf %65, %66 : vector<16x64xf32>
    %c0_39 = arith.constant 0 : index
    %c0_40 = arith.constant 0 : index
    %68 = vector.load %arg7[%c0_39, %c0_40] : memref<16x256xf32, #tpu.memory_space<vmem>>, vector<16x256xf32>
    tpu.vector_store %arg7[%c0_39, %c0_40], %11 {strides = array<i32>} : memref<16x256xf32, #tpu.memory_space<vmem>>, vector<16x256xf32>,
    %c0_41 = arith.constant 0 : index
    %c0_42 = arith.constant 0 : index
    %69 = vector.load %arg8[%c0_41, %c0_42] : memref<16x128xf32, #tpu.memory_space<vmem>>, vector<16x128xf32>
    tpu.vector_store %arg8[%c0_41, %c0_42], %22 {strides = array<i32>} : memref<16x128xf32, #tpu.memory_space<vmem>>, vector<16x128xf32>,
    %70 = tpu.concatenate %33, %44 in 1 : vector<16x64xf32>, vector<16x64xf32> -> vector<16x128xf32>
    %c0_43 = arith.constant 0 : index
    %c0_44 = arith.constant 0 : index
    %71 = vector.load %arg9[%c0_43, %c0_44] : memref<16x128xf32, #tpu.memory_space<vmem>>, vector<16x128xf32>
    tpu.vector_store %arg9[%c0_43, %c0_44], %70 {strides = array<i32>} : memref<16x128xf32, #tpu.memory_space<vmem>>, vector<16x128xf32>,
    %c0_45 = arith.constant 0 : index
    %c0_46 = arith.constant 0 : index
    %72 = vector.load %arg10[%c0_45, %c0_46] : memref<16x128xf32, #tpu.memory_space<vmem>>, vector<16x128xf32>
    tpu.vector_store %arg10[%c0_45, %c0_46], %56 {strides = array<i32>} : memref<16x128xf32, #tpu.memory_space<vmem>>, vector<16x128xf32>,
    %c640_47 = arith.constant 640 : index
    %c0_48 = arith.constant 0 : index
    %73 = vector.load %arg4[%c640_47, %c0_48] : memref<704x64xf32, #tpu.memory_space<vmem>>, vector<64x64xf32>
    %cst_49 = arith.constant dense<0.000000e+00> : vector<16x64xf32>
    %74 = tpu.matmul %67, %73, %cst_49 {dimension_numbers = #tpu.dot_dimension_numbers<[1], [0], [0], [1], [0, 0, 1, 1], [], []>} : vector<16x64xf32>, vector<64x64xf32>, vector<16x64xf32> -> vector<16x64xf32>
    %75 = arith.addf %44, %74 : vector<16x64xf32>
    %c0_50 = arith.constant 0 : index
    %c896 = arith.constant 896 : index
    %76 = vector.load %arg5[%c0_50, %c896] : memref<1x2688xf32, #tpu.memory_space<vmem>>, vector<1x64xf32>
    %77 = vector.broadcast %76 : vector<1x64xf32> to vector<16x64xf32>
    %78 = arith.addf %75, %77 : vector<16x64xf32>
    tpu.wait_dma2 semaphore(%arg14 : memref<!tpu.dma_semaphore, #tpu.memory_space<semaphore_mem>>) src(%arg6 : memref<320x768xbf16, #tpu.memory_space<any>>) dst(%arg13 : memref<320x768xbf16, #tpu.memory_space<vmem>>)
    %c0_51 = arith.constant 0 : index
    %c0_52 = arith.constant 0 : index
    %79 = vector.load %arg13[%c0_51, %c0_52] : memref<320x768xbf16, #tpu.memory_space<vmem>>, vector<64x768xbf16>
    %80 = arith.extf %79 : vector<64x768xbf16> to vector<64x768xf32>
    %c64 = arith.constant 64 : index
    %c0_53 = arith.constant 0 : index
    %81 = vector.load %arg13[%c64, %c0_53] : memref<320x768xbf16, #tpu.memory_space<vmem>>, vector<256x768xbf16>
    %82 = arith.extf %81 : vector<256x768xbf16> to vector<256x768xf32>
    %cst_54 = arith.constant dense<0.000000e+00> : vector<16x768xf32>
    %83 = tpu.matmul %78, %80, %cst_54 {dimension_numbers = #tpu.dot_dimension_numbers<[1], [0], [0], [1], [0, 0, 1, 1], [], []>} : vector<16x64xf32>, vector<64x768xf32>, vector<16x768xf32> -> vector<16x768xf32>
    %c0_55 = arith.constant 0 : index
    %c1024 = arith.constant 1024 : index
    %84 = vector.load %arg5[%c0_55, %c1024] : memref<1x2688xf32, #tpu.memory_space<vmem>>, vector<1x768xf32>
    %85 = vector.broadcast %84 : vector<1x768xf32> to vector<16x768xf32>
    %86 = arith.addf %83, %85 : vector<16x768xf32>
    %c0_56 = arith.constant 0 : index
    %c1792 = arith.constant 1792 : index
    %87 = vector.load %arg5[%c0_56, %c1792] : memref<1x2688xf32, #tpu.memory_space<vmem>>, vector<1x768xf32>
    %cst_57 = arith.constant 0.000000e+00 : f32
    %88 = vector.broadcast %cst_57 : f32 to vector<2x256xf32>
    %89 = vector.extract_strided_slice %86 {offsets = [0, 0], sizes = [2, 768], strides = [1, 1]} : vector<16x768xf32> to vector<2x768xf32>
    %cst_58 = arith.constant dense<0.000000e+00> : vector<2x768xf32>
    %90 = tpu.matmul %88, %82, %cst_58 {dimension_numbers = #tpu.dot_dimension_numbers<[1], [0], [0], [1], [0, 0, 1, 1], [], []>} : vector<2x256xf32>, vector<256x768xf32>, vector<2x768xf32> -> vector<2x768xf32>
    %91 = vector.broadcast %87 : vector<1x768xf32> to vector<2x768xf32>
    %92 = arith.addf %90, %91 : vector<2x768xf32>
    %93 = vector.extract_strided_slice %89 {offsets = [0, 0], sizes = [2, 256], strides = [1, 1]} : vector<2x768xf32> to vector<2x256xf32>
    %94 = vector.extract_strided_slice %92 {offsets = [0, 0], sizes = [2, 256], strides = [1, 1]} : vector<2x768xf32> to vector<2x256xf32>
    %95 = arith.addf %93, %94 : vector<2x256xf32>
    %96 = arith.negf %95 : vector<2x256xf32>
    %97 = math.exp %96 : vector<2x256xf32>
    %cst_59 = arith.constant 1.000000e+00 : f32
    %98 = vector.broadcast %cst_59 : f32 to vector<2x256xf32>
    %99 = arith.addf %98, %97 : vector<2x256xf32>
    %100 = arith.divf %98, %99 : vector<2x256xf32>
    %101 = vector.extract_strided_slice %89 {offsets = [0, 256], sizes = [2, 256], strides = [1, 1]} : vector<2x768xf32> to vector<2x256xf32>
    %102 = vector.extract_strided_slice %92 {offsets = [0, 256], sizes = [2, 256], strides = [1, 1]} : vector<2x768xf32> to vector<2x256xf32>
    %103 = arith.addf %101, %102 : vector<2x256xf32>
    %104 = arith.negf %103 : vector<2x256xf32>
    %105 = math.exp %104 : vector<2x256xf32>
    %cst_60 = arith.constant 1.000000e+00 : f32
    %106 = vector.broadcast %cst_60 : f32 to vector<2x256xf32>
    %107 = arith.addf %106, %105 : vector<2x256xf32>
    %108 = arith.divf %106, %107 : vector<2x256xf32>
    %109 = vector.extract_strided_slice %89 {offsets = [0, 512], sizes = [2, 256], strides = [1, 1]} : vector<2x768xf32> to vector<2x256xf32>
    %110 = vector.extract_strided_slice %92 {offsets = [0, 512], sizes = [2, 256], strides = [1, 1]} : vector<2x768xf32> to vector<2x256xf32>
    %111 = arith.mulf %100, %110 : vector<2x256xf32>
    %112 = arith.addf %109, %111 : vector<2x256xf32>
    %113 = math.tanh %112 : vector<2x256xf32>
    %cst_61 = arith.constant 1.000000e+00 : f32
    %114 = vector.broadcast %cst_61 : f32 to vector<2x256xf32>
    %115 = arith.subf %114, %108 : vector<2x256xf32>
    %116 = arith.mulf %115, %113 : vector<2x256xf32>
    %117 = arith.mulf %108, %88 : vector<2x256xf32>
    %118 = arith.addf %116, %117 : vector<2x256xf32>
    %119 = vector.extract_strided_slice %86 {offsets = [2, 0], sizes = [2, 768], strides = [1, 1]} : vector<16x768xf32> to vector<2x768xf32>
    %cst_62 = arith.constant dense<0.000000e+00> : vector<2x768xf32>
    %120 = tpu.matmul %118, %82, %cst_62 {dimension_numbers = #tpu.dot_dimension_numbers<[1], [0], [0], [1], [0, 0, 1, 1], [], []>} : vector<2x256xf32>, vector<256x768xf32>, vector<2x768xf32> -> vector<2x768xf32>
    %121 = vector.broadcast %87 : vector<1x768xf32> to vector<2x768xf32>
    %122 = arith.addf %120, %121 : vector<2x768xf32>
    %123 = vector.extract_strided_slice %119 {offsets = [0, 0], sizes = [2, 256], strides = [1, 1]} : vector<2x768xf32> to vector<2x256xf32>
    %124 = vector.extract_strided_slice %122 {offsets = [0, 0], sizes = [2, 256], strides = [1, 1]} : vector<2x768xf32> to vector<2x256xf32>
    %125 = arith.addf %123, %124 : vector<2x256xf32>
    %126 = arith.negf %125 : vector<2x256xf32>
    %127 = math.exp %126 : vector<2x256xf32>
    %cst_63 = arith.constant 1.000000e+00 : f32
    %128 = vector.broadcast %cst_63 : f32 to vector<2x256xf32>
    %129 = arith.addf %128, %127 : vector<2x256xf32>
    %130 = arith.divf %128, %129 : vector<2x256xf32>
    %131 = vector.extract_strided_slice %119 {offsets = [0, 256], sizes = [2, 256], strides = [1, 1]} : vector<2x768xf32> to vector<2x256xf32>
    %132 = vector.extract_strided_slice %122 {offsets = [0, 256], sizes = [2, 256], strides = [1, 1]} : vector<2x768xf32> to vector<2x256xf32>
    %133 = arith.addf %131, %132 : vector<2x256xf32>
    %134 = arith.negf %133 : vector<2x256xf32>
    %135 = math.exp %134 : vector<2x256xf32>
    %cst_64 = arith.constant 1.000000e+00 : f32
    %136 = vector.broadcast %cst_64 : f32 to vector<2x256xf32>
    %137 = arith.addf %136, %135 : vector<2x256xf32>
    %138 = arith.divf %136, %137 : vector<2x256xf32>
    %139 = vector.extract_strided_slice %119 {offsets = [0, 512], sizes = [2, 256], strides = [1, 1]} : vector<2x768xf32> to vector<2x256xf32>
    %140 = vector.extract_strided_slice %122 {offsets = [0, 512], sizes = [2, 256], strides = [1, 1]} : vector<2x768xf32> to vector<2x256xf32>
    %141 = arith.mulf %130, %140 : vector<2x256xf32>
    %142 = arith.addf %139, %141 : vector<2x256xf32>
    %143 = math.tanh %142 : vector<2x256xf32>
    %cst_65 = arith.constant 1.000000e+00 : f32
    %144 = vector.broadcast %cst_65 : f32 to vector<2x256xf32>
    %145 = arith.subf %144, %138 : vector<2x256xf32>
    %146 = arith.mulf %145, %143 : vector<2x256xf32>
    %147 = arith.mulf %138, %118 : vector<2x256xf32>
    %148 = arith.addf %146, %147 : vector<2x256xf32>
    %149 = vector.extract_strided_slice %86 {offsets = [4, 0], sizes = [2, 768], strides = [1, 1]} : vector<16x768xf32> to vector<2x768xf32>
    %cst_66 = arith.constant dense<0.000000e+00> : vector<2x768xf32>
    %150 = tpu.matmul %148, %82, %cst_66 {dimension_numbers = #tpu.dot_dimension_numbers<[1], [0], [0], [1], [0, 0, 1, 1], [], []>} : vector<2x256xf32>, vector<256x768xf32>, vector<2x768xf32> -> vector<2x768xf32>
    %151 = vector.broadcast %87 : vector<1x768xf32> to vector<2x768xf32>
    %152 = arith.addf %150, %151 : vector<2x768xf32>
    %153 = vector.extract_strided_slice %149 {offsets = [0, 0], sizes = [2, 256], strides = [1, 1]} : vector<2x768xf32> to vector<2x256xf32>
    %154 = vector.extract_strided_slice %152 {offsets = [0, 0], sizes = [2, 256], strides = [1, 1]} : vector<2x768xf32> to vector<2x256xf32>
    %155 = arith.addf %153, %154 : vector<2x256xf32>
    %156 = arith.negf %155 : vector<2x256xf32>
    %157 = math.exp %156 : vector<2x256xf32>
    %cst_67 = arith.constant 1.000000e+00 : f32
    %158 = vector.broadcast %cst_67 : f32 to vector<2x256xf32>
    %159 = arith.addf %158, %157 : vector<2x256xf32>
    %160 = arith.divf %158, %159 : vector<2x256xf32>
    %161 = vector.extract_strided_slice %149 {offsets = [0, 256], sizes = [2, 256], strides = [1, 1]} : vector<2x768xf32> to vector<2x256xf32>
    %162 = vector.extract_strided_slice %152 {offsets = [0, 256], sizes = [2, 256], strides = [1, 1]} : vector<2x768xf32> to vector<2x256xf32>
    %163 = arith.addf %161, %162 : vector<2x256xf32>
    %164 = arith.negf %163 : vector<2x256xf32>
    %165 = math.exp %164 : vector<2x256xf32>
    %cst_68 = arith.constant 1.000000e+00 : f32
    %166 = vector.broadcast %cst_68 : f32 to vector<2x256xf32>
    %167 = arith.addf %166, %165 : vector<2x256xf32>
    %168 = arith.divf %166, %167 : vector<2x256xf32>
    %169 = vector.extract_strided_slice %149 {offsets = [0, 512], sizes = [2, 256], strides = [1, 1]} : vector<2x768xf32> to vector<2x256xf32>
    %170 = vector.extract_strided_slice %152 {offsets = [0, 512], sizes = [2, 256], strides = [1, 1]} : vector<2x768xf32> to vector<2x256xf32>
    %171 = arith.mulf %160, %170 : vector<2x256xf32>
    %172 = arith.addf %169, %171 : vector<2x256xf32>
    %173 = math.tanh %172 : vector<2x256xf32>
    %cst_69 = arith.constant 1.000000e+00 : f32
    %174 = vector.broadcast %cst_69 : f32 to vector<2x256xf32>
    %175 = arith.subf %174, %168 : vector<2x256xf32>
    %176 = arith.mulf %175, %173 : vector<2x256xf32>
    %177 = arith.mulf %168, %148 : vector<2x256xf32>
    %178 = arith.addf %176, %177 : vector<2x256xf32>
    %179 = vector.extract_strided_slice %86 {offsets = [6, 0], sizes = [2, 768], strides = [1, 1]} : vector<16x768xf32> to vector<2x768xf32>
    %cst_70 = arith.constant dense<0.000000e+00> : vector<2x768xf32>
    %180 = tpu.matmul %178, %82, %cst_70 {dimension_numbers = #tpu.dot_dimension_numbers<[1], [0], [0], [1], [0, 0, 1, 1], [], []>} : vector<2x256xf32>, vector<256x768xf32>, vector<2x768xf32> -> vector<2x768xf32>
    %181 = vector.broadcast %87 : vector<1x768xf32> to vector<2x768xf32>
    %182 = arith.addf %180, %181 : vector<2x768xf32>
    %183 = vector.extract_strided_slice %179 {offsets = [0, 0], sizes = [2, 256], strides = [1, 1]} : vector<2x768xf32> to vector<2x256xf32>
    %184 = vector.extract_strided_slice %182 {offsets = [0, 0], sizes = [2, 256], strides = [1, 1]} : vector<2x768xf32> to vector<2x256xf32>
    %185 = arith.addf %183, %184 : vector<2x256xf32>
    %186 = arith.negf %185 : vector<2x256xf32>
    %187 = math.exp %186 : vector<2x256xf32>
    %cst_71 = arith.constant 1.000000e+00 : f32
    %188 = vector.broadcast %cst_71 : f32 to vector<2x256xf32>
    %189 = arith.addf %188, %187 : vector<2x256xf32>
    %190 = arith.divf %188, %189 : vector<2x256xf32>
    %191 = vector.extract_strided_slice %179 {offsets = [0, 256], sizes = [2, 256], strides = [1, 1]} : vector<2x768xf32> to vector<2x256xf32>
    %192 = vector.extract_strided_slice %182 {offsets = [0, 256], sizes = [2, 256], strides = [1, 1]} : vector<2x768xf32> to vector<2x256xf32>
    %193 = arith.addf %191, %192 : vector<2x256xf32>
    %194 = arith.negf %193 : vector<2x256xf32>
    %195 = math.exp %194 : vector<2x256xf32>
    %cst_72 = arith.constant 1.000000e+00 : f32
    %196 = vector.broadcast %cst_72 : f32 to vector<2x256xf32>
    %197 = arith.addf %196, %195 : vector<2x256xf32>
    %198 = arith.divf %196, %197 : vector<2x256xf32>
    %199 = vector.extract_strided_slice %179 {offsets = [0, 512], sizes = [2, 256], strides = [1, 1]} : vector<2x768xf32> to vector<2x256xf32>
    %200 = vector.extract_strided_slice %182 {offsets = [0, 512], sizes = [2, 256], strides = [1, 1]} : vector<2x768xf32> to vector<2x256xf32>
    %201 = arith.mulf %190, %200 : vector<2x256xf32>
    %202 = arith.addf %199, %201 : vector<2x256xf32>
    %203 = math.tanh %202 : vector<2x256xf32>
    %cst_73 = arith.constant 1.000000e+00 : f32
    %204 = vector.broadcast %cst_73 : f32 to vector<2x256xf32>
    %205 = arith.subf %204, %198 : vector<2x256xf32>
    %206 = arith.mulf %205, %203 : vector<2x256xf32>
    %207 = arith.mulf %198, %178 : vector<2x256xf32>
    %208 = arith.addf %206, %207 : vector<2x256xf32>
    %209 = vector.extract_strided_slice %86 {offsets = [8, 0], sizes = [2, 768], strides = [1, 1]} : vector<16x768xf32> to vector<2x768xf32>
    %cst_74 = arith.constant dense<0.000000e+00> : vector<2x768xf32>
    %210 = tpu.matmul %208, %82, %cst_74 {dimension_numbers = #tpu.dot_dimension_numbers<[1], [0], [0], [1], [0, 0, 1, 1], [], []>} : vector<2x256xf32>, vector<256x768xf32>, vector<2x768xf32> -> vector<2x768xf32>
    %211 = vector.broadcast %87 : vector<1x768xf32> to vector<2x768xf32>
    %212 = arith.addf %210, %211 : vector<2x768xf32>
    %213 = vector.extract_strided_slice %209 {offsets = [0, 0], sizes = [2, 256], strides = [1, 1]} : vector<2x768xf32> to vector<2x256xf32>
    %214 = vector.extract_strided_slice %212 {offsets = [0, 0], sizes = [2, 256], strides = [1, 1]} : vector<2x768xf32> to vector<2x256xf32>
    %215 = arith.addf %213, %214 : vector<2x256xf32>
    %216 = arith.negf %215 : vector<2x256xf32>
    %217 = math.exp %216 : vector<2x256xf32>
    %cst_75 = arith.constant 1.000000e+00 : f32
    %218 = vector.broadcast %cst_75 : f32 to vector<2x256xf32>
    %219 = arith.addf %218, %217 : vector<2x256xf32>
    %220 = arith.divf %218, %219 : vector<2x256xf32>
    %221 = vector.extract_strided_slice %209 {offsets = [0, 256], sizes = [2, 256], strides = [1, 1]} : vector<2x768xf32> to vector<2x256xf32>
    %222 = vector.extract_strided_slice %212 {offsets = [0, 256], sizes = [2, 256], strides = [1, 1]} : vector<2x768xf32> to vector<2x256xf32>
    %223 = arith.addf %221, %222 : vector<2x256xf32>
    %224 = arith.negf %223 : vector<2x256xf32>
    %225 = math.exp %224 : vector<2x256xf32>
    %cst_76 = arith.constant 1.000000e+00 : f32
    %226 = vector.broadcast %cst_76 : f32 to vector<2x256xf32>
    %227 = arith.addf %226, %225 : vector<2x256xf32>
    %228 = arith.divf %226, %227 : vector<2x256xf32>
    %229 = vector.extract_strided_slice %209 {offsets = [0, 512], sizes = [2, 256], strides = [1, 1]} : vector<2x768xf32> to vector<2x256xf32>
    %230 = vector.extract_strided_slice %212 {offsets = [0, 512], sizes = [2, 256], strides = [1, 1]} : vector<2x768xf32> to vector<2x256xf32>
    %231 = arith.mulf %220, %230 : vector<2x256xf32>
    %232 = arith.addf %229, %231 : vector<2x256xf32>
    %233 = math.tanh %232 : vector<2x256xf32>
    %cst_77 = arith.constant 1.000000e+00 : f32
    %234 = vector.broadcast %cst_77 : f32 to vector<2x256xf32>
    %235 = arith.subf %234, %228 : vector<2x256xf32>
    %236 = arith.mulf %235, %233 : vector<2x256xf32>
    %237 = arith.mulf %228, %208 : vector<2x256xf32>
    %238 = arith.addf %236, %237 : vector<2x256xf32>
    %239 = vector.extract_strided_slice %86 {offsets = [10, 0], sizes = [2, 768], strides = [1, 1]} : vector<16x768xf32> to vector<2x768xf32>
    %cst_78 = arith.constant dense<0.000000e+00> : vector<2x768xf32>
    %240 = tpu.matmul %238, %82, %cst_78 {dimension_numbers = #tpu.dot_dimension_numbers<[1], [0], [0], [1], [0, 0, 1, 1], [], []>} : vector<2x256xf32>, vector<256x768xf32>, vector<2x768xf32> -> vector<2x768xf32>
    %241 = vector.broadcast %87 : vector<1x768xf32> to vector<2x768xf32>
    %242 = arith.addf %240, %241 : vector<2x768xf32>
    %243 = vector.extract_strided_slice %239 {offsets = [0, 0], sizes = [2, 256], strides = [1, 1]} : vector<2x768xf32> to vector<2x256xf32>
    %244 = vector.extract_strided_slice %242 {offsets = [0, 0], sizes = [2, 256], strides = [1, 1]} : vector<2x768xf32> to vector<2x256xf32>
    %245 = arith.addf %243, %244 : vector<2x256xf32>
    %246 = arith.negf %245 : vector<2x256xf32>
    %247 = math.exp %246 : vector<2x256xf32>
    %cst_79 = arith.constant 1.000000e+00 : f32
    %248 = vector.broadcast %cst_79 : f32 to vector<2x256xf32>
    %249 = arith.addf %248, %247 : vector<2x256xf32>
    %250 = arith.divf %248, %249 : vector<2x256xf32>
    %251 = vector.extract_strided_slice %239 {offsets = [0, 256], sizes = [2, 256], strides = [1, 1]} : vector<2x768xf32> to vector<2x256xf32>
    %252 = vector.extract_strided_slice %242 {offsets = [0, 256], sizes = [2, 256], strides = [1, 1]} : vector<2x768xf32> to vector<2x256xf32>
    %253 = arith.addf %251, %252 : vector<2x256xf32>
    %254 = arith.negf %253 : vector<2x256xf32>
    %255 = math.exp %254 : vector<2x256xf32>
    %cst_80 = arith.constant 1.000000e+00 : f32
    %256 = vector.broadcast %cst_80 : f32 to vector<2x256xf32>
    %257 = arith.addf %256, %255 : vector<2x256xf32>
    %258 = arith.divf %256, %257 : vector<2x256xf32>
    %259 = vector.extract_strided_slice %239 {offsets = [0, 512], sizes = [2, 256], strides = [1, 1]} : vector<2x768xf32> to vector<2x256xf32>
    %260 = vector.extract_strided_slice %242 {offsets = [0, 512], sizes = [2, 256], strides = [1, 1]} : vector<2x768xf32> to vector<2x256xf32>
    %261 = arith.mulf %250, %260 : vector<2x256xf32>
    %262 = arith.addf %259, %261 : vector<2x256xf32>
    %263 = math.tanh %262 : vector<2x256xf32>
    %cst_81 = arith.constant 1.000000e+00 : f32
    %264 = vector.broadcast %cst_81 : f32 to vector<2x256xf32>
    %265 = arith.subf %264, %258 : vector<2x256xf32>
    %266 = arith.mulf %265, %263 : vector<2x256xf32>
    %267 = arith.mulf %258, %238 : vector<2x256xf32>
    %268 = arith.addf %266, %267 : vector<2x256xf32>
    %269 = vector.extract_strided_slice %86 {offsets = [12, 0], sizes = [2, 768], strides = [1, 1]} : vector<16x768xf32> to vector<2x768xf32>
    %cst_82 = arith.constant dense<0.000000e+00> : vector<2x768xf32>
    %270 = tpu.matmul %268, %82, %cst_82 {dimension_numbers = #tpu.dot_dimension_numbers<[1], [0], [0], [1], [0, 0, 1, 1], [], []>} : vector<2x256xf32>, vector<256x768xf32>, vector<2x768xf32> -> vector<2x768xf32>
    %271 = vector.broadcast %87 : vector<1x768xf32> to vector<2x768xf32>
    %272 = arith.addf %270, %271 : vector<2x768xf32>
    %273 = vector.extract_strided_slice %269 {offsets = [0, 0], sizes = [2, 256], strides = [1, 1]} : vector<2x768xf32> to vector<2x256xf32>
    %274 = vector.extract_strided_slice %272 {offsets = [0, 0], sizes = [2, 256], strides = [1, 1]} : vector<2x768xf32> to vector<2x256xf32>
    %275 = arith.addf %273, %274 : vector<2x256xf32>
    %276 = arith.negf %275 : vector<2x256xf32>
    %277 = math.exp %276 : vector<2x256xf32>
    %cst_83 = arith.constant 1.000000e+00 : f32
    %278 = vector.broadcast %cst_83 : f32 to vector<2x256xf32>
    %279 = arith.addf %278, %277 : vector<2x256xf32>
    %280 = arith.divf %278, %279 : vector<2x256xf32>
    %281 = vector.extract_strided_slice %269 {offsets = [0, 256], sizes = [2, 256], strides = [1, 1]} : vector<2x768xf32> to vector<2x256xf32>
    %282 = vector.extract_strided_slice %272 {offsets = [0, 256], sizes = [2, 256], strides = [1, 1]} : vector<2x768xf32> to vector<2x256xf32>
    %283 = arith.addf %281, %282 : vector<2x256xf32>
    %284 = arith.negf %283 : vector<2x256xf32>
    %285 = math.exp %284 : vector<2x256xf32>
    %cst_84 = arith.constant 1.000000e+00 : f32
    %286 = vector.broadcast %cst_84 : f32 to vector<2x256xf32>
    %287 = arith.addf %286, %285 : vector<2x256xf32>
    %288 = arith.divf %286, %287 : vector<2x256xf32>
    %289 = vector.extract_strided_slice %269 {offsets = [0, 512], sizes = [2, 256], strides = [1, 1]} : vector<2x768xf32> to vector<2x256xf32>
    %290 = vector.extract_strided_slice %272 {offsets = [0, 512], sizes = [2, 256], strides = [1, 1]} : vector<2x768xf32> to vector<2x256xf32>
    %291 = arith.mulf %280, %290 : vector<2x256xf32>
    %292 = arith.addf %289, %291 : vector<2x256xf32>
    %293 = math.tanh %292 : vector<2x256xf32>
    %cst_85 = arith.constant 1.000000e+00 : f32
    %294 = vector.broadcast %cst_85 : f32 to vector<2x256xf32>
    %295 = arith.subf %294, %288 : vector<2x256xf32>
    %296 = arith.mulf %295, %293 : vector<2x256xf32>
    %297 = arith.mulf %288, %268 : vector<2x256xf32>
    %298 = arith.addf %296, %297 : vector<2x256xf32>
    %299 = vector.extract_strided_slice %86 {offsets = [14, 0], sizes = [2, 768], strides = [1, 1]} : vector<16x768xf32> to vector<2x768xf32>
    %cst_86 = arith.constant dense<0.000000e+00> : vector<2x768xf32>
    %300 = tpu.matmul %298, %82, %cst_86 {dimension_numbers = #tpu.dot_dimension_numbers<[1], [0], [0], [1], [0, 0, 1, 1], [], []>} : vector<2x256xf32>, vector<256x768xf32>, vector<2x768xf32> -> vector<2x768xf32>
    %301 = vector.broadcast %87 : vector<1x768xf32> to vector<2x768xf32>
    %302 = arith.addf %300, %301 : vector<2x768xf32>
    %303 = vector.extract_strided_slice %299 {offsets = [0, 0], sizes = [2, 256], strides = [1, 1]} : vector<2x768xf32> to vector<2x256xf32>
    %304 = vector.extract_strided_slice %302 {offsets = [0, 0], sizes = [2, 256], strides = [1, 1]} : vector<2x768xf32> to vector<2x256xf32>
    %305 = arith.addf %303, %304 : vector<2x256xf32>
    %306 = arith.negf %305 : vector<2x256xf32>
    %307 = math.exp %306 : vector<2x256xf32>
    %cst_87 = arith.constant 1.000000e+00 : f32
    %308 = vector.broadcast %cst_87 : f32 to vector<2x256xf32>
    %309 = arith.addf %308, %307 : vector<2x256xf32>
    %310 = arith.divf %308, %309 : vector<2x256xf32>
    %311 = vector.extract_strided_slice %299 {offsets = [0, 256], sizes = [2, 256], strides = [1, 1]} : vector<2x768xf32> to vector<2x256xf32>
    %312 = vector.extract_strided_slice %302 {offsets = [0, 256], sizes = [2, 256], strides = [1, 1]} : vector<2x768xf32> to vector<2x256xf32>
    %313 = arith.addf %311, %312 : vector<2x256xf32>
    %314 = arith.negf %313 : vector<2x256xf32>
    %315 = math.exp %314 : vector<2x256xf32>
    %cst_88 = arith.constant 1.000000e+00 : f32
    %316 = vector.broadcast %cst_88 : f32 to vector<2x256xf32>
    %317 = arith.addf %316, %315 : vector<2x256xf32>
    %318 = arith.divf %316, %317 : vector<2x256xf32>
    %319 = vector.extract_strided_slice %299 {offsets = [0, 512], sizes = [2, 256], strides = [1, 1]} : vector<2x768xf32> to vector<2x256xf32>
    %320 = vector.extract_strided_slice %302 {offsets = [0, 512], sizes = [2, 256], strides = [1, 1]} : vector<2x768xf32> to vector<2x256xf32>
    %321 = arith.mulf %310, %320 : vector<2x256xf32>
    %322 = arith.addf %319, %321 : vector<2x256xf32>
    %323 = math.tanh %322 : vector<2x256xf32>
    %cst_89 = arith.constant 1.000000e+00 : f32
    %324 = vector.broadcast %cst_89 : f32 to vector<2x256xf32>
    %325 = arith.subf %324, %318 : vector<2x256xf32>
    %326 = arith.mulf %325, %323 : vector<2x256xf32>
    %327 = arith.mulf %318, %298 : vector<2x256xf32>
    %328 = arith.addf %326, %327 : vector<2x256xf32>
    %329 = tpu.concatenate %118, %148, %178, %208, %238, %268, %298, %328 in 0 : vector<2x256xf32>, vector<2x256xf32>, vector<2x256xf32>, vector<2x256xf32>, vector<2x256xf32>, vector<2x256xf32>, vector<2x256xf32>, vector<2x256xf32> -> vector<16x256xf32>
    %c0_90 = arith.constant 0 : index
    %c0_91 = arith.constant 0 : index
    %330 = vector.load %arg11[%c0_90, %c0_91] : memref<16x256xf32, #tpu.memory_space<vmem>>, vector<16x256xf32>
    tpu.vector_store %arg11[%c0_90, %c0_91], %329 {strides = array<i32>} : memref<16x256xf32, #tpu.memory_space<vmem>>, vector<16x256xf32>,
    %c544 = arith.constant 544 : index
    %c0_92 = arith.constant 0 : index
    %331 = vector.load %arg3[%c544, %c0_92] : memref<800x128xf32, #tpu.memory_space<vmem>>, vector<256x128xf32>
    %cst_93 = arith.constant dense<0.000000e+00> : vector<16x128xf32>
    %332 = tpu.matmul %329, %331, %cst_93 {dimension_numbers = #tpu.dot_dimension_numbers<[1], [0], [0], [1], [0, 0, 1, 1], [], []>} : vector<16x256xf32>, vector<256x128xf32>, vector<16x128xf32> -> vector<16x128xf32>
    %c0_94 = arith.constant 0 : index
    %c2560 = arith.constant 2560 : index
    %333 = vector.load %arg5[%c0_94, %c2560] : memref<1x2688xf32, #tpu.memory_space<vmem>>, vector<1x128xf32>
    %334 = vector.broadcast %333 : vector<1x128xf32> to vector<16x128xf32>
    %335 = arith.addf %332, %334 : vector<16x128xf32>
    %336 = arith.negf %335 : vector<16x128xf32>
    %337 = math.exp %336 : vector<16x128xf32>
    %cst_95 = arith.constant 1.000000e+00 : f32
    %338 = vector.broadcast %cst_95 : f32 to vector<16x128xf32>
    %339 = arith.addf %338, %337 : vector<16x128xf32>
    %340 = arith.divf %338, %339 : vector<16x128xf32>
    %cst_96 = arith.constant 5.000000e+01 : f32
    %341 = vector.broadcast %cst_96 : f32 to vector<16x128xf32>
    %342 = arith.mulf %340, %341 : vector<16x128xf32>
    %cst_97 = arith.constant -1.500000e+01 : f32
    %343 = vector.broadcast %cst_97 : f32 to vector<16x128xf32>
    %344 = arith.addf %342, %343 : vector<16x128xf32>
    %c0_98 = arith.constant 0 : index
    %c0_99 = arith.constant 0 : index
    %345 = vector.load %arg12[%c0_98, %c0_99] : memref<16x128xf32, #tpu.memory_space<vmem>>, vector<16x128xf32>
    tpu.vector_store %arg12[%c0_98, %c0_99], %344 {strides = array<i32>} : memref<16x128xf32, #tpu.memory_space<vmem>>, vector<16x128xf32>,
    return
  }
}

</mosaic_0001>

<bundles_post_ra>
// kernel: encoder_forward.1
= control target key start
LH: loop header
LB: loop body
LE: loop exit
PB: predicated region body
PF: predicated region fallthrough
CT: control target
= control target key end

     0   :  { %18 = vsyncpa [#allocation5], 0  ;;  %s4905_s21 = smov [#allocation4]   ;;  %s8506_s0 = inlined_call_operand.vmem [shape: f32[16,16], index: 0, kind: input, shape index: {}]   ;;  %s8507_s1 = inlined_call_operand.vmem [shape: f32[16,16], index: 1, kind: input, shape index: {}]   ;;  %s8508_s2 = inlined_call_operand.vmem [shape: f32[32,256], index: 2, kind: input, shape index: {}]   ;;  %s8509_s3 = inlined_call_operand.hbm [shape: f32[800,128], index: 3, kind: input, shape index: {}]   ;;  %s8510_s4 = inlined_call_operand.vmem [shape: f32[704,64], index: 4, kind: input, shape index: {}]   ;;  %s8511_s5 = inlined_call_operand.vmem [shape: f32[1,2688], index: 5, kind: input, shape index: {}]   ;;  %s8512_s6 = inlined_call_operand.vmem [shape: bf16[320,768], index: 6, kind: input, shape index: {}]   ;;  %s8513_s7 = inlined_call_operand.vmem [shape: f32[16,256], index: 7, kind: output, shape index: {0}]   ;;  %s8514_s8 = inlined_call_operand.vmem [shape: f32[16,128], index: 8, kind: output, shape index: {1}]   ;;  %s8515_s9 = inlined_call_operand.vmem [shape: f32[16,128], index: 9, kind: output, shape index: {2}]   ;;  %s8516_s10 = inlined_call_operand.vmem [shape: f32[16,128], index: 10, kind: output, shape index: {3}]   ;;  %s8517_s11 = inlined_call_operand.vmem [shape: f32[16,256], index: 11, kind: output, shape index: {4}]   ;;  %s8518_s12 = inlined_call_operand.vmem [shape: f32[16,128], index: 12, kind: output, shape index: {5}]  }
   0x1   :  { %s30_s22 = sshll.u32 %s4905_s21, 4  ;;  %s31_s22 = int_to_ptr.vmem [resolvable:$true] %s30_s22 }
   0x2   :  { %s4889_s23 = scalar_lea.vmem %s31_s22, 12800  ;;  %p4894_p1 = scmp.lt.s32.totalorder %s31_s22, %s31_s22 }
   0x3   :  { %p4890_p0 = scmp.ne.s32.totalorder %s31_s22, %s4889_s23  ;;  %p4895_p2 = scmp.lt.s32.totalorder %s4889_s23, %s4889_s23 }
   0x5   :  { %p4896_p3 = por %p4895_p2, %p4894_p1 }
   0x7   :  { %p4897_p4 = pnand %p4896_p3, %p4890_p0 }
   0x9   :  { %4900 = shalt.err (!%p4897_p4)
}
   0xa   :  { %s4906_s24 = smov 128   ;;  %s4907_s25 = smov 8  }
   0xb   :  { %36 = dma.hbm_to_vmem [thread:$0]  %s8509_s3, 12800, %s31_s22, [#allocation5], %s4906_s24, %s4906_s24, %s4907_s25  }
   0xc   :  { %4901 = dma.done.wait [#allocation5], 12800  }
   0xd   :  { %4902 = vsyncadd [#allocation5], 4294954496  ;;  %v4982_v0 = vld [vmem:[%s8512_s6] sm:$0xff]  ;;  %v4987_v1 = vld [vmem:[%s8512_s6 + $0x8] sm:$0xff] }
   0xe   :  { %v4992_v2 = vld [vmem:[%s8512_s6 + $0x10] sm:$0xff]  ;;  %v4997_v3 = vld [vmem:[%s8512_s6 + $0x18] sm:$0xff]  ;;  %v5002_v4 = vld [vmem:[%s8512_s6 + $0x20] sm:$0xff] }
   0xf   :  { %9013 = vst [vmem:[#allocation9_spill] sm:$0xff] %v4992_v2  ;;  %v5007_v5 = vld [vmem:[%s8512_s6 + $0x28] sm:$0xff]  ;;  %v5012_v6 = vld [vmem:[%s8512_s6 + $0x30] sm:$0xff]  ;;  %v5017_v7 = vld [vmem:[%s8512_s6 + $0x38] sm:$0xff] }
  0x10   :  { %9014 = vst [vmem:[#allocation10_spill] sm:$0xff] %v5007_v5  ;;  %v5022_v8 = vld [vmem:[%s8512_s6 + $0x40] sm:$0xff]  ;;  %v5027_v9 = vld [vmem:[%s8512_s6 + $0x48] sm:$0xff]  ;;  %v5032_v10 = vld [vmem:[%s8512_s6 + $0x50] sm:$0xff] }
  0x11   :  { %9015 = vst [vmem:[#allocation11_spill] sm:$0xff] %v5022_v8  ;;  %v5037_v11 = vld [vmem:[%s8512_s6 + $0x58] sm:$0xff]  ;;  %v5042_v12 = vld [vmem:[%s8512_s6 + $0x60] sm:$0xff]  ;;  %v5047_v13 = vld [vmem:[%s8512_s6 + $0x68] sm:$0xff] }
  0x12   :  { %9016 = vst [vmem:[#allocation12_spill] sm:$0xff] %v5037_v11  ;;  %v5052_v14 = vld [vmem:[%s8512_s6 + $0x70] sm:$0xff]  ;;  %v5057_v15 = vld [vmem:[%s8512_s6 + $0x78] sm:$0xff]  ;;  %v5062_v16 = vld [vmem:[%s8512_s6 + $0x80] sm:$0xff] }
  0x13   :  { %v5067_v17 = vld [vmem:[%s8512_s6 + $0x88] sm:$0xff]  ;;  %v5072_v18 = vld [vmem:[%s8512_s6 + $0x90] sm:$0xff]  ;;  %v5077_v19 = vld [vmem:[%s8512_s6 + $0x98] sm:$0xff] }
  0x14   :  { %v5082_v20 = vld [vmem:[%s8512_s6 + $0xa0] sm:$0xff]  ;;  %v5087_v21 = vld [vmem:[%s8512_s6 + $0xa8] sm:$0xff]  ;;  %v5092_v22 = vld [vmem:[%s8512_s6 + $0xb0] sm:$0xff] }
  0x15   :  { %v5097_v23 = vld [vmem:[%s8512_s6 + $0xb8] sm:$0xff]  ;;  %v5102_v24 = vld [vmem:[%s8512_s6 + $0xc0] sm:$0xff]  ;;  %v5107_v25 = vld [vmem:[%s8512_s6 + $0xc8] sm:$0xff] }
  0x16   :  { %9017 = vst [vmem:[#allocation13_spill] sm:$0xff] %v5107_v25  ;;  %v5112_v26 = vld [vmem:[%s8512_s6 + $0xd0] sm:$0xff]  ;;  %v5117_v27 = vld [vmem:[%s8512_s6 + $0xd8] sm:$0xff]  ;;  %v5122_v28 = vld [vmem:[%s8512_s6 + $0xe0] sm:$0xff] }
  0x17   :  { %9018 = vst [vmem:[#allocation14_spill] sm:$0xff] %v5112_v26  ;;  %9019 = vst [vmem:[#allocation15_spill] sm:$0xff] %v5122_v28  ;;  %v5127_v29 = vld [vmem:[%s8512_s6 + $0xe8] sm:$0xff]  ;;  %v5132_v30 = vld [vmem:[%s8512_s6 + $0xf0] sm:$0xff] }
  0x18   :  { %9020 = vst [vmem:[#allocation16_spill] sm:$0xff] %v5127_v29  ;;  %v5137_v31 = vld [vmem:[%s8512_s6 + $0xf8] sm:$0xff]  ;;  %v5142_v32 = vld [vmem:[%s8512_s6 + $0x100] sm:$0xff]  ;;  %v5147_v33 = vld [vmem:[%s8512_s6 + $0x108] sm:$0xff] }
  0x19   :  { %9021 = vst [vmem:[#allocation17_spill] sm:$0xff] %v5137_v31  ;;  %9022 = vst [vmem:[#allocation18_spill] sm:$0xff] %v5142_v32  ;;  %v5152_v34 = vld [vmem:[%s8512_s6 + $0x110] sm:$0xff]  ;;  %v5157_v35 = vld [vmem:[%s8512_s6 + $0x118] sm:$0xff] }
  0x1a   :  { %9023 = vst [vmem:[#allocation19_spill] sm:$0xff] %v5152_v34  ;;  %9024 = vst [vmem:[#allocation20_spill] sm:$0xff] %v5157_v35  ;;  %v5162_v36 = vld [vmem:[%s8512_s6 + $0x120] sm:$0xff]  ;;  %v5167_v37 = vld [vmem:[%s8512_s6 + $0x128] sm:$0xff] }
  0x1b   :  { %9025 = vst [vmem:[#allocation21_spill] sm:$0xff] %v5167_v37  ;;  %v5172_v38 = vld [vmem:[%s8512_s6 + $0x130] sm:$0xff]  ;;  %v5177_v39 = vld [vmem:[%s8512_s6 + $0x138] sm:$0xff]  ;;  %v5182_v40 = vld [vmem:[%s8512_s6 + $0x140] sm:$0xff] }
  0x1c   :  { %9026 = vst [vmem:[#allocation22_spill] sm:$0xff] %v5172_v38  ;;  %9027 = vst [vmem:[#allocation23_spill] sm:$0xff] %v5182_v40  ;;  %v5187_v41 = vld [vmem:[%s8512_s6 + $0x148] sm:$0xff]  ;;  %v5192_v42 = vld [vmem:[%s8512_s6 + $0x150] sm:$0xff] }
  0x1d   :  { %9028 = vst [vmem:[#allocation24_spill] sm:$0xff] %v5187_v41  ;;  %v5197_v43 = vld [vmem:[%s8512_s6 + $0x158] sm:$0xff]  ;;  %v5202_v44 = vld [vmem:[%s8512_s6 + $0x160] sm:$0xff]  ;;  %v5207_v45 = vld [vmem:[%s8512_s6 + $0x168] sm:$0xff] }
  0x1e   :  { %9029 = vst [vmem:[#allocation25_spill] sm:$0xff] %v5197_v43  ;;  %9030 = vst [vmem:[#allocation26_spill] sm:$0xff] %v5202_v44  ;;  %v5212_v46 = vld [vmem:[%s8512_s6 + $0x170] sm:$0xff]  ;;  %v5217_v47 = vld [vmem:[%s8512_s6 + $0x178] sm:$0xff] }
  0x1f   :  { %9031 = vst [vmem:[#allocation27_spill] sm:$0xff] %v5212_v46  ;;  %9032 = vst [vmem:[#allocation28_spill] sm:$0xff] %v5217_v47  ;;  %v5222_v48 = vld [vmem:[%s8512_s6 + $0x180] sm:$0xff]  ;;  %v5227_v49 = vld [vmem:[%s8512_s6 + $0x188] sm:$0xff] }
  0x20   :  { %9033 = vst [vmem:[#allocation29_spill] sm:$0xff] %v5227_v49  ;;  %v5232_v50 = vld [vmem:[%s8512_s6 + $0x190] sm:$0xff]  ;;  %v5237_v51 = vld [vmem:[%s8512_s6 + $0x198] sm:$0xff]  ;;  %v5242_v52 = vld [vmem:[%s8512_s6 + $0x1a0] sm:$0xff] }
  0x21   :  { %9034 = vst [vmem:[#allocation30_spill] sm:$0xff] %v5232_v50  ;;  %9035 = vst [vmem:[#allocation31_spill] sm:$0xff] %v5242_v52  ;;  %v5247_v53 = vld [vmem:[%s8512_s6 + $0x1a8] sm:$0xff]  ;;  %v5252_v54 = vld [vmem:[%s8512_s6 + $0x1b0] sm:$0xff] }
  0x22   :  { %9036 = vst [vmem:[#allocation32_spill] sm:$0xff] %v5247_v53  ;;  %v5257_v55 = vld [vmem:[%s8512_s6 + $0x1b8] sm:$0xff]  ;;  %v5262_v56 = vld [vmem:[%s8512_s6 + $0x1c0] sm:$0xff]  ;;  %v5267_v57 = vld [vmem:[%s8512_s6 + $0x1c8] sm:$0xff] }
  0x23   :  { %9037 = vst [vmem:[#allocation33_spill] sm:$0xff] %v5257_v55  ;;  %9038 = vst [vmem:[#allocation34_spill] sm:$0xff] %v5262_v56  ;;  %v5272_v58 = vld [vmem:[%s8512_s6 + $0x1d0] sm:$0xff]  ;;  %v5277_v59 = vld [vmem:[%s8512_s6 + $0x1d8] sm:$0xff] }
  0x24   :  { %9039 = vst [vmem:[#allocation35_spill] sm:$0xff] %v5272_v58  ;;  %9040 = vst [vmem:[#allocation36_spill] sm:$0xff] %v5277_v59  ;;  %v5282_v60 = vld [vmem:[%s8512_s6 + $0x1e0] sm:$0xff]  ;;  %v5287_v61 = vld [vmem:[%s8512_s6 + $0x1e8] sm:$0xff] }
  0x25   :  { %9041 = vst [vmem:[#allocation37_spill] sm:$0xff] %v5287_v61  ;;  %v5292_v62 = vld [vmem:[%s8512_s6 + $0x1f0] sm:$0xff]  ;;  %v5297_v63 = vld [vmem:[%s8512_s6 + $0x1f8] sm:$0xff]  ;;  %v5302_v26 = vld [vmem:[%s8512_s6 + $0x200] sm:$0xff] }
  0x26   :  { %9042 = vst [vmem:[#allocation38_spill] sm:$0xff] %v5292_v62  ;;  %9043 = vst [vmem:[#allocation39_spill] sm:$0xff] %v5302_v26  ;;  %v5307_v29 = vld [vmem:[%s8512_s6 + $0x208] sm:$0xff]  ;;  %v5312_v32 = vld [vmem:[%s8512_s6 + $0x210] sm:$0xff] }
  0x27   :  { %9044 = vst [vmem:[#allocation40_spill] sm:$0xff] %v5307_v29  ;;  %v5317_v35 = vld [vmem:[%s8512_s6 + $0x218] sm:$0xff]  ;;  %v5322_v38 = vld [vmem:[%s8512_s6 + $0x220] sm:$0xff]  ;;  %v5327_v41 = vld [vmem:[%s8512_s6 + $0x228] sm:$0xff] }
  0x28   :  { %9045 = vst [vmem:[#allocation41_spill] sm:$0xff] %v5317_v35  ;;  %9046 = vst [vmem:[#allocation42_spill] sm:$0xff] %v5322_v38  ;;  %v5332_v44 = vld [vmem:[%s8512_s6 + $0x230] sm:$0xff]  ;;  %v5337_v47 = vld [vmem:[%s8512_s6 + $0x238] sm:$0xff] }
  0x29   :  { %9047 = vst [vmem:[#allocation43_spill] sm:$0xff] %v5332_v44  ;;  %9048 = vst [vmem:[#allocation44_spill] sm:$0xff] %v5337_v47  ;;  %v5342_v50 = vld [vmem:[%s8512_s6 + $0x240] sm:$0xff]  ;;  %v5347_v25 = vld [vmem:[%s8512_s6 + $0x248] sm:$0xff] }
  0x2a   :  { %9049 = vst [vmem:[#allocation45_spill] sm:$0xff] %v5342_v50  ;;  %9050 = vst [vmem:[#allocation46_spill] sm:$0xff] %v5347_v25  ;;  %v5352_v53 = vld [vmem:[%s8512_s6 + $0x250] sm:$0xff]  ;;  %v5357_v28 = vld [vmem:[%s8512_s6 + $0x258] sm:$0xff] }
  0x2b   :  { %9051 = vst [vmem:[#allocation47_spill] sm:$0xff] %v5352_v53  ;;  %9052 = vst [vmem:[#allocation48_spill] sm:$0xff] %v5357_v28  ;;  %v5362_v56 = vld [vmem:[%s8512_s6 + $0x260] sm:$0xff]  ;;  %v5367_v31 = vld [vmem:[%s8512_s6 + $0x268] sm:$0xff] }
  0x2c   :  { %9053 = vst [vmem:[#allocation49_spill] sm:$0xff] %v5362_v56  ;;  %9054 = vst [vmem:[#allocation50_spill] sm:$0xff] %v5367_v31  ;;  %v5372_v25 = vld [vmem:[%s8512_s6 + $0x270] sm:$0xff]  ;;  %v5377_v53 = vld [vmem:[%s8512_s6 + $0x278] sm:$0xff] }
  0x2d   :  { %9055 = vst [vmem:[#allocation51_spill] sm:$0xff] %v5372_v25  ;;  %9056 = vst [vmem:[#allocation52_spill] sm:$0xff] %v5377_v53  ;;  %v5382_v59 = vld [vmem:[%s8512_s6 + $0x280] sm:$0xff]  ;;  %v5387_v56 = vld [vmem:[%s8512_s6 + $0x288] sm:$0xff] }
  0x2e   :  { %9057 = vst [vmem:[#allocation53_spill] sm:$0xff] %v5382_v59  ;;  %9058 = vst [vmem:[#allocation54_spill] sm:$0xff] %v5387_v56  ;;  %v5392_v31 = vld [vmem:[%s8512_s6 + $0x290] sm:$0xff]  ;;  %v5397_v34 = vld [vmem:[%s8512_s6 + $0x298] sm:$0xff] }
  0x2f   :  { %9059 = vst [vmem:[#allocation55_spill] sm:$0xff] %v5392_v31  ;;  %9060 = vst [vmem:[#allocation56_spill] sm:$0xff] %v5397_v34  ;;  %v5402_v53 = vld [vmem:[%s8512_s6 + $0x2a0] sm:$0xff]  ;;  %v5407_v59 = vld [vmem:[%s8512_s6 + $0x2a8] sm:$0xff] }
  0x30   :  { %9061 = vst [vmem:[#allocation57_spill] sm:$0xff] %v5402_v53  ;;  %9062 = vst [vmem:[#allocation58_spill] sm:$0xff] %v5407_v59  ;;  %v5412_v62 = vld [vmem:[%s8512_s6 + $0x2b0] sm:$0xff]  ;;  %v5417_v31 = vld [vmem:[%s8512_s6 + $0x2b8] sm:$0xff] }
  0x31   :  { %9063 = vst [vmem:[#allocation59_spill] sm:$0xff] %v5412_v62  ;;  %9064 = vst [vmem:[#allocation60_spill] sm:$0xff] %v5417_v31  ;;  %v5422_v34 = vld [vmem:[%s8512_s6 + $0x2c0] sm:$0xff]  ;;  %v5427_v37 = vld [vmem:[%s8512_s6 + $0x2c8] sm:$0xff] }
  0x32   :  { %9065 = vst [vmem:[#allocation61_spill] sm:$0xff] %v5422_v34  ;;  %9066 = vst [vmem:[#allocation62_spill] sm:$0xff] %v5427_v37  ;;  %v5432_v59 = vld [vmem:[%s8512_s6 + $0x2d0] sm:$0xff]  ;;  %v5437_v62 = vld [vmem:[%s8512_s6 + $0x2d8] sm:$0xff] }
  0x33   :  { %9067 = vst [vmem:[#allocation63_spill] sm:$0xff] %v5432_v59  ;;  %9068 = vst [vmem:[#allocation64_spill] sm:$0xff] %v5437_v62  ;;  %v5442_v29 = vld [vmem:[%s8512_s6 + $0x2e0] sm:$0xff]  ;;  %v5447_v34 = vld [vmem:[%s8512_s6 + $0x2e8] sm:$0xff] }
  0x34   :  { %9069 = vst [vmem:[#allocation65_spill] sm:$0xff] %v5442_v29  ;;  %9070 = vst [vmem:[#allocation66_spill] sm:$0xff] %v5447_v34  ;;  %v5452_v37 = vld [vmem:[%s8512_s6 + $0x2f0] sm:$0xff]  ;;  %v5457_v40 = vld [vmem:[%s8512_s6 + $0x2f8] sm:$0xff] }
  0x35   :  { %9071 = vst [vmem:[#allocation67_spill] sm:$0xff] %v5452_v37  ;;  %9072 = vst [vmem:[#allocation68_spill] sm:$0xff] %v5457_v40  ;;  %v5462_v62 = vld [vmem:[%s8512_s6 + $0x300] sm:$0xff]  ;;  %v5467_v29 = vld [vmem:[%s8512_s6 + $0x308] sm:$0xff] }
  0x36   :  { %9073 = vst [vmem:[#allocation69_spill] sm:$0xff] %v5462_v62  ;;  %9074 = vst [vmem:[#allocation70_spill] sm:$0xff] %v5467_v29  ;;  %v5472_v38 = vld [vmem:[%s8512_s6 + $0x310] sm:$0xff]  ;;  %v5477_v37 = vld [vmem:[%s8512_s6 + $0x318] sm:$0xff] }
  0x37   :  { %9075 = vst [vmem:[#allocation71_spill] sm:$0xff] %v5472_v38  ;;  %9076 = vst [vmem:[#allocation72_spill] sm:$0xff] %v5477_v37  ;;  %v5482_v40 = vld [vmem:[%s8512_s6 + $0x320] sm:$0xff]  ;;  %v5487_v43 = vld [vmem:[%s8512_s6 + $0x328] sm:$0xff] }
  0x38   :  { %9077 = vst [vmem:[#allocation73_spill] sm:$0xff] %v5482_v40  ;;  %9078 = vst [vmem:[#allocation74_spill] sm:$0xff] %v5487_v43  ;;  %v5492_v29 = vld [vmem:[%s8512_s6 + $0x330] sm:$0xff]  ;;  %v5497_v38 = vld [vmem:[%s8512_s6 + $0x338] sm:$0xff] }
  0x39   :  { %9079 = vst [vmem:[#allocation75_spill] sm:$0xff] %v5492_v29  ;;  %9080 = vst [vmem:[#allocation76_spill] sm:$0xff] %v5497_v38  ;;  %v5502_v47 = vld [vmem:[%s8512_s6 + $0x340] sm:$0xff]  ;;  %v5507_v40 = vld [vmem:[%s8512_s6 + $0x348] sm:$0xff] }
  0x3a   :  { %9081 = vst [vmem:[#allocation77_spill] sm:$0xff] %v5502_v47  ;;  %9082 = vst [vmem:[#allocation78_spill] sm:$0xff] %v5507_v40  ;;  %v5512_v43 = vld [vmem:[%s8512_s6 + $0x350] sm:$0xff]  ;;  %v5517_v46 = vld [vmem:[%s8512_s6 + $0x358] sm:$0xff] }
  0x3b   :  { %9083 = vst [vmem:[#allocation79_spill] sm:$0xff] %v5512_v43  ;;  %9084 = vst [vmem:[#allocation80_spill] sm:$0xff] %v5517_v46  ;;  %v5522_v38 = vld [vmem:[%s8512_s6 + $0x360] sm:$0xff]  ;;  %v5527_v47 = vld [vmem:[%s8512_s6 + $0x368] sm:$0xff] }
  0x3c   :  { %9085 = vst [vmem:[#allocation81_spill] sm:$0xff] %v5522_v38  ;;  %9086 = vst [vmem:[#allocation82_spill] sm:$0xff] %v5527_v47  ;;  %v5532_v49 = vld [vmem:[%s8512_s6 + $0x370] sm:$0xff]  ;;  %v5537_v43 = vld [vmem:[%s8512_s6 + $0x378] sm:$0xff] }
  0x3d   :  { %9087 = vst [vmem:[#allocation83_spill] sm:$0xff] %v5532_v49  ;;  %v5542_v46 = vld [vmem:[%s8512_s6 + $0x380] sm:$0xff]  ;;  %v5547_v50 = vld [vmem:[%s8512_s6 + $0x388] sm:$0xff]  ;;  %v5552_v47 = vld [vmem:[%s8512_s6 + $0x390] sm:$0xff] }
  0x3e   :  { %9088 = vst [vmem:[#allocation84_spill] sm:$0xff] %v5542_v46  ;;  %9089 = vst [vmem:[#allocation85_spill] sm:$0xff] %v5547_v50  ;;  %v5557_v49 = vld [vmem:[%s8512_s6 + $0x398] sm:$0xff]  ;;  %v5562_v52 = vld [vmem:[%s8512_s6 + $0x3a0] sm:$0xff] }
  0x3f   :  { %9090 = vst [vmem:[#allocation86_spill] sm:$0xff] %v5557_v49  ;;  %9091 = vst [vmem:[#allocation87_spill] sm:$0xff] %v5562_v52  ;;  %v5567_v46 = vld [vmem:[%s8512_s6 + $0x3a8] sm:$0xff]  ;;  %v5572_v50 = vld [vmem:[%s8512_s6 + $0x3b0] sm:$0xff] }
  0x40   :  { %9092 = vst [vmem:[#allocation88_spill] sm:$0xff] %v5572_v50  ;;  %v5577_v28 = vld [vmem:[%s8512_s6 + $0x3b8] sm:$0xff]  ;;  %v5582_v49 = vld [vmem:[%s8506_s0] sm:$0xff]  ;;  %v326_v52 = vld [vmem:[%s8506_s0 + $0x8] sm:$0xff] }
  0x41   :  { %9093 = vst [vmem:[#allocation89_spill] sm:$0xff] %v5577_v28 }
  0x42   :  { %324 = vsyncadd [#allocation3], 15360  ;;  %s4908_s25 = smov 16   ;;  %v340_v55 = vrot.slane %v326_v52, 6  ;;  %v334_v28 = vld [vmem:[%s8508_s2 + $0x38] sm:$0xff]  ;;  %v333_v25 = vld [vmem:[%s8508_s2 + $0x30] sm:$0xff] }
  0x43   :  { %345 = vrot.lane.b32.xlu0 %v5582_v49, %s4908_s25  ;;  %v332_v58 = vld [vmem:[%s8508_s2 + $0x28] sm:$0xff]  ;;  %vm338_vm0 = vcmask 1041408   ;;  %396 = vmatprep.subr.mxu0 %v334_v28  ;;  %v331_v56 = vld [vmem:[%s8508_s2 + $0x20] sm:$0xff]  ;;  %v330_v50 = vld [vmem:[%s8508_s2 + $0x18] sm:$0xff]  ;;  %v8588_v61 = vmov 0.0   ;;  %v9094_v53 = vrot.slane %v5582_v49, 6 }
  0x44   :  { %397 = vmatpush1.msra.mxu0 %v333_v25  ;;  %436 = vmatprep.mubr.f32.mxu0 %v8588_v61  ;;  %v329_v28 = vld [vmem:[%s8508_s2 + $0x10] sm:$0xff]  ;;  %v484_v31 = vld [vmem:[#allocation4 + $0xf8] sm:$0xff]  ;;  %v328_v25 = vld [vmem:[%s8508_s2 + $0x8] sm:$0xff]  ;;  %vm351_vm1 = vcmask 130048   ;;  %vm365_vm2 = vcmask 261120   ;;  %s4910_s24 = smov 64  }
  0x45   :  { %v5609_v26 = vsel %vm338_vm0, %v9094_v53, %v340_v55  ;;  %398 = vmatprep.subr.mxu0 %v332_v58  ;;  %v468_v35 = vld [vmem:[#allocation4 + $0x78] sm:$0xff]  ;;  %v483_v61 = vld [vmem:[#allocation4 + $0xf0] sm:$0xff]  ;;  %v327_v53 = vld [vmem:[%s8508_s2] sm:$0xff]  ;;  %4411 = vmatprep.subr.mxu1 %v484_v31  ;;  %vm847_vm4 = vcmask 523264  }
  0x46   :  { %399 = vmatpush1.msra.mxu0 %v331_v56  ;;  %v467_v55 = vld [vmem:[#allocation4 + $0x70] sm:$0xff]  ;;  %v516_v58 = vld [vmem:[#allocation4 + $0x1f8] sm:$0xff]  ;;  %4412 = vmatpush3.msra.mxu1 %v468_v35  ;;  %v482_v59 = vld [vmem:[#allocation4 + $0xe8] sm:$0xff] }
  0x47   :  { %347 = vrot.lane.b32.xlu0 %v326_v52, %s4908_s25  ;;  %400 = vmatprep.subr.mxu0 %v330_v50  ;;  %v466_v52 = vld [vmem:[#allocation4 + $0x68] sm:$0xff]  ;;  %v481_v56 = vld [vmem:[#allocation4 + $0xe0] sm:$0xff]  ;;  %v480_v50 = vld [vmem:[#allocation4 + $0xd8] sm:$0xff] }
  0x48   :  { %401 = vmatpush1.msra.mxu0 %v329_v28  ;;  %4413 = vmatprep.subr.mxu1 %v483_v61  ;;  %v465_v44 = vld [vmem:[#allocation4 + $0x60] sm:$0xff]  ;;  %v464_v34 = vld [vmem:[#allocation4 + $0x58] sm:$0xff]  ;;  %v479_v31 = vld [vmem:[#allocation4 + $0xd0] sm:$0xff] }
  0x49   :  { %402 = vmatprep.subr.mxu0 %v328_v25  ;;  %4414 = vmatpush3.msra.mxu1 %v467_v55  ;;  %v463_v28 = vld [vmem:[#allocation4 + $0x50] sm:$0xff]  ;;  %v478_v35 = vld [vmem:[#allocation4 + $0xc8] sm:$0xff]  ;;  %v477_v61 = vld [vmem:[#allocation4 + $0xc0] sm:$0xff] }
  0x4a   :  { %403 = vmatpush1.msra.mxu0 %v327_v53  ;;  %4415 = vmatprep.subr.mxu1 %v482_v59  ;;  %v462_v25 = vld [vmem:[#allocation4 + $0x48] sm:$0xff]  ;;  %v461_v53 = vld [vmem:[#allocation4 + $0x40] sm:$0xff]  ;;  %v476_v55 = vld [vmem:[#allocation4 + $0xb8] sm:$0xff] }
  0x4b   :  { %4449 = vmatprep.subr.mxu0 %v516_v58  ;;  %4416 = vmatpush3.msra.mxu1 %v466_v52  ;;  %v460_v59 = vld [vmem:[#allocation4 + $0x38] sm:$0xff]  ;;  %v475_v58 = vld [vmem:[#allocation4 + $0xb0] sm:$0xff]  ;;  %vm5650_vm3 = vmneg %vm338_vm0 }
  0x4c   :  { %4417 = vmatprep.subr.mxu1 %v481_v56  ;;  %v459_v52 = vld [vmem:[#allocation4 + $0x30] sm:$0xff]  ;;  %v458_v56 = vld [vmem:[#allocation4 + $0x28] sm:$0xff] }
  0x4d   :  { %4418 = vmatpush3.msra.mxu1 %v465_v44  ;;  %v474_v44 = vld [vmem:[#allocation4 + $0xa8] sm:$0xff] }
  0x4e   :  { %4419 = vmatprep.subr.mxu1 %v480_v50 }
  0x4f   :  { %4420 = vmatpush3.msra.mxu1 %v464_v34  ;;  %v9095_v34 = vrot.slane %v5582_v49, 6 }
  0x50   :  { %4421 = vmatprep.subr.mxu1 %v479_v31 }
  0x51   :  { %4422 = vmatpush3.msra.mxu1 %v463_v28  ;;  %v344_v50 = vsel %vm338_vm0, 0.0, %v9095_v34  ;;  %v500_v28 = vld [vmem:[#allocation4 + $0x178] sm:$0xff] }
  0x52   :  { %4423 = vmatprep.subr.mxu1 %v478_v35  ;;  %v496_v34 = vld [vmem:[#allocation4 + $0x158] sm:$0xff] }
  0x53   :  { %4424 = vmatpush3.msra.mxu1 %v462_v25  ;;  %v515_v25 = vld [vmem:[#allocation4 + $0x1f0] sm:$0xff] }
  0x54   :  { %4425 = vmatprep.subr.mxu1 %v477_v61  ;;  %v499_v61 = vld [vmem:[#allocation4 + $0x170] sm:$0xff] }
  0x55   :  { %4426 = vmatpush3.msra.mxu1 %v461_v53  ;;  %v9096_v53 = vmov 0.0  }
  0x56   :  { %4427 = vmatprep.subr.mxu1 %v476_v55  ;;  %v514_v55 = vld [vmem:[#allocation4 + $0x1e8] sm:$0xff] }
  0x57   :  { %4428 = vmatpush3.msra.mxu1 %v460_v59 }
  0x58   :  { %4429 = vmatprep.subr.mxu1 %v475_v58  ;;  %v498_v58 = vld [vmem:[#allocation4 + $0x168] sm:$0xff] }
  0x59   :  { %4430 = vmatpush3.msra.mxu1 %v459_v52  ;;  %v513_v52 = vld [vmem:[#allocation4 + $0x1e0] sm:$0xff] }
  0x5a   :  { %4431 = vmatprep.subr.mxu1 %v474_v44  ;;  %v497_v44 = vld [vmem:[#allocation4 + $0x160] sm:$0xff] }
  0x5b   :  { %4432 = vmatpush3.msra.mxu1 %v458_v56  ;;  %v512_v56 = vld [vmem:[#allocation4 + $0x1d8] sm:$0xff] }
  0xb5   :  { %v346_v31 = vpop.permute.xlu0 %345 }
  0xb6   :  { %v352_v35 = vsel %vm351_vm1, %v344_v50, %v346_v31  ;;  %v511_v50 = vld [vmem:[#allocation4 + $0x1d0] sm:$0xff] }
  0xb7   :  { %4349 = vmatmul.mubr.msk.f32.vlgmr.msra.gmra.mxu0 %vm365_vm2, %v352_v35  ;;  %v495_v31 = vld [vmem:[#allocation4 + $0x150] sm:$0xff]  ;;  %v494_v35 = vld [vmem:[#allocation4 + $0x148] sm:$0xff] }
  0xb8   :  { %442 = vmatprep.mubr.f32.mxu0 %v9096_v53  ;;  %4450 = vmatpush3.msra.mxu0 %v500_v28  ;;  %v510_v28 = vld [vmem:[#allocation4 + $0x1c8] sm:$0xff] }
  0xb9   :  { %v348_v59 = vpop.permute.xlu0 %347  ;;  %4451 = vmatprep.subr.mxu0 %v515_v25  ;;  %v493_v25 = vld [vmem:[#allocation4 + $0x140] sm:$0xff] }
  0xba   :  { %v353_v49 = vsel %vm351_vm1, %v5609_v26, %v348_v59  ;;  %4452 = vmatpush3.msra.mxu0 %v499_v61  ;;  %v509_v26 = vld [vmem:[#allocation4 + $0x1c0] sm:$0xff]  ;;  %v508_v61 = vld [vmem:[#allocation4 + $0x1b8] sm:$0xff]  ;;  %v507_v59 = vld [vmem:[#allocation4 + $0x1b0] sm:$0xff] }
  0xbb   :  { %4350 = vmatmul.mubr.msk.f32.gmra.mxu0 %vm365_vm2, %v353_v49  ;;  %4453 = vmatprep.subr.mxu0 %v514_v55  ;;  %v492_v55 = vld [vmem:[#allocation4 + $0x138] sm:$0xff]  ;;  %v506_v49 = vld [vmem:[#allocation4 + $0x1a8] sm:$0xff] }
  0xbc   :  { %4454 = vmatpush3.msra.mxu0 %v498_v58  ;;  %v491_v58 = vld [vmem:[#allocation4 + $0x130] sm:$0xff] }
  0xbd   :  { %4455 = vmatprep.subr.mxu0 %v513_v52  ;;  %v490_v52 = vld [vmem:[#allocation4 + $0x128] sm:$0xff] }
  0xbe   :  { %4456 = vmatpush3.msra.mxu0 %v497_v44  ;;  %v505_v44 = vld [vmem:[#allocation4 + $0x1a0] sm:$0xff] }
  0xbf   :  { %4457 = vmatprep.subr.mxu0 %v512_v56  ;;  %v489_v56 = vld [vmem:[#allocation4 + $0x120] sm:$0xff] }
  0xc0   :  { %4458 = vmatpush3.msra.mxu0 %v496_v34  ;;  %v473_v34 = vld [vmem:[#allocation4 + $0xa0] sm:$0xff] }
  0xc1   :  { %4459 = vmatprep.subr.mxu0 %v511_v50  ;;  %v504_v50 = vld [vmem:[#allocation4 + $0x198] sm:$0xff]  ;;  %4433 = vmatprep.subr.mxu1 %v473_v34  ;;  %v485_v34 = vld [vmem:[#allocation4 + $0x100] sm:$0xff] }
  0xc2   :  { %4460 = vmatpush3.msra.mxu0 %v495_v31  ;;  %v457_v31 = vld [vmem:[#allocation4 + $0x20] sm:$0xff] }
  0xc3   :  { %4461 = vmatprep.subr.mxu0 %v510_v28  ;;  %v488_v28 = vld [vmem:[#allocation4 + $0x118] sm:$0xff]  ;;  %4434 = vmatpush3.msra.mxu1 %v457_v31  ;;  %v453_v31 = vld [vmem:[#allocation4] sm:$0xff] }
  0xc4   :  { %4462 = vmatpush3.msra.mxu0 %v494_v35  ;;  %v472_v35 = vld [vmem:[#allocation4 + $0x98] sm:$0xff] }
  0xc5   :  { %4463 = vmatprep.subr.mxu0 %v509_v26  ;;  %v503_v26 = vld [vmem:[#allocation4 + $0x190] sm:$0xff]  ;;  %4435 = vmatprep.subr.mxu1 %v472_v35  ;;  %v355_v35 = vlaneseq }
  0xc6   :  { %4464 = vmatpush3.msra.mxu0 %v493_v25  ;;  %v456_v25 = vld [vmem:[#allocation4 + $0x18] sm:$0xff] }
  0xc7   :  { %4465 = vmatprep.subr.mxu0 %v508_v61  ;;  %v487_v61 = vld [vmem:[#allocation4 + $0x110] sm:$0xff]  ;;  %4436 = vmatpush3.msra.mxu1 %v456_v25 }
  0xc8   :  { %4466 = vmatpush3.msra.mxu0 %v492_v55  ;;  %v471_v55 = vld [vmem:[#allocation4 + $0x90] sm:$0xff] }
  0xc9   :  { %4467 = vmatprep.subr.mxu0 %v507_v59  ;;  %v502_v59 = vld [vmem:[#allocation4 + $0x188] sm:$0xff]  ;;  %4437 = vmatprep.subr.mxu1 %v471_v55 }
  0xca   :  { %4468 = vmatpush3.msra.mxu0 %v491_v58  ;;  %v455_v58 = vld [vmem:[#allocation4 + $0x10] sm:$0xff] }
  0xcb   :  { %4469 = vmatprep.subr.mxu0 %v506_v49  ;;  %v486_v49 = vld [vmem:[#allocation4 + $0x108] sm:$0xff]  ;;  %4438 = vmatpush3.msra.mxu1 %v455_v58 }
  0xcc   :  { %4470 = vmatpush3.msra.mxu0 %v490_v52  ;;  %v470_v52 = vld [vmem:[#allocation4 + $0x88] sm:$0xff] }
  0xcd   :  { %4471 = vmatprep.subr.mxu0 %v505_v44  ;;  %v501_v44 = vld [vmem:[#allocation4 + $0x180] sm:$0xff]  ;;  %4439 = vmatprep.subr.mxu1 %v470_v52 }
  0xce   :  { %4472 = vmatpush3.msra.mxu0 %v489_v56  ;;  %v454_v56 = vld [vmem:[#allocation4 + $0x8] sm:$0xff] }
  0xcf   :  { %4473 = vmatprep.subr.mxu0 %v504_v50  ;;  %4440 = vmatpush3.msra.mxu1 %v454_v56  ;;  %v469_v50 = vld [vmem:[#allocation4 + $0x80] sm:$0xff] }
  0xd0   :  { %4474 = vmatpush3.msra.mxu0 %v488_v28  ;;  %4441 = vmatprep.subr.mxu1 %v469_v50  ;;  %v723_v28 = vld [vmem:[%s8510_s4 + $0xf8] sm:$0xff] }
  0xd1   :  { %4475 = vmatprep.subr.mxu0 %v503_v26  ;;  %4442 = vmatpush3.msra.mxu1 %v453_v31  ;;  %v5633_v26 = vshrl.u32 %v355_v35, 7 }
  0xd2   :  { %4476 = vmatpush3.msra.mxu0 %v487_v61  ;;  %4487 = vmatprep.subr.mxu1 %v723_v28  ;;  %v335_v61 = vld [vmem:[%s8511_s5] sm:$0x3] }
  0xd3   :  { %4477 = vmatprep.subr.mxu0 %v502_v59  ;;  %9097 = vst [vmem:[#allocation90_spill] sm:$0xff] %v5633_v26  ;;  %v5636_v25 = vsub.s32 0, %v5633_v26  ;;  %v5642_v55 = vsub.s32 1, %v5633_v26  ;;  %v1194_v26 = vld [vmem:[%s8510_s4 + $0x2a8] sm:$0xff] }
  0xd4   :  { %4478 = vmatpush3.msra.mxu0 %v486_v49 }
  0xd5   :  { %4479 = vmatprep.subr.mxu0 %v501_v44  ;;  %9098 = vst [vmem:[#allocation91_spill] sm:$0xff] %v5636_v25  ;;  %9099 = vst [vmem:[#allocation92_spill] sm:$0xff] %v5642_v55  ;;  %v358_v59 = vrot.slane %v335_v61, %v5636_v25  ;;  %v362_v58 = vrot.slane %v335_v61, %v5642_v55 }
  0xd6   :  { %4480 = vmatpush3.msra.mxu0 %v485_v34 }
 0x177   :  { %v438_v49 = vpop.f32.mrf.mxu0 }
 0x178   :  { %v439_v52 = vadd.f32 %v438_v49, %v358_v59 }
 0x179   :  { %v440_v44 = vpop.f32.mrf.mxu0 }
 0x17a   :  { %v449_v56 = vmax.f32 %v439_v52, 0.0  ;;  %v441_v34 = vadd.f32 %v440_v44, %v362_v58 }
 0x17b   :  { %v444_v50 = vpop.f32.mrf.mxu0 }
 0x17c   :  { %1169 = vst [vmem:[%s8513_s7] sm:$0xff] %v449_v56  ;;  %v450_v31 = vmax.f32 %v441_v34, 0.0  ;;  %v445_v28 = vadd.f32 %v444_v50, %v358_v59  ;;  %v522_v44 = vrot.slane %v449_v56, 6  ;;  %v707_v59 = vld [vmem:[%s8510_s4 + $0x78] sm:$0xff] }
 0x17d   :  { %v446_v35 = vpop.f32.mrf.mxu0 }
 0x17e   :  { %1170 = vst [vmem:[%s8513_s7 + $0x8] sm:$0xff] %v450_v31  ;;  %v451_v61 = vmax.f32 %v445_v28, 0.0  ;;  %v447_v49 = vadd.f32 %v446_v35, %v362_v58  ;;  %679 = vmatprep.mubr.f32.mxu0 %v450_v31  ;;  %v523_v52 = vrot.slane %v450_v31, 6  ;;  %v722_v58 = vld [vmem:[%s8510_s4 + $0xf0] sm:$0xff]  ;;  %v721_v28 = vld [vmem:[%s8510_s4 + $0xe8] sm:$0xff] }
 0x17f   :  { %680 = vmatmul.mubr.f32.vlgmr.msra.gmra.mxu0 %v449_v56  ;;  %v706_v56 = vld [vmem:[%s8510_s4 + $0x70] sm:$0xff] }
 0x180   :  { %1171 = vst [vmem:[%s8513_s7 + $0x10] sm:$0xff] %v451_v61  ;;  %v452_v34 = vmax.f32 %v447_v49, 0.0  ;;  %4353 = vmatprep.mubr.msk.f32.mxu1 %vm5650_vm3, %v523_v52  ;;  %v524_v50 = vrot.slane %v451_v61, 6  ;;  %v705_v49 = vld [vmem:[%s8510_s4 + $0x68] sm:$0xff] }
 0x181   :  { %4355 = vmatmul.mubr.msk.f32.vlgmr.msra.gmra.mxu1 %vm5650_vm3, %v522_v44 }
 0x182   :  { %v526_v31 = vrot.slane %v452_v34, 6  ;;  %1172 = vst [vmem:[%s8513_s7 + $0x18] sm:$0xff] %v452_v34  ;;  %684 = vmatprep.mubr.f32.mxu0 %v452_v34  ;;  %4488 = vmatpush3.msra.mxu1 %v707_v59  ;;  %v525_v55 = vsel %vm338_vm0, %v522_v44, %v524_v50  ;;  %v720_v59 = vld [vmem:[%s8510_s4 + $0xe0] sm:$0xff]  ;;  %v703_v44 = vld [vmem:[%s8510_s4 + $0x58] sm:$0xff]  ;;  %v718_v34 = vld [vmem:[%s8510_s4 + $0xd0] sm:$0xff] }
 0x183   :  { %685 = vmatmul.mubr.f32.gmra.mxu0 %v451_v61  ;;  %4489 = vmatprep.subr.mxu1 %v722_v58  ;;  %v704_v61 = vld [vmem:[%s8510_s4 + $0x60] sm:$0xff]  ;;  %v717_v58 = vld [vmem:[%s8510_s4 + $0xc8] sm:$0xff] }
 0x184   :  { %v527_v35 = vsel %vm338_vm0, %v523_v52, %v526_v31  ;;  %4490 = vmatpush3.msra.mxu1 %v706_v56  ;;  %v719_v52 = vld [vmem:[%s8510_s4 + $0xd8] sm:$0xff]  ;;  %v701_v50 = vld [vmem:[%s8510_s4 + $0x48] sm:$0xff]  ;;  %v716_v56 = vld [vmem:[%s8510_s4 + $0xc0] sm:$0xff] }
 0x185   :  { %609 = vmatprep.mubr.f32.mxu1 %v527_v35  ;;  %4491 = vmatprep.subr.mxu1 %v721_v28  ;;  %v700_v31 = vld [vmem:[%s8510_s4 + $0x40] sm:$0xff]  ;;  %v715_v28 = vld [vmem:[%s8510_s4 + $0xb8] sm:$0xff] }
 0x186   :  { %610 = vmatmul.mubr.f32.gmra.mxu1 %v525_v55  ;;  %v702_v55 = vld [vmem:[%s8510_s4 + $0x50] sm:$0xff]  ;;  %v699_v35 = vld [vmem:[%s8510_s4 + $0x38] sm:$0xff] }
 0x187   :  { %4492 = vmatpush3.msra.mxu1 %v705_v49  ;;  %v714_v49 = vld [vmem:[%s8510_s4 + $0xb0] sm:$0xff] }
 0x188   :  { %4493 = vmatprep.subr.mxu1 %v720_v59  ;;  %v698_v59 = vld [vmem:[%s8510_s4 + $0x30] sm:$0xff] }
 0x189   :  { %4494 = vmatpush3.msra.mxu1 %v704_v61  ;;  %v713_v61 = vld [vmem:[%s8510_s4 + $0xa8] sm:$0xff] }
 0x18a   :  { %4495 = vmatprep.subr.mxu1 %v719_v52  ;;  %v697_v52 = vld [vmem:[%s8510_s4 + $0x28] sm:$0xff] }
 0x18b   :  { %4496 = vmatpush3.msra.mxu1 %v703_v44  ;;  %v712_v44 = vld [vmem:[%s8510_s4 + $0xa0] sm:$0xff] }
 0x18c   :  { %4497 = vmatprep.subr.mxu1 %v718_v34  ;;  %v696_v34 = vld [vmem:[%s8510_s4 + $0x20] sm:$0xff] }
 0x18d   :  { %4498 = vmatpush3.msra.mxu1 %v702_v55  ;;  %v711_v55 = vld [vmem:[%s8510_s4 + $0x98] sm:$0xff] }
 0x18e   :  { %4499 = vmatprep.subr.mxu1 %v717_v58  ;;  %v695_v58 = vld [vmem:[%s8510_s4 + $0x18] sm:$0xff] }
 0x18f   :  { %4500 = vmatpush3.msra.mxu1 %v701_v50  ;;  %v710_v50 = vld [vmem:[%s8510_s4 + $0x90] sm:$0xff] }
 0x190   :  { %4501 = vmatprep.subr.mxu1 %v716_v56  ;;  %v694_v56 = vld [vmem:[%s8510_s4 + $0x10] sm:$0xff] }
 0x191   :  { %4502 = vmatpush3.msra.mxu1 %v700_v31  ;;  %v709_v31 = vld [vmem:[%s8510_s4 + $0x88] sm:$0xff] }
 0x192   :  { %4503 = vmatprep.subr.mxu1 %v715_v28  ;;  %v693_v28 = vld [vmem:[%s8510_s4 + $0x8] sm:$0xff] }
 0x193   :  { %4504 = vmatpush3.msra.mxu1 %v699_v35  ;;  %v708_v35 = vld [vmem:[%s8510_s4 + $0x80] sm:$0xff] }
 0x194   :  { %4505 = vmatprep.subr.mxu1 %v714_v49  ;;  %v692_v49 = vld [vmem:[%s8510_s4] sm:$0xff] }
 0x195   :  { %4506 = vmatpush3.msra.mxu1 %v698_v59  ;;  %v933_v59 = vld [vmem:[%s8507_s1] sm:$0xff] }
 0x196   :  { %4507 = vmatprep.subr.mxu1 %v713_v61  ;;  %v934_v61 = vld [vmem:[%s8507_s1 + $0x8] sm:$0xff]  ;;  %948 = vrot.lane.b32.xlu1 %v933_v59, %s4908_s25 }
 0x197   :  { %4508 = vmatpush3.msra.mxu1 %v697_v52  ;;  %v938_v52 = vld [vmem:[#allocation4 + $0x218] sm:$0xff] }
 0x198   :  { %4509 = vmatprep.subr.mxu1 %v712_v44  ;;  %v942_v44 = vrot.slane %v933_v59, 6 }
 0x199   :  { %4510 = vmatpush3.msra.mxu1 %v696_v34  ;;  %v943_v34 = vrot.slane %v934_v61, 6 }
 0x19a   :  { %4511 = vmatprep.subr.mxu1 %v711_v55  ;;  %950 = vrot.lane.b32.xlu1 %v934_v61, %s4908_s25 }
 0x19b   :  { %4512 = vmatpush3.msra.mxu1 %v695_v58  ;;  %v944_v55 = vsel %vm338_vm0, %v942_v44, %v943_v34 }
 0x19c   :  { %4513 = vmatprep.subr.mxu1 %v710_v50 }
 0x19d   :  { %4514 = vmatpush3.msra.mxu1 %v694_v56 }
 0x19e   :  { %4515 = vmatprep.subr.mxu1 %v709_v31  ;;  %v4351_v31 = vld [vmem:[%s8511_s5 + $0x2] ss:$0 sm:$0xff] }
 0x19f   :  { %4516 = vmatpush3.msra.mxu1 %v693_v28 }
 0x1a0   :  { %4517 = vmatprep.subr.mxu1 %v708_v35 }
 0x1a1   :  { %4518 = vmatpush3.msra.mxu1 %v692_v49 }
 0x1a2   :  { %4670 = vmatprep.subr.mxu1 %v938_v52 }
 0x208   :  { %v949_v11 = vpop.permute.xlu1 %948 }
 0x23f   :  { %v4481_v58 = vpop.f32.mrf.mxu0 }
 0x241   :  { %v4443_v50 = vpop.f32.mrf.mxu1  ;;  %v4482_v56 = vpop.f32.mrf.mxu0 }
 0x242   :  { %v4483_v25 = vadd.f32 %v4482_v56, %v4481_v58  ;;  %v947_v56 = vsel %vm338_vm0, 0.0, %v942_v44  ;;  %v827_v44 = vld [vmem:[%s8510_s4 + $0x158] sm:$0xff] }
 0x243   :  { %v4444_v28 = vpop.f32.mrf.mxu1  ;;  %v4484_v49 = vpop.f32.mrf.mxu0 }
 0x244   :  { %v4445_v35 = vadd.f32 %v4444_v28, %v4443_v50  ;;  %v937_v50 = vld [vmem:[#allocation4 + $0x210] sm:$0xff]  ;;  %v824_v28 = vld [vmem:[%s8510_s4 + $0x140] sm:$0xff] }
 0x245   :  { %v4485_v59 = vpop.f32.mrf.mxu0 }
 0x246   :  { %v607_v2 = vadd.f32 %v4445_v35, %v4351_v31  ;;  %v4446_v62 = vpop.f32.mrf.mxu1  ;;  %v4486_v8 = vadd.f32 %v4485_v59, %v4484_v49  ;;  %v823_v35 = vld [vmem:[%s8510_s4 + $0x138] sm:$0xff]  ;;  %v822_v49 = vld [vmem:[%s8510_s4 + $0x130] sm:$0xff]  ;;  %v821_v59 = vld [vmem:[%s8510_s4 + $0x128] sm:$0xff] }
 0x248   :  { %v4447_v5 = vpop.f32.mrf.mxu1  ;;  %v682_v37 = vadd.f32 %v4483_v25, %v607_v2  ;;  %v936_v2 = vld [vmem:[#allocation4 + $0x208] sm:$0xff]  ;;  %v831_v25 = vld [vmem:[%s8510_s4 + $0x178] sm:$0xff] }
 0x249   :  { %v4448_v29 = vadd.f32 %v4447_v5, %v4446_v62  ;;  %4635 = vmatprep.subr.mxu0 %v831_v25 }
 0x24a   :  { %v690_v34 = vmax.f32 %v682_v37, 0.0  ;;  %v951_v37 = vpop.permute.xlu1 %950  ;;  %4636 = vmatpush3.msra.mxu0 %v831_v25 }
 0x24b   :  { %v612_v61 = vadd.f32 %v4448_v29, %v4351_v31  ;;  %v935_v29 = vld [vmem:[#allocation4 + $0x200] sm:$0xff]  ;;  %v825_v31 = vld [vmem:[%s8510_s4 + $0x148] sm:$0xff] }
 0x24c   :  { %v727_v40 = vrot.slane %v690_v34, 6  ;;  %803 = vmatprep.mubr.f32.mxu1 %v690_v34  ;;  %1173 = vst [vmem:[%s8514_s8] sm:$0xff] %v690_v34  ;;  %v820_v34 = vld [vmem:[%s8510_s4 + $0x120] sm:$0xff] }
 0x24d   :  { %v687_v38 = vadd.f32 %v4486_v8, %v612_v61  ;;  %v954_v8 = vsel %vm351_vm1, %v947_v56, %v949_v11  ;;  %v830_v11 = vld [vmem:[%s8510_s4 + $0x170] sm:$0xff]  ;;  %v819_v61 = vld [vmem:[%s8510_s4 + $0x118] sm:$0xff] }
 0x24e   :  { %4358 = vmatmul.mubr.msk.f32.vlgmr.msra.gmra.mxu1 %vm5650_vm3, %v727_v40  ;;  %4637 = vmatprep.subr.mxu0 %v830_v11 }
 0x24f   :  { %v691_v58 = vmax.f32 %v687_v38, 0.0  ;;  %4671 = vmatpush3.msra.mxu1 %v938_v52  ;;  %v955_v38 = vsel %vm351_vm1, %v944_v55, %v951_v37  ;;  %4638 = vmatpush3.msra.mxu0 %v830_v11  ;;  %v828_v52 = vld [vmem:[%s8510_s4 + $0x160] sm:$0xff]  ;;  %v826_v55 = vld [vmem:[%s8510_s4 + $0x150] sm:$0xff] }
 0x250   :  { %4672 = vmatprep.subr.mxu1 %v937_v50 }
 0x251   :  { %808 = vmatprep.mubr.f32.mxu1 %v691_v58  ;;  %1174 = vst [vmem:[%s8514_s8 + $0x8] sm:$0xff] %v691_v58  ;;  %v728_v5 = vrot.slane %v691_v58, 6  ;;  %4673 = vmatpush3.msra.mxu1 %v937_v50  ;;  %v818_v50 = vld [vmem:[%s8510_s4 + $0x110] sm:$0xff]  ;;  %v817_v58 = vld [vmem:[%s8510_s4 + $0x108] sm:$0xff] }
 0x252   :  { %4674 = vmatprep.subr.mxu1 %v936_v2 }
 0x253   :  { %v729_v62 = vsel %vm338_vm0, %v727_v40, %v728_v5  ;;  %4675 = vmatpush3.msra.mxu1 %v936_v2  ;;  %v829_v40 = vld [vmem:[%s8510_s4 + $0x168] sm:$0xff]  ;;  %v816_v5 = vld [vmem:[%s8510_s4 + $0x100] sm:$0xff] }
 0x254   :  { %809 = vmatmul.mubr.f32.gmra.mxu1 %v729_v62  ;;  %4676 = vmatprep.subr.mxu1 %v935_v29  ;;  %v1076_v62 = vld [vmem:[%s8510_s4 + $0x278] sm:$0xff] }
 0x255   :  { %4678 = vmatprep.mubr.msk.f32.mxu1 %vm365_vm2, %v954_v8  ;;  %4677 = vmatpush3.msra.mxu1 %v935_v29  ;;  %v4356_v8 = vld [vmem:[%s8511_s5 + $0x3] ss:$0 sm:$0xff] }
 0x256   :  { %4639 = vmatprep.subr.mxu0 %v829_v40 }
 0x257   :  { %4640 = vmatpush3.msra.mxu0 %v829_v40 }
 0x258   :  { %4679 = vmatmul.mubr.msk.f32.vlgmr.msra.gmra.mxu1 %vm365_vm2, %v955_v38  ;;  %4641 = vmatprep.subr.mxu0 %v828_v52 }
 0x259   :  { %4642 = vmatpush3.msra.mxu0 %v828_v52 }
 0x25a   :  { %4643 = vmatprep.subr.mxu0 %v827_v44 }
 0x25b   :  { %4644 = vmatpush3.msra.mxu0 %v827_v44 }
 0x25c   :  { %4645 = vmatprep.subr.mxu0 %v826_v55 }
 0x25d   :  { %4646 = vmatpush3.msra.mxu0 %v826_v55 }
 0x25e   :  { %4647 = vmatprep.subr.mxu0 %v825_v31 }
 0x25f   :  { %4648 = vmatpush3.msra.mxu0 %v825_v31 }
 0x260   :  { %4649 = vmatprep.subr.mxu0 %v824_v28 }
 0x261   :  { %4650 = vmatpush3.msra.mxu0 %v824_v28  ;;  %v4360_v28 = vld [vmem:[%s8511_s5 + $0x5] ss:$0 sm:$0xff] }
 0x262   :  { %4651 = vmatprep.subr.mxu0 %v823_v35 }
 0x263   :  { %4652 = vmatpush3.msra.mxu0 %v823_v35 }
 0x264   :  { %4653 = vmatprep.subr.mxu0 %v822_v49 }
 0x265   :  { %4654 = vmatpush3.msra.mxu0 %v822_v49 }
 0x266   :  { %4655 = vmatprep.subr.mxu0 %v821_v59 }
 0x267   :  { %4656 = vmatpush3.msra.mxu0 %v821_v59 }
 0x268   :  { %4657 = vmatprep.subr.mxu0 %v820_v34 }
 0x269   :  { %4658 = vmatpush3.msra.mxu0 %v820_v34 }
 0x26a   :  { %4659 = vmatprep.subr.mxu0 %v819_v61 }
 0x26b   :  { %4660 = vmatpush3.msra.mxu0 %v819_v61 }
 0x26c   :  { %4661 = vmatprep.subr.mxu0 %v818_v50 }
 0x26d   :  { %4662 = vmatpush3.msra.mxu0 %v818_v50 }
 0x26e   :  { %4663 = vmatprep.subr.mxu0 %v817_v58 }
 0x26f   :  { %4664 = vmatpush3.msra.mxu0 %v817_v58 }
 0x270   :  { %4665 = vmatprep.subr.mxu0 %v816_v5 }
 0x271   :  { %4666 = vmatpush3.msra.mxu0 %v816_v5 }
 0x272   :  { %4549 = vmatprep.subr.mxu0 %v1076_v62 }
 0x30e   :  { %v4519_v56 = vpop.f32.mrf.mxu1 }
 0x310   :  { %v4520_v2 = vpop.f32.mrf.mxu1 }
 0x311   :  { %v4521_v29 = vadd.f32 %v4520_v2, %v4519_v56 }
 0x313   :  { %v806_v25 = vadd.f32 %v4521_v29, %v4356_v8 }
 0x314   :  { %v4522_v37 = vpop.f32.mrf.mxu1 }
 0x315   :  { %v5842_v52 = vmax.f32 %v806_v25, 0.0  ;;  %v1075_v25 = vld [vmem:[%s8510_s4 + $0x270] sm:$0xff] }
 0x316   :  { %v4523_v38 = vpop.f32.mrf.mxu1 }
 0x317   :  { %v4524_v11 = vadd.f32 %v4523_v38, %v4522_v37  ;;  %v835_v58 = vrot.slane %v5842_v52, 6  ;;  %v1060_v38 = vld [vmem:[%s8510_s4 + $0x1f8] sm:$0xff] }
 0x318   :  { %v4680_v31 = vpop.f32.mrf.mxu1 }
 0x319   :  { %v811_v40 = vadd.f32 %v4524_v11, %v4356_v8  ;;  %v1040_v35 = vadd.f32 %v4680_v31, %v4360_v28  ;;  %v840_v29 = vsel %vm338_vm0, 0.0, %v835_v58  ;;  %v1059_v11 = vld [vmem:[%s8510_s4 + $0x1f0] sm:$0xff]  ;;  %v1073_v31 = vld [vmem:[%s8510_s4 + $0x260] sm:$0xff] }
 0x31a   :  { %v1034_v49 = vpop.f32.mrf.mxu1 }
 0x31b   :  { %v5844_v44 = vmax.f32 %v811_v40, 0.0  ;;  %v5852_v59 = vmax.f32 %v1040_v35, 0.0  ;;  %v1035_v34 = vadd.f32 %v4360_v28, %v1034_v49  ;;  %v1074_v40 = vld [vmem:[%s8510_s4 + $0x268] sm:$0xff]  ;;  %v1057_v28 = vld [vmem:[%s8510_s4 + $0x1e0] sm:$0xff]  ;;  %v1072_v35 = vld [vmem:[%s8510_s4 + $0x258] sm:$0xff] }
 0x31c   :  { %v1056_v49 = vld [vmem:[%s8510_s4 + $0x1d8] sm:$0xff] }
 0x31d   :  { %v4706_v55 = vpack.i.bf16 %v5844_v44, %v5842_v52  ;;  %1188 = vst [vmem:[%s8516_s10 + $0x8] sm:$0xff] %v5852_v59  ;;  %v5858_v61 = vmax.f32 %v1035_v34, 0.0  ;;  %v836_v50 = vrot.slane %v5844_v44, 6  ;;  %v1071_v34 = vld [vmem:[%s8510_s4 + $0x250] sm:$0xff] }
 0x31f   :  { %4707 = vrot.lane.b32.xlu0 %v4706_v55, %s4910_s24  ;;  %1187 = vst [vmem:[%s8516_s10] sm:$0xff] %v5858_v61  ;;  %v837_v8 = vsel %vm338_vm0, %v835_v58, %v836_v50  ;;  %v1058_v55 = vld [vmem:[%s8510_s4 + $0x1e8] sm:$0xff]  ;;  %v1055_v50 = vld [vmem:[%s8510_s4 + $0x1d0] sm:$0xff] }
 0x320   :  { %v1070_v58 = vld [vmem:[%s8510_s4 + $0x248] sm:$0xff] }
 0x391   :  { %v4708_v56 = vpop.permute.xlu0 %4707 }
 0x392   :  { %v4710_v2 = vunpack.i.h.bf16 %v4708_v56  ;;  %v4709_v5 = vunpack.i.l.bf16 %v4708_v56  ;;  %v1054_v56 = vld [vmem:[%s8510_s4 + $0x1c8] sm:$0xff] }
 0x394   :  { %v848_v37 = vsel %vm847_vm4, %v840_v29, %v4709_v5  ;;  %v849_v62 = vsel %vm847_vm4, %v837_v8, %v4710_v2  ;;  %v1069_v2 = vld [vmem:[%s8510_s4 + $0x240] sm:$0xff]  ;;  %v1068_v29 = vld [vmem:[%s8510_s4 + $0x238] sm:$0xff] }
 0x395   :  { %4667 = vmatprep.mubr.f32.mxu0 %v848_v37  ;;  %v1053_v5 = vld [vmem:[%s8510_s4 + $0x1c0] sm:$0xff]  ;;  %v1052_v8 = vld [vmem:[%s8510_s4 + $0x1b8] sm:$0xff]  ;;  %v1067_v37 = vld [vmem:[%s8510_s4 + $0x230] sm:$0xff] }
 0x396   :  { %4668 = vmatmul.mubr.f32.vlgmr.msra.gmra.mxu0 %v849_v62  ;;  %v1051_v62 = vld [vmem:[%s8510_s4 + $0x1b0] sm:$0xff] }
 0x397   :  { %4550 = vmatpush3.msra.mxu0 %v1060_v38  ;;  %1156 = vmatprep.mubr.f32.mxu0 %v5858_v61  ;;  %v1066_v38 = vld [vmem:[%s8510_s4 + $0x228] sm:$0xff] }
 0x398   :  { %4551 = vmatprep.subr.mxu0 %v1075_v25  ;;  %v1050_v25 = vld [vmem:[%s8510_s4 + $0x1a8] sm:$0xff] }
 0x399   :  { %4552 = vmatpush3.msra.mxu0 %v1059_v11  ;;  %v1065_v11 = vld [vmem:[%s8510_s4 + $0x220] sm:$0xff] }
 0x39a   :  { %4553 = vmatprep.subr.mxu0 %v1074_v40  ;;  %v1049_v40 = vld [vmem:[%s8510_s4 + $0x1a0] sm:$0xff] }
 0x39b   :  { %4554 = vmatpush3.msra.mxu0 %v1058_v55  ;;  %v1064_v55 = vld [vmem:[%s8510_s4 + $0x218] sm:$0xff] }
 0x39c   :  { %4555 = vmatprep.subr.mxu0 %v1073_v31  ;;  %v1048_v31 = vld [vmem:[%s8510_s4 + $0x198] sm:$0xff] }
 0x39d   :  { %4556 = vmatpush3.msra.mxu0 %v1057_v28  ;;  %v1063_v28 = vld [vmem:[%s8510_s4 + $0x210] sm:$0xff] }
 0x39e   :  { %4557 = vmatprep.subr.mxu0 %v1072_v35  ;;  %v1047_v35 = vld [vmem:[%s8510_s4 + $0x190] sm:$0xff] }
 0x39f   :  { %4558 = vmatpush3.msra.mxu0 %v1056_v49  ;;  %v1062_v49 = vld [vmem:[%s8510_s4 + $0x208] sm:$0xff] }
 0x3a0   :  { %4559 = vmatprep.subr.mxu0 %v1071_v34  ;;  %v1046_v34 = vld [vmem:[%s8510_s4 + $0x188] sm:$0xff] }
 0x3a1   :  { %4560 = vmatpush3.msra.mxu0 %v1055_v50  ;;  %v1061_v50 = vld [vmem:[%s8510_s4 + $0x200] sm:$0xff] }
 0x3a2   :  { %4561 = vmatprep.subr.mxu0 %v1070_v58  ;;  %v1045_v58 = vld [vmem:[%s8510_s4 + $0x180] sm:$0xff] }
 0x3a3   :  { %4562 = vmatpush3.msra.mxu0 %v1054_v56  ;;  %v1080_v56 = vrot.slane %v5858_v61, 6  ;;  %v1195_v61 = vld [vmem:[%s8510_s4 + $0x2b0] sm:$0xff] }
 0x3a4   :  { %4563 = vmatprep.subr.mxu0 %v1069_v2  ;;  %v1081_v2 = vrot.slane %v5852_v59, 6 }
 0x3a5   :  { %4564 = vmatpush3.msra.mxu0 %v1053_v5 }
 0x3a6   :  { %4565 = vmatprep.subr.mxu0 %v1068_v29  ;;  %v1082_v5 = vsel %vm338_vm0, %v1080_v56, %v1081_v2  ;;  %v1196_v29 = vld [vmem:[%s8510_s4 + $0x2b8] sm:$0xff] }
 0x3a7   :  { %4566 = vmatpush3.msra.mxu0 %v1052_v8  ;;  %4681 = vmatprep.subr.mxu1 %v1196_v29  ;;  %v1192_v8 = vld [vmem:[%s8510_s4 + $0x298] sm:$0xff] }
 0x3a8   :  { %4567 = vmatprep.subr.mxu0 %v1067_v37  ;;  %4682 = vmatpush3.msra.mxu1 %v1196_v29  ;;  %v1191_v37 = vld [vmem:[%s8510_s4 + $0x290] sm:$0xff] }
 0x3a9   :  { %4568 = vmatpush3.msra.mxu0 %v1051_v62  ;;  %4683 = vmatprep.subr.mxu1 %v1195_v61  ;;  %v1190_v62 = vld [vmem:[%s8510_s4 + $0x288] sm:$0xff] }
 0x3aa   :  { %4569 = vmatprep.subr.mxu0 %v1066_v38  ;;  %4684 = vmatpush3.msra.mxu1 %v1195_v61  ;;  %v1189_v38 = vld [vmem:[%s8510_s4 + $0x280] sm:$0xff] }
 0x3ab   :  { %4570 = vmatpush3.msra.mxu0 %v1050_v25  ;;  %4685 = vmatprep.subr.mxu1 %v1194_v26  ;;  %v4359_v25 = vld [vmem:[%s8511_s5 + $0x4] ss:$0 sm:$0xff] }
 0x3ac   :  { %4571 = vmatprep.subr.mxu0 %v1065_v11  ;;  %4686 = vmatpush3.msra.mxu1 %v1194_v26 }
 0x3ad   :  { %4572 = vmatpush3.msra.mxu0 %v1049_v40 }
 0x3ae   :  { %4573 = vmatprep.subr.mxu0 %v1064_v55 }
 0x3af   :  { %4574 = vmatpush3.msra.mxu0 %v1048_v31 }
 0x3b0   :  { %4575 = vmatprep.subr.mxu0 %v1063_v28 }
 0x3b1   :  { %4576 = vmatpush3.msra.mxu0 %v1047_v35 }
 0x3b2   :  { %4577 = vmatprep.subr.mxu0 %v1062_v49 }
 0x3b3   :  { %4578 = vmatpush3.msra.mxu0 %v1046_v34  ;;  %v4363_v34 = vld [vmem:[%s8511_s5 + $0x6] ss:$0 sm:$0xff] }
 0x3b4   :  { %4579 = vmatprep.subr.mxu0 %v1061_v50 }
 0x3b5   :  { %4580 = vmatpush3.msra.mxu0 %v1045_v58 }
 0x3b6   :  { %4365 = vmatmul.mubr.msk.f32.vlgmr.msra.gmra.mxu0 %vm5650_vm3, %v1080_v56 }
 0x3b7   :  { %1161 = vmatprep.mubr.f32.mxu0 %v5852_v59  ;;  %v1193_v59 = vld [vmem:[%s8510_s4 + $0x2a0] sm:$0xff] }
 0x3b8   :  { %4687 = vmatprep.subr.mxu1 %v1193_v59 }
 0x3b9   :  { %4688 = vmatpush3.msra.mxu1 %v1193_v59 }
 0x3ba   :  { %1162 = vmatmul.mubr.f32.gmra.mxu0 %v1082_v5  ;;  %4689 = vmatprep.subr.mxu1 %v1192_v8 }
 0x3bb   :  { %4690 = vmatpush3.msra.mxu1 %v1192_v8  ;;  %2018 = vmatprep.mubr.f32.mxu0 %v9096_v53 }
 0x3bc   :  { %4691 = vmatprep.subr.mxu1 %v1191_v37 }
 0x3bd   :  { %4692 = vmatpush3.msra.mxu1 %v1191_v37 }
 0x3be   :  { %4693 = vmatprep.subr.mxu1 %v1190_v62 }
 0x3bf   :  { %4694 = vmatpush3.msra.mxu1 %v1190_v62 }
 0x3c0   :  { %4695 = vmatprep.subr.mxu1 %v1189_v38 }
 0x3c1   :  { %4696 = vmatpush3.msra.mxu1 %v1189_v38 }
 0x456   :  { %v4669_v11 = vpop.f32.mrf.mxu0 }
 0x457   :  { %v928_v40 = vadd.f32 %v4669_v11, %v4359_v25  ;;  %v4368_v11 = vld [vmem:[%s8511_s5 + $0x7] ss:$0 sm:$0xff] }
 0x458   :  { %v922_v55 = vpop.f32.mrf.mxu0 }
 0x459   :  { %v932_v31 = vmax.f32 %v928_v40, 0.0  ;;  %v923_v28 = vadd.f32 %v4359_v25, %v922_v55 }
 0x45b   :  { %v931_v35 = vmax.f32 %v923_v28, 0.0  ;;  %1179 = vrot.lane.b32.xlu0 %v932_v31, %s4910_s24 }
 0x45d   :  { %1177 = vrot.lane.b32.xlu1 %v931_v35, %s4910_s24 }
 0x476   :  { %v4581_v49 = vpop.f32.mrf.mxu0 }
 0x478   :  { %v4582_v50 = vpop.f32.mrf.mxu0 }
 0x479   :  { %v4583_v58 = vadd.f32 %v4582_v50, %v4581_v49  ;;  %v1359_v50 = vunpack.c.l.bf16 %v5087_v21 }
 0x47a   :  { %v4584_v56 = vpop.f32.mrf.mxu0 }
 0x47b   :  { %v1159_v2 = vadd.f32 %v4583_v58, %v4363_v34  ;;  %v6027_v58 = vunpack.c.l.bf16 %v5327_v41 }
 0x47c   :  { %v4585_v5 = vpop.f32.mrf.mxu0 }
 0x47d   :  { %v1167_v29 = vmax.f32 %v1159_v2, 0.0  ;;  %v4586_v61 = vadd.f32 %v4585_v5, %v4584_v56 }
 0x47f   :  { %v1164_v26 = vadd.f32 %v4586_v61, %v4363_v34  ;;  %4697 = vmatprep.mubr.msk.f32.mxu1 %vm847_vm4, %v1167_v29  ;;  %v1360_v34 = vunpack.c.h.bf16 %v5087_v21 }
 0x481   :  { %v1168_v59 = vmax.f32 %v1164_v26, 0.0 }
 0x483   :  { %4698 = vmatmul.mubr.msk.f32.vlgmr.msra.gmra.mxu1 %vm847_vm4, %v1168_v59 }
 0x484   :  { %1755 = vmatprep.mubr.f32.mxu1 %v9096_v53 }
 0x4cd   :  { %v1180_v8 = vpop.permute.xlu0 %1179 }
 0x4ce   :  { %v1184_v37 = vsel %vm847_vm4, %v5844_v44, %v1180_v8 }
 0x4cf   :  { %1186 = vst [vmem:[%s8515_s9 + $0x8] sm:$0xff] %v1184_v37  ;;  %v1178_v62 = vpop.permute.xlu1 %1177 }
 0x4d0   :  { %v1183_v38 = vsel %vm847_vm4, %v5842_v52, %v1178_v62  ;;  %v6023_v52 = vunpack.c.h.bf16 %v5327_v41 }
 0x4d1   :  { %1185 = vst [vmem:[%s8515_s9] sm:$0xff] %v1183_v38 }
 0x4d2   :  { %9102 = vst [vmem:[#allocation93_spill] sm:$0xff] %v6023_v52 }
 0x543   :  { %v4699_v25 = vpop.f32.mrf.mxu1 }
 0x544   :  { %v1279_v40 = vadd.f32 %v4699_v25, %v932_v31 }
 0x545   :  { %v1269_v55 = vpop.f32.mrf.mxu1 }
 0x546   :  { %v6017_v44 = vadd.f32 %v4368_v11, %v1279_v40  ;;  %v1278_v28 = vadd.f32 %v1269_v55, %v931_v35 }
 0x548   :  { %v6019_v49 = vadd.f32 %v4368_v11, %v1278_v28 }
 0x549   :  { %4903 = dma.done.wait [#allocation3], 15360 }
 0x54a   :  { %4904 = vsyncadd [#allocation3], 4294951936  ;;  %v1354_v31 = vunpack.c.h.bf16 %v5072_v18  ;;  %v6033_v35 = vunpack.c.h.bf16 %v5312_v32  ;;  %v1353_v56 = vunpack.c.l.bf16 %v5072_v18  ;;  %v6037_v2 = vunpack.c.l.bf16 %v5312_v32  ;;  %1707 = vmatprep.subr.mxu1 %v1360_v34  ;;  %1954 = vmatprep.subr.mxu0 %v6023_v52 }
 0x54b   :  { %v1348_v21 = vunpack.c.h.bf16 %v5057_v15  ;;  %v6042_v41 = vunpack.c.h.bf16 %v5297_v63  ;;  %1708 = vmatpush1.msra.mxu1 %v1359_v50  ;;  %1955 = vmatpush1.msra.mxu0 %v6027_v58  ;;  %v1347_v5 = vunpack.c.l.bf16 %v5057_v15  ;;  %v6047_v29 = vunpack.c.l.bf16 %v5297_v63 }
 0x54c   :  { %1709 = vmatprep.subr.mxu1 %v1354_v31  ;;  %1956 = vmatprep.subr.mxu0 %v6033_v35  ;;  %v1342_v18 = vunpack.c.h.bf16 %v5042_v12  ;;  %v6052_v32 = vunpack.c.h.bf16 %v5282_v60  ;;  %v1341_v61 = vunpack.c.l.bf16 %v5042_v12  ;;  %v6057_v26 = vunpack.c.l.bf16 %v5282_v60 }
 0x54d   :  { %1710 = vmatpush1.msra.mxu1 %v1353_v56  ;;  %1957 = vmatpush1.msra.mxu0 %v6037_v2  ;;  %v1336_v15 = vunpack.c.h.bf16 %v5027_v9  ;;  %v6062_v63 = vunpack.c.h.bf16 %v5267_v57  ;;  %v1335_v59 = vunpack.c.l.bf16 %v5027_v9  ;;  %v6067_v8 = vunpack.c.l.bf16 %v5267_v57 }
 0x54e   :  { %1711 = vmatprep.subr.mxu1 %v1348_v21  ;;  %1958 = vmatprep.subr.mxu0 %v6042_v41  ;;  %v1330_v12 = vunpack.c.h.bf16 %v5012_v6  ;;  %v6072_v60 = vunpack.c.h.bf16 %v5252_v54  ;;  %v1329_v37 = vunpack.c.l.bf16 %v5012_v6  ;;  %v6077_v62 = vunpack.c.l.bf16 %v5252_v54 }
 0x54f   :  { %1712 = vmatpush1.msra.mxu1 %v1347_v5  ;;  %1959 = vmatpush1.msra.mxu0 %v6047_v29  ;;  %v1324_v9 = vunpack.c.h.bf16 %v4997_v3  ;;  %v6082_v57 = vunpack.c.h.bf16 %v5237_v51  ;;  %v1323_v38 = vunpack.c.l.bf16 %v4997_v3  ;;  %v6087_v25 = vunpack.c.l.bf16 %v5237_v51 }
 0x550   :  { %1713 = vmatprep.subr.mxu1 %v1342_v18  ;;  %1960 = vmatprep.subr.mxu0 %v6052_v32  ;;  %v1318_v6 = vunpack.c.h.bf16 %v4982_v0  ;;  %v6092_v54 = vunpack.c.h.bf16 %v5222_v48  ;;  %v1317_v11 = vunpack.c.l.bf16 %v4982_v0  ;;  %v6097_v40 = vunpack.c.l.bf16 %v5222_v48 }
 0x551   :  { %1714 = vmatpush1.msra.mxu1 %v1341_v61  ;;  %1961 = vmatpush1.msra.mxu0 %v6057_v26  ;;  %9103 = vst [vmem:[#allocation94_spill] sm:$0xff] %v6082_v57  ;;  %9104 = vst [vmem:[#allocation95_spill] sm:$0xff] %v6087_v25  ;;  %v1362_v3 = vunpack.c.h.bf16 %v5092_v22  ;;  %v6103_v51 = vunpack.c.h.bf16 %v5207_v45  ;;  %v1361_v55 = vunpack.c.l.bf16 %v5092_v22  ;;  %v6108_v0 = vunpack.c.l.bf16 %v5207_v45 }
 0x552   :  { %1715 = vmatprep.subr.mxu1 %v1336_v15  ;;  %1962 = vmatprep.subr.mxu0 %v6062_v63  ;;  %9105 = vst [vmem:[#allocation96_spill] sm:$0xff] %v6092_v54  ;;  %9106 = vst [vmem:[#allocation97_spill] sm:$0xff] %v6097_v40  ;;  %v1356_v48 = vunpack.c.h.bf16 %v5077_v19  ;;  %v6113_v28 = vunpack.c.h.bf16 %v5192_v42  ;;  %v1355_v34 = vunpack.c.l.bf16 %v5077_v19  ;;  %v6119_v22 = vunpack.c.l.bf16 %v5192_v42 }
 0x553   :  { %1716 = vmatpush1.msra.mxu1 %v1335_v59  ;;  %1963 = vmatpush1.msra.mxu0 %v6067_v8  ;;  %9107 = vst [vmem:[#allocation98_spill] sm:$0xff] %v6103_v51  ;;  %9108 = vst [vmem:[#allocation99_spill] sm:$0xff] %v6108_v0  ;;  %v1350_v45 = vunpack.c.h.bf16 %v5062_v16  ;;  %v6124_v50 = vunpack.c.h.bf16 %v5177_v39  ;;  %v1349_v31 = vunpack.c.l.bf16 %v5062_v16  ;;  %v6129_v19 = vunpack.c.l.bf16 %v5177_v39 }
 0x554   :  { %1717 = vmatprep.subr.mxu1 %v1330_v12  ;;  %1964 = vmatprep.subr.mxu0 %v6072_v60  ;;  %9109 = vst [vmem:[#allocation100_spill] sm:$0xff] %v6113_v28  ;;  %9110 = vst [vmem:[#allocation101_spill] sm:$0xff] %v6119_v22  ;;  %v1344_v56 = vunpack.c.h.bf16 %v5047_v13  ;;  %v6134_v42 = vunpack.c.h.bf16 %v5162_v36  ;;  %v1343_v21 = vunpack.c.l.bf16 %v5047_v13  ;;  %v6139_v16 = vunpack.c.l.bf16 %v5162_v36 }
 0x555   :  { %1718 = vmatpush1.msra.mxu1 %v1329_v37  ;;  %1965 = vmatpush1.msra.mxu0 %v6077_v62  ;;  %9111 = vst [vmem:[#allocation102_spill] sm:$0xff] %v6124_v50  ;;  %9112 = vst [vmem:[#allocation103_spill] sm:$0xff] %v6129_v19  ;;  %v1338_v5 = vunpack.c.h.bf16 %v5032_v10  ;;  %v6144_v39 = vunpack.c.h.bf16 %v5147_v33  ;;  %v1337_v18 = vunpack.c.l.bf16 %v5032_v10  ;;  %v6149_v13 = vunpack.c.l.bf16 %v5147_v33 }
 0x556   :  { %1719 = vmatprep.subr.mxu1 %v1324_v9  ;;  %1966 = vmatprep.subr.mxu0 %v6082_v57  ;;  %9113 = vst [vmem:[#allocation104_spill] sm:$0xff] %v6134_v42  ;;  %9114 = vst [vmem:[#allocation105_spill] sm:$0xff] %v6139_v16  ;;  %v1332_v36 = vunpack.c.h.bf16 %v5017_v7  ;;  %v6154_v61 = vunpack.c.h.bf16 %v5132_v30  ;;  %v6158_v15 = vunpack.c.l.bf16 %v5132_v30  ;;  %v1331_v10 = vunpack.c.l.bf16 %v5017_v7 }
 0x557   :  { %1720 = vmatpush1.msra.mxu1 %v1323_v38  ;;  %1967 = vmatpush1.msra.mxu0 %v6087_v25  ;;  %9115 = vst [vmem:[#allocation106_spill] sm:$0xff] %v6144_v39  ;;  %9116 = vst [vmem:[#allocation107_spill] sm:$0xff] %v6149_v13  ;;  %v6163_v33 = vunpack.c.h.bf16 %v5117_v27  ;;  %v1326_v59 = vunpack.c.h.bf16 %v5002_v4  ;;  %v6169_v12 = vunpack.c.l.bf16 %v5117_v27  ;;  %v1325_v30 = vunpack.c.l.bf16 %v5002_v4 }
 0x558   :  { %1721 = vmatprep.subr.mxu1 %v1318_v6  ;;  %1968 = vmatprep.subr.mxu0 %v6092_v54  ;;  %9117 = vst [vmem:[#allocation108_spill] sm:$0xff] %v6154_v61  ;;  %9118 = vst [vmem:[#allocation109_spill] sm:$0xff] %v6158_v15  ;;  %v6174_v37 = vunpack.c.h.bf16 %v5102_v24  ;;  %v1320_v7 = vunpack.c.h.bf16 %v4987_v1  ;;  %v1319_v27 = vunpack.c.l.bf16 %v4987_v1  ;;  %v6183_v9 = vunpack.c.l.bf16 %v5102_v24 }
 0x559   :  { %1722 = vmatpush1.msra.mxu1 %v1317_v11  ;;  %1969 = vmatpush1.msra.mxu0 %v6097_v40  ;;  %9119 = vst [vmem:[#allocation110_spill] sm:$0xff] %v6163_v33  ;;  %9120 = vst [vmem:[#allocation111_spill] sm:$0xff] %v6169_v12  ;;  %v1364_v4 = vunpack.c.h.bf16 %v5097_v23  ;;  %v6189_v38 = vunpack.c.h.bf16 %v5567_v46  ;;  %v1363_v6 = vunpack.c.l.bf16 %v5097_v23  ;;  %v6194_v1 = vunpack.c.l.bf16 %v5567_v46 }
 0x55a   :  { %4369 = vmatmul.mubr.msk.f32.vlgmr.msra.gmra.mxu1 %vm847_vm4, %v6019_v49  ;;  %1784 = vmatprep.subr.mxu1 %v1362_v3  ;;  %9121 = vst [vmem:[#allocation112_spill] sm:$0xff] %v6174_v37  ;;  %9122 = vst [vmem:[#allocation113_spill] sm:$0xff] %v6183_v9  ;;  %v1358_v24 = vunpack.c.h.bf16 %v5082_v20  ;;  %v6199_v11 = vunpack.c.h.bf16 %v5552_v47  ;;  %v1357_v3 = vunpack.c.l.bf16 %v5082_v20  ;;  %v6205_v23 = vunpack.c.l.bf16 %v5552_v47  ;;  %v9129_v47 = vld [vmem:[#allocation81_spill] sm:$0xff] }
 0x55b   :  { %1970 = vmatprep.subr.mxu0 %v6103_v51  ;;  %1785 = vmatpush1.msra.mxu1 %v1361_v55  ;;  %9123 = vst [vmem:[#allocation114_spill] sm:$0xff] %v6189_v38  ;;  %9124 = vst [vmem:[#allocation115_spill] sm:$0xff] %v6194_v1  ;;  %v1352_v46 = vunpack.c.h.bf16 %v5067_v17  ;;  %v6210_v55 = vunpack.c.h.bf16 %v5537_v43  ;;  %v6215_v20 = vunpack.c.l.bf16 %v5537_v43  ;;  %v9133_v43 = vld [vmem:[#allocation78_spill] sm:$0xff]  ;;  %vm4162_vm5 = vcmask 1043456  }
 0x55c   :  { %1971 = vmatpush1.msra.mxu0 %v6108_v0  ;;  %1786 = vmatprep.subr.mxu1 %v1356_v48  ;;  %9125 = vst [vmem:[#allocation116_spill] sm:$0xff] %v6199_v11  ;;  %9126 = vst [vmem:[#allocation117_spill] sm:$0xff] %v6205_v23  ;;  %v1351_v48 = vunpack.c.l.bf16 %v5067_v17  ;;  %v6225_v17 = vunpack.c.l.bf16 %v9129_v47  ;;  %vm4165_vm6 = vcmask 1045504  }
 0x55d   :  { %1972 = vmatprep.subr.mxu0 %v6113_v28  ;;  %1787 = vmatpush1.msra.mxu1 %v1355_v34  ;;  %9127 = vst [vmem:[#allocation118_spill] sm:$0xff] %v6210_v55  ;;  %9128 = vst [vmem:[#allocation119_spill] sm:$0xff] %v6215_v20  ;;  %v1346_v34 = vunpack.c.h.bf16 %v5052_v14 }
 0x55e   :  { %1973 = vmatpush1.msra.mxu0 %v6119_v22  ;;  %1788 = vmatprep.subr.mxu1 %v1350_v45  ;;  %v6220_v45 = vunpack.c.h.bf16 %v9129_v47  ;;  %9131 = vst [vmem:[#allocation120_spill] sm:$0xff] %v6225_v17 }
 0x55f   :  { %1974 = vmatprep.subr.mxu0 %v6124_v50  ;;  %1789 = vmatpush1.msra.mxu1 %v1349_v31  ;;  %v1345_v31 = vunpack.c.l.bf16 %v5052_v14  ;;  %v6235_v14 = vunpack.c.l.bf16 %v9133_v43 }
 0x560   :  { %1975 = vmatpush1.msra.mxu0 %v6129_v19  ;;  %1790 = vmatprep.subr.mxu1 %v1344_v56  ;;  %9130 = vst [vmem:[#allocation81_spill] sm:$0xff] %v6220_v45  ;;  %v9132_v56 = vld [vmem:[#allocation12_spill] sm:$0xff] }
 0x561   :  { %1976 = vmatprep.subr.mxu0 %v6134_v42  ;;  %1791 = vmatpush1.msra.mxu1 %v1343_v21  ;;  %v1340_v21 = vunpack.c.h.bf16 %v9132_v56  ;;  %9135 = vst [vmem:[#allocation78_spill] sm:$0xff] %v6235_v14 }
 0x562   :  { %1977 = vmatpush1.msra.mxu0 %v6139_v16  ;;  %1792 = vmatprep.subr.mxu1 %v1338_v5  ;;  %v6230_v5 = vunpack.c.h.bf16 %v9133_v43 }
 0x563   :  { %1978 = vmatprep.subr.mxu0 %v6144_v39  ;;  %1793 = vmatpush1.msra.mxu1 %v1337_v18  ;;  %v1339_v18 = vunpack.c.l.bf16 %v9132_v56 }
 0x564   :  { %1979 = vmatpush1.msra.mxu0 %v6149_v13  ;;  %1761 = vmatprep.mubr.f32.mxu1 %v9096_v53  ;;  %9134 = vst [vmem:[#allocation12_spill] sm:$0xff] %v6230_v5 }
 0x565   :  { %1794 = vmatprep.subr.mxu1 %v1332_v36  ;;  %1980 = vmatprep.subr.mxu0 %v6154_v61  ;;  %v9136_v36 = vld [vmem:[#allocation11_spill] sm:$0xff] }
 0x566   :  { %4370 = vmatmul.mubr.msk.f32.gmra.mxu1 %vm847_vm4, %v6017_v44  ;;  %1981 = vmatpush1.msra.mxu0 %v6158_v15 }
 0x567   :  { %1795 = vmatpush1.msra.mxu1 %v1331_v10  ;;  %1982 = vmatprep.subr.mxu0 %v6163_v33  ;;  %v1334_v10 = vunpack.c.h.bf16 %v9136_v36 }
 0x568   :  { %1796 = vmatprep.subr.mxu1 %v1326_v59  ;;  %1983 = vmatpush1.msra.mxu0 %v6169_v12  ;;  %v9137_v59 = vld [vmem:[#allocation75_spill] sm:$0xff] }
 0x569   :  { %1797 = vmatpush1.msra.mxu1 %v1325_v30  ;;  %1984 = vmatprep.subr.mxu0 %v6174_v37  ;;  %v6240_v30 = vunpack.c.h.bf16 %v9137_v59  ;;  %v9216_v37 = vld [vmem:[#allocation38_spill] sm:$0xff] }
 0x56a   :  { %1798 = vmatprep.subr.mxu1 %v1320_v7  ;;  %1832 = vmatprep.mubr.f32.mxu1 %v9096_v53  ;;  %v6244_v7 = vunpack.c.l.bf16 %v9137_v59 }
 0x56b   :  { %1799 = vmatpush1.msra.mxu1 %v1319_v27  ;;  %1985 = vmatpush1.msra.mxu0 %v6183_v9  ;;  %9138 = vst [vmem:[#allocation11_spill] sm:$0xff] %v6240_v30  ;;  %v1333_v27 = vunpack.c.l.bf16 %v9136_v36 }
 0x56c   :  { %4371 = vmatmul.mubr.msk.f32.vlgmr.msra.gmra.mxu1 %vm847_vm4, %v6019_v49  ;;  %1861 = vmatprep.subr.mxu1 %v1364_v4  ;;  %9139 = vst [vmem:[#allocation75_spill] sm:$0xff] %v6244_v7  ;;  %v9140_v4 = vld [vmem:[#allocation72_spill] sm:$0xff] }
 0x56d   :  { %1986 = vmatprep.subr.mxu0 %v6189_v38  ;;  %1862 = vmatpush1.msra.mxu1 %v1363_v6  ;;  %v6249_v6 = vunpack.c.h.bf16 %v9140_v4 }
 0x56e   :  { %1987 = vmatpush2.msra.mxu0 %v6194_v1  ;;  %1863 = vmatprep.subr.mxu1 %v1358_v24  ;;  %v9142_v24 = vld [vmem:[#allocation10_spill] sm:$0xff]  ;;  %v9210_v1 = vld [vmem:[#allocation40_spill] sm:$0xff] }
 0x56f   :  { %1988 = vmatprep.subr.mxu0 %v6199_v11  ;;  %1864 = vmatpush1.msra.mxu1 %v1357_v3  ;;  %9141 = vst [vmem:[#allocation72_spill] sm:$0xff] %v6249_v6  ;;  %v1328_v3 = vunpack.c.h.bf16 %v9142_v24  ;;  %v6436_v38 = vunpack.c.h.bf16 %v9210_v1 }
 0x570   :  { %1989 = vmatpush2.msra.mxu0 %v6205_v23  ;;  %1865 = vmatprep.subr.mxu1 %v1352_v46  ;;  %v6255_v46 = vunpack.c.l.bf16 %v9140_v4  ;;  %v9204_v23 = vld [vmem:[#allocation42_spill] sm:$0xff] }
 0x571   :  { %1990 = vmatprep.subr.mxu0 %v6210_v55  ;;  %1866 = vmatpush1.msra.mxu1 %v1351_v48  ;;  %v1327_v48 = vunpack.c.l.bf16 %v9142_v24  ;;  %v9154_v24 = vld [vmem:[#allocation63_spill] sm:$0xff]  ;;  %v6420_v11 = vunpack.c.h.bf16 %v9204_v23  ;;  %9211 = vst [vmem:[#allocation40_spill] sm:$0xff] %v6436_v38 }
 0x572   :  { %1991 = vmatpush2.msra.mxu0 %v6215_v20  ;;  %1867 = vmatprep.subr.mxu1 %v1346_v34  ;;  %9143 = vst [vmem:[#allocation10_spill] sm:$0xff] %v6255_v46  ;;  %v9144_v34 = vld [vmem:[#allocation69_spill] sm:$0xff] }
 0x573   :  { %1992 = vmatprep.subr.mxu0 %v6220_v45  ;;  %1868 = vmatpush1.msra.mxu1 %v1345_v31  ;;  %v6260_v47 = vunpack.c.h.bf16 %v9144_v34  ;;  %v9146_v31 = vld [vmem:[#allocation9_spill] sm:$0xff]  ;;  %v6269_v43 = vunpack.c.l.bf16 %v9144_v34  ;;  %9205 = vst [vmem:[#allocation42_spill] sm:$0xff] %v6420_v11 }
 0x574   :  { %1993 = vmatpush2.msra.mxu0 %v6225_v17  ;;  %1869 = vmatprep.subr.mxu1 %v1340_v21  ;;  %v1322_v56 = vunpack.c.h.bf16 %v9146_v31  ;;  %v1321_v21 = vunpack.c.l.bf16 %v9146_v31  ;;  %v6294_v31 = vunpack.c.l.bf16 %v9154_v24 }
 0x575   :  { %1994 = vmatprep.subr.mxu0 %v6230_v5  ;;  %1870 = vmatpush1.msra.mxu1 %v1339_v18  ;;  %9145 = vst [vmem:[#allocation69_spill] sm:$0xff] %v6260_v47  ;;  %9147 = vst [vmem:[#allocation9_spill] sm:$0xff] %v6269_v43  ;;  %v9148_v18 = vld [vmem:[#allocation66_spill] sm:$0xff] }
 0x576   :  { %1995 = vmatpush2.msra.mxu0 %v6235_v14  ;;  %1838 = vmatprep.mubr.f32.mxu1 %v9096_v53  ;;  %v6273_v36 = vunpack.c.h.bf16 %v9148_v18  ;;  %9158 = vst [vmem:[#allocation123_spill] sm:$0xff] %v6294_v31 }
 0x577   :  { %1871 = vmatprep.subr.mxu1 %v1334_v10  ;;  %1996 = vmatprep.subr.mxu0 %v6240_v30  ;;  %v9150_v10 = vld [vmem:[#allocation43_spill] sm:$0xff] }
 0x578   :  { %4372 = vmatmul.mubr.msk.f32.gmra.mxu1 %vm847_vm4, %v6017_v44  ;;  %1997 = vmatpush2.msra.mxu0 %v6244_v7  ;;  %9149 = vst [vmem:[#allocation66_spill] sm:$0xff] %v6273_v36  ;;  %v6277_v59 = vunpack.c.h.bf16 %v9150_v10  ;;  %v6284_v4 = vunpack.c.l.bf16 %v9150_v10 }
 0x579   :  { %1872 = vmatpush1.msra.mxu1 %v1333_v27  ;;  %1998 = vmatprep.subr.mxu0 %v6249_v6  ;;  %v6280_v27 = vunpack.c.l.bf16 %v9148_v18  ;;  %v9160_v18 = vld [vmem:[#allocation60_spill] sm:$0xff] }
 0x57a   :  { %1873 = vmatprep.subr.mxu1 %v1328_v3  ;;  %1999 = vmatpush2.msra.mxu0 %v6255_v46  ;;  %9151 = vst [vmem:[#allocation43_spill] sm:$0xff] %v6277_v59  ;;  %9153 = vst [vmem:[#allocation122_spill] sm:$0xff] %v6284_v4  ;;  %v6287_v3 = vunpack.c.h.bf16 %v9154_v24  ;;  %v6303_v10 = vunpack.c.h.bf16 %v9160_v18  ;;  %v6311_v24 = vunpack.c.l.bf16 %v9160_v18 }
 0x57b   :  { %1874 = vmatpush1.msra.mxu1 %v1327_v48  ;;  %2000 = vmatprep.subr.mxu0 %v6260_v47  ;;  %9152 = vst [vmem:[#allocation121_spill] sm:$0xff] %v6280_v27  ;;  %v9156_v48 = vld [vmem:[#allocation41_spill] sm:$0xff] }
 0x57c   :  { %1875 = vmatprep.subr.mxu1 %v1322_v56  ;;  %1909 = vmatprep.mubr.f32.mxu1 %v9096_v53  ;;  %9155 = vst [vmem:[#allocation63_spill] sm:$0xff] %v6287_v3  ;;  %v6291_v34 = vunpack.c.h.bf16 %v9156_v48  ;;  %v6300_v56 = vunpack.c.l.bf16 %v9156_v48  ;;  %9161 = vst [vmem:[#allocation60_spill] sm:$0xff] %v6303_v10  ;;  %v9166_v48 = vld [vmem:[#allocation57_spill] sm:$0xff] }
 0x57d   :  { %1876 = vmatpush1.msra.mxu1 %v1321_v21  ;;  %2001 = vmatpush2.msra.mxu0 %v6269_v43  ;;  %v9162_v21 = vld [vmem:[#allocation39_spill] sm:$0xff]  ;;  %9164 = vst [vmem:[#allocation125_spill] sm:$0xff] %v6311_v24  ;;  %v6327_v18 = vunpack.c.l.bf16 %v9166_v48 }
 0x57e   :  { %9157 = vst [vmem:[#allocation41_spill] sm:$0xff] %v6291_v34  ;;  %4373 = vmatmul.mubr.msk.f32.vlgmr.msra.gmra.mxu1 %vm847_vm4, %v6019_v49  ;;  %2002 = vmatprep.subr.mxu0 %v6273_v36  ;;  %9159 = vst [vmem:[#allocation124_spill] sm:$0xff] %v6300_v56  ;;  %v6308_v43 = vunpack.c.h.bf16 %v9162_v21  ;;  %v6316_v49 = vunpack.c.l.bf16 %v9162_v21  ;;  %v6319_v36 = vunpack.c.h.bf16 %v9166_v48 }
 0x57f   :  { %2025 = vmatprep.subr.mxu1 %v6277_v59  ;;  %2003 = vmatpush2.msra.mxu0 %v6280_v27  ;;  %v9168_v27 = vld [vmem:[#allocation37_spill] sm:$0xff]  ;;  %9170 = vst [vmem:[#allocation127_spill] sm:$0xff] %v6327_v18 }
 0x580   :  { %9163 = vst [vmem:[#allocation39_spill] sm:$0xff] %v6308_v43  ;;  %2026 = vmatpush1.msra.mxu1 %v6284_v4  ;;  %2004 = vmatprep.subr.mxu0 %v6287_v3  ;;  %9165 = vst [vmem:[#allocation126_spill] sm:$0xff] %v6316_v49  ;;  %v6324_v47 = vunpack.c.h.bf16 %v9168_v27  ;;  %v6332_v21 = vunpack.c.l.bf16 %v9168_v27  ;;  %v9172_v3 = vld [vmem:[#allocation54_spill] sm:$0xff] }
 0x581   :  { %9167 = vst [vmem:[#allocation57_spill] sm:$0xff] %v6319_v36  ;;  %2027 = vmatprep.subr.mxu1 %v6291_v34  ;;  %2005 = vmatpush2.msra.mxu0 %v6294_v31  ;;  %v6335_v46 = vunpack.c.h.bf16 %v9172_v3  ;;  %v9174_v31 = vld [vmem:[#allocation35_spill] sm:$0xff]  ;;  %v6343_v48 = vunpack.c.l.bf16 %v9172_v3 }
 0x582   :  { %9169 = vst [vmem:[#allocation37_spill] sm:$0xff] %v6324_v47  ;;  %2028 = vmatpush1.msra.mxu1 %v6300_v56  ;;  %2006 = vmatprep.subr.mxu0 %v6303_v10  ;;  %9171 = vst [vmem:[#allocation128_spill] sm:$0xff] %v6332_v21  ;;  %v6340_v6 = vunpack.c.h.bf16 %v9174_v31  ;;  %v6348_v27 = vunpack.c.l.bf16 %v9174_v31  ;;  %v9178_v10 = vld [vmem:[#allocation51_spill] sm:$0xff] }
 0x583   :  { %9173 = vst [vmem:[#allocation54_spill] sm:$0xff] %v6335_v46  ;;  %2029 = vmatprep.subr.mxu1 %v6308_v43  ;;  %2007 = vmatpush2.msra.mxu0 %v6311_v24  ;;  %9176 = vst [vmem:[#allocation129_spill] sm:$0xff] %v6343_v48  ;;  %v6351_v7 = vunpack.c.h.bf16 %v9178_v10  ;;  %v9180_v24 = vld [vmem:[#allocation33_spill] sm:$0xff]  ;;  %v6359_v3 = vunpack.c.l.bf16 %v9178_v10 }
 0x584   :  { %9175 = vst [vmem:[#allocation35_spill] sm:$0xff] %v6340_v6  ;;  %2030 = vmatpush1.msra.mxu1 %v6316_v49  ;;  %2008 = vmatprep.subr.mxu0 %v6319_v36  ;;  %9177 = vst [vmem:[#allocation130_spill] sm:$0xff] %v6348_v27  ;;  %v6356_v30 = vunpack.c.h.bf16 %v9180_v24  ;;  %v6364_v31 = vunpack.c.l.bf16 %v9180_v24  ;;  %v9184_v36 = vld [vmem:[#allocation48_spill] sm:$0xff] }
 0x585   :  { %9179 = vst [vmem:[#allocation51_spill] sm:$0xff] %v6351_v7  ;;  %2031 = vmatprep.subr.mxu1 %v6324_v47  ;;  %2009 = vmatpush2.msra.mxu0 %v6327_v18  ;;  %9182 = vst [vmem:[#allocation131_spill] sm:$0xff] %v6359_v3  ;;  %v6367_v14 = vunpack.c.h.bf16 %v9184_v36  ;;  %v9186_v18 = vld [vmem:[#allocation31_spill] sm:$0xff]  ;;  %v6375_v10 = vunpack.c.l.bf16 %v9184_v36 }
 0x586   :  { %9181 = vst [vmem:[#allocation33_spill] sm:$0xff] %v6356_v30  ;;  %2032 = vmatpush1.msra.mxu1 %v6332_v21  ;;  %2010 = vmatprep.subr.mxu0 %v6335_v46  ;;  %9183 = vst [vmem:[#allocation132_spill] sm:$0xff] %v6364_v31  ;;  %v6372_v5 = vunpack.c.h.bf16 %v9186_v18  ;;  %v6380_v24 = vunpack.c.l.bf16 %v9186_v18  ;;  %v9190_v46 = vld [vmem:[#allocation45_spill] sm:$0xff] }
 0x587   :  { %9185 = vst [vmem:[#allocation48_spill] sm:$0xff] %v6367_v14  ;;  %2033 = vmatprep.subr.mxu1 %v6340_v6  ;;  %2011 = vmatpush2.msra.mxu0 %v6343_v48  ;;  %9188 = vst [vmem:[#allocation133_spill] sm:$0xff] %v6375_v10  ;;  %v6383_v17 = vunpack.c.h.bf16 %v9190_v46  ;;  %v9192_v48 = vld [vmem:[#allocation29_spill] sm:$0xff]  ;;  %v6391_v36 = vunpack.c.l.bf16 %v9190_v46 }
 0x588   :  { %9187 = vst [vmem:[#allocation31_spill] sm:$0xff] %v6372_v5  ;;  %2034 = vmatpush1.msra.mxu1 %v6348_v27  ;;  %2012 = vmatprep.subr.mxu0 %v6351_v7  ;;  %9189 = vst [vmem:[#allocation134_spill] sm:$0xff] %v6380_v24  ;;  %v6388_v45 = vunpack.c.h.bf16 %v9192_v48  ;;  %v6396_v18 = vunpack.c.l.bf16 %v9192_v48  ;;  %v9196_v7 = vld [vmem:[#allocation27_spill] sm:$0xff] }
 0x589   :  { %9191 = vst [vmem:[#allocation45_spill] sm:$0xff] %v6383_v17  ;;  %2035 = vmatprep.subr.mxu1 %v6356_v30  ;;  %2013 = vmatpush2.msra.mxu0 %v6359_v3  ;;  %9194 = vst [vmem:[#allocation135_spill] sm:$0xff] %v6391_v36  ;;  %v6401_v20 = vunpack.c.h.bf16 %v9196_v7  ;;  %v9198_v3 = vld [vmem:[#allocation44_spill] sm:$0xff]  ;;  %v6409_v46 = vunpack.c.l.bf16 %v9196_v7 }
 0x58a   :  { %9193 = vst [vmem:[#allocation29_spill] sm:$0xff] %v6388_v45  ;;  %2036 = vmatpush1.msra.mxu1 %v6364_v31  ;;  %2014 = vmatprep.subr.mxu0 %v6367_v14  ;;  %9195 = vst [vmem:[#allocation136_spill] sm:$0xff] %v6396_v18  ;;  %v6404_v55 = vunpack.c.h.bf16 %v9198_v3  ;;  %v6412_v48 = vunpack.c.l.bf16 %v9198_v3  ;;  %v6428_v3 = vunpack.c.l.bf16 %v9204_v23  ;;  %v6444_v23 = vunpack.c.l.bf16 %v9210_v1 }
 0x58b   :  { %2037 = vmatprep.subr.mxu1 %v6372_v5  ;;  %2015 = vmatpush2.msra.mxu0 %v6375_v10  ;;  %9197 = vst [vmem:[#allocation27_spill] sm:$0xff] %v6401_v20  ;;  %9200 = vst [vmem:[#allocation137_spill] sm:$0xff] %v6409_v46  ;;  %v9202_v10 = vld [vmem:[#allocation25_spill] sm:$0xff]  ;;  %v6460_v1 = vunpack.c.l.bf16 %v9216_v37 }
 0x58c   :  { %9199 = vst [vmem:[#allocation44_spill] sm:$0xff] %v6404_v55  ;;  %2038 = vmatpush1.msra.mxu1 %v6380_v24  ;;  %2016 = vmatprep.subr.mxu0 %v6383_v17  ;;  %9201 = vst [vmem:[#allocation138_spill] sm:$0xff] %v6412_v48  ;;  %v6417_v14 = vunpack.c.h.bf16 %v9202_v10  ;;  %v6425_v7 = vunpack.c.l.bf16 %v9202_v10 }
 0x58d   :  { %2039 = vmatprep.subr.mxu1 %v6388_v45  ;;  %2017 = vmatpush2.msra.mxu0 %v6391_v36  ;;  %9207 = vst [vmem:[#allocation140_spill] sm:$0xff] %v6428_v3  ;;  %v9208_v36 = vld [vmem:[#allocation23_spill] sm:$0xff]  ;;  %9213 = vst [vmem:[#allocation142_spill] sm:$0xff] %v6444_v23 }
 0x58e   :  { %9203 = vst [vmem:[#allocation25_spill] sm:$0xff] %v6417_v14  ;;  %2040 = vmatpush1.msra.mxu1 %v6396_v18  ;;  %2019 = vmatmul.mubr.f32.vlgmr.msra.gmra.mxu0 %v9096_v53  ;;  %9206 = vst [vmem:[#allocation139_spill] sm:$0xff] %v6425_v7  ;;  %v6433_v17 = vunpack.c.h.bf16 %v9208_v36  ;;  %v6441_v10 = vunpack.c.l.bf16 %v9208_v36 }
 0x58f   :  { %2041 = vmatprep.subr.mxu1 %v6401_v20  ;;  %2096 = vmatprep.subr.mxu0 %v6404_v55  ;;  %v9214_v55 = vld [vmem:[#allocation21_spill] sm:$0xff]  ;;  %v6452_v20 = vunpack.c.h.bf16 %v9216_v37  ;;  %9219 = vst [vmem:[#allocation144_spill] sm:$0xff] %v6460_v1 }
 0x590   :  { %9209 = vst [vmem:[#allocation23_spill] sm:$0xff] %v6433_v17  ;;  %2042 = vmatpush1.msra.mxu1 %v6409_v46  ;;  %2097 = vmatpush1.msra.mxu0 %v6412_v48  ;;  %9212 = vst [vmem:[#allocation141_spill] sm:$0xff] %v6441_v10  ;;  %v6449_v9 = vunpack.c.h.bf16 %v9214_v55  ;;  %v6457_v36 = vunpack.c.l.bf16 %v9214_v55 }
 0x591   :  { %2043 = vmatprep.subr.mxu1 %v6417_v14  ;;  %2098 = vmatprep.subr.mxu0 %v6420_v11  ;;  %9217 = vst [vmem:[#allocation38_spill] sm:$0xff] %v6452_v20  ;;  %v9220_v11 = vld [vmem:[#allocation19_spill] sm:$0xff]  ;;  %v9222_v14 = vld [vmem:[#allocation36_spill] sm:$0xff] }
 0x592   :  { %9215 = vst [vmem:[#allocation21_spill] sm:$0xff] %v6449_v9  ;;  %2044 = vmatpush1.msra.mxu1 %v6425_v7  ;;  %2099 = vmatpush1.msra.mxu0 %v6428_v3  ;;  %9218 = vst [vmem:[#allocation143_spill] sm:$0xff] %v6457_v36  ;;  %v6465_v48 = vunpack.c.h.bf16 %v9220_v11  ;;  %v6468_v46 = vunpack.c.h.bf16 %v9222_v14  ;;  %v6473_v55 = vunpack.c.l.bf16 %v9220_v11  ;;  %v6476_v37 = vunpack.c.l.bf16 %v9222_v14 }
 0x593   :  { %2045 = vmatprep.subr.mxu1 %v6433_v17  ;;  %2100 = vmatprep.subr.mxu0 %v6436_v38  ;;  %v9226_v38 = vld [vmem:[#allocation17_spill] sm:$0xff]  ;;  %v9228_v17 = vld [vmem:[#allocation34_spill] sm:$0xff] }
 0x594   :  { %9221 = vst [vmem:[#allocation19_spill] sm:$0xff] %v6465_v48  ;;  %9223 = vst [vmem:[#allocation36_spill] sm:$0xff] %v6468_v46  ;;  %2046 = vmatpush1.msra.mxu1 %v6441_v10  ;;  %2101 = vmatpush1.msra.mxu0 %v6444_v23  ;;  %v6481_v3 = vunpack.c.h.bf16 %v9226_v38  ;;  %v6484_v7 = vunpack.c.h.bf16 %v9228_v17  ;;  %v6489_v11 = vunpack.c.l.bf16 %v9226_v38  ;;  %v6492_v14 = vunpack.c.l.bf16 %v9228_v17 }
 0x595   :  { %9224 = vst [vmem:[#allocation145_spill] sm:$0xff] %v6473_v55  ;;  %9225 = vst [vmem:[#allocation146_spill] sm:$0xff] %v6476_v37  ;;  %2047 = vmatprep.subr.mxu1 %v6449_v9  ;;  %2102 = vmatprep.subr.mxu0 %v6452_v20  ;;  %v9232_v20 = vld [vmem:[#allocation15_spill] sm:$0xff]  ;;  %v9234_v9 = vld [vmem:[#allocation32_spill] sm:$0xff] }
 0x596   :  { %9227 = vst [vmem:[#allocation17_spill] sm:$0xff] %v6481_v3  ;;  %9229 = vst [vmem:[#allocation34_spill] sm:$0xff] %v6484_v7  ;;  %2048 = vmatpush1.msra.mxu1 %v6457_v36  ;;  %2103 = vmatpush1.msra.mxu0 %v6460_v1  ;;  %v6497_v23 = vunpack.c.h.bf16 %v9232_v20  ;;  %v6500_v10 = vunpack.c.h.bf16 %v9234_v9  ;;  %v6505_v38 = vunpack.c.l.bf16 %v9232_v20  ;;  %v6508_v17 = vunpack.c.l.bf16 %v9234_v9 }
 0x597   :  { %9230 = vst [vmem:[#allocation147_spill] sm:$0xff] %v6489_v11  ;;  %9231 = vst [vmem:[#allocation148_spill] sm:$0xff] %v6492_v14  ;;  %2049 = vmatprep.subr.mxu1 %v6465_v48  ;;  %2104 = vmatprep.subr.mxu0 %v6468_v46  ;;  %v9238_v46 = vld [vmem:[#allocation13_spill] sm:$0xff]  ;;  %v9240_v48 = vld [vmem:[#allocation30_spill] sm:$0xff] }
 0x598   :  { %9233 = vst [vmem:[#allocation15_spill] sm:$0xff] %v6497_v23  ;;  %9235 = vst [vmem:[#allocation32_spill] sm:$0xff] %v6500_v10  ;;  %2050 = vmatpush1.msra.mxu1 %v6473_v55  ;;  %2105 = vmatpush1.msra.mxu0 %v6476_v37  ;;  %v6513_v1 = vunpack.c.h.bf16 %v9238_v46  ;;  %v6516_v36 = vunpack.c.h.bf16 %v9240_v48  ;;  %v6521_v20 = vunpack.c.l.bf16 %v9238_v46  ;;  %v6524_v9 = vunpack.c.l.bf16 %v9240_v48 }
 0x599   :  { %9236 = vst [vmem:[#allocation149_spill] sm:$0xff] %v6505_v38  ;;  %9237 = vst [vmem:[#allocation150_spill] sm:$0xff] %v6508_v17  ;;  %2051 = vmatprep.subr.mxu1 %v6481_v3  ;;  %2106 = vmatprep.subr.mxu0 %v6484_v7  ;;  %v9244_v7 = vld [vmem:[#allocation88_spill] sm:$0xff] }
 0x59a   :  { %9239 = vst [vmem:[#allocation13_spill] sm:$0xff] %v6513_v1  ;;  %9241 = vst [vmem:[#allocation30_spill] sm:$0xff] %v6516_v36  ;;  %2052 = vmatpush1.msra.mxu1 %v6489_v11  ;;  %2107 = vmatpush1.msra.mxu0 %v6492_v14  ;;  %v6529_v37 = vunpack.c.h.bf16 %v9244_v7  ;;  %v9246_v3 = vld [vmem:[#allocation28_spill] sm:$0xff]  ;;  %v6537_v46 = vunpack.c.l.bf16 %v9244_v7 }
 0x59b   :  { %9242 = vst [vmem:[#allocation151_spill] sm:$0xff] %v6521_v20  ;;  %9243 = vst [vmem:[#allocation152_spill] sm:$0xff] %v6524_v9  ;;  %2053 = vmatprep.subr.mxu1 %v6497_v23  ;;  %2108 = vmatprep.subr.mxu0 %v6500_v10  ;;  %v6532_v55 = vunpack.c.h.bf16 %v9246_v3  ;;  %v6540_v48 = vunpack.c.l.bf16 %v9246_v3  ;;  %v9250_v10 = vld [vmem:[#allocation86_spill] sm:$0xff] }
 0x59c   :  { %9245 = vst [vmem:[#allocation88_spill] sm:$0xff] %v6529_v37  ;;  %2054 = vmatpush1.msra.mxu1 %v6505_v38  ;;  %2109 = vmatpush1.msra.mxu0 %v6508_v17  ;;  %9248 = vst [vmem:[#allocation153_spill] sm:$0xff] %v6537_v46  ;;  %v6545_v14 = vunpack.c.h.bf16 %v9250_v10  ;;  %v9252_v23 = vld [vmem:[#allocation26_spill] sm:$0xff]  ;;  %v6553_v7 = vunpack.c.l.bf16 %v9250_v10 }
 0x59d   :  { %9247 = vst [vmem:[#allocation28_spill] sm:$0xff] %v6532_v55  ;;  %9249 = vst [vmem:[#allocation154_spill] sm:$0xff] %v6540_v48  ;;  %2055 = vmatprep.subr.mxu1 %v6513_v1  ;;  %2110 = vmatprep.subr.mxu0 %v6516_v36  ;;  %v6548_v11 = vunpack.c.h.bf16 %v9252_v23  ;;  %v6556_v3 = vunpack.c.l.bf16 %v9252_v23  ;;  %v9256_v36 = vld [vmem:[#allocation84_spill] sm:$0xff] }
 0x59e   :  { %9251 = vst [vmem:[#allocation86_spill] sm:$0xff] %v6545_v14  ;;  %2056 = vmatpush1.msra.mxu1 %v6521_v20  ;;  %2111 = vmatpush1.msra.mxu0 %v6524_v9  ;;  %9254 = vst [vmem:[#allocation155_spill] sm:$0xff] %v6553_v7  ;;  %v6561_v17 = vunpack.c.h.bf16 %v9256_v36  ;;  %v9258_v1 = vld [vmem:[#allocation24_spill] sm:$0xff]  ;;  %v6569_v10 = vunpack.c.l.bf16 %v9256_v36 }
 0x59f   :  { %9253 = vst [vmem:[#allocation26_spill] sm:$0xff] %v6548_v11  ;;  %9255 = vst [vmem:[#allocation156_spill] sm:$0xff] %v6556_v3  ;;  %2057 = vmatprep.subr.mxu1 %v6529_v37  ;;  %2112 = vmatprep.subr.mxu0 %v6532_v55  ;;  %v6564_v38 = vunpack.c.h.bf16 %v9258_v1  ;;  %v6572_v23 = vunpack.c.l.bf16 %v9258_v1  ;;  %v9262_v55 = vld [vmem:[#allocation82_spill] sm:$0xff] }
 0x5a0   :  { %9257 = vst [vmem:[#allocation84_spill] sm:$0xff] %v6561_v17  ;;  %2058 = vmatpush2.msra.mxu1 %v6537_v46  ;;  %2113 = vmatpush1.msra.mxu0 %v6540_v48  ;;  %9260 = vst [vmem:[#allocation157_spill] sm:$0xff] %v6569_v10  ;;  %v6577_v9 = vunpack.c.h.bf16 %v9262_v55  ;;  %v9264_v37 = vld [vmem:[#allocation22_spill] sm:$0xff]  ;;  %v6585_v36 = vunpack.c.l.bf16 %v9262_v55 }
 0x5a1   :  { %9259 = vst [vmem:[#allocation24_spill] sm:$0xff] %v6564_v38  ;;  %9261 = vst [vmem:[#allocation158_spill] sm:$0xff] %v6572_v23  ;;  %2059 = vmatprep.subr.mxu1 %v6545_v14  ;;  %2114 = vmatprep.subr.mxu0 %v6548_v11  ;;  %v6580_v20 = vunpack.c.h.bf16 %v9264_v37  ;;  %v6588_v1 = vunpack.c.l.bf16 %v9264_v37  ;;  %v9268_v11 = vld [vmem:[#allocation79_spill] sm:$0xff]  ;;  %v9270_v14 = vld [vmem:[#allocation20_spill] sm:$0xff] }
 0x5a2   :  { %9263 = vst [vmem:[#allocation82_spill] sm:$0xff] %v6577_v9  ;;  %2060 = vmatpush2.msra.mxu1 %v6553_v7  ;;  %2115 = vmatpush1.msra.mxu0 %v6556_v3  ;;  %9266 = vst [vmem:[#allocation159_spill] sm:$0xff] %v6585_v36  ;;  %v6593_v48 = vunpack.c.h.bf16 %v9268_v11  ;;  %v6596_v46 = vunpack.c.h.bf16 %v9270_v14  ;;  %v6601_v55 = vunpack.c.l.bf16 %v9268_v11  ;;  %v6604_v37 = vunpack.c.l.bf16 %v9270_v14 }
 0x5a3   :  { %9265 = vst [vmem:[#allocation22_spill] sm:$0xff] %v6580_v20  ;;  %9267 = vst [vmem:[#allocation160_spill] sm:$0xff] %v6588_v1  ;;  %2061 = vmatprep.subr.mxu1 %v6561_v17  ;;  %2116 = vmatprep.subr.mxu0 %v6564_v38  ;;  %v9274_v38 = vld [vmem:[#allocation76_spill] sm:$0xff]  ;;  %v9276_v17 = vld [vmem:[#allocation18_spill] sm:$0xff] }
 0x5a4   :  { %9269 = vst [vmem:[#allocation79_spill] sm:$0xff] %v6593_v48  ;;  %9271 = vst [vmem:[#allocation20_spill] sm:$0xff] %v6596_v46  ;;  %2062 = vmatpush2.msra.mxu1 %v6569_v10  ;;  %2117 = vmatpush1.msra.mxu0 %v6572_v23  ;;  %v6609_v3 = vunpack.c.h.bf16 %v9274_v38  ;;  %v6612_v7 = vunpack.c.h.bf16 %v9276_v17  ;;  %v6617_v11 = vunpack.c.l.bf16 %v9274_v38  ;;  %v6620_v14 = vunpack.c.l.bf16 %v9276_v17 }
 0x5a5   :  { %9272 = vst [vmem:[#allocation161_spill] sm:$0xff] %v6601_v55  ;;  %9273 = vst [vmem:[#allocation162_spill] sm:$0xff] %v6604_v37  ;;  %2063 = vmatprep.subr.mxu1 %v6577_v9  ;;  %2118 = vmatprep.subr.mxu0 %v6580_v20  ;;  %v9280_v20 = vld [vmem:[#allocation73_spill] sm:$0xff]  ;;  %v9282_v9 = vld [vmem:[#allocation16_spill] sm:$0xff] }
 0x5a6   :  { %9275 = vst [vmem:[#allocation76_spill] sm:$0xff] %v6609_v3  ;;  %9277 = vst [vmem:[#allocation18_spill] sm:$0xff] %v6612_v7  ;;  %2064 = vmatpush2.msra.mxu1 %v6585_v36  ;;  %2119 = vmatpush1.msra.mxu0 %v6588_v1  ;;  %v6625_v23 = vunpack.c.h.bf16 %v9280_v20  ;;  %v6628_v10 = vunpack.c.h.bf16 %v9282_v9  ;;  %v6633_v38 = vunpack.c.l.bf16 %v9280_v20  ;;  %v6636_v17 = vunpack.c.l.bf16 %v9282_v9 }
 0x5a7   :  { %9278 = vst [vmem:[#allocation163_spill] sm:$0xff] %v6617_v11  ;;  %9279 = vst [vmem:[#allocation164_spill] sm:$0xff] %v6620_v14  ;;  %2065 = vmatprep.subr.mxu1 %v6593_v48  ;;  %2120 = vmatprep.subr.mxu0 %v6596_v46  ;;  %v9286_v46 = vld [vmem:[#allocation70_spill] sm:$0xff] }
 0x5a8   :  { %9281 = vst [vmem:[#allocation73_spill] sm:$0xff] %v6625_v23  ;;  %9283 = vst [vmem:[#allocation16_spill] sm:$0xff] %v6628_v10  ;;  %2066 = vmatpush2.msra.mxu1 %v6601_v55  ;;  %2121 = vmatpush1.msra.mxu0 %v6604_v37  ;;  %v6641_v1 = vunpack.c.h.bf16 %v9286_v46  ;;  %v9288_v48 = vld [vmem:[#allocation14_spill] sm:$0xff]  ;;  %v6649_v20 = vunpack.c.l.bf16 %v9286_v46 }
 0x5a9   :  { %9284 = vst [vmem:[#allocation165_spill] sm:$0xff] %v6633_v38  ;;  %9285 = vst [vmem:[#allocation166_spill] sm:$0xff] %v6636_v17  ;;  %2067 = vmatprep.subr.mxu1 %v6609_v3  ;;  %2122 = vmatprep.subr.mxu0 %v6612_v7  ;;  %v6644_v36 = vunpack.c.h.bf16 %v9288_v48  ;;  %v6652_v9 = vunpack.c.l.bf16 %v9288_v48  ;;  %v9292_v7 = vld [vmem:[#allocation67_spill] sm:$0xff]  ;;  %v9294_v3 = vld [vmem:[#allocation89_spill] sm:$0xff] }
 0x5aa   :  { %9287 = vst [vmem:[#allocation70_spill] sm:$0xff] %v6641_v1  ;;  %2068 = vmatpush2.msra.mxu1 %v6617_v11  ;;  %2123 = vmatpush1.msra.mxu0 %v6620_v14  ;;  %9290 = vst [vmem:[#allocation167_spill] sm:$0xff] %v6649_v20  ;;  %v6657_v37 = vunpack.c.h.bf16 %v9292_v7  ;;  %v6660_v55 = vunpack.c.h.bf16 %v9294_v3  ;;  %v6665_v46 = vunpack.c.l.bf16 %v9292_v7  ;;  %v6668_v48 = vunpack.c.l.bf16 %v9294_v3 }
 0x5ab   :  { %9289 = vst [vmem:[#allocation14_spill] sm:$0xff] %v6644_v36  ;;  %9291 = vst [vmem:[#allocation168_spill] sm:$0xff] %v6652_v9  ;;  %2069 = vmatprep.subr.mxu1 %v6625_v23  ;;  %2124 = vmatprep.subr.mxu0 %v6628_v10  ;;  %v9298_v10 = vld [vmem:[#allocation64_spill] sm:$0xff]  ;;  %v9300_v23 = vld [vmem:[#allocation87_spill] sm:$0xff] }
 0x5ac   :  { %9293 = vst [vmem:[#allocation67_spill] sm:$0xff] %v6657_v37  ;;  %9295 = vst [vmem:[#allocation89_spill] sm:$0xff] %v6660_v55  ;;  %2070 = vmatpush2.msra.mxu1 %v6633_v38  ;;  %2125 = vmatpush1.msra.mxu0 %v6636_v17  ;;  %v6673_v14 = vunpack.c.h.bf16 %v9298_v10  ;;  %v6676_v11 = vunpack.c.h.bf16 %v9300_v23  ;;  %v6681_v7 = vunpack.c.l.bf16 %v9298_v10  ;;  %v6684_v3 = vunpack.c.l.bf16 %v9300_v23 }
 0x5ad   :  { %9296 = vst [vmem:[#allocation169_spill] sm:$0xff] %v6665_v46  ;;  %9297 = vst [vmem:[#allocation170_spill] sm:$0xff] %v6668_v48  ;;  %2071 = vmatprep.subr.mxu1 %v6641_v1  ;;  %2126 = vmatprep.subr.mxu0 %v6644_v36  ;;  %v9304_v36 = vld [vmem:[#allocation61_spill] sm:$0xff] }
 0x5ae   :  { %9299 = vst [vmem:[#allocation64_spill] sm:$0xff] %v6673_v14  ;;  %9301 = vst [vmem:[#allocation87_spill] sm:$0xff] %v6676_v11  ;;  %2072 = vmatpush2.msra.mxu1 %v6649_v20  ;;  %2127 = vmatpush1.msra.mxu0 %v6652_v9  ;;  %v6689_v17 = vunpack.c.h.bf16 %v9304_v36  ;;  %v9306_v1 = vld [vmem:[#allocation85_spill] sm:$0xff]  ;;  %v6697_v10 = vunpack.c.l.bf16 %v9304_v36 }
 0x5af   :  { %9302 = vst [vmem:[#allocation171_spill] sm:$0xff] %v6681_v7  ;;  %9303 = vst [vmem:[#allocation172_spill] sm:$0xff] %v6684_v3  ;;  %2073 = vmatprep.subr.mxu1 %v6657_v37  ;;  %2128 = vmatprep.subr.mxu0 %v6660_v55  ;;  %v6692_v38 = vunpack.c.h.bf16 %v9306_v1  ;;  %v6700_v23 = vunpack.c.l.bf16 %v9306_v1  ;;  %v9310_v55 = vld [vmem:[#allocation58_spill] sm:$0xff]  ;;  %v9312_v37 = vld [vmem:[#allocation83_spill] sm:$0xff] }
 0x5b0   :  { %9305 = vst [vmem:[#allocation61_spill] sm:$0xff] %v6689_v17  ;;  %2074 = vmatpush2.msra.mxu1 %v6665_v46  ;;  %2129 = vmatpush2.msra.mxu0 %v6668_v48  ;;  %9308 = vst [vmem:[#allocation173_spill] sm:$0xff] %v6697_v10  ;;  %v6705_v9 = vunpack.c.h.bf16 %v9310_v55  ;;  %v6708_v20 = vunpack.c.h.bf16 %v9312_v37  ;;  %v6713_v36 = vunpack.c.l.bf16 %v9310_v55  ;;  %v6716_v1 = vunpack.c.l.bf16 %v9312_v37 }
 0x5b1   :  { %9307 = vst [vmem:[#allocation85_spill] sm:$0xff] %v6692_v38  ;;  %9309 = vst [vmem:[#allocation174_spill] sm:$0xff] %v6700_v23  ;;  %2075 = vmatprep.subr.mxu1 %v6673_v14  ;;  %2130 = vmatprep.subr.mxu0 %v6676_v11  ;;  %v9316_v11 = vld [vmem:[#allocation55_spill] sm:$0xff]  ;;  %v9318_v14 = vld [vmem:[#allocation80_spill] sm:$0xff] }
 0x5b2   :  { %9311 = vst [vmem:[#allocation58_spill] sm:$0xff] %v6705_v9  ;;  %9313 = vst [vmem:[#allocation83_spill] sm:$0xff] %v6708_v20  ;;  %2076 = vmatpush2.msra.mxu1 %v6681_v7  ;;  %2131 = vmatpush2.msra.mxu0 %v6684_v3  ;;  %v6721_v48 = vunpack.c.h.bf16 %v9316_v11  ;;  %v6724_v46 = vunpack.c.h.bf16 %v9318_v14  ;;  %v6729_v55 = vunpack.c.l.bf16 %v9316_v11  ;;  %v6734_v37 = vunpack.c.l.bf16 %v9318_v14 }
 0x5b3   :  { %9314 = vst [vmem:[#allocation175_spill] sm:$0xff] %v6713_v36  ;;  %9315 = vst [vmem:[#allocation176_spill] sm:$0xff] %v6716_v1  ;;  %2077 = vmatprep.subr.mxu1 %v6689_v17  ;;  %2132 = vmatprep.subr.mxu0 %v6692_v38  ;;  %v9322_v38 = vld [vmem:[#allocation52_spill] sm:$0xff] }
 0x5b4   :  { %9317 = vst [vmem:[#allocation55_spill] sm:$0xff] %v6721_v48  ;;  %9319 = vst [vmem:[#allocation80_spill] sm:$0xff] %v6724_v46  ;;  %2078 = vmatpush2.msra.mxu1 %v6697_v10  ;;  %2133 = vmatpush2.msra.mxu0 %v6700_v23  ;;  %v6739_v3 = vunpack.c.h.bf16 %v9322_v38  ;;  %v9324_v10 = vld [vmem:[#allocation77_spill] sm:$0xff]  ;;  %v6747_v11 = vunpack.c.l.bf16 %v9322_v38  ;;  %v9330_v23 = vld [vmem:[#allocation74_spill] sm:$0xff] }
 0x5b5   :  { %9320 = vst [vmem:[#allocation177_spill] sm:$0xff] %v6729_v55  ;;  %2079 = vmatprep.subr.mxu1 %v6705_v9  ;;  %2134 = vmatprep.subr.mxu0 %v6708_v20  ;;  %9321 = vst [vmem:[#allocation178_spill] sm:$0xff] %v6734_v37  ;;  %v6742_v17 = vunpack.c.h.bf16 %v9324_v10  ;;  %v6750_v14 = vunpack.c.l.bf16 %v9324_v10  ;;  %v6767_v10 = vunpack.c.l.bf16 %v9330_v23 }
 0x5b6   :  { %2080 = vmatpush2.msra.mxu1 %v6713_v36  ;;  %2135 = vmatpush2.msra.mxu0 %v6716_v1  ;;  %9323 = vst [vmem:[#allocation52_spill] sm:$0xff] %v6739_v3  ;;  %9326 = vst [vmem:[#allocation179_spill] sm:$0xff] %v6747_v11  ;;  %v9328_v1 = vld [vmem:[#allocation49_spill] sm:$0xff]  ;;  %v6758_v36 = vunpack.c.h.bf16 %v9330_v23 }
 0x5b7   :  { %9325 = vst [vmem:[#allocation77_spill] sm:$0xff] %v6742_v17  ;;  %2081 = vmatprep.subr.mxu1 %v6721_v48  ;;  %2136 = vmatprep.subr.mxu0 %v6724_v46  ;;  %9327 = vst [vmem:[#allocation180_spill] sm:$0xff] %v6750_v14  ;;  %v6755_v20 = vunpack.c.h.bf16 %v9328_v1  ;;  %v6764_v38 = vunpack.c.l.bf16 %v9328_v1  ;;  %v9334_v46 = vld [vmem:[#allocation46_spill] sm:$0xff]  ;;  %v9336_v48 = vld [vmem:[#allocation71_spill] sm:$0xff] }
 0x5b8   :  { %1915 = vmatprep.mubr.f32.mxu1 %v9096_v53  ;;  %2082 = vmatpush2.msra.mxu1 %v6729_v55  ;;  %9331 = vst [vmem:[#allocation74_spill] sm:$0xff] %v6758_v36  ;;  %9333 = vst [vmem:[#allocation182_spill] sm:$0xff] %v6767_v10  ;;  %v6772_v55 = vunpack.c.h.bf16 %v9334_v46  ;;  %v6775_v9 = vunpack.c.h.bf16 %v9336_v48  ;;  %v6785_v23 = vunpack.c.l.bf16 %v9336_v48  ;;  %v9340_v1 = vld [vmem:[#allocation68_spill] sm:$0xff]  ;;  %v9343_v48 = vld [vmem:[#allocation65_spill] sm:$0xff] }
 0x5b9   :  { %9329 = vst [vmem:[#allocation49_spill] sm:$0xff] %v6755_v20  ;;  %2137 = vmatpush2.msra.mxu0 %v6734_v37  ;;  %4374 = vmatmul.mubr.msk.f32.gmra.mxu1 %vm847_vm4, %v6017_v44  ;;  %9332 = vst [vmem:[#allocation181_spill] sm:$0xff] %v6764_v38  ;;  %v6780_v44 = vunpack.c.l.bf16 %v9334_v46  ;;  %v6795_v46 = vunpack.c.l.bf16 %v9340_v1 }
 0x5ba   :  { %2083 = vmatprep.subr.mxu1 %v6739_v3  ;;  %2138 = vmatprep.subr.mxu0 %v6742_v17  ;;  %9335 = vst [vmem:[#allocation46_spill] sm:$0xff] %v6772_v55  ;;  %9337 = vst [vmem:[#allocation71_spill] sm:$0xff] %v6775_v9  ;;  %v6790_v17 = vunpack.c.h.bf16 %v9340_v1 }
 0x5bb   :  { %2084 = vmatpush2.msra.mxu1 %v6747_v11  ;;  %2139 = vmatpush2.msra.mxu0 %v6750_v14  ;;  %9338 = vst [vmem:[#allocation183_spill] sm:$0xff] %v6780_v44  ;;  %9339 = vst [vmem:[#allocation184_spill] sm:$0xff] %v6785_v23 }
 0x5bc   :  { %2085 = vmatprep.subr.mxu1 %v6755_v20  ;;  %2140 = vmatprep.subr.mxu0 %v6758_v36  ;;  %9341 = vst [vmem:[#allocation68_spill] sm:$0xff] %v6790_v17  ;;  %9342 = vst [vmem:[#allocation185_spill] sm:$0xff] %v6795_v46  ;;  %v6800_v36 = vunpack.c.h.bf16 %v9343_v48 }
 0x5bd   :  { %2086 = vmatpush2.msra.mxu1 %v6764_v38  ;;  %2141 = vmatpush2.msra.mxu0 %v6767_v10  ;;  %v6805_v10 = vunpack.c.l.bf16 %v9343_v48 }
 0x5be   :  { %2087 = vmatprep.subr.mxu1 %v6772_v55  ;;  %2142 = vmatprep.subr.mxu0 %v6775_v9  ;;  %9344 = vst [vmem:[#allocation65_spill] sm:$0xff] %v6800_v36  ;;  %v9346_v9 = vld [vmem:[#allocation62_spill] sm:$0xff] }
 0x5bf   :  { %2088 = vmatpush2.msra.mxu1 %v6780_v44  ;;  %2089 = vmatprep.mubr.f32.mxu1 %v9096_v53  ;;  %9345 = vst [vmem:[#allocation186_spill] sm:$0xff] %v6805_v10  ;;  %v6809_v14 = vunpack.c.h.bf16 %v9346_v9  ;;  %v6814_v1 = vunpack.c.l.bf16 %v9346_v9  ;;  %v9352_v9 = vld [vmem:[#allocation56_spill] sm:$0xff] }
 0x5c0   :  { %2143 = vmatpush2.msra.mxu0 %v6785_v23  ;;  %2090 = vmatmul.mubr.f32.vlgmr.msra.gmra.mxu1 %v9096_v53  ;;  %v9349_v23 = vld [vmem:[#allocation59_spill] sm:$0xff] }
 0x5c1   :  { %2144 = vmatprep.subr.mxu0 %v6790_v17  ;;  %9347 = vst [vmem:[#allocation62_spill] sm:$0xff] %v6809_v14  ;;  %2160 = vmatprep.mubr.f32.mxu0 %v9096_v53  ;;  %9348 = vst [vmem:[#allocation187_spill] sm:$0xff] %v6814_v1  ;;  %v6819_v37 = vunpack.c.h.bf16 %v9349_v23  ;;  %v6824_v48 = vunpack.c.l.bf16 %v9349_v23  ;;  %v9355_v23 = vld [vmem:[#allocation53_spill] sm:$0xff] }
 0x5c2   :  { %2145 = vmatpush2.msra.mxu0 %v6795_v46  ;;  %2209 = vmatprep.subr.mxu1 %v6023_v52  ;;  %v6829_v46 = vunpack.c.h.bf16 %v9352_v9  ;;  %v9406_v17 = vld [vmem:[#allocation157_spill] sm:$0xff] }
 0x5c3   :  { %2146 = vmatprep.subr.mxu0 %v6800_v36  ;;  %9350 = vst [vmem:[#allocation59_spill] sm:$0xff] %v6819_v37  ;;  %2210 = vmatpush1.msra.mxu1 %v6027_v58  ;;  %9351 = vst [vmem:[#allocation188_spill] sm:$0xff] %v6824_v48  ;;  %v6834_v36 = vunpack.c.l.bf16 %v9352_v9  ;;  %v9358_v9 = vld [vmem:[#allocation50_spill] sm:$0xff] }
 0x5c4   :  { %2147 = vmatpush2.msra.mxu0 %v6805_v10  ;;  %2211 = vmatprep.subr.mxu1 %v6033_v35  ;;  %9353 = vst [vmem:[#allocation56_spill] sm:$0xff] %v6829_v46  ;;  %v6839_v10 = vunpack.c.h.bf16 %v9355_v23 }
 0x5c5   :  { %2148 = vmatprep.subr.mxu0 %v6809_v14  ;;  %2212 = vmatpush1.msra.mxu1 %v6037_v2  ;;  %9354 = vst [vmem:[#allocation189_spill] sm:$0xff] %v6834_v36  ;;  %v6844_v14 = vunpack.c.l.bf16 %v9355_v23  ;;  %v9361_v23 = vld [vmem:[#allocation47_spill] sm:$0xff] }
 0x5c6   :  { %2149 = vmatpush2.msra.mxu0 %v6814_v1  ;;  %2213 = vmatprep.subr.mxu1 %v6042_v41  ;;  %9356 = vst [vmem:[#allocation53_spill] sm:$0xff] %v6839_v10  ;;  %v6849_v1 = vunpack.c.h.bf16 %v9358_v9 }
 0x5c7   :  { %2150 = vmatprep.subr.mxu0 %v6819_v37  ;;  %2214 = vmatpush1.msra.mxu1 %v6047_v29  ;;  %9357 = vst [vmem:[#allocation190_spill] sm:$0xff] %v6844_v14  ;;  %v6854_v37 = vunpack.c.l.bf16 %v9358_v9  ;;  %v9365_v9 = vld [vmem:[#allocation112_spill] sm:$0xff] }
 0x5c8   :  { %2151 = vmatpush2.msra.mxu0 %v6824_v48  ;;  %2215 = vmatprep.subr.mxu1 %v6052_v32  ;;  %9359 = vst [vmem:[#allocation50_spill] sm:$0xff] %v6849_v1  ;;  %v6859_v48 = vunpack.c.h.bf16 %v9361_v23 }
 0x5c9   :  { %2152 = vmatprep.subr.mxu0 %v6829_v46  ;;  %2216 = vmatpush1.msra.mxu1 %v6057_v26  ;;  %9360 = vst [vmem:[#allocation191_spill] sm:$0xff] %v6854_v37  ;;  %v6864_v46 = vunpack.c.l.bf16 %v9361_v23  ;;  %v9366_v23 = vld [vmem:[#allocation137_spill] sm:$0xff] }
 0x5ca   :  { %2153 = vmatpush2.msra.mxu0 %v6834_v36  ;;  %2217 = vmatprep.subr.mxu1 %v6062_v63  ;;  %9362 = vst [vmem:[#allocation47_spill] sm:$0xff] %v6859_v48  ;;  %v9404_v36 = vld [vmem:[#allocation84_spill] sm:$0xff] }
 0x5cb   :  { %2154 = vmatprep.subr.mxu0 %v6839_v10  ;;  %2218 = vmatpush1.msra.mxu1 %v6067_v8  ;;  %9363 = vst [vmem:[#allocation192_spill] sm:$0xff] %v6864_v46  ;;  %v9402_v10 = vld [vmem:[#allocation155_spill] sm:$0xff] }
 0x5cc   :  { %2155 = vmatpush2.msra.mxu0 %v6844_v14  ;;  %2219 = vmatprep.subr.mxu1 %v6072_v60  ;;  %v9400_v14 = vld [vmem:[#allocation86_spill] sm:$0xff] }
 0x5cd   :  { %2156 = vmatprep.subr.mxu0 %v6849_v1  ;;  %2220 = vmatpush1.msra.mxu1 %v6077_v62  ;;  %v9398_v1 = vld [vmem:[#allocation153_spill] sm:$0xff] }
 0x5ce   :  { %2157 = vmatpush2.msra.mxu0 %v6854_v37  ;;  %2221 = vmatprep.subr.mxu1 %v6082_v57  ;;  %v9396_v37 = vld [vmem:[#allocation88_spill] sm:$0xff] }
 0x5cf   :  { %2158 = vmatprep.subr.mxu0 %v6859_v48  ;;  %2222 = vmatpush1.msra.mxu1 %v6087_v25  ;;  %v9394_v48 = vld [vmem:[#allocation151_spill] sm:$0xff] }
 0x5d0   :  { %2159 = vmatpush2.msra.mxu0 %v6864_v46  ;;  %2223 = vmatprep.subr.mxu1 %v6092_v54  ;;  %v9392_v46 = vld [vmem:[#allocation13_spill] sm:$0xff] }
 0x5d1   :  { %2161 = vmatmul.mubr.f32.vlgmr.msra.gmra.mxu0 %v9096_v53  ;;  %2280 = vmatprep.subr.mxu0 %v6277_v59  ;;  %v9364_v53 = vld [vmem:[#allocation27_spill] sm:$0xff]  ;;  %v9390_v59 = vld [vmem:[#allocation149_spill] sm:$0xff] }
 0x5d2   :  { %2281 = vmatpush1.msra.mxu0 %v6284_v4  ;;  %2224 = vmatpush1.msra.mxu1 %v6097_v40  ;;  %v9388_v4 = vld [vmem:[#allocation15_spill] sm:$0xff] }
 0x5d3   :  { %2282 = vmatprep.subr.mxu0 %v6291_v34  ;;  %2225 = vmatprep.subr.mxu1 %v6103_v51  ;;  %v9386_v34 = vld [vmem:[#allocation147_spill] sm:$0xff] }
 0x5d4   :  { %2283 = vmatpush1.msra.mxu0 %v6300_v56  ;;  %2226 = vmatpush1.msra.mxu1 %v6108_v0  ;;  %v9384_v56 = vld [vmem:[#allocation17_spill] sm:$0xff] }
 0x5d5   :  { %2284 = vmatprep.subr.mxu0 %v6308_v43  ;;  %2227 = vmatprep.subr.mxu1 %v6113_v28  ;;  %v9382_v43 = vld [vmem:[#allocation145_spill] sm:$0xff] }
 0x5d6   :  { %2285 = vmatpush1.msra.mxu0 %v6316_v49  ;;  %2228 = vmatpush1.msra.mxu1 %v6119_v22  ;;  %v9380_v49 = vld [vmem:[#allocation19_spill] sm:$0xff] }
 0x5d7   :  { %2286 = vmatprep.subr.mxu0 %v6324_v47  ;;  %2229 = vmatprep.subr.mxu1 %v6124_v50  ;;  %v9378_v47 = vld [vmem:[#allocation143_spill] sm:$0xff] }
 0x5d8   :  { %2287 = vmatpush1.msra.mxu0 %v6332_v21  ;;  %2230 = vmatpush1.msra.mxu1 %v6129_v19  ;;  %v9376_v21 = vld [vmem:[#allocation21_spill] sm:$0xff] }
 0x5d9   :  { %2288 = vmatprep.subr.mxu0 %v6340_v6  ;;  %2231 = vmatprep.subr.mxu1 %v6134_v42  ;;  %v9374_v6 = vld [vmem:[#allocation141_spill] sm:$0xff] }
 0x5da   :  { %2289 = vmatpush1.msra.mxu0 %v6348_v27  ;;  %2232 = vmatpush1.msra.mxu1 %v6139_v16  ;;  %v9372_v27 = vld [vmem:[#allocation23_spill] sm:$0xff] }
 0x5db   :  { %2290 = vmatprep.subr.mxu0 %v6356_v30  ;;  %2233 = vmatprep.subr.mxu1 %v6144_v39  ;;  %v9370_v30 = vld [vmem:[#allocation139_spill] sm:$0xff] }
 0x5dc   :  { %2291 = vmatpush1.msra.mxu0 %v6364_v31  ;;  %2234 = vmatpush1.msra.mxu1 %v6149_v13  ;;  %v9368_v31 = vld [vmem:[#allocation25_spill] sm:$0xff] }
 0x5dd   :  { %2292 = vmatprep.subr.mxu0 %v6372_v5  ;;  %2235 = vmatprep.subr.mxu1 %v6154_v61  ;;  %v9367_v5 = vld [vmem:[#allocation113_spill] sm:$0xff] }
 0x5de   :  { %2293 = vmatpush1.msra.mxu0 %v6380_v24  ;;  %2236 = vmatpush1.msra.mxu1 %v6158_v15  ;;  %v9369_v24 = vld [vmem:[#allocation114_spill] sm:$0xff] }
 0x5df   :  { %2294 = vmatprep.subr.mxu0 %v6388_v45  ;;  %2237 = vmatprep.subr.mxu1 %v6163_v33  ;;  %v9371_v45 = vld [vmem:[#allocation115_spill] sm:$0xff] }
 0x5e0   :  { %2295 = vmatpush1.msra.mxu0 %v6396_v18  ;;  %2238 = vmatpush1.msra.mxu1 %v6169_v12  ;;  %v9373_v18 = vld [vmem:[#allocation116_spill] sm:$0xff] }
 0x5e1   :  { %2296 = vmatprep.subr.mxu0 %v9364_v53  ;;  %2239 = vmatprep.subr.mxu1 %v9365_v9  ;;  %v9375_v53 = vld [vmem:[#allocation117_spill] sm:$0xff] }
 0x5e2   :  { %2297 = vmatpush1.msra.mxu0 %v9366_v23  ;;  %2240 = vmatpush1.msra.mxu1 %v9367_v5  ;;  %v9377_v23 = vld [vmem:[#allocation118_spill] sm:$0xff] }
 0x5e3   :  { %2298 = vmatprep.subr.mxu0 %v9368_v31  ;;  %2241 = vmatprep.subr.mxu1 %v9369_v24  ;;  %v9379_v31 = vld [vmem:[#allocation119_spill] sm:$0xff] }
 0x5e4   :  { %2299 = vmatpush1.msra.mxu0 %v9370_v30  ;;  %2242 = vmatpush2.msra.mxu1 %v9371_v45  ;;  %v9381_v30 = vld [vmem:[#allocation81_spill] sm:$0xff] }
 0x5e5   :  { %2300 = vmatprep.subr.mxu0 %v9372_v27  ;;  %2243 = vmatprep.subr.mxu1 %v9373_v18  ;;  %v9383_v27 = vld [vmem:[#allocation120_spill] sm:$0xff] }
 0x5e6   :  { %2301 = vmatpush1.msra.mxu0 %v9374_v6  ;;  %2244 = vmatpush2.msra.mxu1 %v9375_v53  ;;  %v9385_v6 = vld [vmem:[#allocation12_spill] sm:$0xff] }
 0x5e7   :  { %2302 = vmatprep.subr.mxu0 %v9376_v21  ;;  %2245 = vmatprep.subr.mxu1 %v9377_v23  ;;  %v9387_v21 = vld [vmem:[#allocation78_spill] sm:$0xff] }
 0x5e8   :  { %2303 = vmatpush1.msra.mxu0 %v9378_v47  ;;  %2246 = vmatpush2.msra.mxu1 %v9379_v31  ;;  %v9389_v47 = vld [vmem:[#allocation11_spill] sm:$0xff] }
 0x5e9   :  { %2304 = vmatprep.subr.mxu0 %v9380_v49  ;;  %2247 = vmatprep.subr.mxu1 %v9381_v30  ;;  %v9391_v49 = vld [vmem:[#allocation75_spill] sm:$0xff] }
 0x5ea   :  { %2305 = vmatpush1.msra.mxu0 %v9382_v43  ;;  %2248 = vmatpush2.msra.mxu1 %v9383_v27  ;;  %v9393_v43 = vld [vmem:[#allocation72_spill] sm:$0xff] }
 0x5eb   :  { %2306 = vmatprep.subr.mxu0 %v9384_v56  ;;  %2249 = vmatprep.subr.mxu1 %v9385_v6  ;;  %v9395_v56 = vld [vmem:[#allocation10_spill] sm:$0xff] }
 0x5ec   :  { %2307 = vmatpush1.msra.mxu0 %v9386_v34  ;;  %2250 = vmatpush2.msra.mxu1 %v9387_v21  ;;  %v9397_v34 = vld [vmem:[#allocation69_spill] sm:$0xff] }
 0x5ed   :  { %2308 = vmatprep.subr.mxu0 %v9388_v4  ;;  %2251 = vmatprep.subr.mxu1 %v9389_v47  ;;  %v9399_v4 = vld [vmem:[#allocation9_spill] sm:$0xff] }
 0x5ee   :  { %2309 = vmatpush1.msra.mxu0 %v9390_v59  ;;  %2252 = vmatpush2.msra.mxu1 %v9391_v49  ;;  %v9401_v59 = vld [vmem:[#allocation66_spill] sm:$0xff] }
 0x5ef   :  { %2310 = vmatprep.subr.mxu0 %v9392_v46  ;;  %2253 = vmatprep.subr.mxu1 %v9393_v43  ;;  %v9403_v46 = vld [vmem:[#allocation121_spill] sm:$0xff] }
 0x5f0   :  { %2311 = vmatpush1.msra.mxu0 %v9394_v48  ;;  %2254 = vmatpush2.msra.mxu1 %v9395_v56  ;;  %v9405_v48 = vld [vmem:[#allocation63_spill] sm:$0xff] }
 0x5f1   :  { %2312 = vmatprep.subr.mxu0 %v9396_v37  ;;  %2255 = vmatprep.subr.mxu1 %v9397_v34  ;;  %v9407_v37 = vld [vmem:[#allocation123_spill] sm:$0xff]  ;;  %v9408_v34 = vld [vmem:[#allocation82_spill] sm:$0xff] }
 0x5f2   :  { %2313 = vmatpush2.msra.mxu0 %v9398_v1  ;;  %2256 = vmatpush2.msra.mxu1 %v9399_v4  ;;  %v9409_v1 = vld [vmem:[#allocation60_spill] sm:$0xff]  ;;  %v9410_v4 = vld [vmem:[#allocation159_spill] sm:$0xff] }
 0x5f3   :  { %2314 = vmatprep.subr.mxu0 %v9400_v14  ;;  %2257 = vmatprep.subr.mxu1 %v9401_v59  ;;  %v9411_v14 = vld [vmem:[#allocation125_spill] sm:$0xff]  ;;  %v9412_v59 = vld [vmem:[#allocation79_spill] sm:$0xff] }
 0x5f4   :  { %2315 = vmatpush2.msra.mxu0 %v9402_v10  ;;  %2258 = vmatpush2.msra.mxu1 %v9403_v46  ;;  %v9413_v10 = vld [vmem:[#allocation57_spill] sm:$0xff] }
 0x5f5   :  { %2316 = vmatprep.subr.mxu0 %v9404_v36  ;;  %2259 = vmatprep.subr.mxu1 %v9405_v48  ;;  %v9414_v46 = vld [vmem:[#allocation161_spill] sm:$0xff]  ;;  %v9415_v36 = vld [vmem:[#allocation127_spill] sm:$0xff]  ;;  %v9416_v48 = vld [vmem:[#allocation76_spill] sm:$0xff] }
 0x5f6   :  { %2317 = vmatpush2.msra.mxu0 %v9406_v17  ;;  %2260 = vmatpush2.msra.mxu1 %v9407_v37  ;;  %v9417_v17 = vld [vmem:[#allocation54_spill] sm:$0xff]  ;;  %v9418_v37 = vld [vmem:[#allocation163_spill] sm:$0xff] }
 0x5f7   :  { %2318 = vmatprep.subr.mxu0 %v9408_v34  ;;  %2261 = vmatprep.subr.mxu1 %v9409_v1  ;;  %v9419_v34 = vld [vmem:[#allocation129_spill] sm:$0xff] }
 0x5f8   :  { %2319 = vmatpush2.msra.mxu0 %v9410_v4  ;;  %2262 = vmatpush2.msra.mxu1 %v9411_v14  ;;  %v9420_v1 = vld [vmem:[#allocation73_spill] sm:$0xff]  ;;  %v9421_v4 = vld [vmem:[#allocation51_spill] sm:$0xff] }
 0x5f9   :  { %2320 = vmatprep.subr.mxu0 %v9412_v59  ;;  %2263 = vmatprep.subr.mxu1 %v9413_v10  ;;  %v9422_v14 = vld [vmem:[#allocation165_spill] sm:$0xff]  ;;  %v9423_v59 = vld [vmem:[#allocation131_spill] sm:$0xff]  ;;  %v9424_v10 = vld [vmem:[#allocation70_spill] sm:$0xff] }
 0x5fa   :  { %2321 = vmatpush2.msra.mxu0 %v9414_v46  ;;  %2264 = vmatpush2.msra.mxu1 %v9415_v36  ;;  %v9425_v46 = vld [vmem:[#allocation48_spill] sm:$0xff]  ;;  %v9426_v36 = vld [vmem:[#allocation167_spill] sm:$0xff] }
 0x5fb   :  { %2322 = vmatprep.subr.mxu0 %v9416_v48  ;;  %2265 = vmatprep.subr.mxu1 %v9417_v17  ;;  %v9427_v48 = vld [vmem:[#allocation133_spill] sm:$0xff]  ;;  %v9428_v17 = vld [vmem:[#allocation67_spill] sm:$0xff] }
 0x5fc   :  { %2323 = vmatpush2.msra.mxu0 %v9418_v37  ;;  %2266 = vmatpush2.msra.mxu1 %v9419_v34  ;;  %v9429_v37 = vld [vmem:[#allocation45_spill] sm:$0xff] }
 0x5fd   :  { %2324 = vmatprep.subr.mxu0 %v9420_v1  ;;  %2267 = vmatprep.subr.mxu1 %v9421_v4  ;;  %v9430_v34 = vld [vmem:[#allocation169_spill] sm:$0xff]  ;;  %v9431_v1 = vld [vmem:[#allocation135_spill] sm:$0xff]  ;;  %v9432_v4 = vld [vmem:[#allocation64_spill] sm:$0xff] }
 0x5fe   :  { %2325 = vmatpush2.msra.mxu0 %v9422_v14  ;;  %2268 = vmatpush2.msra.mxu1 %v9423_v59  ;;  %v9433_v14 = vld [vmem:[#allocation44_spill] sm:$0xff] }
 0x5ff   :  { %2326 = vmatprep.subr.mxu0 %v9424_v10  ;;  %2269 = vmatprep.subr.mxu1 %v9425_v46  ;;  %v9434_v10 = vld [vmem:[#allocation61_spill] sm:$0xff] }
 0x600   :  { %2327 = vmatpush2.msra.mxu0 %v9426_v36  ;;  %2270 = vmatpush2.msra.mxu1 %v9427_v48  ;;  %v9435_v46 = vld [vmem:[#allocation173_spill] sm:$0xff]  ;;  %v9436_v36 = vld [vmem:[#allocation58_spill] sm:$0xff]  ;;  %v9437_v48 = vld [vmem:[#allocation175_spill] sm:$0xff] }
 0x601   :  { %2328 = vmatprep.subr.mxu0 %v9428_v17  ;;  %2271 = vmatprep.subr.mxu1 %v9429_v37  ;;  %v9438_v17 = vld [vmem:[#allocation55_spill] sm:$0xff]  ;;  %v9439_v37 = vld [vmem:[#allocation177_spill] sm:$0xff] }
 0x602   :  { %2329 = vmatpush2.msra.mxu0 %v9430_v34  ;;  %2272 = vmatpush2.msra.mxu1 %v9431_v1 }
 0x603   :  { %2330 = vmatprep.subr.mxu0 %v9432_v4  ;;  %2351 = vmatprep.subr.mxu1 %v9433_v14 }
 0x604   :  { %2331 = vmatpush2.msra.mxu0 %v6681_v7 }
 0x605   :  { %2332 = vmatprep.subr.mxu0 %v9434_v10 }
 0x606   :  { %2333 = vmatpush2.msra.mxu0 %v9435_v46 }
 0x607   :  { %2334 = vmatprep.subr.mxu0 %v9436_v36 }
 0x608   :  { %2335 = vmatpush2.msra.mxu0 %v9437_v48  ;;  %v9440_v48 = vld [vmem:[#allocation91_spill] sm:$0xff] }
 0x609   :  { %2336 = vmatprep.subr.mxu0 %v9438_v17  ;;  %v1653_v17 = vld [vmem:[%s8511_s5 + $0x8] sm:$0x3f] }
 0x60a   :  { %2337 = vmatpush2.msra.mxu0 %v9439_v37 }
 0x60b   :  { %2338 = vmatprep.subr.mxu0 %v6739_v3  ;;  %v1658_v3 = vrot.slane %v1653_v17, %v9440_v48 }
 0x60c   :  { %2339 = vmatpush2.msra.mxu0 %v6747_v11  ;;  %v9441_v11 = vld [vmem:[#allocation92_spill] sm:$0xff] }
 0x60d   :  { %2340 = vmatprep.subr.mxu0 %v6755_v20  ;;  %v1662_v10 = vrot.slane %v1653_v17, %v9441_v11 }
 0x60e   :  { %2341 = vmatpush2.msra.mxu0 %v6764_v38 }
 0x60f   :  { %2342 = vmatprep.subr.mxu0 %v6772_v55 }
 0x610   :  { %2343 = vmatpush2.msra.mxu0 %v6780_v44  ;;  %v9444_v44 = vld [vmem:[#allocation90_spill] sm:$0xff] }
 0x611   :  { %2494 = vmatprep.subr.mxu0 %v6023_v52  ;;  %v1665_v4 = vsub.s32 2, %v9444_v44  ;;  %v1669_v52 = vsub.s32 3, %v9444_v44  ;;  %v1677_v31 = vsub.s32 5, %v9444_v44 }
 0x613   :  { %v1666_v14 = vrot.slane %v1653_v17, %v1665_v4  ;;  %v1670_v59 = vrot.slane %v1653_v17, %v1669_v52 }
 0x61a   :  { %v1757_v36 = vpop.f32.mrf.mxu1 }
 0x61b   :  { %v7016_v6 = vadd.f32 %v1757_v36, %v1658_v3 }
 0x61c   :  { %v1759_v37 = vpop.f32.mrf.mxu1 }
 0x61d   :  { %9449 = vst [vmem:[#allocation196_spill] sm:$0xff] %v7016_v6 }
 0x626   :  { %v1763_v46 = vpop.f32.mrf.mxu1 }
 0x627   :  { %v6996_v20 = vadd.f32 %v1763_v46, %v1658_v3  ;;  %v1922_v46 = vld [vmem:[%s8511_s5 + $0xe] sm:$0x3f] }
 0x628   :  { %v1765_v38 = vpop.f32.mrf.mxu1 }
 0x629   :  { %9442 = vst [vmem:[#allocation91_spill] sm:$0xff] %v6996_v20  ;;  %v6998_v7 = vadd.f32 %v1765_v38, %v1662_v10  ;;  %v7013_v20 = vrot.slane %v1922_v46, %v9441_v11  ;;  %v1673_v11 = vsub.s32 4, %v9444_v44 }
 0x62b   :  { %9443 = vst [vmem:[#allocation92_spill] sm:$0xff] %v6998_v7  ;;  %v7010_v7 = vrot.slane %v1922_v46, %v9440_v48  ;;  %9448 = vst [vmem:[#allocation195_spill] sm:$0xff] %v7013_v20  ;;  %v1674_v3 = vrot.slane %v1653_v17, %v1673_v11 }
 0x62c   :  { %v1834_v55 = vpop.f32.mrf.mxu1 }
 0x62d   :  { %9447 = vst [vmem:[#allocation194_spill] sm:$0xff] %v7010_v7 }
 0x62e   :  { %v1836_v34 = vpop.f32.mrf.mxu1 }
 0x638   :  { %v1840_v1 = vpop.f32.mrf.mxu1 }
 0x639   :  { %v7002_v56 = vadd.f32 %v1840_v1, %v1666_v14 }
 0x63a   :  { %v1842_v43 = vpop.f32.mrf.mxu1 }
 0x63b   :  { %9445 = vst [vmem:[#allocation90_spill] sm:$0xff] %v7002_v56  ;;  %v7004_v49 = vadd.f32 %v1842_v43, %v1670_v59  ;;  %v7019_v43 = vadd.f32 %v1759_v37, %v1662_v10 }
 0x63d   :  { %9446 = vst [vmem:[#allocation193_spill] sm:$0xff] %v7004_v49  ;;  %9450 = vst [vmem:[#allocation197_spill] sm:$0xff] %v7019_v43 }
 0x63e   :  { %v1911_v48 = vpop.f32.mrf.mxu1 }
 0x64e   :  { %v2020_v38 = vpop.f32.mrf.mxu0 }
 0x64f   :  { %v2021_v21 = vadd.f32 %v2020_v38, %v7010_v7  ;;  %v1913_v38 = vpop.f32.mrf.mxu1  ;;  %v1678_v7 = vrot.slane %v1653_v17, %v1677_v31 }
 0x650   :  { %v2022_v47 = vpop.f32.mrf.mxu0 }
 0x651   :  { %v2023_v1 = vadd.f32 %v2022_v47, %v7013_v20  ;;  %v2167_v49 = vadd.f32 %v2021_v21, %v7016_v6  ;;  %v7029_v21 = vrot.slane %v1922_v46, %v1665_v4  ;;  %v7036_v20 = vadd.f32 %v1836_v34, %v1670_v59 }
 0x653   :  { %v2168_v56 = vadd.f32 %v2023_v1, %v7019_v43  ;;  %v4375_v27 = vmul.f32 -1.442695, %v2167_v49  ;;  %9453 = vst [vmem:[#allocation200_spill] sm:$0xff] %v7029_v21  ;;  %v7033_v43 = vadd.f32 %v1834_v55, %v1666_v14  ;;  %9455 = vst [vmem:[#allocation202_spill] sm:$0xff] %v7036_v20  ;;  %v7041_v55 = vrot.slane %v1922_v46, %v1673_v11 }
 0x654   :  { %v7043_v14 = vrot.slane %v1922_v46, %v1677_v31 }
 0x655   :  { %v4376_v30 = vmul.f32 -1.442695, %v2168_v56  ;;  %4711 = vpow2.f32 %v4375_v27  ;;  %v7031_v56 = vrot.slane %v1922_v46, %v1669_v52  ;;  %9456 = vst [vmem:[#allocation203_spill] sm:$0xff] %v7041_v55 }
 0x656   :  { %9457 = vst [vmem:[#allocation204_spill] sm:$0xff] %v7043_v14 }
 0x657   :  { %4713 = vpow2.f32 %v4376_v30  ;;  %9454 = vst [vmem:[#allocation201_spill] sm:$0xff] %v7031_v56 }
 0x662   :  { %v4712_v49 = vpop.eup %4711 }
 0x663   :  { %v2175_v44 = vadd.f32 1.0, %v4712_v49 }
 0x664   :  { %v4714_v1 = vpop.eup %4713 }
 0x665   :  { %4715 = vrcp.f32 %v2175_v44 }
 0x672   :  { %v4716_v34 = vpop.eup %4715 }
 0x679   :  { %v1917_v36 = vpop.f32.mrf.mxu1 }
 0x67a   :  { %v7025_v47 = vadd.f32 %v1917_v36, %v1674_v3 }
 0x67b   :  { %v1919_v37 = vpop.f32.mrf.mxu1 }
 0x67c   :  { %9451 = vst [vmem:[#allocation198_spill] sm:$0xff] %v7025_v47  ;;  %v7027_v10 = vadd.f32 %v1919_v37, %v1678_v7  ;;  %v2176_v37 = vadd.f32 1.0, %v4714_v1 }
 0x67e   :  { %9452 = vst [vmem:[#allocation199_spill] sm:$0xff] %v7027_v10 }
 0x680   :  { %v2091_v27 = vpop.f32.mrf.mxu1 }
 0x681   :  { %v2092_v30 = vadd.f32 %v2091_v27, %v7029_v21 }
 0x682   :  { %v2093_v6 = vpop.f32.mrf.mxu1 }
 0x683   :  { %v2181_v17 = vadd.f32 %v2092_v30, %v7033_v43  ;;  %v2094_v36 = vadd.f32 %v2093_v6, %v7031_v56  ;;  %v7046_v6 = vadd.f32 %v1911_v48, %v1674_v3 }
 0x685   :  { %v4377_v4 = vmul.f32 -1.442695, %v2181_v17  ;;  %v2182_v10 = vadd.f32 %v2094_v36, %v7036_v20 }
 0x687   :  { %4717 = vpow2.f32 %v4377_v4  ;;  %v4378_v52 = vmul.f32 -1.442695, %v2182_v10 }
 0x688   :  { %4719 = vrcp.f32 %v2176_v37  ;;  %v7049_v37 = vadd.f32 %v1913_v38, %v1678_v7 }
 0x689   :  { %4721 = vpow2.f32 %v4378_v52 }
 0x691   :  { %v2162_v49 = vpop.f32.mrf.mxu0 }
 0x692   :  { %v2163_v59 = vadd.f32 %v2162_v49, %v7041_v55 }
 0x693   :  { %v2164_v27 = vpop.f32.mrf.mxu0 }
 0x694   :  { %v4718_v30 = vpop.eup %4717  ;;  %v2195_v1 = vmul.f32 %v4716_v34, %v2163_v59  ;;  %v2165_v17 = vadd.f32 %v2164_v27, %v7043_v14 }
 0x695   :  { %v4720_v44 = vpop.eup %4719  ;;  %v2189_v36 = vadd.f32 1.0, %v4718_v30 }
 0x696   :  { %v4722_v10 = vpop.eup %4721  ;;  %v2197_v11 = vadd.f32 %v2195_v1, %v7046_v6  ;;  %v2196_v31 = vmul.f32 %v4720_v44, %v2165_v17  ;;  %v9458_v17 = vld [vmem:[#allocation138_spill] sm:$0xff] }
 0x697   :  { %4723 = vrcp.f32 %v2189_v36  ;;  %v2190_v46 = vadd.f32 1.0, %v4722_v10  ;;  %v9459_v44 = vld [vmem:[#allocation42_spill] sm:$0xff]  ;;  %v9460_v36 = vld [vmem:[#allocation140_spill] sm:$0xff] }
 0x698   :  { %v2198_v4 = vadd.f32 %v2196_v31, %v7049_v37  ;;  %v9461_v10 = vld [vmem:[#allocation40_spill] sm:$0xff]  ;;  %v9463_v31 = vld [vmem:[#allocation38_spill] sm:$0xff] }
 0x699   :  { %4725 = vrcp.f32 %v2190_v46  ;;  %v9464_v46 = vld [vmem:[#allocation144_spill] sm:$0xff] }
 0x69a   :  { %4727 = vtanh.f32 %v2197_v11  ;;  %v9462_v11 = vld [vmem:[#allocation142_spill] sm:$0xff] }
 0x69b   :  { %4729 = vtanh.f32 %v2198_v4  ;;  %v9465_v4 = vld [vmem:[#allocation36_spill] sm:$0xff] }
 0x6a4   :  { %v4724_v48 = vpop.eup %4723 }
 0x6a5   :  { %v2201_v3 = vsub.f32 1.0, %v4724_v48  ;;  %v2205_v38 = vmul.f32 0.0, %v4724_v48  ;;  %v9466_v48 = vld [vmem:[#allocation146_spill] sm:$0xff] }
 0x6a6   :  { %v4726_v52 = vpop.eup %4725 }
 0x6a7   :  { %v4728_v49 = vpop.eup %4727  ;;  %v2202_v59 = vsub.f32 1.0, %v4726_v52  ;;  %v2206_v7 = vmul.f32 0.0, %v4726_v52  ;;  %v9468_v52 = vld [vmem:[#allocation148_spill] sm:$0xff] }
 0x6a8   :  { %v4730_v34 = vpop.eup %4729  ;;  %v2203_v27 = vmul.f32 %v4728_v49, %v2201_v3  ;;  %v9467_v3 = vld [vmem:[#allocation34_spill] sm:$0xff]  ;;  %v9469_v49 = vld [vmem:[#allocation32_spill] sm:$0xff] }
 0x6a9   :  { %v2204_v30 = vmul.f32 %v4730_v34, %v2202_v59  ;;  %v9470_v59 = vld [vmem:[#allocation150_spill] sm:$0xff] }
 0x6aa   :  { %v7055_v1 = vadd.f32 %v2205_v38, %v2203_v27  ;;  %v9471_v34 = vld [vmem:[#allocation30_spill] sm:$0xff]  ;;  %v9472_v27 = vld [vmem:[#allocation152_spill] sm:$0xff] }
 0x6ab   :  { %v7053_v47 = vadd.f32 %v2206_v7, %v2204_v30  ;;  %v9473_v30 = vld [vmem:[#allocation28_spill] sm:$0xff]  ;;  %v9474_v7 = vld [vmem:[#allocation154_spill] sm:$0xff] }
 0x6ac   :  { %v9475_v38 = vld [vmem:[#allocation26_spill] sm:$0xff] }
 0x6ad   :  { %2273 = vmatprep.mubr.f32.mxu1 %v7053_v47  ;;  %2344 = vmatprep.mubr.f32.mxu0 %v7053_v47 }
 0x6ae   :  { %2274 = vmatmul.mubr.f32.vlgmr.msra.gmra.mxu1 %v7055_v1  ;;  %2345 = vmatmul.mubr.f32.vlgmr.msra.gmra.mxu0 %v7055_v1 }
 0x6af   :  { %2352 = vmatpush1.msra.mxu1 %v9458_v17  ;;  %2415 = vmatprep.mubr.f32.mxu1 %v7053_v47 }
 0x6b0   :  { %2353 = vmatprep.subr.mxu1 %v9459_v44  ;;  %2495 = vmatpush1.msra.mxu0 %v6027_v58 }
 0x6b1   :  { %2354 = vmatpush1.msra.mxu1 %v9460_v36  ;;  %2496 = vmatprep.subr.mxu0 %v6033_v35 }
 0x6b2   :  { %2355 = vmatprep.subr.mxu1 %v9461_v10  ;;  %2497 = vmatpush1.msra.mxu0 %v6037_v2 }
 0x6b3   :  { %2356 = vmatpush1.msra.mxu1 %v9462_v11  ;;  %2498 = vmatprep.subr.mxu0 %v6042_v41 }
 0x6b4   :  { %2357 = vmatprep.subr.mxu1 %v9463_v31  ;;  %2499 = vmatpush1.msra.mxu0 %v6047_v29 }
 0x6b5   :  { %2358 = vmatpush1.msra.mxu1 %v9464_v46  ;;  %2500 = vmatprep.subr.mxu0 %v6052_v32 }
 0x6b6   :  { %2359 = vmatprep.subr.mxu1 %v9465_v4  ;;  %2501 = vmatpush1.msra.mxu0 %v6057_v26 }
 0x6b7   :  { %2360 = vmatpush1.msra.mxu1 %v9466_v48  ;;  %2502 = vmatprep.subr.mxu0 %v6062_v63 }
 0x6b8   :  { %2361 = vmatprep.subr.mxu1 %v9467_v3  ;;  %2503 = vmatpush1.msra.mxu0 %v6067_v8 }
 0x6b9   :  { %2362 = vmatpush1.msra.mxu1 %v9468_v52  ;;  %2504 = vmatprep.subr.mxu0 %v6072_v60 }
 0x6ba   :  { %2363 = vmatprep.subr.mxu1 %v9469_v49  ;;  %2505 = vmatpush1.msra.mxu0 %v6077_v62 }
 0x6bb   :  { %2364 = vmatpush1.msra.mxu1 %v9470_v59  ;;  %2506 = vmatprep.subr.mxu0 %v6082_v57  ;;  %v9476_v57 = vld [vmem:[#allocation156_spill] sm:$0xff] }
 0x6bc   :  { %2365 = vmatprep.subr.mxu1 %v9471_v34  ;;  %2507 = vmatpush1.msra.mxu0 %v6087_v25  ;;  %v9477_v25 = vld [vmem:[#allocation24_spill] sm:$0xff] }
 0x6bd   :  { %2366 = vmatpush1.msra.mxu1 %v9472_v27  ;;  %2508 = vmatprep.subr.mxu0 %v6092_v54  ;;  %v9478_v54 = vld [vmem:[#allocation158_spill] sm:$0xff] }
 0x6be   :  { %2367 = vmatprep.subr.mxu1 %v9473_v30  ;;  %2509 = vmatpush1.msra.mxu0 %v6097_v40  ;;  %v9479_v40 = vld [vmem:[#allocation22_spill] sm:$0xff] }
 0x6bf   :  { %2368 = vmatpush1.msra.mxu1 %v9474_v7  ;;  %2510 = vmatprep.subr.mxu0 %v6103_v51  ;;  %v9480_v51 = vld [vmem:[#allocation160_spill] sm:$0xff] }
 0x6c0   :  { %2369 = vmatprep.subr.mxu1 %v9475_v38  ;;  %2511 = vmatpush1.msra.mxu0 %v6108_v0  ;;  %v9481_v0 = vld [vmem:[#allocation20_spill] sm:$0xff] }
 0x6c1   :  { %2370 = vmatpush1.msra.mxu1 %v9476_v57  ;;  %2512 = vmatprep.subr.mxu0 %v6113_v28  ;;  %v9482_v28 = vld [vmem:[#allocation162_spill] sm:$0xff] }
 0x6c2   :  { %2371 = vmatprep.subr.mxu1 %v9477_v25  ;;  %2513 = vmatpush1.msra.mxu0 %v6119_v22  ;;  %v9483_v22 = vld [vmem:[#allocation18_spill] sm:$0xff] }
 0x6c3   :  { %2372 = vmatpush1.msra.mxu1 %v9478_v54  ;;  %2514 = vmatprep.subr.mxu0 %v6124_v50  ;;  %v9484_v50 = vld [vmem:[#allocation164_spill] sm:$0xff] }
 0x6c4   :  { %2373 = vmatprep.subr.mxu1 %v9479_v40  ;;  %2515 = vmatpush1.msra.mxu0 %v6129_v19  ;;  %v9485_v19 = vld [vmem:[#allocation16_spill] sm:$0xff] }
 0x6c5   :  { %2374 = vmatpush1.msra.mxu1 %v9480_v51  ;;  %2516 = vmatprep.subr.mxu0 %v6134_v42  ;;  %v9486_v42 = vld [vmem:[#allocation166_spill] sm:$0xff] }
 0x6c6   :  { %2375 = vmatprep.subr.mxu1 %v9481_v0  ;;  %2517 = vmatpush1.msra.mxu0 %v6139_v16  ;;  %v9487_v16 = vld [vmem:[#allocation14_spill] sm:$0xff] }
 0x6c7   :  { %2376 = vmatpush1.msra.mxu1 %v9482_v28  ;;  %2518 = vmatprep.subr.mxu0 %v6144_v39  ;;  %v9488_v39 = vld [vmem:[#allocation168_spill] sm:$0xff] }
 0x6c8   :  { %2377 = vmatprep.subr.mxu1 %v9483_v22  ;;  %2519 = vmatpush1.msra.mxu0 %v6149_v13  ;;  %v9489_v13 = vld [vmem:[#allocation89_spill] sm:$0xff] }
 0x6c9   :  { %2378 = vmatpush1.msra.mxu1 %v9484_v50  ;;  %2520 = vmatprep.subr.mxu0 %v6154_v61  ;;  %v9490_v61 = vld [vmem:[#allocation170_spill] sm:$0xff] }
 0x6ca   :  { %2379 = vmatprep.subr.mxu1 %v9485_v19  ;;  %2521 = vmatpush1.msra.mxu0 %v6158_v15  ;;  %v9491_v15 = vld [vmem:[#allocation87_spill] sm:$0xff] }
 0x6cb   :  { %2380 = vmatpush1.msra.mxu1 %v9486_v42  ;;  %2522 = vmatprep.subr.mxu0 %v6163_v33  ;;  %v9492_v33 = vld [vmem:[#allocation172_spill] sm:$0xff] }
 0x6cc   :  { %2381 = vmatprep.subr.mxu1 %v9487_v16  ;;  %2523 = vmatpush1.msra.mxu0 %v6169_v12  ;;  %v9493_v12 = vld [vmem:[#allocation85_spill] sm:$0xff]  ;;  %v9616_v42 = vld [vmem:[#allocation196_spill] sm:$0xff] }
 0x6cd   :  { %2382 = vmatpush1.msra.mxu1 %v9488_v39  ;;  %2524 = vmatprep.subr.mxu0 %v9365_v9  ;;  %v9494_v9 = vld [vmem:[#allocation174_spill] sm:$0xff]  ;;  %v9615_v39 = vld [vmem:[#allocation195_spill] sm:$0xff] }
 0x6ce   :  { %2383 = vmatprep.subr.mxu1 %v9489_v13  ;;  %2525 = vmatpush1.msra.mxu0 %v9367_v5  ;;  %v9495_v5 = vld [vmem:[#allocation83_spill] sm:$0xff]  ;;  %v9614_v13 = vld [vmem:[#allocation194_spill] sm:$0xff] }
 0x6cf   :  { %2384 = vmatpush2.msra.mxu1 %v9490_v61  ;;  %2526 = vmatprep.subr.mxu0 %v9369_v24  ;;  %v9496_v61 = vld [vmem:[#allocation119_spill] sm:$0xff]  ;;  %v9497_v24 = vld [vmem:[#allocation176_spill] sm:$0xff] }
 0x6d0   :  { %2385 = vmatprep.subr.mxu1 %v9491_v15  ;;  %2527 = vmatpush2.msra.mxu0 %v9371_v45  ;;  %v9498_v15 = vld [vmem:[#allocation81_spill] sm:$0xff]  ;;  %v9499_v45 = vld [vmem:[#allocation80_spill] sm:$0xff] }
 0x6d1   :  { %2386 = vmatpush2.msra.mxu1 %v9492_v33  ;;  %2528 = vmatprep.subr.mxu0 %v9373_v18  ;;  %v9500_v33 = vld [vmem:[#allocation120_spill] sm:$0xff]  ;;  %v9501_v18 = vld [vmem:[#allocation178_spill] sm:$0xff] }
 0x6d2   :  { %2387 = vmatprep.subr.mxu1 %v9493_v12  ;;  %2529 = vmatpush2.msra.mxu0 %v9375_v53  ;;  %v9502_v12 = vld [vmem:[#allocation12_spill] sm:$0xff]  ;;  %v9503_v53 = vld [vmem:[#allocation77_spill] sm:$0xff] }
 0x6d3   :  { %2388 = vmatpush2.msra.mxu1 %v9494_v9  ;;  %2530 = vmatprep.subr.mxu0 %v9377_v23  ;;  %v9504_v9 = vld [vmem:[#allocation78_spill] sm:$0xff]  ;;  %v9505_v23 = vld [vmem:[#allocation180_spill] sm:$0xff] }
 0x6d4   :  { %2389 = vmatprep.subr.mxu1 %v9495_v5  ;;  %2531 = vmatpush2.msra.mxu0 %v9496_v61  ;;  %v9506_v5 = vld [vmem:[#allocation11_spill] sm:$0xff]  ;;  %v9507_v61 = vld [vmem:[#allocation74_spill] sm:$0xff] }
 0x6d5   :  { %2390 = vmatpush2.msra.mxu1 %v9497_v24  ;;  %2532 = vmatprep.subr.mxu0 %v9498_v15  ;;  %v9508_v24 = vld [vmem:[#allocation75_spill] sm:$0xff]  ;;  %v9509_v15 = vld [vmem:[#allocation182_spill] sm:$0xff] }
 0x6d6   :  { %2391 = vmatprep.subr.mxu1 %v9499_v45  ;;  %2533 = vmatpush2.msra.mxu0 %v9500_v33  ;;  %v9510_v45 = vld [vmem:[#allocation72_spill] sm:$0xff]  ;;  %v9511_v33 = vld [vmem:[#allocation71_spill] sm:$0xff] }
 0x6d7   :  { %2392 = vmatpush2.msra.mxu1 %v9501_v18  ;;  %2534 = vmatprep.subr.mxu0 %v9502_v12  ;;  %v9512_v18 = vld [vmem:[#allocation10_spill] sm:$0xff]  ;;  %v9513_v12 = vld [vmem:[#allocation184_spill] sm:$0xff] }
 0x6d8   :  { %2393 = vmatprep.subr.mxu1 %v9503_v53  ;;  %2535 = vmatpush2.msra.mxu0 %v9504_v9  ;;  %v9514_v53 = vld [vmem:[#allocation69_spill] sm:$0xff]  ;;  %v9515_v9 = vld [vmem:[#allocation68_spill] sm:$0xff] }
 0x6d9   :  { %2394 = vmatpush2.msra.mxu1 %v9505_v23  ;;  %2536 = vmatprep.subr.mxu0 %v9506_v5  ;;  %v9516_v23 = vld [vmem:[#allocation9_spill] sm:$0xff] }
 0x6da   :  { %2395 = vmatprep.subr.mxu1 %v9507_v61  ;;  %2537 = vmatpush2.msra.mxu0 %v9508_v24  ;;  %v9517_v5 = vld [vmem:[#allocation185_spill] sm:$0xff]  ;;  %v9518_v61 = vld [vmem:[#allocation66_spill] sm:$0xff] }
 0x6db   :  { %2396 = vmatpush2.msra.mxu1 %v9509_v15  ;;  %2538 = vmatprep.subr.mxu0 %v9510_v45  ;;  %v9519_v24 = vld [vmem:[#allocation65_spill] sm:$0xff]  ;;  %v9521_v45 = vld [vmem:[#allocation186_spill] sm:$0xff] }
 0x6dc   :  { %2397 = vmatprep.subr.mxu1 %v9511_v33  ;;  %2539 = vmatpush2.msra.mxu0 %v9512_v18  ;;  %v9520_v15 = vld [vmem:[#allocation121_spill] sm:$0xff]  ;;  %v9522_v33 = vld [vmem:[#allocation63_spill] sm:$0xff]  ;;  %v9523_v18 = vld [vmem:[#allocation62_spill] sm:$0xff] }
 0x6dd   :  { %2398 = vmatpush2.msra.mxu1 %v9513_v12  ;;  %2540 = vmatprep.subr.mxu0 %v9514_v53  ;;  %v9524_v12 = vld [vmem:[#allocation123_spill] sm:$0xff] }
 0x6de   :  { %2399 = vmatprep.subr.mxu1 %v9515_v9  ;;  %2541 = vmatpush2.msra.mxu0 %v9516_v23  ;;  %v9525_v53 = vld [vmem:[#allocation187_spill] sm:$0xff]  ;;  %v9526_v9 = vld [vmem:[#allocation60_spill] sm:$0xff] }
 0x6df   :  { %2400 = vmatpush2.msra.mxu1 %v9517_v5  ;;  %2542 = vmatprep.subr.mxu0 %v9518_v61  ;;  %v9527_v23 = vld [vmem:[#allocation59_spill] sm:$0xff]  ;;  %v9528_v5 = vld [vmem:[#allocation125_spill] sm:$0xff]  ;;  %v9529_v61 = vld [vmem:[#allocation188_spill] sm:$0xff] }
 0x6e0   :  { %2401 = vmatprep.subr.mxu1 %v9519_v24  ;;  %2543 = vmatpush2.msra.mxu0 %v9520_v15  ;;  %v9530_v24 = vld [vmem:[#allocation57_spill] sm:$0xff]  ;;  %v9531_v15 = vld [vmem:[#allocation56_spill] sm:$0xff] }
 0x6e1   :  { %2402 = vmatpush2.msra.mxu1 %v9521_v45  ;;  %2544 = vmatprep.subr.mxu0 %v9522_v33  ;;  %v9532_v45 = vld [vmem:[#allocation127_spill] sm:$0xff]  ;;  %v9533_v33 = vld [vmem:[#allocation189_spill] sm:$0xff] }
 0x6e2   :  { %2403 = vmatprep.subr.mxu1 %v9523_v18  ;;  %2545 = vmatpush2.msra.mxu0 %v9524_v12  ;;  %v9534_v18 = vld [vmem:[#allocation54_spill] sm:$0xff]  ;;  %v9535_v12 = vld [vmem:[#allocation53_spill] sm:$0xff] }
 0x6e3   :  { %2404 = vmatpush2.msra.mxu1 %v9525_v53  ;;  %2546 = vmatprep.subr.mxu0 %v9526_v9  ;;  %v9536_v53 = vld [vmem:[#allocation129_spill] sm:$0xff]  ;;  %v9537_v9 = vld [vmem:[#allocation190_spill] sm:$0xff] }
 0x6e4   :  { %2405 = vmatprep.subr.mxu1 %v9527_v23  ;;  %2547 = vmatpush2.msra.mxu0 %v9528_v5  ;;  %v9538_v23 = vld [vmem:[#allocation51_spill] sm:$0xff]  ;;  %v9539_v5 = vld [vmem:[#allocation50_spill] sm:$0xff] }
 0x6e5   :  { %2406 = vmatpush2.msra.mxu1 %v9529_v61  ;;  %2548 = vmatprep.subr.mxu0 %v9530_v24  ;;  %v9540_v61 = vld [vmem:[#allocation131_spill] sm:$0xff] }
 0x6e6   :  { %2407 = vmatprep.subr.mxu1 %v9531_v15  ;;  %2549 = vmatpush2.msra.mxu0 %v9532_v45  ;;  %v9541_v24 = vld [vmem:[#allocation191_spill] sm:$0xff]  ;;  %v9542_v15 = vld [vmem:[#allocation48_spill] sm:$0xff] }
 0x6e7   :  { %2408 = vmatpush2.msra.mxu1 %v9533_v33  ;;  %2550 = vmatprep.subr.mxu0 %v9534_v18  ;;  %v9543_v45 = vld [vmem:[#allocation47_spill] sm:$0xff]  ;;  %v9544_v33 = vld [vmem:[#allocation133_spill] sm:$0xff]  ;;  %v9545_v18 = vld [vmem:[#allocation192_spill] sm:$0xff] }
 0x6e8   :  { %2409 = vmatprep.subr.mxu1 %v9535_v12  ;;  %2551 = vmatpush2.msra.mxu0 %v9536_v53  ;;  %v9546_v12 = vld [vmem:[#allocation45_spill] sm:$0xff]  ;;  %v9557_v53 = vld [vmem:[#allocation35_spill] sm:$0xff] }
 0x6e9   :  { %2410 = vmatpush2.msra.mxu1 %v9537_v9  ;;  %2552 = vmatprep.subr.mxu0 %v9538_v23  ;;  %v9547_v9 = vld [vmem:[#allocation43_spill] sm:$0xff]  ;;  %v9548_v23 = vld [vmem:[#allocation122_spill] sm:$0xff] }
 0x6ea   :  { %2411 = vmatprep.subr.mxu1 %v9539_v5  ;;  %2553 = vmatpush2.msra.mxu0 %v9540_v61  ;;  %v9549_v5 = vld [vmem:[#allocation135_spill] sm:$0xff]  ;;  %v9550_v61 = vld [vmem:[#allocation41_spill] sm:$0xff] }
 0x6eb   :  { %2412 = vmatpush2.msra.mxu1 %v9541_v24  ;;  %2554 = vmatprep.subr.mxu0 %v9542_v15  ;;  %v9551_v24 = vld [vmem:[#allocation44_spill] sm:$0xff] }
 0x6ec   :  { %2413 = vmatprep.subr.mxu1 %v9543_v45  ;;  %2555 = vmatpush2.msra.mxu0 %v9544_v33  ;;  %v9552_v15 = vld [vmem:[#allocation124_spill] sm:$0xff]  ;;  %v9553_v45 = vld [vmem:[#allocation39_spill] sm:$0xff]  ;;  %v9554_v33 = vld [vmem:[#allocation126_spill] sm:$0xff] }
 0x6ed   :  { %2414 = vmatpush2.msra.mxu1 %v9545_v18  ;;  %2556 = vmatprep.subr.mxu0 %v9546_v12  ;;  %v9555_v18 = vld [vmem:[#allocation37_spill] sm:$0xff]  ;;  %v9556_v12 = vld [vmem:[#allocation128_spill] sm:$0xff] }
 0x6ee   :  { %2416 = vmatmul.mubr.f32.vlgmr.msra.gmra.mxu1 %v7055_v1  ;;  %2565 = vmatprep.subr.mxu1 %v9547_v9  ;;  %v9558_v9 = vld [vmem:[#allocation130_spill] sm:$0xff] }
 0x6ef   :  { %2566 = vmatpush1.msra.mxu1 %v9548_v23  ;;  %2557 = vmatpush2.msra.mxu0 %v9549_v5  ;;  %v9559_v23 = vld [vmem:[#allocation33_spill] sm:$0xff]  ;;  %v9560_v5 = vld [vmem:[#allocation132_spill] sm:$0xff] }
 0x6f0   :  { %2567 = vmatprep.subr.mxu1 %v9550_v61  ;;  %2636 = vmatprep.subr.mxu0 %v9551_v24  ;;  %v9561_v61 = vld [vmem:[#allocation31_spill] sm:$0xff]  ;;  %v9562_v24 = vld [vmem:[#allocation134_spill] sm:$0xff] }
 0x6f1   :  { %2568 = vmatpush1.msra.mxu1 %v9552_v15  ;;  %v9563_v15 = vld [vmem:[#allocation29_spill] sm:$0xff] }
 0x6f2   :  { %2569 = vmatprep.subr.mxu1 %v9553_v45  ;;  %v9564_v45 = vld [vmem:[#allocation136_spill] sm:$0xff] }
 0x6f3   :  { %2570 = vmatpush1.msra.mxu1 %v9554_v33  ;;  %v9565_v33 = vld [vmem:[#allocation27_spill] sm:$0xff] }
 0x6f4   :  { %2571 = vmatprep.subr.mxu1 %v9555_v18  ;;  %v9566_v18 = vld [vmem:[#allocation137_spill] sm:$0xff] }
 0x6f5   :  { %2572 = vmatpush1.msra.mxu1 %v9556_v12  ;;  %v9567_v12 = vld [vmem:[#allocation25_spill] sm:$0xff] }
 0x6f6   :  { %2573 = vmatprep.subr.mxu1 %v9557_v53  ;;  %v9568_v53 = vld [vmem:[#allocation139_spill] sm:$0xff] }
 0x6f7   :  { %2574 = vmatpush1.msra.mxu1 %v9558_v9  ;;  %v9569_v9 = vld [vmem:[#allocation23_spill] sm:$0xff] }
 0x6f8   :  { %2575 = vmatprep.subr.mxu1 %v9559_v23  ;;  %v9570_v23 = vld [vmem:[#allocation141_spill] sm:$0xff] }
 0x6f9   :  { %2576 = vmatpush1.msra.mxu1 %v9560_v5  ;;  %v9571_v5 = vld [vmem:[#allocation21_spill] sm:$0xff] }
 0x6fa   :  { %2577 = vmatprep.subr.mxu1 %v9561_v61  ;;  %v9572_v61 = vld [vmem:[#allocation143_spill] sm:$0xff] }
 0x6fb   :  { %2578 = vmatpush1.msra.mxu1 %v9562_v24  ;;  %v9573_v24 = vld [vmem:[#allocation19_spill] sm:$0xff] }
 0x6fc   :  { %2579 = vmatprep.subr.mxu1 %v9563_v15  ;;  %v9574_v15 = vld [vmem:[#allocation145_spill] sm:$0xff] }
 0x6fd   :  { %2580 = vmatpush1.msra.mxu1 %v9564_v45  ;;  %v9575_v45 = vld [vmem:[#allocation17_spill] sm:$0xff] }
 0x6fe   :  { %2581 = vmatprep.subr.mxu1 %v9565_v33  ;;  %v9576_v33 = vld [vmem:[#allocation147_spill] sm:$0xff] }
 0x6ff   :  { %2582 = vmatpush1.msra.mxu1 %v9566_v18  ;;  %v9577_v18 = vld [vmem:[#allocation15_spill] sm:$0xff] }
 0x700   :  { %2583 = vmatprep.subr.mxu1 %v9567_v12  ;;  %v9578_v12 = vld [vmem:[#allocation149_spill] sm:$0xff] }
 0x701   :  { %2584 = vmatpush1.msra.mxu1 %v9568_v53  ;;  %v9579_v53 = vld [vmem:[#allocation13_spill] sm:$0xff] }
 0x702   :  { %2585 = vmatprep.subr.mxu1 %v9569_v9  ;;  %v9580_v9 = vld [vmem:[#allocation151_spill] sm:$0xff] }
 0x703   :  { %2586 = vmatpush1.msra.mxu1 %v9570_v23  ;;  %v9581_v23 = vld [vmem:[#allocation88_spill] sm:$0xff] }
 0x704   :  { %2587 = vmatprep.subr.mxu1 %v9571_v5  ;;  %v9582_v5 = vld [vmem:[#allocation153_spill] sm:$0xff] }
 0x705   :  { %2588 = vmatpush1.msra.mxu1 %v9572_v61  ;;  %v9583_v61 = vld [vmem:[#allocation86_spill] sm:$0xff] }
 0x706   :  { %2589 = vmatprep.subr.mxu1 %v9573_v24  ;;  %v9584_v24 = vld [vmem:[#allocation155_spill] sm:$0xff] }
 0x707   :  { %2590 = vmatpush1.msra.mxu1 %v9574_v15  ;;  %v9585_v15 = vld [vmem:[#allocation84_spill] sm:$0xff] }
 0x708   :  { %2591 = vmatprep.subr.mxu1 %v9575_v45  ;;  %v9586_v45 = vld [vmem:[#allocation157_spill] sm:$0xff] }
 0x709   :  { %2592 = vmatpush1.msra.mxu1 %v9576_v33  ;;  %v9587_v33 = vld [vmem:[#allocation82_spill] sm:$0xff] }
 0x70a   :  { %2593 = vmatprep.subr.mxu1 %v9577_v18  ;;  %v9588_v18 = vld [vmem:[#allocation159_spill] sm:$0xff] }
 0x70b   :  { %2594 = vmatpush1.msra.mxu1 %v9578_v12  ;;  %v9589_v12 = vld [vmem:[#allocation79_spill] sm:$0xff] }
 0x70c   :  { %2595 = vmatprep.subr.mxu1 %v9579_v53  ;;  %v9590_v53 = vld [vmem:[#allocation161_spill] sm:$0xff] }
 0x70d   :  { %2596 = vmatpush1.msra.mxu1 %v9580_v9  ;;  %v9591_v9 = vld [vmem:[#allocation76_spill] sm:$0xff] }
 0x70e   :  { %2597 = vmatprep.subr.mxu1 %v9581_v23  ;;  %v9592_v23 = vld [vmem:[#allocation163_spill] sm:$0xff] }
 0x70f   :  { %2598 = vmatpush2.msra.mxu1 %v9582_v5  ;;  %v9593_v5 = vld [vmem:[#allocation73_spill] sm:$0xff] }
 0x710   :  { %2599 = vmatprep.subr.mxu1 %v9583_v61  ;;  %v9594_v61 = vld [vmem:[#allocation165_spill] sm:$0xff] }
 0x711   :  { %2600 = vmatpush2.msra.mxu1 %v9584_v24  ;;  %v9595_v24 = vld [vmem:[#allocation70_spill] sm:$0xff] }
 0x712   :  { %2601 = vmatprep.subr.mxu1 %v9585_v15  ;;  %v9596_v15 = vld [vmem:[#allocation167_spill] sm:$0xff] }
 0x713   :  { %2602 = vmatpush2.msra.mxu1 %v9586_v45  ;;  %v9597_v45 = vld [vmem:[#allocation67_spill] sm:$0xff] }
 0x714   :  { %2603 = vmatprep.subr.mxu1 %v9587_v33  ;;  %v9598_v33 = vld [vmem:[#allocation169_spill] sm:$0xff] }
 0x715   :  { %2604 = vmatpush2.msra.mxu1 %v9588_v18  ;;  %v9599_v18 = vld [vmem:[#allocation64_spill] sm:$0xff] }
 0x716   :  { %2605 = vmatprep.subr.mxu1 %v9589_v12  ;;  %v9600_v12 = vld [vmem:[#allocation171_spill] sm:$0xff] }
 0x717   :  { %2606 = vmatpush2.msra.mxu1 %v9590_v53  ;;  %v9601_v53 = vld [vmem:[#allocation61_spill] sm:$0xff] }
 0x718   :  { %2607 = vmatprep.subr.mxu1 %v9591_v9  ;;  %v9602_v9 = vld [vmem:[#allocation173_spill] sm:$0xff] }
 0x719   :  { %2608 = vmatpush2.msra.mxu1 %v9592_v23  ;;  %v9603_v23 = vld [vmem:[#allocation58_spill] sm:$0xff] }
 0x71a   :  { %2609 = vmatprep.subr.mxu1 %v9593_v5  ;;  %v9604_v5 = vld [vmem:[#allocation175_spill] sm:$0xff] }
 0x71b   :  { %2610 = vmatpush2.msra.mxu1 %v9594_v61  ;;  %v9605_v61 = vld [vmem:[#allocation55_spill] sm:$0xff] }
 0x71c   :  { %2611 = vmatprep.subr.mxu1 %v9595_v24  ;;  %v9606_v24 = vld [vmem:[#allocation177_spill] sm:$0xff] }
 0x71d   :  { %2612 = vmatpush2.msra.mxu1 %v9596_v15  ;;  %v9607_v15 = vld [vmem:[#allocation52_spill] sm:$0xff] }
 0x71e   :  { %2613 = vmatprep.subr.mxu1 %v9597_v45  ;;  %v9608_v45 = vld [vmem:[#allocation179_spill] sm:$0xff] }
 0x71f   :  { %2614 = vmatpush2.msra.mxu1 %v9598_v33  ;;  %v9609_v33 = vld [vmem:[#allocation49_spill] sm:$0xff] }
 0x720   :  { %2615 = vmatprep.subr.mxu1 %v9599_v18  ;;  %v9610_v18 = vld [vmem:[#allocation181_spill] sm:$0xff] }
 0x721   :  { %2616 = vmatpush2.msra.mxu1 %v9600_v12  ;;  %v9611_v12 = vld [vmem:[#allocation46_spill] sm:$0xff] }
 0x722   :  { %2617 = vmatprep.subr.mxu1 %v9601_v53  ;;  %v9612_v53 = vld [vmem:[#allocation183_spill] sm:$0xff] }
 0x723   :  { %2618 = vmatpush2.msra.mxu1 %v9602_v9  ;;  %v9613_v9 = vld [vmem:[#allocation93_spill] sm:$0xff] }
 0x724   :  { %2619 = vmatprep.subr.mxu1 %v9603_v23 }
 0x725   :  { %2620 = vmatpush2.msra.mxu1 %v9604_v5 }
 0x726   :  { %2621 = vmatprep.subr.mxu1 %v9605_v61 }
 0x727   :  { %2622 = vmatpush2.msra.mxu1 %v9606_v24 }
 0x728   :  { %2623 = vmatprep.subr.mxu1 %v9607_v15 }
 0x729   :  { %2624 = vmatpush2.msra.mxu1 %v9608_v45 }
 0x72a   :  { %2625 = vmatprep.subr.mxu1 %v9609_v33  ;;  %v9617_v33 = vld [vmem:[#allocation197_spill] sm:$0xff] }
 0x72b   :  { %2626 = vmatpush2.msra.mxu1 %v9610_v18 }
 0x72c   :  { %2627 = vmatprep.subr.mxu1 %v9611_v12 }
 0x72d   :  { %2628 = vmatpush2.msra.mxu1 %v9612_v53 }
 0x72e   :  { %2777 = vmatprep.subr.mxu1 %v9613_v9 }
 0x76e   :  { %v2275_v23 = vpop.f32.mrf.mxu1  ;;  %v2346_v19 = vpop.f32.mrf.mxu0 }
 0x76f   :  { %v2276_v61 = vadd.f32 %v2275_v23, %v9614_v13  ;;  %v2347_v12 = vadd.f32 %v2346_v19, %v7029_v21 }
 0x770   :  { %v2277_v5 = vpop.f32.mrf.mxu1  ;;  %v2348_v22 = vpop.f32.mrf.mxu0 }
 0x771   :  { %v2278_v24 = vadd.f32 %v2277_v5, %v9615_v39  ;;  %v2424_v16 = vrot.slane %v2276_v61, 6  ;;  %v2349_v9 = vadd.f32 %v2348_v22, %v7031_v56  ;;  %v2444_v28 = vrot.slane %v2347_v12, 6 }
 0x773   :  { %v2425_v15 = vrot.slane %v2278_v24, 6  ;;  %v2428_v45 = vadd.f32 %v2424_v16, %v9616_v42  ;;  %v2445_v23 = vrot.slane %v2349_v9, 6  ;;  %v2448_v5 = vadd.f32 %v2444_v28, %v7033_v43 }
 0x775   :  { %v2429_v50 = vadd.f32 %v2425_v15, %v9617_v33  ;;  %v4379_v18 = vmul.f32 -1.442695, %v2428_v45  ;;  %v2449_v61 = vadd.f32 %v2445_v23, %v7036_v20  ;;  %v4381_v24 = vmul.f32 -1.442695, %v2448_v5 }
 0x777   :  { %v4380_v53 = vmul.f32 -1.442695, %v2429_v50  ;;  %4731 = vpow2.f32 %v4379_v18  ;;  %v4382_v16 = vmul.f32 -1.442695, %v2449_v61 }
 0x779   :  { %4733 = vpow2.f32 %v4380_v53 }
 0x77a   :  { %4735 = vpow2.f32 %v4381_v24 }
 0x77b   :  { %4737 = vpow2.f32 %v4382_v16 }
 0x784   :  { %v4732_v42 = vpop.eup %4731 }
 0x785   :  { %v2436_v45 = vadd.f32 1.0, %v4732_v42 }
 0x786   :  { %v4734_v15 = vpop.eup %4733 }
 0x787   :  { %v2437_v33 = vadd.f32 1.0, %v4734_v15  ;;  %4739 = vrcp.f32 %v2436_v45  ;;  %v4736_v50 = vpop.eup %4735 }
 0x788   :  { %v4738_v19 = vpop.eup %4737  ;;  %v2456_v12 = vadd.f32 1.0, %v4736_v50 }
 0x789   :  { %4741 = vrcp.f32 %v2437_v33  ;;  %v2457_v28 = vadd.f32 1.0, %v4738_v19 }
 0x78a   :  { %4743 = vrcp.f32 %v2456_v12  ;;  %v2481_v12 = vrot.slane %v7053_v47, 6 }
 0x78b   :  { %4745 = vrcp.f32 %v2457_v28 }
 0x794   :  { %v4740_v5 = vpop.eup %4739 }
 0x796   :  { %v4742_v42 = vpop.eup %4741 }
 0x797   :  { %v4744_v45 = vpop.eup %4743 }
 0x798   :  { %v4746_v50 = vpop.eup %4745 }
 0x7ae   :  { %v2417_v22 = vpop.f32.mrf.mxu1 }
 0x7af   :  { %v2418_v18 = vadd.f32 %v2417_v22, %v7041_v55  ;;  %v2474_v22 = vsub.f32 1.0, %v4744_v45 }
 0x7b0   :  { %v2419_v53 = vpop.f32.mrf.mxu1 }
 0x7b1   :  { %v2464_v9 = vrot.slane %v2418_v18, 6  ;;  %v2420_v23 = vadd.f32 %v2419_v53, %v7043_v14  ;;  %v2480_v18 = vrot.slane %v7055_v1, 6  ;;  %v2475_v53 = vsub.f32 1.0, %v4746_v50 }
 0x7b2   :  { %v2485_v14 = vmul.f32 %v4746_v50, %v2481_v12  ;;  %v9622_v50 = vld [vmem:[#allocation98_spill] sm:$0xff]  ;;  %v9627_v12 = vld [vmem:[#allocation103_spill] sm:$0xff] }
 0x7b3   :  { %v2468_v61 = vmul.f32 %v4740_v5, %v2464_v9  ;;  %v2465_v24 = vrot.slane %v2420_v23, 6  ;;  %v2484_v5 = vmul.f32 %v4744_v45, %v2480_v18  ;;  %v9621_v45 = vld [vmem:[#allocation97_spill] sm:$0xff] }
 0x7b4   :  { %v9625_v18 = vld [vmem:[#allocation101_spill] sm:$0xff] }
 0x7b5   :  { %v2470_v16 = vadd.f32 %v2468_v61, %v7046_v6  ;;  %v2469_v33 = vmul.f32 %v4742_v42, %v2465_v24 }
 0x7b7   :  { %4747 = vtanh.f32 %v2470_v16  ;;  %v2471_v15 = vadd.f32 %v2469_v33, %v7049_v37  ;;  %v9619_v33 = vld [vmem:[#allocation95_spill] sm:$0xff] }
 0x7b9   :  { %4749 = vtanh.f32 %v2471_v15  ;;  %v9620_v15 = vld [vmem:[#allocation96_spill] sm:$0xff] }
 0x7c4   :  { %v4748_v19 = vpop.eup %4747 }
 0x7c5   :  { %v2476_v9 = vmul.f32 %v4748_v19, %v2474_v22  ;;  %v9623_v22 = vld [vmem:[#allocation99_spill] sm:$0xff]  ;;  %v9624_v19 = vld [vmem:[#allocation100_spill] sm:$0xff] }
 0x7c6   :  { %v4750_v23 = vpop.eup %4749 }
 0x7c7   :  { %v2477_v28 = vmul.f32 %v4750_v23, %v2475_v53  ;;  %v7269_v61 = vadd.f32 %v2484_v5, %v2476_v9  ;;  %v9626_v53 = vld [vmem:[#allocation102_spill] sm:$0xff]  ;;  %v9628_v9 = vld [vmem:[#allocation104_spill] sm:$0xff]  ;;  %v9629_v23 = vld [vmem:[#allocation105_spill] sm:$0xff] }
 0x7c8   :  { %v9630_v5 = vld [vmem:[#allocation162_spill] sm:$0xff] }
 0x7c9   :  { %v7271_v24 = vadd.f32 %v2485_v14, %v2477_v28  ;;  %v7275_v16 = vrot.slane %v7269_v61, 2  ;;  %v9618_v14 = vld [vmem:[#allocation94_spill] sm:$0xff] }
 0x7ca   :  { %v9631_v28 = vld [vmem:[#allocation106_spill] sm:$0xff] }
 0x7cb   :  { %v2491_v42 = vrot.slane %v7271_v24, 2 }
 0x7cd   :  { %2558 = vmatprep.mubr.f32.mxu0 %v2491_v42  ;;  %2629 = vmatprep.mubr.f32.mxu1 %v2491_v42 }
 0x7ce   :  { %2559 = vmatmul.mubr.f32.vlgmr.msra.gmra.mxu0 %v7275_v16  ;;  %2630 = vmatmul.mubr.f32.vlgmr.msra.gmra.mxu1 %v7275_v16 }
 0x7cf   :  { %2637 = vmatpush1.msra.mxu0 %v9458_v17  ;;  %2700 = vmatprep.mubr.f32.mxu0 %v2491_v42  ;;  %v9632_v42 = vld [vmem:[#allocation18_spill] sm:$0xff] }
 0x7d0   :  { %2638 = vmatprep.subr.mxu0 %v9459_v44  ;;  %2778 = vmatpush1.msra.mxu1 %v6027_v58 }
 0x7d1   :  { %2639 = vmatpush1.msra.mxu0 %v9460_v36  ;;  %2779 = vmatprep.subr.mxu1 %v6033_v35 }
 0x7d2   :  { %2640 = vmatprep.subr.mxu0 %v9461_v10  ;;  %2780 = vmatpush1.msra.mxu1 %v6037_v2 }
 0x7d3   :  { %2641 = vmatpush1.msra.mxu0 %v9462_v11  ;;  %2781 = vmatprep.subr.mxu1 %v6042_v41 }
 0x7d4   :  { %2642 = vmatprep.subr.mxu0 %v9463_v31  ;;  %2782 = vmatpush1.msra.mxu1 %v6047_v29 }
 0x7d5   :  { %2643 = vmatpush1.msra.mxu0 %v9464_v46  ;;  %2783 = vmatprep.subr.mxu1 %v6052_v32 }
 0x7d6   :  { %2644 = vmatprep.subr.mxu0 %v9465_v4  ;;  %2784 = vmatpush1.msra.mxu1 %v6057_v26 }
 0x7d7   :  { %2645 = vmatpush1.msra.mxu0 %v9466_v48  ;;  %2785 = vmatprep.subr.mxu1 %v6062_v63 }
 0x7d8   :  { %2646 = vmatprep.subr.mxu0 %v9467_v3  ;;  %2786 = vmatpush1.msra.mxu1 %v6067_v8 }
 0x7d9   :  { %2647 = vmatpush1.msra.mxu0 %v9468_v52  ;;  %2787 = vmatprep.subr.mxu1 %v6072_v60 }
 0x7da   :  { %2648 = vmatprep.subr.mxu0 %v9469_v49  ;;  %2788 = vmatpush1.msra.mxu1 %v6077_v62 }
 0x7db   :  { %2649 = vmatpush1.msra.mxu0 %v9470_v59  ;;  %2789 = vmatprep.subr.mxu1 %v9618_v14 }
 0x7dc   :  { %2650 = vmatprep.subr.mxu0 %v9471_v34  ;;  %2790 = vmatpush1.msra.mxu1 %v9619_v33 }
 0x7dd   :  { %2651 = vmatpush1.msra.mxu0 %v9472_v27  ;;  %2791 = vmatprep.subr.mxu1 %v9620_v15 }
 0x7de   :  { %2652 = vmatprep.subr.mxu0 %v9473_v30  ;;  %2792 = vmatpush1.msra.mxu1 %v9621_v45 }
 0x7df   :  { %2653 = vmatpush1.msra.mxu0 %v9474_v7  ;;  %2793 = vmatprep.subr.mxu1 %v9622_v50 }
 0x7e0   :  { %2654 = vmatprep.subr.mxu0 %v9475_v38  ;;  %2794 = vmatpush1.msra.mxu1 %v9623_v22 }
 0x7e1   :  { %2655 = vmatpush1.msra.mxu0 %v9476_v57  ;;  %2795 = vmatprep.subr.mxu1 %v9624_v19 }
 0x7e2   :  { %2656 = vmatprep.subr.mxu0 %v9477_v25  ;;  %2796 = vmatpush1.msra.mxu1 %v9625_v18  ;;  %v9775_v18 = vld [vmem:[#allocation196_spill] sm:$0xff] }
 0x7e3   :  { %2657 = vmatpush1.msra.mxu0 %v9478_v54  ;;  %2797 = vmatprep.subr.mxu1 %v9626_v53  ;;  %v9633_v54 = vld [vmem:[#allocation107_spill] sm:$0xff]  ;;  %v9634_v53 = vld [vmem:[#allocation164_spill] sm:$0xff] }
 0x7e4   :  { %2658 = vmatprep.subr.mxu0 %v9479_v40  ;;  %2798 = vmatpush1.msra.mxu1 %v9627_v12  ;;  %v9635_v40 = vld [vmem:[#allocation108_spill] sm:$0xff] }
 0x7e5   :  { %2659 = vmatpush1.msra.mxu0 %v9480_v51  ;;  %2799 = vmatprep.subr.mxu1 %v9628_v9  ;;  %v9636_v12 = vld [vmem:[#allocation16_spill] sm:$0xff]  ;;  %v9637_v51 = vld [vmem:[#allocation109_spill] sm:$0xff]  ;;  %v9638_v9 = vld [vmem:[#allocation166_spill] sm:$0xff] }
 0x7e6   :  { %2660 = vmatprep.subr.mxu0 %v9481_v0  ;;  %2800 = vmatpush1.msra.mxu1 %v9629_v23  ;;  %v9639_v0 = vld [vmem:[#allocation110_spill] sm:$0xff] }
 0x7e7   :  { %2661 = vmatpush1.msra.mxu0 %v9630_v5  ;;  %2801 = vmatprep.subr.mxu1 %v9631_v28  ;;  %v9640_v23 = vld [vmem:[#allocation14_spill] sm:$0xff]  ;;  %v9641_v5 = vld [vmem:[#allocation111_spill] sm:$0xff]  ;;  %v9642_v28 = vld [vmem:[#allocation168_spill] sm:$0xff] }
 0x7e8   :  { %2662 = vmatprep.subr.mxu0 %v9632_v42  ;;  %2802 = vmatpush1.msra.mxu1 %v9633_v54  ;;  %v9643_v42 = vld [vmem:[#allocation112_spill] sm:$0xff]  ;;  %v9644_v54 = vld [vmem:[#allocation89_spill] sm:$0xff] }
 0x7e9   :  { %2663 = vmatpush1.msra.mxu0 %v9634_v53  ;;  %2803 = vmatprep.subr.mxu1 %v9635_v40  ;;  %v9645_v53 = vld [vmem:[#allocation113_spill] sm:$0xff]  ;;  %v9646_v40 = vld [vmem:[#allocation170_spill] sm:$0xff] }
 0x7ea   :  { %2664 = vmatprep.subr.mxu0 %v9636_v12  ;;  %2804 = vmatpush1.msra.mxu1 %v9637_v51  ;;  %v9647_v12 = vld [vmem:[#allocation114_spill] sm:$0xff]  ;;  %v9648_v51 = vld [vmem:[#allocation87_spill] sm:$0xff] }
 0x7eb   :  { %2665 = vmatpush1.msra.mxu0 %v9638_v9  ;;  %2805 = vmatprep.subr.mxu1 %v9639_v0  ;;  %v9649_v9 = vld [vmem:[#allocation115_spill] sm:$0xff]  ;;  %v9650_v0 = vld [vmem:[#allocation172_spill] sm:$0xff] }
 0x7ec   :  { %2666 = vmatprep.subr.mxu0 %v9640_v23  ;;  %2806 = vmatpush1.msra.mxu1 %v9641_v5  ;;  %v9651_v23 = vld [vmem:[#allocation116_spill] sm:$0xff]  ;;  %v9652_v5 = vld [vmem:[#allocation85_spill] sm:$0xff] }
 0x7ed   :  { %2667 = vmatpush1.msra.mxu0 %v9642_v28  ;;  %2807 = vmatprep.subr.mxu1 %v9643_v42  ;;  %v9653_v28 = vld [vmem:[#allocation117_spill] sm:$0xff]  ;;  %v9654_v42 = vld [vmem:[#allocation174_spill] sm:$0xff] }
 0x7ee   :  { %2668 = vmatprep.subr.mxu0 %v9644_v54  ;;  %2808 = vmatpush1.msra.mxu1 %v9645_v53  ;;  %v9655_v54 = vld [vmem:[#allocation118_spill] sm:$0xff]  ;;  %v9656_v53 = vld [vmem:[#allocation83_spill] sm:$0xff] }
 0x7ef   :  { %2669 = vmatpush2.msra.mxu0 %v9646_v40  ;;  %2809 = vmatprep.subr.mxu1 %v9647_v12  ;;  %v9657_v40 = vld [vmem:[#allocation119_spill] sm:$0xff]  ;;  %v9658_v12 = vld [vmem:[#allocation176_spill] sm:$0xff] }
 0x7f0   :  { %2670 = vmatprep.subr.mxu0 %v9648_v51  ;;  %2810 = vmatpush2.msra.mxu1 %v9649_v9  ;;  %v9659_v51 = vld [vmem:[#allocation81_spill] sm:$0xff]  ;;  %v9660_v9 = vld [vmem:[#allocation80_spill] sm:$0xff] }
 0x7f1   :  { %2671 = vmatpush2.msra.mxu0 %v9650_v0  ;;  %2811 = vmatprep.subr.mxu1 %v9651_v23  ;;  %v9661_v0 = vld [vmem:[#allocation120_spill] sm:$0xff]  ;;  %v9662_v23 = vld [vmem:[#allocation178_spill] sm:$0xff] }
 0x7f2   :  { %2672 = vmatprep.subr.mxu0 %v9652_v5  ;;  %2812 = vmatpush2.msra.mxu1 %v9653_v28  ;;  %v9663_v5 = vld [vmem:[#allocation12_spill] sm:$0xff]  ;;  %v9664_v28 = vld [vmem:[#allocation77_spill] sm:$0xff] }
 0x7f3   :  { %2673 = vmatpush2.msra.mxu0 %v9654_v42  ;;  %2813 = vmatprep.subr.mxu1 %v9655_v54  ;;  %v9665_v42 = vld [vmem:[#allocation78_spill] sm:$0xff]  ;;  %v9666_v54 = vld [vmem:[#allocation180_spill] sm:$0xff] }
 0x7f4   :  { %2674 = vmatprep.subr.mxu0 %v9656_v53  ;;  %2814 = vmatpush2.msra.mxu1 %v9657_v40  ;;  %v9667_v53 = vld [vmem:[#allocation11_spill] sm:$0xff]  ;;  %v9668_v40 = vld [vmem:[#allocation74_spill] sm:$0xff] }
 0x7f5   :  { %2675 = vmatpush2.msra.mxu0 %v9658_v12  ;;  %2815 = vmatprep.subr.mxu1 %v9659_v51  ;;  %v9669_v12 = vld [vmem:[#allocation75_spill] sm:$0xff]  ;;  %v9670_v51 = vld [vmem:[#allocation182_spill] sm:$0xff] }
 0x7f6   :  { %2676 = vmatprep.subr.mxu0 %v9660_v9  ;;  %2816 = vmatpush2.msra.mxu1 %v9661_v0  ;;  %v9671_v9 = vld [vmem:[#allocation72_spill] sm:$0xff]  ;;  %v9672_v0 = vld [vmem:[#allocation71_spill] sm:$0xff] }
 0x7f7   :  { %2677 = vmatpush2.msra.mxu0 %v9662_v23  ;;  %2817 = vmatprep.subr.mxu1 %v9663_v5  ;;  %v9673_v23 = vld [vmem:[#allocation10_spill] sm:$0xff]  ;;  %v9674_v5 = vld [vmem:[#allocation184_spill] sm:$0xff] }
 0x7f8   :  { %2678 = vmatprep.subr.mxu0 %v9664_v28  ;;  %2818 = vmatpush2.msra.mxu1 %v9665_v42  ;;  %v9675_v28 = vld [vmem:[#allocation69_spill] sm:$0xff]  ;;  %v9676_v42 = vld [vmem:[#allocation68_spill] sm:$0xff] }
 0x7f9   :  { %2679 = vmatpush2.msra.mxu0 %v9666_v54  ;;  %2819 = vmatprep.subr.mxu1 %v9667_v53  ;;  %v9677_v54 = vld [vmem:[#allocation9_spill] sm:$0xff] }
 0x7fa   :  { %2680 = vmatprep.subr.mxu0 %v9668_v40  ;;  %2820 = vmatpush2.msra.mxu1 %v9669_v12  ;;  %v9678_v53 = vld [vmem:[#allocation185_spill] sm:$0xff]  ;;  %v9679_v40 = vld [vmem:[#allocation66_spill] sm:$0xff] }
 0x7fb   :  { %2681 = vmatpush2.msra.mxu0 %v9670_v51  ;;  %2821 = vmatprep.subr.mxu1 %v9671_v9  ;;  %v9680_v12 = vld [vmem:[#allocation65_spill] sm:$0xff]  ;;  %v9682_v9 = vld [vmem:[#allocation186_spill] sm:$0xff] }
 0x7fc   :  { %2682 = vmatprep.subr.mxu0 %v9672_v0  ;;  %2822 = vmatpush2.msra.mxu1 %v9673_v23  ;;  %v9681_v51 = vld [vmem:[#allocation121_spill] sm:$0xff]  ;;  %v9683_v0 = vld [vmem:[#allocation63_spill] sm:$0xff]  ;;  %v9684_v23 = vld [vmem:[#allocation62_spill] sm:$0xff] }
 0x7fd   :  { %2683 = vmatpush2.msra.mxu0 %v9674_v5  ;;  %2823 = vmatprep.subr.mxu1 %v9675_v28  ;;  %v9685_v5 = vld [vmem:[#allocation123_spill] sm:$0xff] }
 0x7fe   :  { %2684 = vmatprep.subr.mxu0 %v9676_v42  ;;  %2824 = vmatpush2.msra.mxu1 %v9677_v54  ;;  %v9686_v28 = vld [vmem:[#allocation187_spill] sm:$0xff]  ;;  %v9687_v42 = vld [vmem:[#allocation60_spill] sm:$0xff] }
 0x7ff   :  { %2685 = vmatpush2.msra.mxu0 %v9678_v53  ;;  %2825 = vmatprep.subr.mxu1 %v9679_v40  ;;  %v9688_v54 = vld [vmem:[#allocation59_spill] sm:$0xff]  ;;  %v9689_v53 = vld [vmem:[#allocation125_spill] sm:$0xff]  ;;  %v9690_v40 = vld [vmem:[#allocation188_spill] sm:$0xff] }
 0x800   :  { %2686 = vmatprep.subr.mxu0 %v9680_v12  ;;  %2826 = vmatpush2.msra.mxu1 %v9681_v51  ;;  %v9691_v12 = vld [vmem:[#allocation57_spill] sm:$0xff]  ;;  %v9692_v51 = vld [vmem:[#allocation56_spill] sm:$0xff] }
 0x801   :  { %2687 = vmatpush2.msra.mxu0 %v9682_v9  ;;  %2827 = vmatprep.subr.mxu1 %v9683_v0  ;;  %v9693_v9 = vld [vmem:[#allocation127_spill] sm:$0xff]  ;;  %v9694_v0 = vld [vmem:[#allocation189_spill] sm:$0xff] }
 0x802   :  { %2688 = vmatprep.subr.mxu0 %v9684_v23  ;;  %2828 = vmatpush2.msra.mxu1 %v9685_v5  ;;  %v9695_v23 = vld [vmem:[#allocation54_spill] sm:$0xff]  ;;  %v9696_v5 = vld [vmem:[#allocation53_spill] sm:$0xff] }
 0x803   :  { %2689 = vmatpush2.msra.mxu0 %v9686_v28  ;;  %2829 = vmatprep.subr.mxu1 %v9687_v42  ;;  %v9697_v28 = vld [vmem:[#allocation129_spill] sm:$0xff]  ;;  %v9698_v42 = vld [vmem:[#allocation190_spill] sm:$0xff] }
 0x804   :  { %2690 = vmatprep.subr.mxu0 %v9688_v54  ;;  %2830 = vmatpush2.msra.mxu1 %v9689_v53  ;;  %v9699_v54 = vld [vmem:[#allocation51_spill] sm:$0xff]  ;;  %v9700_v53 = vld [vmem:[#allocation50_spill] sm:$0xff] }
 0x805   :  { %2691 = vmatpush2.msra.mxu0 %v9690_v40  ;;  %2831 = vmatprep.subr.mxu1 %v9691_v12  ;;  %v9701_v40 = vld [vmem:[#allocation131_spill] sm:$0xff] }
 0x806   :  { %2692 = vmatprep.subr.mxu0 %v9692_v51  ;;  %2832 = vmatpush2.msra.mxu1 %v9693_v9  ;;  %v9702_v12 = vld [vmem:[#allocation191_spill] sm:$0xff]  ;;  %v9703_v51 = vld [vmem:[#allocation48_spill] sm:$0xff] }
 0x807   :  { %2693 = vmatpush2.msra.mxu0 %v9694_v0  ;;  %2833 = vmatprep.subr.mxu1 %v9695_v23  ;;  %v9704_v9 = vld [vmem:[#allocation47_spill] sm:$0xff]  ;;  %v9705_v0 = vld [vmem:[#allocation133_spill] sm:$0xff]  ;;  %v9706_v23 = vld [vmem:[#allocation192_spill] sm:$0xff] }
 0x808   :  { %2694 = vmatprep.subr.mxu0 %v9696_v5  ;;  %2834 = vmatpush2.msra.mxu1 %v9697_v28  ;;  %v9707_v5 = vld [vmem:[#allocation45_spill] sm:$0xff] }
 0x809   :  { %2695 = vmatpush2.msra.mxu0 %v9698_v42  ;;  %2835 = vmatprep.subr.mxu1 %v9699_v54  ;;  %v9708_v42 = vld [vmem:[#allocation43_spill] sm:$0xff]  ;;  %v9709_v54 = vld [vmem:[#allocation122_spill] sm:$0xff] }
 0x80a   :  { %2696 = vmatprep.subr.mxu0 %v9700_v53  ;;  %2836 = vmatpush2.msra.mxu1 %v9701_v40  ;;  %v9710_v53 = vld [vmem:[#allocation135_spill] sm:$0xff]  ;;  %v9711_v40 = vld [vmem:[#allocation41_spill] sm:$0xff] }
 0x80b   :  { %2697 = vmatpush2.msra.mxu0 %v9702_v12  ;;  %2837 = vmatprep.subr.mxu1 %v9703_v51  ;;  %v9712_v12 = vld [vmem:[#allocation44_spill] sm:$0xff] }
 0x80c   :  { %2698 = vmatprep.subr.mxu0 %v9704_v9  ;;  %2838 = vmatpush2.msra.mxu1 %v9705_v0  ;;  %v9713_v51 = vld [vmem:[#allocation124_spill] sm:$0xff]  ;;  %v9714_v9 = vld [vmem:[#allocation39_spill] sm:$0xff]  ;;  %v9715_v0 = vld [vmem:[#allocation126_spill] sm:$0xff] }
 0x80d   :  { %2699 = vmatpush2.msra.mxu0 %v9706_v23  ;;  %2839 = vmatprep.subr.mxu1 %v9707_v5  ;;  %v9716_v23 = vld [vmem:[#allocation37_spill] sm:$0xff]  ;;  %v9717_v5 = vld [vmem:[#allocation128_spill] sm:$0xff] }
 0x80e   :  { %2701 = vmatmul.mubr.f32.vlgmr.msra.gmra.mxu0 %v7275_v16  ;;  %2848 = vmatprep.subr.mxu0 %v9708_v42  ;;  %v9718_v16 = vld [vmem:[#allocation35_spill] sm:$0xff]  ;;  %v9719_v42 = vld [vmem:[#allocation130_spill] sm:$0xff] }
 0x80f   :  { %2849 = vmatpush1.msra.mxu0 %v9709_v54  ;;  %2840 = vmatpush2.msra.mxu1 %v9710_v53  ;;  %v9720_v54 = vld [vmem:[#allocation33_spill] sm:$0xff]  ;;  %v9721_v53 = vld [vmem:[#allocation132_spill] sm:$0xff] }
 0x810   :  { %2850 = vmatprep.subr.mxu0 %v9711_v40  ;;  %2919 = vmatprep.subr.mxu1 %v9712_v12  ;;  %v9722_v40 = vld [vmem:[#allocation31_spill] sm:$0xff]  ;;  %v9723_v12 = vld [vmem:[#allocation134_spill] sm:$0xff] }
 0x811   :  { %2851 = vmatpush1.msra.mxu0 %v9713_v51  ;;  %v9724_v51 = vld [vmem:[#allocation29_spill] sm:$0xff] }
 0x812   :  { %2852 = vmatprep.subr.mxu0 %v9714_v9  ;;  %v9725_v9 = vld [vmem:[#allocation136_spill] sm:$0xff] }
 0x813   :  { %2853 = vmatpush1.msra.mxu0 %v9715_v0  ;;  %v9726_v0 = vld [vmem:[#allocation27_spill] sm:$0xff] }
 0x814   :  { %2854 = vmatprep.subr.mxu0 %v9716_v23  ;;  %v9727_v23 = vld [vmem:[#allocation137_spill] sm:$0xff] }
 0x815   :  { %2855 = vmatpush1.msra.mxu0 %v9717_v5  ;;  %v9728_v5 = vld [vmem:[#allocation25_spill] sm:$0xff] }
 0x816   :  { %2856 = vmatprep.subr.mxu0 %v9718_v16  ;;  %v9729_v16 = vld [vmem:[#allocation139_spill] sm:$0xff] }
 0x817   :  { %2857 = vmatpush1.msra.mxu0 %v9719_v42  ;;  %v9730_v42 = vld [vmem:[#allocation23_spill] sm:$0xff] }
 0x818   :  { %2858 = vmatprep.subr.mxu0 %v9720_v54  ;;  %v9731_v54 = vld [vmem:[#allocation141_spill] sm:$0xff] }
 0x819   :  { %2859 = vmatpush1.msra.mxu0 %v9721_v53  ;;  %v9732_v53 = vld [vmem:[#allocation21_spill] sm:$0xff] }
 0x81a   :  { %2860 = vmatprep.subr.mxu0 %v9722_v40  ;;  %v9733_v40 = vld [vmem:[#allocation143_spill] sm:$0xff] }
 0x81b   :  { %2861 = vmatpush1.msra.mxu0 %v9723_v12  ;;  %v9734_v12 = vld [vmem:[#allocation19_spill] sm:$0xff] }
 0x81c   :  { %2862 = vmatprep.subr.mxu0 %v9724_v51  ;;  %v9735_v51 = vld [vmem:[#allocation145_spill] sm:$0xff] }
 0x81d   :  { %2863 = vmatpush1.msra.mxu0 %v9725_v9  ;;  %v9736_v9 = vld [vmem:[#allocation17_spill] sm:$0xff] }
 0x81e   :  { %2864 = vmatprep.subr.mxu0 %v9726_v0  ;;  %v9737_v0 = vld [vmem:[#allocation147_spill] sm:$0xff] }
 0x81f   :  { %2865 = vmatpush1.msra.mxu0 %v9727_v23  ;;  %v9738_v23 = vld [vmem:[#allocation15_spill] sm:$0xff] }
 0x820   :  { %2866 = vmatprep.subr.mxu0 %v9728_v5  ;;  %v9739_v5 = vld [vmem:[#allocation149_spill] sm:$0xff] }
 0x821   :  { %2867 = vmatpush1.msra.mxu0 %v9729_v16  ;;  %v9740_v16 = vld [vmem:[#allocation13_spill] sm:$0xff] }
 0x822   :  { %2868 = vmatprep.subr.mxu0 %v9730_v42  ;;  %v9741_v42 = vld [vmem:[#allocation151_spill] sm:$0xff] }
 0x823   :  { %2869 = vmatpush1.msra.mxu0 %v9731_v54  ;;  %v9742_v54 = vld [vmem:[#allocation88_spill] sm:$0xff] }
 0x824   :  { %2870 = vmatprep.subr.mxu0 %v9732_v53  ;;  %v9743_v53 = vld [vmem:[#allocation153_spill] sm:$0xff] }
 0x825   :  { %2871 = vmatpush1.msra.mxu0 %v9733_v40  ;;  %v9744_v40 = vld [vmem:[#allocation86_spill] sm:$0xff] }
 0x826   :  { %2872 = vmatprep.subr.mxu0 %v9734_v12  ;;  %v9745_v12 = vld [vmem:[#allocation155_spill] sm:$0xff] }
 0x827   :  { %2873 = vmatpush1.msra.mxu0 %v9735_v51  ;;  %v9746_v51 = vld [vmem:[#allocation84_spill] sm:$0xff] }
 0x828   :  { %2874 = vmatprep.subr.mxu0 %v9736_v9  ;;  %v9747_v9 = vld [vmem:[#allocation157_spill] sm:$0xff] }
 0x829   :  { %2875 = vmatpush1.msra.mxu0 %v9737_v0  ;;  %v9748_v0 = vld [vmem:[#allocation82_spill] sm:$0xff] }
 0x82a   :  { %2876 = vmatprep.subr.mxu0 %v9738_v23  ;;  %v9749_v23 = vld [vmem:[#allocation159_spill] sm:$0xff] }
 0x82b   :  { %2877 = vmatpush1.msra.mxu0 %v9739_v5  ;;  %v9750_v5 = vld [vmem:[#allocation79_spill] sm:$0xff] }
 0x82c   :  { %2878 = vmatprep.subr.mxu0 %v9740_v16  ;;  %v9751_v16 = vld [vmem:[#allocation161_spill] sm:$0xff] }
 0x82d   :  { %2879 = vmatpush1.msra.mxu0 %v9741_v42  ;;  %v9752_v42 = vld [vmem:[#allocation76_spill] sm:$0xff] }
 0x82e   :  { %2880 = vmatprep.subr.mxu0 %v9742_v54  ;;  %v9753_v54 = vld [vmem:[#allocation163_spill] sm:$0xff] }
 0x82f   :  { %2881 = vmatpush2.msra.mxu0 %v9743_v53  ;;  %v9754_v53 = vld [vmem:[#allocation73_spill] sm:$0xff] }
 0x830   :  { %2882 = vmatprep.subr.mxu0 %v9744_v40  ;;  %v9755_v40 = vld [vmem:[#allocation165_spill] sm:$0xff] }
 0x831   :  { %2883 = vmatpush2.msra.mxu0 %v9745_v12  ;;  %v9756_v12 = vld [vmem:[#allocation70_spill] sm:$0xff] }
 0x832   :  { %2884 = vmatprep.subr.mxu0 %v9746_v51  ;;  %v9757_v51 = vld [vmem:[#allocation167_spill] sm:$0xff] }
 0x833   :  { %2885 = vmatpush2.msra.mxu0 %v9747_v9  ;;  %v9758_v9 = vld [vmem:[#allocation67_spill] sm:$0xff] }
 0x834   :  { %2886 = vmatprep.subr.mxu0 %v9748_v0  ;;  %v9759_v0 = vld [vmem:[#allocation169_spill] sm:$0xff] }
 0x835   :  { %2887 = vmatpush2.msra.mxu0 %v9749_v23  ;;  %v9760_v23 = vld [vmem:[#allocation64_spill] sm:$0xff] }
 0x836   :  { %2888 = vmatprep.subr.mxu0 %v9750_v5  ;;  %v9761_v5 = vld [vmem:[#allocation171_spill] sm:$0xff] }
 0x837   :  { %2889 = vmatpush2.msra.mxu0 %v9751_v16  ;;  %v9762_v16 = vld [vmem:[#allocation61_spill] sm:$0xff] }
 0x838   :  { %2890 = vmatprep.subr.mxu0 %v9752_v42  ;;  %v9763_v42 = vld [vmem:[#allocation173_spill] sm:$0xff] }
 0x839   :  { %2891 = vmatpush2.msra.mxu0 %v9753_v54  ;;  %v9764_v54 = vld [vmem:[#allocation58_spill] sm:$0xff] }
 0x83a   :  { %2892 = vmatprep.subr.mxu0 %v9754_v53  ;;  %v9765_v53 = vld [vmem:[#allocation175_spill] sm:$0xff] }
 0x83b   :  { %2893 = vmatpush2.msra.mxu0 %v9755_v40  ;;  %v9766_v40 = vld [vmem:[#allocation55_spill] sm:$0xff] }
 0x83c   :  { %2894 = vmatprep.subr.mxu0 %v9756_v12  ;;  %v9767_v12 = vld [vmem:[#allocation177_spill] sm:$0xff] }
 0x83d   :  { %2895 = vmatpush2.msra.mxu0 %v9757_v51  ;;  %v9768_v51 = vld [vmem:[#allocation52_spill] sm:$0xff] }
 0x83e   :  { %2896 = vmatprep.subr.mxu0 %v9758_v9  ;;  %v9769_v9 = vld [vmem:[#allocation179_spill] sm:$0xff] }
 0x83f   :  { %2897 = vmatpush2.msra.mxu0 %v9759_v0  ;;  %v9770_v0 = vld [vmem:[#allocation49_spill] sm:$0xff] }
 0x840   :  { %2898 = vmatprep.subr.mxu0 %v9760_v23  ;;  %v9771_v23 = vld [vmem:[#allocation181_spill] sm:$0xff] }
 0x841   :  { %2899 = vmatpush2.msra.mxu0 %v9761_v5  ;;  %v9772_v5 = vld [vmem:[#allocation46_spill] sm:$0xff] }
 0x842   :  { %2900 = vmatprep.subr.mxu0 %v9762_v16  ;;  %v9773_v16 = vld [vmem:[#allocation183_spill] sm:$0xff] }
 0x843   :  { %2901 = vmatpush2.msra.mxu0 %v9763_v42  ;;  %v9774_v42 = vld [vmem:[#allocation93_spill] sm:$0xff] }
 0x844   :  { %2902 = vmatprep.subr.mxu0 %v9764_v54 }
 0x845   :  { %2903 = vmatpush2.msra.mxu0 %v9765_v53 }
 0x846   :  { %2904 = vmatprep.subr.mxu0 %v9766_v40 }
 0x847   :  { %2905 = vmatpush2.msra.mxu0 %v9767_v12 }
 0x848   :  { %2906 = vmatprep.subr.mxu0 %v9768_v51 }
 0x849   :  { %2907 = vmatpush2.msra.mxu0 %v9769_v9 }
 0x84a   :  { %2908 = vmatprep.subr.mxu0 %v9770_v0  ;;  %v9776_v0 = vld [vmem:[#allocation197_spill] sm:$0xff] }
 0x84b   :  { %2909 = vmatpush2.msra.mxu0 %v9771_v23 }
 0x84c   :  { %2910 = vmatprep.subr.mxu0 %v9772_v5 }
 0x84d   :  { %2911 = vmatpush2.msra.mxu0 %v9773_v16 }
 0x84e   :  { %3060 = vmatprep.subr.mxu0 %v9774_v42 }
 0x88e   :  { %v2560_v54 = vpop.f32.mrf.mxu0  ;;  %v2631_v25 = vpop.f32.mrf.mxu1 }
 0x88f   :  { %v2561_v40 = vadd.f32 %v2560_v54, %v9614_v13  ;;  %v2632_v5 = vadd.f32 %v2631_v25, %v7029_v21 }
 0x890   :  { %v2562_v53 = vpop.f32.mrf.mxu0  ;;  %v2633_v57 = vpop.f32.mrf.mxu1 }
 0x891   :  { %v2563_v12 = vadd.f32 %v2562_v53, %v9615_v39  ;;  %v2709_v28 = vrot.slane %v2561_v40, 4  ;;  %v2634_v42 = vadd.f32 %v2633_v57, %v7031_v56  ;;  %v2729_v22 = vrot.slane %v2632_v5, 4 }
 0x893   :  { %v2710_v51 = vrot.slane %v2563_v12, 4  ;;  %v2713_v9 = vadd.f32 %v2709_v28, %v9775_v18  ;;  %v2730_v54 = vrot.slane %v2634_v42, 4  ;;  %v2733_v53 = vadd.f32 %v2729_v22, %v7033_v43 }
 0x895   :  { %v2714_v19 = vadd.f32 %v2710_v51, %v9776_v0  ;;  %v4383_v23 = vmul.f32 -1.442695, %v2713_v9  ;;  %v2734_v40 = vadd.f32 %v2730_v54, %v7036_v20  ;;  %v4385_v12 = vmul.f32 -1.442695, %v2733_v53  ;;  %v9777_v54 = vld [vmem:[#allocation204_spill] sm:$0xff] }
 0x897   :  { %v4384_v16 = vmul.f32 -1.442695, %v2714_v19  ;;  %4751 = vpow2.f32 %v4383_v23  ;;  %v4386_v28 = vmul.f32 -1.442695, %v2734_v40 }
 0x899   :  { %4753 = vpow2.f32 %v4384_v16 }
 0x89a   :  { %4755 = vpow2.f32 %v4385_v12 }
 0x89b   :  { %4757 = vpow2.f32 %v4386_v28 }
 0x8a4   :  { %v4752_v18 = vpop.eup %4751 }
 0x8a5   :  { %v2721_v9 = vadd.f32 1.0, %v4752_v18 }
 0x8a6   :  { %v4754_v51 = vpop.eup %4753 }
 0x8a7   :  { %v2722_v0 = vadd.f32 1.0, %v4754_v51  ;;  %4759 = vrcp.f32 %v2721_v9  ;;  %v4756_v25 = vpop.eup %4755 }
 0x8a8   :  { %v4758_v19 = vpop.eup %4757  ;;  %v2741_v23 = vadd.f32 1.0, %v4756_v25 }
 0x8a9   :  { %4761 = vrcp.f32 %v2722_v0  ;;  %v2742_v22 = vadd.f32 1.0, %v4758_v19  ;;  %v2763_v19 = vrot.slane %v7269_v61, 6 }
 0x8aa   :  { %4763 = vrcp.f32 %v2741_v23  ;;  %v2764_v23 = vrot.slane %v7271_v24, 6 }
 0x8ab   :  { %4765 = vrcp.f32 %v2742_v22 }
 0x8b4   :  { %v4760_v40 = vpop.eup %4759 }
 0x8b6   :  { %v4762_v18 = vpop.eup %4761 }
 0x8b7   :  { %v4764_v9 = vpop.eup %4763 }
 0x8b8   :  { %v4766_v25 = vpop.eup %4765 }
 0x8ce   :  { %v2702_v57 = vpop.f32.mrf.mxu0 }
 0x8cf   :  { %v2703_v5 = vadd.f32 %v2702_v57, %v7041_v55  ;;  %v2759_v57 = vsub.f32 1.0, %v4764_v9 }
 0x8d0   :  { %v2704_v42 = vpop.f32.mrf.mxu0 }
 0x8d1   :  { %v2749_v16 = vrot.slane %v2703_v5, 4  ;;  %v2705_v53 = vadd.f32 %v2704_v42, %v9777_v54  ;;  %v2760_v42 = vsub.f32 1.0, %v4766_v25 }
 0x8d3   :  { %v2753_v12 = vmul.f32 %v4760_v40, %v2749_v16  ;;  %v2750_v20 = vrot.slane %v2705_v53, 4  ;;  %v2767_v53 = vmul.f32 %v4764_v9, %v2763_v19  ;;  %v9782_v19 = vld [vmem:[#allocation101_spill] sm:$0xff] }
 0x8d5   :  { %v2755_v28 = vadd.f32 %v2753_v12, %v7046_v6  ;;  %v2754_v0 = vmul.f32 %v4762_v18, %v2750_v20  ;;  %v2768_v12 = vmul.f32 %v4766_v25, %v2764_v23  ;;  %v4160_v18 = vsel %vm338_vm0, %v7055_v1, %v7269_v61  ;;  %v9779_v1 = vld [vmem:[#allocation156_spill] sm:$0xff]  ;;  %v9785_v23 = vld [vmem:[#allocation22_spill] sm:$0xff] }
 0x8d6   :  { %v9780_v61 = vld [vmem:[#allocation100_spill] sm:$0xff] }
 0x8d7   :  { %4767 = vtanh.f32 %v2755_v28  ;;  %v2756_v51 = vadd.f32 %v2754_v0, %v7049_v37 }
 0x8d9   :  { %4769 = vtanh.f32 %v2756_v51  ;;  %v4161_v51 = vsel %vm338_vm0, %v7053_v47, %v7271_v24  ;;  %v9778_v47 = vld [vmem:[#allocation99_spill] sm:$0xff]  ;;  %v9781_v24 = vld [vmem:[#allocation24_spill] sm:$0xff] }
 0x8e4   :  { %v4768_v5 = vpop.eup %4767 }
 0x8e5   :  { %v2761_v16 = vmul.f32 %v4768_v5, %v2759_v57  ;;  %v9783_v5 = vld [vmem:[#allocation158_spill] sm:$0xff] }
 0x8e6   :  { %v4770_v40 = vpop.eup %4769 }
 0x8e7   :  { %v2762_v22 = vmul.f32 %v4770_v40, %v2760_v42  ;;  %v7486_v20 = vadd.f32 %v2767_v53, %v2761_v16  ;;  %v9784_v42 = vld [vmem:[#allocation102_spill] sm:$0xff]  ;;  %v9786_v16 = vld [vmem:[#allocation103_spill] sm:$0xff]  ;;  %v9787_v53 = vld [vmem:[#allocation160_spill] sm:$0xff] }
 0x8e8   :  { %v9788_v40 = vld [vmem:[#allocation104_spill] sm:$0xff] }
 0x8e9   :  { %v7491_v28 = vadd.f32 %v2768_v12, %v2762_v22  ;;  %v7495_v0 = vsel %vm4162_vm5, %v4160_v18, %v7486_v20  ;;  %v7506_v57 = vrot.slane %v7486_v20, 4  ;;  %v9789_v22 = vld [vmem:[#allocation20_spill] sm:$0xff]  ;;  %v9790_v12 = vld [vmem:[#allocation105_spill] sm:$0xff]  ;;  %v9791_v18 = vld [vmem:[#allocation162_spill] sm:$0xff] }
 0x8eb   :  { %v2774_v9 = vrot.slane %v7491_v28, 4  ;;  %v7503_v25 = vsel %vm4162_vm5, %v4161_v51, %v7491_v28  ;;  %v9792_v51 = vld [vmem:[#allocation106_spill] sm:$0xff] }
 0x8ed   :  { %2841 = vmatprep.mubr.f32.mxu1 %v2774_v9  ;;  %2912 = vmatprep.mubr.f32.mxu0 %v2774_v9 }
 0x8ee   :  { %2842 = vmatmul.mubr.f32.vlgmr.msra.gmra.mxu1 %v7506_v57  ;;  %2913 = vmatmul.mubr.f32.vlgmr.msra.gmra.mxu0 %v7506_v57 }
 0x8ef   :  { %2920 = vmatpush1.msra.mxu1 %v9458_v17  ;;  %2983 = vmatprep.mubr.f32.mxu1 %v2774_v9  ;;  %v9793_v9 = vld [vmem:[#allocation18_spill] sm:$0xff] }
 0x8f0   :  { %2921 = vmatprep.subr.mxu1 %v9459_v44  ;;  %3061 = vmatpush1.msra.mxu0 %v6027_v58 }
 0x8f1   :  { %2922 = vmatpush1.msra.mxu1 %v9460_v36  ;;  %3062 = vmatprep.subr.mxu0 %v6033_v35 }
 0x8f2   :  { %2923 = vmatprep.subr.mxu1 %v9461_v10  ;;  %3063 = vmatpush1.msra.mxu0 %v6037_v2 }
 0x8f3   :  { %2924 = vmatpush1.msra.mxu1 %v9462_v11  ;;  %3064 = vmatprep.subr.mxu0 %v6042_v41 }
 0x8f4   :  { %2925 = vmatprep.subr.mxu1 %v9463_v31  ;;  %3065 = vmatpush1.msra.mxu0 %v6047_v29 }
 0x8f5   :  { %2926 = vmatpush1.msra.mxu1 %v9464_v46  ;;  %3066 = vmatprep.subr.mxu0 %v6052_v32 }
 0x8f6   :  { %2927 = vmatprep.subr.mxu1 %v9465_v4  ;;  %3067 = vmatpush1.msra.mxu0 %v6057_v26 }
 0x8f7   :  { %2928 = vmatpush1.msra.mxu1 %v9466_v48  ;;  %3068 = vmatprep.subr.mxu0 %v6062_v63 }
 0x8f8   :  { %2929 = vmatprep.subr.mxu1 %v9467_v3  ;;  %3069 = vmatpush1.msra.mxu0 %v6067_v8 }
 0x8f9   :  { %2930 = vmatpush1.msra.mxu1 %v9468_v52  ;;  %3070 = vmatprep.subr.mxu0 %v6072_v60 }
 0x8fa   :  { %2931 = vmatprep.subr.mxu1 %v9469_v49  ;;  %3071 = vmatpush1.msra.mxu0 %v6077_v62 }
 0x8fb   :  { %2932 = vmatpush1.msra.mxu1 %v9470_v59  ;;  %3072 = vmatprep.subr.mxu0 %v9618_v14 }
 0x8fc   :  { %2933 = vmatprep.subr.mxu1 %v9471_v34  ;;  %3073 = vmatpush1.msra.mxu0 %v9619_v33 }
 0x8fd   :  { %2934 = vmatpush1.msra.mxu1 %v9472_v27  ;;  %3074 = vmatprep.subr.mxu0 %v9620_v15 }
 0x8fe   :  { %2935 = vmatprep.subr.mxu1 %v9473_v30  ;;  %3075 = vmatpush1.msra.mxu0 %v9621_v45 }
 0x8ff   :  { %2936 = vmatpush1.msra.mxu1 %v9474_v7  ;;  %3076 = vmatprep.subr.mxu0 %v9622_v50 }
 0x900   :  { %2937 = vmatprep.subr.mxu1 %v9475_v38  ;;  %3077 = vmatpush1.msra.mxu0 %v9778_v47 }
 0x901   :  { %2938 = vmatpush1.msra.mxu1 %v9779_v1  ;;  %3078 = vmatprep.subr.mxu0 %v9780_v61 }
 0x902   :  { %2939 = vmatprep.subr.mxu1 %v9781_v24  ;;  %3079 = vmatpush1.msra.mxu0 %v9782_v19  ;;  %v9936_v19 = vld [vmem:[#allocation196_spill] sm:$0xff] }
 0x903   :  { %2940 = vmatpush1.msra.mxu1 %v9783_v5  ;;  %3080 = vmatprep.subr.mxu0 %v9784_v42  ;;  %v9794_v5 = vld [vmem:[#allocation107_spill] sm:$0xff]  ;;  %v9795_v42 = vld [vmem:[#allocation164_spill] sm:$0xff] }
 0x904   :  { %2941 = vmatprep.subr.mxu1 %v9785_v23  ;;  %3081 = vmatpush1.msra.mxu0 %v9786_v16  ;;  %v9796_v23 = vld [vmem:[#allocation108_spill] sm:$0xff] }
 0x905   :  { %2942 = vmatpush1.msra.mxu1 %v9787_v53  ;;  %3082 = vmatprep.subr.mxu0 %v9788_v40  ;;  %v9797_v16 = vld [vmem:[#allocation16_spill] sm:$0xff]  ;;  %v9798_v53 = vld [vmem:[#allocation109_spill] sm:$0xff]  ;;  %v9799_v40 = vld [vmem:[#allocation166_spill] sm:$0xff] }
 0x906   :  { %2943 = vmatprep.subr.mxu1 %v9789_v22  ;;  %3083 = vmatpush1.msra.mxu0 %v9790_v12  ;;  %v9800_v22 = vld [vmem:[#allocation110_spill] sm:$0xff] }
 0x907   :  { %2944 = vmatpush1.msra.mxu1 %v9791_v18  ;;  %3084 = vmatprep.subr.mxu0 %v9792_v51  ;;  %v9801_v12 = vld [vmem:[#allocation14_spill] sm:$0xff]  ;;  %v9802_v18 = vld [vmem:[#allocation111_spill] sm:$0xff]  ;;  %v9803_v51 = vld [vmem:[#allocation168_spill] sm:$0xff] }
 0x908   :  { %2945 = vmatprep.subr.mxu1 %v9793_v9  ;;  %3085 = vmatpush1.msra.mxu0 %v9794_v5  ;;  %v9804_v9 = vld [vmem:[#allocation112_spill] sm:$0xff]  ;;  %v9805_v5 = vld [vmem:[#allocation89_spill] sm:$0xff] }
 0x909   :  { %2946 = vmatpush1.msra.mxu1 %v9795_v42  ;;  %3086 = vmatprep.subr.mxu0 %v9796_v23  ;;  %v9806_v42 = vld [vmem:[#allocation113_spill] sm:$0xff]  ;;  %v9807_v23 = vld [vmem:[#allocation170_spill] sm:$0xff] }
 0x90a   :  { %2947 = vmatprep.subr.mxu1 %v9797_v16  ;;  %3087 = vmatpush1.msra.mxu0 %v9798_v53  ;;  %v9808_v16 = vld [vmem:[#allocation114_spill] sm:$0xff]  ;;  %v9809_v53 = vld [vmem:[#allocation87_spill] sm:$0xff] }
 0x90b   :  { %2948 = vmatpush1.msra.mxu1 %v9799_v40  ;;  %3088 = vmatprep.subr.mxu0 %v9800_v22  ;;  %v9810_v40 = vld [vmem:[#allocation115_spill] sm:$0xff]  ;;  %v9811_v22 = vld [vmem:[#allocation172_spill] sm:$0xff] }
 0x90c   :  { %2949 = vmatprep.subr.mxu1 %v9801_v12  ;;  %3089 = vmatpush1.msra.mxu0 %v9802_v18  ;;  %v9812_v12 = vld [vmem:[#allocation116_spill] sm:$0xff]  ;;  %v9813_v18 = vld [vmem:[#allocation85_spill] sm:$0xff] }
 0x90d   :  { %2950 = vmatpush1.msra.mxu1 %v9803_v51  ;;  %3090 = vmatprep.subr.mxu0 %v9804_v9  ;;  %v9814_v51 = vld [vmem:[#allocation117_spill] sm:$0xff]  ;;  %v9815_v9 = vld [vmem:[#allocation174_spill] sm:$0xff] }
 0x90e   :  { %2951 = vmatprep.subr.mxu1 %v9805_v5  ;;  %3091 = vmatpush1.msra.mxu0 %v9806_v42  ;;  %v9816_v5 = vld [vmem:[#allocation118_spill] sm:$0xff]  ;;  %v9817_v42 = vld [vmem:[#allocation83_spill] sm:$0xff] }
 0x90f   :  { %2952 = vmatpush2.msra.mxu1 %v9807_v23  ;;  %3092 = vmatprep.subr.mxu0 %v9808_v16  ;;  %v9818_v23 = vld [vmem:[#allocation119_spill] sm:$0xff]  ;;  %v9819_v16 = vld [vmem:[#allocation176_spill] sm:$0xff] }
 0x910   :  { %2953 = vmatprep.subr.mxu1 %v9809_v53  ;;  %3093 = vmatpush2.msra.mxu0 %v9810_v40  ;;  %v9820_v53 = vld [vmem:[#allocation81_spill] sm:$0xff]  ;;  %v9821_v40 = vld [vmem:[#allocation80_spill] sm:$0xff] }
 0x911   :  { %2954 = vmatpush2.msra.mxu1 %v9811_v22  ;;  %3094 = vmatprep.subr.mxu0 %v9812_v12  ;;  %v9822_v22 = vld [vmem:[#allocation120_spill] sm:$0xff]  ;;  %v9823_v12 = vld [vmem:[#allocation178_spill] sm:$0xff] }
 0x912   :  { %2955 = vmatprep.subr.mxu1 %v9813_v18  ;;  %3095 = vmatpush2.msra.mxu0 %v9814_v51  ;;  %v9824_v18 = vld [vmem:[#allocation12_spill] sm:$0xff]  ;;  %v9825_v51 = vld [vmem:[#allocation77_spill] sm:$0xff] }
 0x913   :  { %2956 = vmatpush2.msra.mxu1 %v9815_v9  ;;  %3096 = vmatprep.subr.mxu0 %v9816_v5  ;;  %v9826_v9 = vld [vmem:[#allocation78_spill] sm:$0xff]  ;;  %v9827_v5 = vld [vmem:[#allocation180_spill] sm:$0xff] }
 0x914   :  { %2957 = vmatprep.subr.mxu1 %v9817_v42  ;;  %3097 = vmatpush2.msra.mxu0 %v9818_v23  ;;  %v9828_v42 = vld [vmem:[#allocation11_spill] sm:$0xff]  ;;  %v9829_v23 = vld [vmem:[#allocation74_spill] sm:$0xff] }
 0x915   :  { %2958 = vmatpush2.msra.mxu1 %v9819_v16  ;;  %3098 = vmatprep.subr.mxu0 %v9820_v53  ;;  %v9830_v16 = vld [vmem:[#allocation75_spill] sm:$0xff]  ;;  %v9831_v53 = vld [vmem:[#allocation182_spill] sm:$0xff] }
 0x916   :  { %2959 = vmatprep.subr.mxu1 %v9821_v40  ;;  %3099 = vmatpush2.msra.mxu0 %v9822_v22  ;;  %v9832_v40 = vld [vmem:[#allocation72_spill] sm:$0xff]  ;;  %v9833_v22 = vld [vmem:[#allocation71_spill] sm:$0xff] }
 0x917   :  { %2960 = vmatpush2.msra.mxu1 %v9823_v12  ;;  %3100 = vmatprep.subr.mxu0 %v9824_v18  ;;  %v9834_v12 = vld [vmem:[#allocation10_spill] sm:$0xff]  ;;  %v9835_v18 = vld [vmem:[#allocation184_spill] sm:$0xff] }
 0x918   :  { %2961 = vmatprep.subr.mxu1 %v9825_v51  ;;  %3101 = vmatpush2.msra.mxu0 %v9826_v9  ;;  %v9836_v51 = vld [vmem:[#allocation69_spill] sm:$0xff]  ;;  %v9837_v9 = vld [vmem:[#allocation68_spill] sm:$0xff] }
 0x919   :  { %2962 = vmatpush2.msra.mxu1 %v9827_v5  ;;  %3102 = vmatprep.subr.mxu0 %v9828_v42  ;;  %v9838_v5 = vld [vmem:[#allocation9_spill] sm:$0xff] }
 0x91a   :  { %2963 = vmatprep.subr.mxu1 %v9829_v23  ;;  %3103 = vmatpush2.msra.mxu0 %v9830_v16  ;;  %v9839_v42 = vld [vmem:[#allocation185_spill] sm:$0xff]  ;;  %v9840_v23 = vld [vmem:[#allocation66_spill] sm:$0xff] }
 0x91b   :  { %2964 = vmatpush2.msra.mxu1 %v9831_v53  ;;  %3104 = vmatprep.subr.mxu0 %v9832_v40  ;;  %v9841_v16 = vld [vmem:[#allocation65_spill] sm:$0xff]  ;;  %v9843_v40 = vld [vmem:[#allocation186_spill] sm:$0xff] }
 0x91c   :  { %2965 = vmatprep.subr.mxu1 %v9833_v22  ;;  %3105 = vmatpush2.msra.mxu0 %v9834_v12  ;;  %v9842_v53 = vld [vmem:[#allocation121_spill] sm:$0xff]  ;;  %v9844_v22 = vld [vmem:[#allocation63_spill] sm:$0xff]  ;;  %v9845_v12 = vld [vmem:[#allocation62_spill] sm:$0xff] }
 0x91d   :  { %2966 = vmatpush2.msra.mxu1 %v9835_v18  ;;  %3106 = vmatprep.subr.mxu0 %v9836_v51  ;;  %v9846_v18 = vld [vmem:[#allocation123_spill] sm:$0xff] }
 0x91e   :  { %2967 = vmatprep.subr.mxu1 %v9837_v9  ;;  %3107 = vmatpush2.msra.mxu0 %v9838_v5  ;;  %v9847_v51 = vld [vmem:[#allocation187_spill] sm:$0xff]  ;;  %v9848_v9 = vld [vmem:[#allocation60_spill] sm:$0xff] }
 0x91f   :  { %2968 = vmatpush2.msra.mxu1 %v9839_v42  ;;  %3108 = vmatprep.subr.mxu0 %v9840_v23  ;;  %v9849_v5 = vld [vmem:[#allocation59_spill] sm:$0xff]  ;;  %v9850_v42 = vld [vmem:[#allocation125_spill] sm:$0xff]  ;;  %v9851_v23 = vld [vmem:[#allocation188_spill] sm:$0xff] }
 0x920   :  { %2969 = vmatprep.subr.mxu1 %v9841_v16  ;;  %3109 = vmatpush2.msra.mxu0 %v9842_v53  ;;  %v9852_v16 = vld [vmem:[#allocation57_spill] sm:$0xff]  ;;  %v9853_v53 = vld [vmem:[#allocation56_spill] sm:$0xff] }
 0x921   :  { %2970 = vmatpush2.msra.mxu1 %v9843_v40  ;;  %3110 = vmatprep.subr.mxu0 %v9844_v22  ;;  %v9854_v40 = vld [vmem:[#allocation127_spill] sm:$0xff]  ;;  %v9855_v22 = vld [vmem:[#allocation189_spill] sm:$0xff] }
 0x922   :  { %2971 = vmatprep.subr.mxu1 %v9845_v12  ;;  %3111 = vmatpush2.msra.mxu0 %v9846_v18  ;;  %v9856_v12 = vld [vmem:[#allocation54_spill] sm:$0xff]  ;;  %v9857_v18 = vld [vmem:[#allocation53_spill] sm:$0xff] }
 0x923   :  { %2972 = vmatpush2.msra.mxu1 %v9847_v51  ;;  %3112 = vmatprep.subr.mxu0 %v9848_v9  ;;  %v9858_v51 = vld [vmem:[#allocation129_spill] sm:$0xff]  ;;  %v9859_v9 = vld [vmem:[#allocation190_spill] sm:$0xff] }
 0x924   :  { %2973 = vmatprep.subr.mxu1 %v9849_v5  ;;  %3113 = vmatpush2.msra.mxu0 %v9850_v42  ;;  %v9860_v5 = vld [vmem:[#allocation51_spill] sm:$0xff]  ;;  %v9861_v42 = vld [vmem:[#allocation50_spill] sm:$0xff] }
 0x925   :  { %2974 = vmatpush2.msra.mxu1 %v9851_v23  ;;  %3114 = vmatprep.subr.mxu0 %v9852_v16  ;;  %v9862_v23 = vld [vmem:[#allocation131_spill] sm:$0xff] }
 0x926   :  { %2975 = vmatprep.subr.mxu1 %v9853_v53  ;;  %3115 = vmatpush2.msra.mxu0 %v9854_v40  ;;  %v9863_v16 = vld [vmem:[#allocation191_spill] sm:$0xff]  ;;  %v9864_v53 = vld [vmem:[#allocation48_spill] sm:$0xff] }
 0x927   :  { %2976 = vmatpush2.msra.mxu1 %v9855_v22  ;;  %3116 = vmatprep.subr.mxu0 %v9856_v12  ;;  %v9865_v40 = vld [vmem:[#allocation47_spill] sm:$0xff]  ;;  %v9866_v22 = vld [vmem:[#allocation133_spill] sm:$0xff]  ;;  %v9867_v12 = vld [vmem:[#allocation192_spill] sm:$0xff] }
 0x928   :  { %2977 = vmatprep.subr.mxu1 %v9857_v18  ;;  %3117 = vmatpush2.msra.mxu0 %v9858_v51  ;;  %v9868_v18 = vld [vmem:[#allocation45_spill] sm:$0xff] }
 0x929   :  { %2978 = vmatpush2.msra.mxu1 %v9859_v9  ;;  %3118 = vmatprep.subr.mxu0 %v9860_v5  ;;  %v9869_v9 = vld [vmem:[#allocation43_spill] sm:$0xff]  ;;  %v9870_v5 = vld [vmem:[#allocation122_spill] sm:$0xff] }
 0x92a   :  { %2979 = vmatprep.subr.mxu1 %v9861_v42  ;;  %3119 = vmatpush2.msra.mxu0 %v9862_v23  ;;  %v9871_v42 = vld [vmem:[#allocation135_spill] sm:$0xff]  ;;  %v9872_v23 = vld [vmem:[#allocation41_spill] sm:$0xff] }
 0x92b   :  { %2980 = vmatpush2.msra.mxu1 %v9863_v16  ;;  %3120 = vmatprep.subr.mxu0 %v9864_v53  ;;  %v9873_v16 = vld [vmem:[#allocation44_spill] sm:$0xff] }
 0x92c   :  { %2981 = vmatprep.subr.mxu1 %v9865_v40  ;;  %3121 = vmatpush2.msra.mxu0 %v9866_v22  ;;  %v9874_v53 = vld [vmem:[#allocation124_spill] sm:$0xff]  ;;  %v9875_v40 = vld [vmem:[#allocation39_spill] sm:$0xff]  ;;  %v9876_v22 = vld [vmem:[#allocation126_spill] sm:$0xff] }
 0x92d   :  { %2982 = vmatpush2.msra.mxu1 %v9867_v12  ;;  %3122 = vmatprep.subr.mxu0 %v9868_v18  ;;  %v9877_v12 = vld [vmem:[#allocation37_spill] sm:$0xff]  ;;  %v9878_v18 = vld [vmem:[#allocation128_spill] sm:$0xff] }
 0x92e   :  { %2984 = vmatmul.mubr.f32.vlgmr.msra.gmra.mxu1 %v7506_v57  ;;  %3131 = vmatprep.subr.mxu1 %v9869_v9  ;;  %v9879_v57 = vld [vmem:[#allocation35_spill] sm:$0xff]  ;;  %v9880_v9 = vld [vmem:[#allocation130_spill] sm:$0xff] }
 0x92f   :  { %3132 = vmatpush1.msra.mxu1 %v9870_v5  ;;  %3123 = vmatpush2.msra.mxu0 %v9871_v42  ;;  %v9881_v5 = vld [vmem:[#allocation33_spill] sm:$0xff]  ;;  %v9882_v42 = vld [vmem:[#allocation132_spill] sm:$0xff] }
 0x930   :  { %3133 = vmatprep.subr.mxu1 %v9872_v23  ;;  %3202 = vmatprep.subr.mxu0 %v9873_v16  ;;  %v9883_v23 = vld [vmem:[#allocation31_spill] sm:$0xff]  ;;  %v9884_v16 = vld [vmem:[#allocation134_spill] sm:$0xff] }
 0x931   :  { %3134 = vmatpush1.msra.mxu1 %v9874_v53  ;;  %v9885_v53 = vld [vmem:[#allocation29_spill] sm:$0xff] }
 0x932   :  { %3135 = vmatprep.subr.mxu1 %v9875_v40  ;;  %v9886_v40 = vld [vmem:[#allocation136_spill] sm:$0xff] }
 0x933   :  { %3136 = vmatpush1.msra.mxu1 %v9876_v22  ;;  %v9887_v22 = vld [vmem:[#allocation27_spill] sm:$0xff] }
 0x934   :  { %3137 = vmatprep.subr.mxu1 %v9877_v12  ;;  %v9888_v12 = vld [vmem:[#allocation137_spill] sm:$0xff] }
 0x935   :  { %3138 = vmatpush1.msra.mxu1 %v9878_v18  ;;  %v9889_v18 = vld [vmem:[#allocation25_spill] sm:$0xff] }
 0x936   :  { %3139 = vmatprep.subr.mxu1 %v9879_v57  ;;  %v9890_v57 = vld [vmem:[#allocation139_spill] sm:$0xff] }
 0x937   :  { %3140 = vmatpush1.msra.mxu1 %v9880_v9  ;;  %v9891_v9 = vld [vmem:[#allocation23_spill] sm:$0xff] }
 0x938   :  { %3141 = vmatprep.subr.mxu1 %v9881_v5  ;;  %v9892_v5 = vld [vmem:[#allocation141_spill] sm:$0xff] }
 0x939   :  { %3142 = vmatpush1.msra.mxu1 %v9882_v42  ;;  %v9893_v42 = vld [vmem:[#allocation21_spill] sm:$0xff] }
 0x93a   :  { %3143 = vmatprep.subr.mxu1 %v9883_v23  ;;  %v9894_v23 = vld [vmem:[#allocation143_spill] sm:$0xff] }
 0x93b   :  { %3144 = vmatpush1.msra.mxu1 %v9884_v16  ;;  %v9895_v16 = vld [vmem:[#allocation19_spill] sm:$0xff] }
 0x93c   :  { %3145 = vmatprep.subr.mxu1 %v9885_v53  ;;  %v9896_v53 = vld [vmem:[#allocation145_spill] sm:$0xff] }
 0x93d   :  { %3146 = vmatpush1.msra.mxu1 %v9886_v40  ;;  %v9897_v40 = vld [vmem:[#allocation17_spill] sm:$0xff] }
 0x93e   :  { %3147 = vmatprep.subr.mxu1 %v9887_v22  ;;  %v9898_v22 = vld [vmem:[#allocation147_spill] sm:$0xff] }
 0x93f   :  { %3148 = vmatpush1.msra.mxu1 %v9888_v12  ;;  %v9899_v12 = vld [vmem:[#allocation15_spill] sm:$0xff] }
 0x940   :  { %3149 = vmatprep.subr.mxu1 %v9889_v18  ;;  %v9900_v18 = vld [vmem:[#allocation149_spill] sm:$0xff] }
 0x941   :  { %3150 = vmatpush1.msra.mxu1 %v9890_v57  ;;  %v9901_v57 = vld [vmem:[#allocation13_spill] sm:$0xff] }
 0x942   :  { %3151 = vmatprep.subr.mxu1 %v9891_v9  ;;  %v9902_v9 = vld [vmem:[#allocation151_spill] sm:$0xff] }
 0x943   :  { %3152 = vmatpush1.msra.mxu1 %v9892_v5  ;;  %v9903_v5 = vld [vmem:[#allocation88_spill] sm:$0xff] }
 0x944   :  { %3153 = vmatprep.subr.mxu1 %v9893_v42  ;;  %v9904_v42 = vld [vmem:[#allocation153_spill] sm:$0xff] }
 0x945   :  { %3154 = vmatpush1.msra.mxu1 %v9894_v23  ;;  %v9905_v23 = vld [vmem:[#allocation86_spill] sm:$0xff] }
 0x946   :  { %3155 = vmatprep.subr.mxu1 %v9895_v16  ;;  %v9906_v16 = vld [vmem:[#allocation155_spill] sm:$0xff] }
 0x947   :  { %3156 = vmatpush1.msra.mxu1 %v9896_v53  ;;  %v9907_v53 = vld [vmem:[#allocation84_spill] sm:$0xff] }
 0x948   :  { %3157 = vmatprep.subr.mxu1 %v9897_v40  ;;  %v9908_v40 = vld [vmem:[#allocation157_spill] sm:$0xff] }
 0x949   :  { %3158 = vmatpush1.msra.mxu1 %v9898_v22  ;;  %v9909_v22 = vld [vmem:[#allocation82_spill] sm:$0xff] }
 0x94a   :  { %3159 = vmatprep.subr.mxu1 %v9899_v12  ;;  %v9910_v12 = vld [vmem:[#allocation159_spill] sm:$0xff] }
 0x94b   :  { %3160 = vmatpush1.msra.mxu1 %v9900_v18  ;;  %v9911_v18 = vld [vmem:[#allocation79_spill] sm:$0xff] }
 0x94c   :  { %3161 = vmatprep.subr.mxu1 %v9901_v57  ;;  %v9912_v57 = vld [vmem:[#allocation161_spill] sm:$0xff] }
 0x94d   :  { %3162 = vmatpush1.msra.mxu1 %v9902_v9  ;;  %v9913_v9 = vld [vmem:[#allocation76_spill] sm:$0xff] }
 0x94e   :  { %3163 = vmatprep.subr.mxu1 %v9903_v5  ;;  %v9914_v5 = vld [vmem:[#allocation163_spill] sm:$0xff] }
 0x94f   :  { %3164 = vmatpush2.msra.mxu1 %v9904_v42  ;;  %v9915_v42 = vld [vmem:[#allocation73_spill] sm:$0xff] }
 0x950   :  { %3165 = vmatprep.subr.mxu1 %v9905_v23  ;;  %v9916_v23 = vld [vmem:[#allocation165_spill] sm:$0xff] }
 0x951   :  { %3166 = vmatpush2.msra.mxu1 %v9906_v16  ;;  %v9917_v16 = vld [vmem:[#allocation70_spill] sm:$0xff] }
 0x952   :  { %3167 = vmatprep.subr.mxu1 %v9907_v53  ;;  %v9918_v53 = vld [vmem:[#allocation167_spill] sm:$0xff] }
 0x953   :  { %3168 = vmatpush2.msra.mxu1 %v9908_v40  ;;  %v9919_v40 = vld [vmem:[#allocation67_spill] sm:$0xff] }
 0x954   :  { %3169 = vmatprep.subr.mxu1 %v9909_v22  ;;  %v9920_v22 = vld [vmem:[#allocation169_spill] sm:$0xff] }
 0x955   :  { %3170 = vmatpush2.msra.mxu1 %v9910_v12  ;;  %v9921_v12 = vld [vmem:[#allocation64_spill] sm:$0xff] }
 0x956   :  { %3171 = vmatprep.subr.mxu1 %v9911_v18  ;;  %v9922_v18 = vld [vmem:[#allocation171_spill] sm:$0xff] }
 0x957   :  { %3172 = vmatpush2.msra.mxu1 %v9912_v57  ;;  %v9923_v57 = vld [vmem:[#allocation61_spill] sm:$0xff] }
 0x958   :  { %3173 = vmatprep.subr.mxu1 %v9913_v9  ;;  %v9924_v9 = vld [vmem:[#allocation173_spill] sm:$0xff] }
 0x959   :  { %3174 = vmatpush2.msra.mxu1 %v9914_v5  ;;  %v9925_v5 = vld [vmem:[#allocation58_spill] sm:$0xff] }
 0x95a   :  { %3175 = vmatprep.subr.mxu1 %v9915_v42  ;;  %v9926_v42 = vld [vmem:[#allocation175_spill] sm:$0xff] }
 0x95b   :  { %3176 = vmatpush2.msra.mxu1 %v9916_v23  ;;  %v9927_v23 = vld [vmem:[#allocation55_spill] sm:$0xff] }
 0x95c   :  { %3177 = vmatprep.subr.mxu1 %v9917_v16  ;;  %v9928_v16 = vld [vmem:[#allocation177_spill] sm:$0xff] }
 0x95d   :  { %3178 = vmatpush2.msra.mxu1 %v9918_v53  ;;  %v9929_v53 = vld [vmem:[#allocation52_spill] sm:$0xff] }
 0x95e   :  { %3179 = vmatprep.subr.mxu1 %v9919_v40  ;;  %v9930_v40 = vld [vmem:[#allocation179_spill] sm:$0xff] }
 0x95f   :  { %3180 = vmatpush2.msra.mxu1 %v9920_v22  ;;  %v9931_v22 = vld [vmem:[#allocation49_spill] sm:$0xff] }
 0x960   :  { %3181 = vmatprep.subr.mxu1 %v9921_v12  ;;  %v9932_v12 = vld [vmem:[#allocation181_spill] sm:$0xff] }
 0x961   :  { %3182 = vmatpush2.msra.mxu1 %v9922_v18  ;;  %v9933_v18 = vld [vmem:[#allocation46_spill] sm:$0xff] }
 0x962   :  { %3183 = vmatprep.subr.mxu1 %v9923_v57  ;;  %v9934_v57 = vld [vmem:[#allocation183_spill] sm:$0xff] }
 0x963   :  { %3184 = vmatpush2.msra.mxu1 %v9924_v9  ;;  %v9935_v9 = vld [vmem:[#allocation93_spill] sm:$0xff] }
 0x964   :  { %3185 = vmatprep.subr.mxu1 %v9925_v5 }
 0x965   :  { %3186 = vmatpush2.msra.mxu1 %v9926_v42 }
 0x966   :  { %3187 = vmatprep.subr.mxu1 %v9927_v23 }
 0x967   :  { %3188 = vmatpush2.msra.mxu1 %v9928_v16 }
 0x968   :  { %3189 = vmatprep.subr.mxu1 %v9929_v53 }
 0x969   :  { %3190 = vmatpush2.msra.mxu1 %v9930_v40 }
 0x96a   :  { %3191 = vmatprep.subr.mxu1 %v9931_v22  ;;  %v9937_v22 = vld [vmem:[#allocation197_spill] sm:$0xff] }
 0x96b   :  { %3192 = vmatpush2.msra.mxu1 %v9932_v12 }
 0x96c   :  { %3193 = vmatprep.subr.mxu1 %v9933_v18 }
 0x96d   :  { %3194 = vmatpush2.msra.mxu1 %v9934_v57 }
 0x96e   :  { %3315 = vmatprep.subr.mxu1 %v9935_v9 }
 0x9ae   :  { %v2843_v5 = vpop.f32.mrf.mxu1  ;;  %v2914_v24 = vpop.f32.mrf.mxu0 }
 0x9af   :  { %v2844_v23 = vadd.f32 %v2843_v5, %v9614_v13  ;;  %v2915_v18 = vadd.f32 %v2914_v24, %v7029_v21 }
 0x9b0   :  { %v2845_v42 = vpop.f32.mrf.mxu1  ;;  %v2916_v1 = vpop.f32.mrf.mxu0 }
 0x9b1   :  { %v2846_v16 = vadd.f32 %v2845_v42, %v9615_v39  ;;  %v2992_v51 = vrot.slane %v2844_v23, 2  ;;  %v2917_v9 = vadd.f32 %v2916_v1, %v7031_v56  ;;  %v3012_v47 = vrot.slane %v2915_v18, 2  ;;  %v9938_v23 = vld [vmem:[#allocation202_spill] sm:$0xff] }
 0x9b3   :  { %v2993_v53 = vrot.slane %v2846_v16, 2  ;;  %v2996_v40 = vadd.f32 %v2992_v51, %v9936_v19  ;;  %v3013_v5 = vrot.slane %v2917_v9, 2  ;;  %v3016_v42 = vadd.f32 %v3012_v47, %v7033_v43 }
 0x9b5   :  { %v2997_v61 = vadd.f32 %v2993_v53, %v9937_v22  ;;  %v4387_v12 = vmul.f32 -1.442695, %v2996_v40  ;;  %v3017_v16 = vadd.f32 %v3013_v5, %v9938_v23  ;;  %v4389_v39 = vmul.f32 -1.442695, %v3016_v42 }
 0x9b7   :  { %v4388_v57 = vmul.f32 -1.442695, %v2997_v61  ;;  %4771 = vpow2.f32 %v4387_v12  ;;  %v4390_v19 = vmul.f32 -1.442695, %v3017_v16 }
 0x9b9   :  { %4773 = vpow2.f32 %v4388_v57 }
 0x9ba   :  { %4775 = vpow2.f32 %v4389_v39 }
 0x9bb   :  { %4777 = vpow2.f32 %v4390_v19 }
 0x9c4   :  { %v4772_v51 = vpop.eup %4771 }
 0x9c5   :  { %v3004_v40 = vadd.f32 1.0, %v4772_v51 }
 0x9c6   :  { %v4774_v53 = vpop.eup %4773 }
 0x9c7   :  { %v3005_v22 = vadd.f32 1.0, %v4774_v53  ;;  %4779 = vrcp.f32 %v3004_v40  ;;  %v4776_v61 = vpop.eup %4775 }
 0x9c8   :  { %v4778_v24 = vpop.eup %4777  ;;  %v3024_v12 = vadd.f32 1.0, %v4776_v61  ;;  %v3046_v61 = vrot.slane %v7486_v20, 6 }
 0x9c9   :  { %4781 = vrcp.f32 %v3005_v22  ;;  %v3025_v43 = vadd.f32 1.0, %v4778_v24 }
 0x9ca   :  { %4783 = vrcp.f32 %v3024_v12 }
 0x9cb   :  { %4785 = vrcp.f32 %v3025_v43 }
 0x9d4   :  { %v4780_v5 = vpop.eup %4779 }
 0x9d6   :  { %v4782_v23 = vpop.eup %4781 }
 0x9d7   :  { %v4784_v53 = vpop.eup %4783 }
 0x9d8   :  { %v4786_v40 = vpop.eup %4785  ;;  %v3042_v22 = vsub.f32 1.0, %v4784_v53 }
 0x9d9   :  { %v3043_v12 = vsub.f32 1.0, %v4786_v40 }
 0x9ee   :  { %v2985_v1 = vpop.f32.mrf.mxu1 }
 0x9ef   :  { %v2986_v18 = vadd.f32 %v2985_v1, %v7041_v55  ;;  %v3047_v1 = vrot.slane %v7491_v28, 6 }
 0x9f0   :  { %v2987_v9 = vpop.f32.mrf.mxu1 }
 0x9f1   :  { %v3032_v47 = vrot.slane %v2986_v18, 2  ;;  %v2988_v57 = vadd.f32 %v2987_v9, %v9777_v54  ;;  %v3050_v9 = vmul.f32 %v4784_v53, %v3046_v61  ;;  %v9946_v53 = vld [vmem:[#allocation22_spill] sm:$0xff]  ;;  %v9949_v61 = vld [vmem:[#allocation104_spill] sm:$0xff] }
 0x9f3   :  { %v3036_v39 = vmul.f32 %v4780_v5, %v3032_v47  ;;  %v3033_v42 = vrot.slane %v2988_v57, 2 }
 0x9f5   :  { %v3038_v16 = vadd.f32 %v3036_v39, %v7046_v6  ;;  %v3037_v19 = vmul.f32 %v4782_v23, %v3033_v42  ;;  %v3051_v6 = vmul.f32 %v4786_v40, %v3047_v1  ;;  %v9941_v42 = vld [vmem:[#allocation100_spill] sm:$0xff]  ;;  %v9947_v40 = vld [vmem:[#allocation103_spill] sm:$0xff]  ;;  %v9951_v1 = vld [vmem:[#allocation105_spill] sm:$0xff] }
 0x9f6   :  { %v9942_v23 = vld [vmem:[#allocation24_spill] sm:$0xff] }
 0x9f7   :  { %4787 = vtanh.f32 %v3038_v16  ;;  %v3039_v51 = vadd.f32 %v3037_v19, %v7049_v37  ;;  %v9943_v16 = vld [vmem:[#allocation101_spill] sm:$0xff]  ;;  %v9944_v19 = vld [vmem:[#allocation158_spill] sm:$0xff] }
 0x9f9   :  { %4789 = vtanh.f32 %v3039_v51  ;;  %v9945_v51 = vld [vmem:[#allocation102_spill] sm:$0xff] }
 0xa04   :  { %v4788_v24 = vpop.eup %4787 }
 0xa05   :  { %v3044_v18 = vmul.f32 %v4788_v24, %v3042_v22  ;;  %v9948_v22 = vld [vmem:[#allocation160_spill] sm:$0xff] }
 0xa06   :  { %v4790_v47 = vpop.eup %4789  ;;  %v9950_v24 = vld [vmem:[#allocation20_spill] sm:$0xff] }
 0xa07   :  { %v3045_v43 = vmul.f32 %v4790_v47, %v3043_v12  ;;  %v3052_v57 = vadd.f32 %v3050_v9, %v3044_v18  ;;  %v9952_v12 = vld [vmem:[#allocation162_spill] sm:$0xff]  ;;  %v9955_v47 = vld [vmem:[#allocation107_spill] sm:$0xff] }
 0xa08   :  { %v9953_v18 = vld [vmem:[#allocation106_spill] sm:$0xff] }
 0xa09   :  { %v3053_v5 = vadd.f32 %v3051_v6, %v3045_v43  ;;  %v4166_v37 = vsel %vm4165_vm6, %v7495_v0, %v3052_v57  ;;  %v7726_v39 = vrot.slane %v3052_v57, 6  ;;  %v9939_v0 = vld [vmem:[#allocation99_spill] sm:$0xff]  ;;  %v9954_v9 = vld [vmem:[#allocation18_spill] sm:$0xff]  ;;  %v9956_v43 = vld [vmem:[#allocation164_spill] sm:$0xff] }
 0xa0a   :  { %4174 = vst [vmem:[%s8517_s11] sm:$0xff] %v4166_v37  ;;  %v9957_v6 = vld [vmem:[#allocation108_spill] sm:$0xff]  ;;  %v9960_v37 = vld [vmem:[#allocation166_spill] sm:$0xff] }
 0xa0b   :  { %v7722_v20 = vrot.slane %v3053_v5, 6  ;;  %v4167_v28 = vsel %vm4165_vm6, %v7503_v25, %v3053_v5  ;;  %v9940_v25 = vld [vmem:[#allocation156_spill] sm:$0xff]  ;;  %v9959_v5 = vld [vmem:[#allocation109_spill] sm:$0xff] }
 0xa0c   :  { %4175 = vst [vmem:[%s8517_s11 + $0x8] sm:$0xff] %v4167_v28  ;;  %v9958_v57 = vld [vmem:[#allocation16_spill] sm:$0xff]  ;;  %v9961_v28 = vld [vmem:[#allocation110_spill] sm:$0xff] }
 0xa0d   :  { %3124 = vmatprep.mubr.f32.mxu0 %v7722_v20  ;;  %3195 = vmatprep.mubr.f32.mxu1 %v7722_v20 }
 0xa0e   :  { %3125 = vmatmul.mubr.f32.vlgmr.msra.gmra.mxu0 %v7726_v39  ;;  %3196 = vmatmul.mubr.f32.vlgmr.msra.gmra.mxu1 %v7726_v39 }
 0xa0f   :  { %3203 = vmatpush1.msra.mxu0 %v9458_v17  ;;  %3266 = vmatprep.mubr.f32.mxu0 %v7722_v20 }
 0xa10   :  { %3204 = vmatprep.subr.mxu0 %v9459_v44  ;;  %3316 = vmatpush1.msra.mxu1 %v6027_v58 }
 0xa11   :  { %3205 = vmatpush1.msra.mxu0 %v9460_v36  ;;  %3317 = vmatprep.subr.mxu1 %v6033_v35 }
 0xa12   :  { %3206 = vmatprep.subr.mxu0 %v9461_v10  ;;  %3318 = vmatpush1.msra.mxu1 %v6037_v2 }
 0xa13   :  { %3207 = vmatpush1.msra.mxu0 %v9462_v11  ;;  %3319 = vmatprep.subr.mxu1 %v6042_v41 }
 0xa14   :  { %3208 = vmatprep.subr.mxu0 %v9463_v31  ;;  %3320 = vmatpush1.msra.mxu1 %v6047_v29 }
 0xa15   :  { %3209 = vmatpush1.msra.mxu0 %v9464_v46  ;;  %3321 = vmatprep.subr.mxu1 %v6052_v32 }
 0xa16   :  { %3210 = vmatprep.subr.mxu0 %v9465_v4  ;;  %3322 = vmatpush1.msra.mxu1 %v6057_v26 }
 0xa17   :  { %3211 = vmatpush1.msra.mxu0 %v9466_v48  ;;  %3323 = vmatprep.subr.mxu1 %v6062_v63 }
 0xa18   :  { %3212 = vmatprep.subr.mxu0 %v9467_v3  ;;  %3324 = vmatpush1.msra.mxu1 %v6067_v8 }
 0xa19   :  { %3213 = vmatpush1.msra.mxu0 %v9468_v52  ;;  %3325 = vmatprep.subr.mxu1 %v6072_v60 }
 0xa1a   :  { %3214 = vmatprep.subr.mxu0 %v9469_v49  ;;  %3326 = vmatpush1.msra.mxu1 %v6077_v62 }
 0xa1b   :  { %3215 = vmatpush1.msra.mxu0 %v9470_v59  ;;  %3327 = vmatprep.subr.mxu1 %v9618_v14 }
 0xa1c   :  { %3216 = vmatprep.subr.mxu0 %v9471_v34  ;;  %3328 = vmatpush1.msra.mxu1 %v9619_v33 }
 0xa1d   :  { %3217 = vmatpush1.msra.mxu0 %v9472_v27  ;;  %3329 = vmatprep.subr.mxu1 %v9620_v15 }
 0xa1e   :  { %3218 = vmatprep.subr.mxu0 %v9473_v30  ;;  %3330 = vmatpush1.msra.mxu1 %v9621_v45 }
 0xa1f   :  { %3219 = vmatpush1.msra.mxu0 %v9474_v7  ;;  %3331 = vmatprep.subr.mxu1 %v9622_v50 }
 0xa20   :  { %3220 = vmatprep.subr.mxu0 %v9475_v38  ;;  %3332 = vmatpush1.msra.mxu1 %v9939_v0 }
 0xa21   :  { %3221 = vmatpush1.msra.mxu0 %v9940_v25  ;;  %3333 = vmatprep.subr.mxu1 %v9941_v42 }
 0xa22   :  { %3222 = vmatprep.subr.mxu0 %v9942_v23  ;;  %3334 = vmatpush1.msra.mxu1 %v9943_v16 }
 0xa23   :  { %3223 = vmatpush1.msra.mxu0 %v9944_v19  ;;  %3335 = vmatprep.subr.mxu1 %v9945_v51  ;;  %v10101_v19 = vld [vmem:[#allocation193_spill] sm:$0xff] }
 0xa24   :  { %3224 = vmatprep.subr.mxu0 %v9946_v53  ;;  %3336 = vmatpush1.msra.mxu1 %v9947_v40 }
 0xa25   :  { %3225 = vmatpush1.msra.mxu0 %v9948_v22  ;;  %3337 = vmatprep.subr.mxu1 %v9949_v61  ;;  %v10098_v61 = vld [vmem:[#allocation91_spill] sm:$0xff]  ;;  %v10099_v22 = vld [vmem:[#allocation92_spill] sm:$0xff] }
 0xa26   :  { %3226 = vmatprep.subr.mxu0 %v9950_v24  ;;  %3338 = vmatpush1.msra.mxu1 %v9951_v1  ;;  %v9962_v1 = vld [vmem:[#allocation14_spill] sm:$0xff]  ;;  %v10097_v24 = vld [vmem:[#allocation195_spill] sm:$0xff] }
 0xa27   :  { %3227 = vmatpush1.msra.mxu0 %v9952_v12  ;;  %3339 = vmatprep.subr.mxu1 %v9953_v18  ;;  %v9963_v12 = vld [vmem:[#allocation111_spill] sm:$0xff]  ;;  %v9964_v18 = vld [vmem:[#allocation168_spill] sm:$0xff] }
 0xa28   :  { %3228 = vmatprep.subr.mxu0 %v9954_v9  ;;  %3340 = vmatpush1.msra.mxu1 %v9955_v47  ;;  %v9965_v9 = vld [vmem:[#allocation112_spill] sm:$0xff]  ;;  %v9966_v47 = vld [vmem:[#allocation89_spill] sm:$0xff] }
 0xa29   :  { %3229 = vmatpush1.msra.mxu0 %v9956_v43  ;;  %3341 = vmatprep.subr.mxu1 %v9957_v6  ;;  %v9967_v43 = vld [vmem:[#allocation113_spill] sm:$0xff]  ;;  %v9968_v6 = vld [vmem:[#allocation170_spill] sm:$0xff] }
 0xa2a   :  { %3230 = vmatprep.subr.mxu0 %v9958_v57  ;;  %3342 = vmatpush1.msra.mxu1 %v9959_v5  ;;  %v9969_v57 = vld [vmem:[#allocation114_spill] sm:$0xff]  ;;  %v9970_v5 = vld [vmem:[#allocation87_spill] sm:$0xff] }
 0xa2b   :  { %3231 = vmatpush1.msra.mxu0 %v9960_v37  ;;  %3343 = vmatprep.subr.mxu1 %v9961_v28  ;;  %v9971_v37 = vld [vmem:[#allocation115_spill] sm:$0xff]  ;;  %v9972_v28 = vld [vmem:[#allocation172_spill] sm:$0xff] }
 0xa2c   :  { %3232 = vmatprep.subr.mxu0 %v9962_v1  ;;  %3344 = vmatpush1.msra.mxu1 %v9963_v12  ;;  %v9973_v1 = vld [vmem:[#allocation116_spill] sm:$0xff]  ;;  %v9974_v12 = vld [vmem:[#allocation85_spill] sm:$0xff] }
 0xa2d   :  { %3233 = vmatpush1.msra.mxu0 %v9964_v18  ;;  %3345 = vmatprep.subr.mxu1 %v9965_v9  ;;  %v9975_v18 = vld [vmem:[#allocation117_spill] sm:$0xff]  ;;  %v9976_v9 = vld [vmem:[#allocation174_spill] sm:$0xff] }
 0xa2e   :  { %3234 = vmatprep.subr.mxu0 %v9966_v47  ;;  %3346 = vmatpush1.msra.mxu1 %v9967_v43  ;;  %v9977_v47 = vld [vmem:[#allocation118_spill] sm:$0xff]  ;;  %v9978_v43 = vld [vmem:[#allocation83_spill] sm:$0xff] }
 0xa2f   :  { %3235 = vmatpush2.msra.mxu0 %v9968_v6  ;;  %3347 = vmatprep.subr.mxu1 %v9969_v57  ;;  %v9979_v6 = vld [vmem:[#allocation119_spill] sm:$0xff]  ;;  %v9980_v57 = vld [vmem:[#allocation176_spill] sm:$0xff] }
 0xa30   :  { %3236 = vmatprep.subr.mxu0 %v9970_v5  ;;  %3348 = vmatpush2.msra.mxu1 %v9971_v37  ;;  %v9981_v5 = vld [vmem:[#allocation81_spill] sm:$0xff]  ;;  %v9982_v37 = vld [vmem:[#allocation80_spill] sm:$0xff] }
 0xa31   :  { %3237 = vmatpush2.msra.mxu0 %v9972_v28  ;;  %3349 = vmatprep.subr.mxu1 %v9973_v1  ;;  %v9983_v28 = vld [vmem:[#allocation120_spill] sm:$0xff]  ;;  %v9984_v1 = vld [vmem:[#allocation178_spill] sm:$0xff] }
 0xa32   :  { %3238 = vmatprep.subr.mxu0 %v9974_v12  ;;  %3350 = vmatpush2.msra.mxu1 %v9975_v18  ;;  %v9985_v12 = vld [vmem:[#allocation12_spill] sm:$0xff]  ;;  %v9986_v18 = vld [vmem:[#allocation77_spill] sm:$0xff] }
 0xa33   :  { %3239 = vmatpush2.msra.mxu0 %v9976_v9  ;;  %3351 = vmatprep.subr.mxu1 %v9977_v47  ;;  %v9987_v9 = vld [vmem:[#allocation78_spill] sm:$0xff]  ;;  %v9988_v47 = vld [vmem:[#allocation180_spill] sm:$0xff] }
 0xa34   :  { %3240 = vmatprep.subr.mxu0 %v9978_v43  ;;  %3352 = vmatpush2.msra.mxu1 %v9979_v6  ;;  %v9989_v43 = vld [vmem:[#allocation11_spill] sm:$0xff]  ;;  %v9990_v6 = vld [vmem:[#allocation74_spill] sm:$0xff] }
 0xa35   :  { %3241 = vmatpush2.msra.mxu0 %v9980_v57  ;;  %3353 = vmatprep.subr.mxu1 %v9981_v5  ;;  %v9991_v57 = vld [vmem:[#allocation75_spill] sm:$0xff]  ;;  %v9992_v5 = vld [vmem:[#allocation182_spill] sm:$0xff] }
 0xa36   :  { %3242 = vmatprep.subr.mxu0 %v9982_v37  ;;  %3354 = vmatpush2.msra.mxu1 %v9983_v28  ;;  %v9993_v37 = vld [vmem:[#allocation72_spill] sm:$0xff]  ;;  %v9994_v28 = vld [vmem:[#allocation71_spill] sm:$0xff] }
 0xa37   :  { %3243 = vmatpush2.msra.mxu0 %v9984_v1  ;;  %3355 = vmatprep.subr.mxu1 %v9985_v12  ;;  %v9995_v1 = vld [vmem:[#allocation10_spill] sm:$0xff]  ;;  %v9996_v12 = vld [vmem:[#allocation184_spill] sm:$0xff] }
 0xa38   :  { %3244 = vmatprep.subr.mxu0 %v9986_v18  ;;  %3356 = vmatpush2.msra.mxu1 %v9987_v9  ;;  %v9997_v18 = vld [vmem:[#allocation69_spill] sm:$0xff]  ;;  %v9998_v9 = vld [vmem:[#allocation68_spill] sm:$0xff] }
 0xa39   :  { %3245 = vmatpush2.msra.mxu0 %v9988_v47  ;;  %3357 = vmatprep.subr.mxu1 %v9989_v43  ;;  %v9999_v47 = vld [vmem:[#allocation9_spill] sm:$0xff] }
 0xa3a   :  { %3246 = vmatprep.subr.mxu0 %v9990_v6  ;;  %3358 = vmatpush2.msra.mxu1 %v9991_v57  ;;  %v10000_v43 = vld [vmem:[#allocation185_spill] sm:$0xff]  ;;  %v10001_v6 = vld [vmem:[#allocation66_spill] sm:$0xff] }
 0xa3b   :  { %3247 = vmatpush2.msra.mxu0 %v9992_v5  ;;  %3359 = vmatprep.subr.mxu1 %v9993_v37  ;;  %v10002_v57 = vld [vmem:[#allocation65_spill] sm:$0xff]  ;;  %v10004_v37 = vld [vmem:[#allocation186_spill] sm:$0xff] }
 0xa3c   :  { %3248 = vmatprep.subr.mxu0 %v9994_v28  ;;  %3360 = vmatpush2.msra.mxu1 %v9995_v1  ;;  %v10003_v5 = vld [vmem:[#allocation121_spill] sm:$0xff]  ;;  %v10005_v28 = vld [vmem:[#allocation63_spill] sm:$0xff]  ;;  %v10006_v1 = vld [vmem:[#allocation62_spill] sm:$0xff] }
 0xa3d   :  { %3249 = vmatpush2.msra.mxu0 %v9996_v12  ;;  %3361 = vmatprep.subr.mxu1 %v9997_v18  ;;  %v10007_v12 = vld [vmem:[#allocation123_spill] sm:$0xff] }
 0xa3e   :  { %3250 = vmatprep.subr.mxu0 %v9998_v9  ;;  %3362 = vmatpush2.msra.mxu1 %v9999_v47  ;;  %v10008_v18 = vld [vmem:[#allocation187_spill] sm:$0xff]  ;;  %v10009_v9 = vld [vmem:[#allocation60_spill] sm:$0xff] }
 0xa3f   :  { %3251 = vmatpush2.msra.mxu0 %v10000_v43  ;;  %3363 = vmatprep.subr.mxu1 %v10001_v6  ;;  %v10010_v47 = vld [vmem:[#allocation59_spill] sm:$0xff]  ;;  %v10011_v43 = vld [vmem:[#allocation125_spill] sm:$0xff]  ;;  %v10012_v6 = vld [vmem:[#allocation188_spill] sm:$0xff] }
 0xa40   :  { %3252 = vmatprep.subr.mxu0 %v10002_v57  ;;  %3364 = vmatpush2.msra.mxu1 %v10003_v5  ;;  %v10013_v57 = vld [vmem:[#allocation57_spill] sm:$0xff]  ;;  %v10014_v5 = vld [vmem:[#allocation56_spill] sm:$0xff] }
 0xa41   :  { %3253 = vmatpush2.msra.mxu0 %v10004_v37  ;;  %3365 = vmatprep.subr.mxu1 %v10005_v28  ;;  %v10015_v37 = vld [vmem:[#allocation127_spill] sm:$0xff]  ;;  %v10016_v28 = vld [vmem:[#allocation189_spill] sm:$0xff] }
 0xa42   :  { %3254 = vmatprep.subr.mxu0 %v10006_v1  ;;  %3366 = vmatpush2.msra.mxu1 %v10007_v12  ;;  %v10017_v1 = vld [vmem:[#allocation54_spill] sm:$0xff]  ;;  %v10018_v12 = vld [vmem:[#allocation53_spill] sm:$0xff] }
 0xa43   :  { %3255 = vmatpush2.msra.mxu0 %v10008_v18  ;;  %3367 = vmatprep.subr.mxu1 %v10009_v9  ;;  %v10019_v18 = vld [vmem:[#allocation129_spill] sm:$0xff]  ;;  %v10020_v9 = vld [vmem:[#allocation190_spill] sm:$0xff] }
 0xa44   :  { %3256 = vmatprep.subr.mxu0 %v10010_v47  ;;  %3368 = vmatpush2.msra.mxu1 %v10011_v43  ;;  %v10021_v47 = vld [vmem:[#allocation51_spill] sm:$0xff]  ;;  %v10022_v43 = vld [vmem:[#allocation50_spill] sm:$0xff] }
 0xa45   :  { %3257 = vmatpush2.msra.mxu0 %v10012_v6  ;;  %3369 = vmatprep.subr.mxu1 %v10013_v57  ;;  %v10023_v6 = vld [vmem:[#allocation131_spill] sm:$0xff] }
 0xa46   :  { %3258 = vmatprep.subr.mxu0 %v10014_v5  ;;  %3370 = vmatpush2.msra.mxu1 %v10015_v37  ;;  %v10024_v57 = vld [vmem:[#allocation191_spill] sm:$0xff]  ;;  %v10025_v5 = vld [vmem:[#allocation48_spill] sm:$0xff] }
 0xa47   :  { %3259 = vmatpush2.msra.mxu0 %v10016_v28  ;;  %3371 = vmatprep.subr.mxu1 %v10017_v1  ;;  %v10026_v37 = vld [vmem:[#allocation47_spill] sm:$0xff]  ;;  %v10027_v28 = vld [vmem:[#allocation133_spill] sm:$0xff]  ;;  %v10028_v1 = vld [vmem:[#allocation192_spill] sm:$0xff] }
 0xa48   :  { %3260 = vmatprep.subr.mxu0 %v10018_v12  ;;  %3372 = vmatpush2.msra.mxu1 %v10019_v18  ;;  %v10029_v12 = vld [vmem:[#allocation45_spill] sm:$0xff]  ;;  %v10040_v18 = vld [vmem:[#allocation35_spill] sm:$0xff] }
 0xa49   :  { %3261 = vmatpush2.msra.mxu0 %v10020_v9  ;;  %3373 = vmatprep.subr.mxu1 %v10021_v47  ;;  %v10030_v9 = vld [vmem:[#allocation43_spill] sm:$0xff]  ;;  %v10031_v47 = vld [vmem:[#allocation122_spill] sm:$0xff] }
 0xa4a   :  { %3262 = vmatprep.subr.mxu0 %v10022_v43  ;;  %3374 = vmatpush2.msra.mxu1 %v10023_v6  ;;  %v10032_v43 = vld [vmem:[#allocation135_spill] sm:$0xff]  ;;  %v10033_v6 = vld [vmem:[#allocation41_spill] sm:$0xff] }
 0xa4b   :  { %3263 = vmatpush2.msra.mxu0 %v10024_v57  ;;  %3375 = vmatprep.subr.mxu1 %v10025_v5  ;;  %v10034_v57 = vld [vmem:[#allocation44_spill] sm:$0xff] }
 0xa4c   :  { %3264 = vmatprep.subr.mxu0 %v10026_v37  ;;  %3376 = vmatpush2.msra.mxu1 %v10027_v28  ;;  %v10035_v5 = vld [vmem:[#allocation124_spill] sm:$0xff]  ;;  %v10036_v37 = vld [vmem:[#allocation39_spill] sm:$0xff]  ;;  %v10037_v28 = vld [vmem:[#allocation126_spill] sm:$0xff] }
 0xa4d   :  { %3265 = vmatpush2.msra.mxu0 %v10028_v1  ;;  %3377 = vmatprep.subr.mxu1 %v10029_v12  ;;  %v10038_v1 = vld [vmem:[#allocation37_spill] sm:$0xff]  ;;  %v10039_v12 = vld [vmem:[#allocation128_spill] sm:$0xff] }
 0xa4e   :  { %3267 = vmatmul.mubr.f32.vlgmr.msra.gmra.mxu0 %v7726_v39  ;;  %3386 = vmatprep.subr.mxu0 %v10030_v9  ;;  %v10041_v9 = vld [vmem:[#allocation130_spill] sm:$0xff] }
 0xa4f   :  { %3387 = vmatpush1.msra.mxu0 %v10031_v47  ;;  %3378 = vmatpush2.msra.mxu1 %v10032_v43  ;;  %v10042_v47 = vld [vmem:[#allocation33_spill] sm:$0xff]  ;;  %v10043_v43 = vld [vmem:[#allocation132_spill] sm:$0xff] }
 0xa50   :  { %3388 = vmatprep.subr.mxu0 %v10033_v6  ;;  %3457 = vmatprep.subr.mxu1 %v10034_v57  ;;  %v10044_v6 = vld [vmem:[#allocation31_spill] sm:$0xff]  ;;  %v10045_v57 = vld [vmem:[#allocation134_spill] sm:$0xff] }
 0xa51   :  { %3389 = vmatpush1.msra.mxu0 %v10035_v5  ;;  %v10046_v5 = vld [vmem:[#allocation29_spill] sm:$0xff] }
 0xa52   :  { %3390 = vmatprep.subr.mxu0 %v10036_v37  ;;  %v10047_v37 = vld [vmem:[#allocation136_spill] sm:$0xff] }
 0xa53   :  { %3391 = vmatpush1.msra.mxu0 %v10037_v28  ;;  %v10048_v28 = vld [vmem:[#allocation27_spill] sm:$0xff] }
 0xa54   :  { %3392 = vmatprep.subr.mxu0 %v10038_v1  ;;  %v10049_v1 = vld [vmem:[#allocation137_spill] sm:$0xff] }
 0xa55   :  { %3393 = vmatpush1.msra.mxu0 %v10039_v12  ;;  %v10050_v12 = vld [vmem:[#allocation25_spill] sm:$0xff] }
 0xa56   :  { %3394 = vmatprep.subr.mxu0 %v10040_v18  ;;  %v10051_v18 = vld [vmem:[#allocation139_spill] sm:$0xff] }
 0xa57   :  { %3395 = vmatpush1.msra.mxu0 %v10041_v9  ;;  %v10052_v9 = vld [vmem:[#allocation23_spill] sm:$0xff] }
 0xa58   :  { %3396 = vmatprep.subr.mxu0 %v10042_v47  ;;  %v10053_v47 = vld [vmem:[#allocation141_spill] sm:$0xff] }
 0xa59   :  { %3397 = vmatpush1.msra.mxu0 %v10043_v43  ;;  %v10054_v43 = vld [vmem:[#allocation21_spill] sm:$0xff] }
 0xa5a   :  { %3398 = vmatprep.subr.mxu0 %v10044_v6  ;;  %v10055_v6 = vld [vmem:[#allocation143_spill] sm:$0xff] }
 0xa5b   :  { %3399 = vmatpush1.msra.mxu0 %v10045_v57  ;;  %v10056_v57 = vld [vmem:[#allocation19_spill] sm:$0xff] }
 0xa5c   :  { %3400 = vmatprep.subr.mxu0 %v10046_v5  ;;  %v10057_v5 = vld [vmem:[#allocation145_spill] sm:$0xff] }
 0xa5d   :  { %3401 = vmatpush1.msra.mxu0 %v10047_v37  ;;  %v10058_v37 = vld [vmem:[#allocation17_spill] sm:$0xff] }
 0xa5e   :  { %3402 = vmatprep.subr.mxu0 %v10048_v28  ;;  %v10059_v28 = vld [vmem:[#allocation147_spill] sm:$0xff] }
 0xa5f   :  { %3403 = vmatpush1.msra.mxu0 %v10049_v1  ;;  %v10060_v1 = vld [vmem:[#allocation15_spill] sm:$0xff] }
 0xa60   :  { %3404 = vmatprep.subr.mxu0 %v10050_v12  ;;  %v10061_v12 = vld [vmem:[#allocation149_spill] sm:$0xff] }
 0xa61   :  { %3405 = vmatpush1.msra.mxu0 %v10051_v18  ;;  %v10062_v18 = vld [vmem:[#allocation13_spill] sm:$0xff] }
 0xa62   :  { %3406 = vmatprep.subr.mxu0 %v10052_v9  ;;  %v10063_v9 = vld [vmem:[#allocation151_spill] sm:$0xff] }
 0xa63   :  { %3407 = vmatpush1.msra.mxu0 %v10053_v47  ;;  %v10064_v47 = vld [vmem:[#allocation88_spill] sm:$0xff] }
 0xa64   :  { %3408 = vmatprep.subr.mxu0 %v10054_v43  ;;  %v10065_v43 = vld [vmem:[#allocation153_spill] sm:$0xff] }
 0xa65   :  { %3409 = vmatpush1.msra.mxu0 %v10055_v6  ;;  %v10066_v6 = vld [vmem:[#allocation86_spill] sm:$0xff] }
 0xa66   :  { %3410 = vmatprep.subr.mxu0 %v10056_v57  ;;  %v10067_v57 = vld [vmem:[#allocation155_spill] sm:$0xff] }
 0xa67   :  { %3411 = vmatpush1.msra.mxu0 %v10057_v5  ;;  %v10068_v5 = vld [vmem:[#allocation84_spill] sm:$0xff] }
 0xa68   :  { %3412 = vmatprep.subr.mxu0 %v10058_v37  ;;  %v10069_v37 = vld [vmem:[#allocation157_spill] sm:$0xff] }
 0xa69   :  { %3413 = vmatpush1.msra.mxu0 %v10059_v28  ;;  %v10070_v28 = vld [vmem:[#allocation82_spill] sm:$0xff] }
 0xa6a   :  { %3414 = vmatprep.subr.mxu0 %v10060_v1  ;;  %v10071_v1 = vld [vmem:[#allocation159_spill] sm:$0xff] }
 0xa6b   :  { %3415 = vmatpush1.msra.mxu0 %v10061_v12  ;;  %v10072_v12 = vld [vmem:[#allocation79_spill] sm:$0xff] }
 0xa6c   :  { %3416 = vmatprep.subr.mxu0 %v10062_v18  ;;  %v10073_v18 = vld [vmem:[#allocation161_spill] sm:$0xff] }
 0xa6d   :  { %3417 = vmatpush1.msra.mxu0 %v10063_v9  ;;  %v10074_v9 = vld [vmem:[#allocation76_spill] sm:$0xff] }
 0xa6e   :  { %3418 = vmatprep.subr.mxu0 %v10064_v47  ;;  %v10075_v47 = vld [vmem:[#allocation163_spill] sm:$0xff] }
 0xa6f   :  { %3419 = vmatpush2.msra.mxu0 %v10065_v43  ;;  %v10076_v43 = vld [vmem:[#allocation73_spill] sm:$0xff] }
 0xa70   :  { %3420 = vmatprep.subr.mxu0 %v10066_v6  ;;  %v10077_v6 = vld [vmem:[#allocation165_spill] sm:$0xff] }
 0xa71   :  { %3421 = vmatpush2.msra.mxu0 %v10067_v57  ;;  %v10078_v57 = vld [vmem:[#allocation70_spill] sm:$0xff] }
 0xa72   :  { %3422 = vmatprep.subr.mxu0 %v10068_v5  ;;  %v10079_v5 = vld [vmem:[#allocation167_spill] sm:$0xff] }
 0xa73   :  { %3423 = vmatpush2.msra.mxu0 %v10069_v37  ;;  %v10080_v37 = vld [vmem:[#allocation67_spill] sm:$0xff] }
 0xa74   :  { %3424 = vmatprep.subr.mxu0 %v10070_v28  ;;  %v10081_v28 = vld [vmem:[#allocation169_spill] sm:$0xff] }
 0xa75   :  { %3425 = vmatpush2.msra.mxu0 %v10071_v1  ;;  %v10082_v1 = vld [vmem:[#allocation64_spill] sm:$0xff] }
 0xa76   :  { %3426 = vmatprep.subr.mxu0 %v10072_v12  ;;  %v10083_v12 = vld [vmem:[#allocation171_spill] sm:$0xff] }
 0xa77   :  { %3427 = vmatpush2.msra.mxu0 %v10073_v18  ;;  %v10084_v18 = vld [vmem:[#allocation61_spill] sm:$0xff] }
 0xa78   :  { %3428 = vmatprep.subr.mxu0 %v10074_v9  ;;  %v10085_v9 = vld [vmem:[#allocation173_spill] sm:$0xff] }
 0xa79   :  { %3429 = vmatpush2.msra.mxu0 %v10075_v47  ;;  %v10086_v47 = vld [vmem:[#allocation58_spill] sm:$0xff] }
 0xa7a   :  { %3430 = vmatprep.subr.mxu0 %v10076_v43  ;;  %v10087_v43 = vld [vmem:[#allocation175_spill] sm:$0xff] }
 0xa7b   :  { %3431 = vmatpush2.msra.mxu0 %v10077_v6  ;;  %v10088_v6 = vld [vmem:[#allocation55_spill] sm:$0xff] }
 0xa7c   :  { %3432 = vmatprep.subr.mxu0 %v10078_v57  ;;  %v10089_v57 = vld [vmem:[#allocation177_spill] sm:$0xff] }
 0xa7d   :  { %3433 = vmatpush2.msra.mxu0 %v10079_v5  ;;  %v10090_v5 = vld [vmem:[#allocation52_spill] sm:$0xff] }
 0xa7e   :  { %3434 = vmatprep.subr.mxu0 %v10080_v37  ;;  %v10091_v37 = vld [vmem:[#allocation179_spill] sm:$0xff] }
 0xa7f   :  { %3435 = vmatpush2.msra.mxu0 %v10081_v28  ;;  %v10092_v28 = vld [vmem:[#allocation49_spill] sm:$0xff] }
 0xa80   :  { %3436 = vmatprep.subr.mxu0 %v10082_v1  ;;  %v10093_v1 = vld [vmem:[#allocation181_spill] sm:$0xff] }
 0xa81   :  { %3437 = vmatpush2.msra.mxu0 %v10083_v12  ;;  %v10094_v12 = vld [vmem:[#allocation46_spill] sm:$0xff] }
 0xa82   :  { %3438 = vmatprep.subr.mxu0 %v10084_v18  ;;  %v10095_v18 = vld [vmem:[#allocation183_spill] sm:$0xff] }
 0xa83   :  { %3439 = vmatpush2.msra.mxu0 %v10085_v9  ;;  %v10096_v9 = vld [vmem:[#allocation93_spill] sm:$0xff] }
 0xa84   :  { %3440 = vmatprep.subr.mxu0 %v10086_v47 }
 0xa85   :  { %3441 = vmatpush2.msra.mxu0 %v10087_v43 }
 0xa86   :  { %3442 = vmatprep.subr.mxu0 %v10088_v6 }
 0xa87   :  { %3443 = vmatpush2.msra.mxu0 %v10089_v57 }
 0xa88   :  { %3444 = vmatprep.subr.mxu0 %v10090_v5 }
 0xa89   :  { %3445 = vmatpush2.msra.mxu0 %v10091_v37 }
 0xa8a   :  { %3446 = vmatprep.subr.mxu0 %v10092_v28 }
 0xa8b   :  { %3447 = vmatpush2.msra.mxu0 %v10093_v1 }
 0xa8c   :  { %3448 = vmatprep.subr.mxu0 %v10094_v12  ;;  %v10100_v12 = vld [vmem:[#allocation90_spill] sm:$0xff] }
 0xa8d   :  { %3449 = vmatpush2.msra.mxu0 %v10095_v18 }
 0xa8e   :  { %3600 = vmatprep.subr.mxu0 %v10096_v9 }
 0xace   :  { %v3126_v47 = vpop.f32.mrf.mxu0  ;;  %v3197_v28 = vpop.f32.mrf.mxu1 }
 0xacf   :  { %v3127_v6 = vadd.f32 %v3126_v47, %v9614_v13  ;;  %v3198_v18 = vadd.f32 %v3197_v28, %v7029_v21 }
 0xad0   :  { %v3128_v43 = vpop.f32.mrf.mxu0  ;;  %v3199_v1 = vpop.f32.mrf.mxu1 }
 0xad1   :  { %v3129_v57 = vadd.f32 %v3128_v43, %v10097_v24  ;;  %v3273_v5 = vadd.f32 %v3127_v6, %v10098_v61  ;;  %v3200_v9 = vadd.f32 %v3199_v1, %v7031_v56  ;;  %v3287_v51 = vadd.f32 %v3198_v18, %v10100_v12 }
 0xad3   :  { %v3274_v37 = vadd.f32 %v3129_v57, %v10099_v22  ;;  %v4391_v40 = vmul.f32 -1.442695, %v3273_v5  ;;  %v3288_v47 = vadd.f32 %v3200_v9, %v10101_v19  ;;  %v4393_v13 = vmul.f32 -1.442695, %v3287_v51 }
 0xad5   :  { %v4392_v53 = vmul.f32 -1.442695, %v3274_v37  ;;  %4791 = vpow2.f32 %v4391_v40  ;;  %v4394_v43 = vmul.f32 -1.442695, %v3288_v47 }
 0xad7   :  { %4793 = vpow2.f32 %v4392_v53 }
 0xad8   :  { %4795 = vpow2.f32 %v4393_v13  ;;  %v10102_v13 = vld [vmem:[#allocation198_spill] sm:$0xff] }
 0xad9   :  { %4797 = vpow2.f32 %v4394_v43 }
 0xae2   :  { %v4792_v24 = vpop.eup %4791 }
 0xae3   :  { %v3281_v57 = vadd.f32 1.0, %v4792_v24 }
 0xae4   :  { %v4794_v6 = vpop.eup %4793 }
 0xae5   :  { %v3282_v5 = vadd.f32 1.0, %v4794_v6  ;;  %4799 = vrcp.f32 %v3281_v57  ;;  %v4796_v40 = vpop.eup %4795  ;;  %v10103_v6 = vld [vmem:[#allocation199_spill] sm:$0xff] }
 0xae6   :  { %v4798_v53 = vpop.eup %4797  ;;  %v3295_v37 = vadd.f32 1.0, %v4796_v40 }
 0xae7   :  { %4801 = vrcp.f32 %v3282_v5  ;;  %v3296_v21 = vadd.f32 1.0, %v4798_v53 }
 0xae8   :  { %4803 = vrcp.f32 %v3295_v37 }
 0xae9   :  { %4805 = vrcp.f32 %v3296_v21 }
 0xaf2   :  { %v4800_v18 = vpop.eup %4799 }
 0xaf4   :  { %v4802_v47 = vpop.eup %4801 }
 0xaf5   :  { %v4804_v5 = vpop.eup %4803 }
 0xaf6   :  { %v4806_v40 = vpop.eup %4805  ;;  %v3307_v19 = vsub.f32 1.0, %v4804_v5  ;;  %v3311_v37 = vmul.f32 %v4804_v5, %v7726_v39  ;;  %v10107_v39 = vld [vmem:[#allocation103_spill] sm:$0xff] }
 0xaf7   :  { %v10115_v5 = vld [vmem:[#allocation107_spill] sm:$0xff] }
 0xb0e   :  { %v3268_v28 = vpop.f32.mrf.mxu0 }
 0xb0f   :  { %v3269_v1 = vadd.f32 %v3268_v28, %v7041_v55  ;;  %v3308_v28 = vsub.f32 1.0, %v4806_v40 }
 0xb10   :  { %v3270_v12 = vpop.f32.mrf.mxu0 }
 0xb11   :  { %v3301_v9 = vmul.f32 %v4800_v18, %v3269_v1  ;;  %v3271_v51 = vadd.f32 %v3270_v12, %v9777_v54  ;;  %v3312_v12 = vmul.f32 %v4806_v40, %v7722_v20  ;;  %v10106_v20 = vld [vmem:[#allocation22_spill] sm:$0xff]  ;;  %v10116_v40 = vld [vmem:[#allocation164_spill] sm:$0xff] }
 0xb13   :  { %v3303_v24 = vadd.f32 %v3301_v9, %v10102_v13  ;;  %v3302_v43 = vmul.f32 %v4802_v47, %v3271_v51  ;;  %v10109_v9 = vld [vmem:[#allocation104_spill] sm:$0xff]  ;;  %v10111_v47 = vld [vmem:[#allocation105_spill] sm:$0xff] }
 0xb14   :  { %v10110_v51 = vld [vmem:[#allocation20_spill] sm:$0xff] }
 0xb15   :  { %4807 = vtanh.f32 %v3303_v24  ;;  %v3304_v57 = vadd.f32 %v3302_v43, %v10103_v6  ;;  %v10112_v24 = vld [vmem:[#allocation162_spill] sm:$0xff] }
 0xb16   :  { %v10113_v43 = vld [vmem:[#allocation106_spill] sm:$0xff] }
 0xb17   :  { %4809 = vtanh.f32 %v3304_v57  ;;  %v10114_v57 = vld [vmem:[#allocation18_spill] sm:$0xff] }
 0xb22   :  { %v4808_v53 = vpop.eup %4807 }
 0xb23   :  { %v3309_v56 = vmul.f32 %v4808_v53, %v3307_v19  ;;  %v10108_v19 = vld [vmem:[#allocation160_spill] sm:$0xff] }
 0xb24   :  { %v4810_v55 = vpop.eup %4809  ;;  %v10117_v53 = vld [vmem:[#allocation108_spill] sm:$0xff] }
 0xb25   :  { %v3310_v1 = vmul.f32 %v4810_v55, %v3308_v28  ;;  %v7945_v18 = vadd.f32 %v3311_v37, %v3309_v56  ;;  %v10104_v56 = vld [vmem:[#allocation158_spill] sm:$0xff]  ;;  %v10118_v28 = vld [vmem:[#allocation16_spill] sm:$0xff] }
 0xb26   :  { %v10105_v55 = vld [vmem:[#allocation102_spill] sm:$0xff] }
 0xb27   :  { %v7943_v21 = vadd.f32 %v3312_v12, %v3310_v1  ;;  %v10119_v1 = vld [vmem:[#allocation109_spill] sm:$0xff]  ;;  %v10120_v12 = vld [vmem:[#allocation166_spill] sm:$0xff] }
 0xb28   :  { %v10121_v37 = vld [vmem:[#allocation110_spill] sm:$0xff] }
 0xb29   :  { %3379 = vmatprep.mubr.f32.mxu1 %v7943_v21  ;;  %3450 = vmatprep.mubr.f32.mxu0 %v7943_v21 }
 0xb2a   :  { %3380 = vmatmul.mubr.f32.vlgmr.msra.gmra.mxu1 %v7945_v18  ;;  %3451 = vmatmul.mubr.f32.vlgmr.msra.gmra.mxu0 %v7945_v18 }
 0xb2b   :  { %3458 = vmatpush1.msra.mxu1 %v9458_v17  ;;  %3521 = vmatprep.mubr.f32.mxu1 %v7943_v21 }
 0xb2c   :  { %3459 = vmatprep.subr.mxu1 %v9459_v44  ;;  %3601 = vmatpush1.msra.mxu0 %v6027_v58 }
 0xb2d   :  { %3460 = vmatpush1.msra.mxu1 %v9460_v36  ;;  %3602 = vmatprep.subr.mxu0 %v6033_v35 }
 0xb2e   :  { %3461 = vmatprep.subr.mxu1 %v9461_v10  ;;  %3603 = vmatpush1.msra.mxu0 %v6037_v2 }
 0xb2f   :  { %3462 = vmatpush1.msra.mxu1 %v9462_v11  ;;  %3604 = vmatprep.subr.mxu0 %v6042_v41 }
 0xb30   :  { %3463 = vmatprep.subr.mxu1 %v9463_v31  ;;  %3605 = vmatpush1.msra.mxu0 %v6047_v29 }
 0xb31   :  { %3464 = vmatpush1.msra.mxu1 %v9464_v46  ;;  %3606 = vmatprep.subr.mxu0 %v6052_v32 }
 0xb32   :  { %3465 = vmatprep.subr.mxu1 %v9465_v4  ;;  %3607 = vmatpush1.msra.mxu0 %v6057_v26 }
 0xb33   :  { %3466 = vmatpush1.msra.mxu1 %v9466_v48  ;;  %3608 = vmatprep.subr.mxu0 %v6062_v63 }
 0xb34   :  { %3467 = vmatprep.subr.mxu1 %v9467_v3  ;;  %3609 = vmatpush1.msra.mxu0 %v6067_v8 }
 0xb35   :  { %3468 = vmatpush1.msra.mxu1 %v9468_v52  ;;  %3610 = vmatprep.subr.mxu0 %v6072_v60 }
 0xb36   :  { %3469 = vmatprep.subr.mxu1 %v9469_v49  ;;  %3611 = vmatpush1.msra.mxu0 %v6077_v62 }
 0xb37   :  { %3470 = vmatpush1.msra.mxu1 %v9470_v59  ;;  %3612 = vmatprep.subr.mxu0 %v9618_v14 }
 0xb38   :  { %3471 = vmatprep.subr.mxu1 %v9471_v34  ;;  %3613 = vmatpush1.msra.mxu0 %v9619_v33 }
 0xb39   :  { %3472 = vmatpush1.msra.mxu1 %v9472_v27  ;;  %3614 = vmatprep.subr.mxu0 %v9620_v15 }
 0xb3a   :  { %3473 = vmatprep.subr.mxu1 %v9473_v30  ;;  %3615 = vmatpush1.msra.mxu0 %v9621_v45 }
 0xb3b   :  { %3474 = vmatpush1.msra.mxu1 %v9474_v7  ;;  %3616 = vmatprep.subr.mxu0 %v9622_v50 }
 0xb3c   :  { %3475 = vmatprep.subr.mxu1 %v9475_v38  ;;  %3617 = vmatpush1.msra.mxu0 %v9939_v0 }
 0xb3d   :  { %3476 = vmatpush1.msra.mxu1 %v9940_v25  ;;  %3618 = vmatprep.subr.mxu0 %v9941_v42 }
 0xb3e   :  { %3477 = vmatprep.subr.mxu1 %v9942_v23  ;;  %3619 = vmatpush1.msra.mxu0 %v9943_v16 }
 0xb3f   :  { %3478 = vmatpush1.msra.mxu1 %v10104_v56  ;;  %3620 = vmatprep.subr.mxu0 %v10105_v55 }
 0xb40   :  { %3479 = vmatprep.subr.mxu1 %v10106_v20  ;;  %3621 = vmatpush1.msra.mxu0 %v10107_v39 }
 0xb41   :  { %3480 = vmatpush1.msra.mxu1 %v10108_v19  ;;  %3622 = vmatprep.subr.mxu0 %v10109_v9  ;;  %v10258_v9 = vld [vmem:[#allocation195_spill] sm:$0xff] }
 0xb42   :  { %3481 = vmatprep.subr.mxu1 %v10110_v51  ;;  %3623 = vmatpush1.msra.mxu0 %v10111_v47  ;;  %v10122_v47 = vld [vmem:[#allocation14_spill] sm:$0xff] }
 0xb43   :  { %3482 = vmatpush1.msra.mxu1 %v10112_v24  ;;  %3624 = vmatprep.subr.mxu0 %v10113_v43  ;;  %v10123_v24 = vld [vmem:[#allocation111_spill] sm:$0xff]  ;;  %v10124_v43 = vld [vmem:[#allocation168_spill] sm:$0xff]  ;;  %v10257_v51 = vld [vmem:[#allocation194_spill] sm:$0xff] }
 0xb44   :  { %3483 = vmatprep.subr.mxu1 %v10114_v57  ;;  %3625 = vmatpush1.msra.mxu0 %v10115_v5  ;;  %v10125_v57 = vld [vmem:[#allocation112_spill] sm:$0xff]  ;;  %v10126_v5 = vld [vmem:[#allocation89_spill] sm:$0xff] }
 0xb45   :  { %3484 = vmatpush1.msra.mxu1 %v10116_v40  ;;  %3626 = vmatprep.subr.mxu0 %v10117_v53  ;;  %v10127_v40 = vld [vmem:[#allocation113_spill] sm:$0xff]  ;;  %v10128_v53 = vld [vmem:[#allocation170_spill] sm:$0xff] }
 0xb46   :  { %3485 = vmatprep.subr.mxu1 %v10118_v28  ;;  %3627 = vmatpush1.msra.mxu0 %v10119_v1  ;;  %v10129_v28 = vld [vmem:[#allocation114_spill] sm:$0xff]  ;;  %v10130_v1 = vld [vmem:[#allocation87_spill] sm:$0xff] }
 0xb47   :  { %3486 = vmatpush1.msra.mxu1 %v10120_v12  ;;  %3628 = vmatprep.subr.mxu0 %v10121_v37  ;;  %v10131_v12 = vld [vmem:[#allocation115_spill] sm:$0xff]  ;;  %v10132_v37 = vld [vmem:[#allocation172_spill] sm:$0xff] }
 0xb48   :  { %3487 = vmatprep.subr.mxu1 %v10122_v47  ;;  %3629 = vmatpush1.msra.mxu0 %v10123_v24  ;;  %v10133_v47 = vld [vmem:[#allocation116_spill] sm:$0xff]  ;;  %v10134_v24 = vld [vmem:[#allocation85_spill] sm:$0xff] }
 0xb49   :  { %3488 = vmatpush1.msra.mxu1 %v10124_v43  ;;  %3630 = vmatprep.subr.mxu0 %v10125_v57  ;;  %v10135_v43 = vld [vmem:[#allocation117_spill] sm:$0xff]  ;;  %v10136_v57 = vld [vmem:[#allocation174_spill] sm:$0xff] }
 0xb4a   :  { %3489 = vmatprep.subr.mxu1 %v10126_v5  ;;  %3631 = vmatpush1.msra.mxu0 %v10127_v40  ;;  %v10137_v5 = vld [vmem:[#allocation118_spill] sm:$0xff]  ;;  %v10138_v40 = vld [vmem:[#allocation83_spill] sm:$0xff] }
 0xb4b   :  { %3490 = vmatpush2.msra.mxu1 %v10128_v53  ;;  %3632 = vmatprep.subr.mxu0 %v10129_v28  ;;  %v10139_v53 = vld [vmem:[#allocation119_spill] sm:$0xff]  ;;  %v10140_v28 = vld [vmem:[#allocation176_spill] sm:$0xff] }
 0xb4c   :  { %3491 = vmatprep.subr.mxu1 %v10130_v1  ;;  %3633 = vmatpush2.msra.mxu0 %v10131_v12  ;;  %v10141_v1 = vld [vmem:[#allocation81_spill] sm:$0xff]  ;;  %v10142_v12 = vld [vmem:[#allocation80_spill] sm:$0xff] }
 0xb4d   :  { %3492 = vmatpush2.msra.mxu1 %v10132_v37  ;;  %3634 = vmatprep.subr.mxu0 %v10133_v47  ;;  %v10143_v37 = vld [vmem:[#allocation120_spill] sm:$0xff]  ;;  %v10144_v47 = vld [vmem:[#allocation178_spill] sm:$0xff] }
 0xb4e   :  { %3493 = vmatprep.subr.mxu1 %v10134_v24  ;;  %3635 = vmatpush2.msra.mxu0 %v10135_v43  ;;  %v10145_v24 = vld [vmem:[#allocation12_spill] sm:$0xff]  ;;  %v10146_v43 = vld [vmem:[#allocation77_spill] sm:$0xff] }
 0xb4f   :  { %3494 = vmatpush2.msra.mxu1 %v10136_v57  ;;  %3636 = vmatprep.subr.mxu0 %v10137_v5  ;;  %v10147_v57 = vld [vmem:[#allocation78_spill] sm:$0xff]  ;;  %v10148_v5 = vld [vmem:[#allocation180_spill] sm:$0xff] }
 0xb50   :  { %3495 = vmatprep.subr.mxu1 %v10138_v40  ;;  %3637 = vmatpush2.msra.mxu0 %v10139_v53  ;;  %v10149_v40 = vld [vmem:[#allocation11_spill] sm:$0xff]  ;;  %v10150_v53 = vld [vmem:[#allocation74_spill] sm:$0xff] }
 0xb51   :  { %3496 = vmatpush2.msra.mxu1 %v10140_v28  ;;  %3638 = vmatprep.subr.mxu0 %v10141_v1  ;;  %v10151_v28 = vld [vmem:[#allocation75_spill] sm:$0xff]  ;;  %v10152_v1 = vld [vmem:[#allocation182_spill] sm:$0xff] }
 0xb52   :  { %3497 = vmatprep.subr.mxu1 %v10142_v12  ;;  %3639 = vmatpush2.msra.mxu0 %v10143_v37  ;;  %v10153_v12 = vld [vmem:[#allocation72_spill] sm:$0xff]  ;;  %v10154_v37 = vld [vmem:[#allocation71_spill] sm:$0xff] }
 0xb53   :  { %3498 = vmatpush2.msra.mxu1 %v10144_v47  ;;  %3640 = vmatprep.subr.mxu0 %v10145_v24  ;;  %v10155_v47 = vld [vmem:[#allocation10_spill] sm:$0xff]  ;;  %v10156_v24 = vld [vmem:[#allocation184_spill] sm:$0xff] }
 0xb54   :  { %3499 = vmatprep.subr.mxu1 %v10146_v43  ;;  %3641 = vmatpush2.msra.mxu0 %v10147_v57  ;;  %v10157_v43 = vld [vmem:[#allocation69_spill] sm:$0xff]  ;;  %v10158_v57 = vld [vmem:[#allocation68_spill] sm:$0xff] }
 0xb55   :  { %3500 = vmatpush2.msra.mxu1 %v10148_v5  ;;  %3642 = vmatprep.subr.mxu0 %v10149_v40  ;;  %v10159_v5 = vld [vmem:[#allocation9_spill] sm:$0xff] }
 0xb56   :  { %3501 = vmatprep.subr.mxu1 %v10150_v53  ;;  %3643 = vmatpush2.msra.mxu0 %v10151_v28  ;;  %v10160_v40 = vld [vmem:[#allocation185_spill] sm:$0xff]  ;;  %v10161_v53 = vld [vmem:[#allocation66_spill] sm:$0xff] }
 0xb57   :  { %3502 = vmatpush2.msra.mxu1 %v10152_v1  ;;  %3644 = vmatprep.subr.mxu0 %v10153_v12  ;;  %v10162_v28 = vld [vmem:[#allocation65_spill] sm:$0xff]  ;;  %v10164_v12 = vld [vmem:[#allocation186_spill] sm:$0xff] }
 0xb58   :  { %3503 = vmatprep.subr.mxu1 %v10154_v37  ;;  %3645 = vmatpush2.msra.mxu0 %v10155_v47  ;;  %v10163_v1 = vld [vmem:[#allocation121_spill] sm:$0xff]  ;;  %v10165_v37 = vld [vmem:[#allocation63_spill] sm:$0xff]  ;;  %v10166_v47 = vld [vmem:[#allocation62_spill] sm:$0xff] }
 0xb59   :  { %3504 = vmatpush2.msra.mxu1 %v10156_v24  ;;  %3646 = vmatprep.subr.mxu0 %v10157_v43  ;;  %v10167_v24 = vld [vmem:[#allocation123_spill] sm:$0xff] }
 0xb5a   :  { %3505 = vmatprep.subr.mxu1 %v10158_v57  ;;  %3647 = vmatpush2.msra.mxu0 %v10159_v5  ;;  %v10168_v43 = vld [vmem:[#allocation187_spill] sm:$0xff]  ;;  %v10169_v57 = vld [vmem:[#allocation60_spill] sm:$0xff] }
 0xb5b   :  { %3506 = vmatpush2.msra.mxu1 %v10160_v40  ;;  %3648 = vmatprep.subr.mxu0 %v10161_v53  ;;  %v10170_v5 = vld [vmem:[#allocation59_spill] sm:$0xff]  ;;  %v10171_v40 = vld [vmem:[#allocation125_spill] sm:$0xff]  ;;  %v10172_v53 = vld [vmem:[#allocation188_spill] sm:$0xff] }
 0xb5c   :  { %3507 = vmatprep.subr.mxu1 %v10162_v28  ;;  %3649 = vmatpush2.msra.mxu0 %v10163_v1  ;;  %v10173_v28 = vld [vmem:[#allocation57_spill] sm:$0xff]  ;;  %v10174_v1 = vld [vmem:[#allocation56_spill] sm:$0xff] }
 0xb5d   :  { %3508 = vmatpush2.msra.mxu1 %v10164_v12  ;;  %3650 = vmatprep.subr.mxu0 %v10165_v37  ;;  %v10175_v12 = vld [vmem:[#allocation127_spill] sm:$0xff]  ;;  %v10176_v37 = vld [vmem:[#allocation189_spill] sm:$0xff] }
 0xb5e   :  { %3509 = vmatprep.subr.mxu1 %v10166_v47  ;;  %3651 = vmatpush2.msra.mxu0 %v10167_v24  ;;  %v10177_v47 = vld [vmem:[#allocation54_spill] sm:$0xff]  ;;  %v10178_v24 = vld [vmem:[#allocation53_spill] sm:$0xff] }
 0xb5f   :  { %3510 = vmatpush2.msra.mxu1 %v10168_v43  ;;  %3652 = vmatprep.subr.mxu0 %v10169_v57  ;;  %v10179_v43 = vld [vmem:[#allocation129_spill] sm:$0xff]  ;;  %v10180_v57 = vld [vmem:[#allocation190_spill] sm:$0xff] }
 0xb60   :  { %3511 = vmatprep.subr.mxu1 %v10170_v5  ;;  %3653 = vmatpush2.msra.mxu0 %v10171_v40  ;;  %v10181_v5 = vld [vmem:[#allocation51_spill] sm:$0xff]  ;;  %v10182_v40 = vld [vmem:[#allocation50_spill] sm:$0xff] }
 0xb61   :  { %3512 = vmatpush2.msra.mxu1 %v10172_v53  ;;  %3654 = vmatprep.subr.mxu0 %v10173_v28  ;;  %v10183_v53 = vld [vmem:[#allocation131_spill] sm:$0xff] }
 0xb62   :  { %3513 = vmatprep.subr.mxu1 %v10174_v1  ;;  %3655 = vmatpush2.msra.mxu0 %v10175_v12  ;;  %v10184_v28 = vld [vmem:[#allocation191_spill] sm:$0xff]  ;;  %v10185_v1 = vld [vmem:[#allocation48_spill] sm:$0xff] }
 0xb63   :  { %3514 = vmatpush2.msra.mxu1 %v10176_v37  ;;  %3656 = vmatprep.subr.mxu0 %v10177_v47  ;;  %v10186_v12 = vld [vmem:[#allocation47_spill] sm:$0xff]  ;;  %v10187_v37 = vld [vmem:[#allocation133_spill] sm:$0xff]  ;;  %v10188_v47 = vld [vmem:[#allocation192_spill] sm:$0xff] }
 0xb64   :  { %3515 = vmatprep.subr.mxu1 %v10178_v24  ;;  %3657 = vmatpush2.msra.mxu0 %v10179_v43  ;;  %v10189_v24 = vld [vmem:[#allocation45_spill] sm:$0xff]  ;;  %v10200_v43 = vld [vmem:[#allocation35_spill] sm:$0xff] }
 0xb65   :  { %3516 = vmatpush2.msra.mxu1 %v10180_v57  ;;  %3658 = vmatprep.subr.mxu0 %v10181_v5  ;;  %v10190_v57 = vld [vmem:[#allocation43_spill] sm:$0xff]  ;;  %v10191_v5 = vld [vmem:[#allocation122_spill] sm:$0xff] }
 0xb66   :  { %3517 = vmatprep.subr.mxu1 %v10182_v40  ;;  %3659 = vmatpush2.msra.mxu0 %v10183_v53  ;;  %v10192_v40 = vld [vmem:[#allocation135_spill] sm:$0xff]  ;;  %v10193_v53 = vld [vmem:[#allocation41_spill] sm:$0xff] }
 0xb67   :  { %3518 = vmatpush2.msra.mxu1 %v10184_v28  ;;  %3660 = vmatprep.subr.mxu0 %v10185_v1  ;;  %v10194_v28 = vld [vmem:[#allocation44_spill] sm:$0xff] }
 0xb68   :  { %3519 = vmatprep.subr.mxu1 %v10186_v12  ;;  %3661 = vmatpush2.msra.mxu0 %v10187_v37  ;;  %v10195_v1 = vld [vmem:[#allocation124_spill] sm:$0xff]  ;;  %v10196_v12 = vld [vmem:[#allocation39_spill] sm:$0xff]  ;;  %v10197_v37 = vld [vmem:[#allocation126_spill] sm:$0xff] }
 0xb69   :  { %3520 = vmatpush2.msra.mxu1 %v10188_v47  ;;  %3662 = vmatprep.subr.mxu0 %v10189_v24  ;;  %v10198_v47 = vld [vmem:[#allocation37_spill] sm:$0xff]  ;;  %v10199_v24 = vld [vmem:[#allocation128_spill] sm:$0xff] }
 0xb6a   :  { %3522 = vmatmul.mubr.f32.vlgmr.msra.gmra.mxu1 %v7945_v18  ;;  %3671 = vmatprep.subr.mxu1 %v10190_v57  ;;  %v10201_v57 = vld [vmem:[#allocation130_spill] sm:$0xff] }
 0xb6b   :  { %3672 = vmatpush1.msra.mxu1 %v10191_v5  ;;  %3663 = vmatpush2.msra.mxu0 %v10192_v40  ;;  %v10202_v5 = vld [vmem:[#allocation33_spill] sm:$0xff]  ;;  %v10203_v40 = vld [vmem:[#allocation132_spill] sm:$0xff] }
 0xb6c   :  { %3673 = vmatprep.subr.mxu1 %v10193_v53  ;;  %3742 = vmatprep.subr.mxu0 %v10194_v28  ;;  %v10204_v53 = vld [vmem:[#allocation31_spill] sm:$0xff]  ;;  %v10205_v28 = vld [vmem:[#allocation134_spill] sm:$0xff] }
 0xb6d   :  { %3674 = vmatpush1.msra.mxu1 %v10195_v1  ;;  %v10206_v1 = vld [vmem:[#allocation29_spill] sm:$0xff] }
 0xb6e   :  { %3675 = vmatprep.subr.mxu1 %v10196_v12  ;;  %v10207_v12 = vld [vmem:[#allocation136_spill] sm:$0xff] }
 0xb6f   :  { %3676 = vmatpush1.msra.mxu1 %v10197_v37  ;;  %v10208_v37 = vld [vmem:[#allocation27_spill] sm:$0xff] }
 0xb70   :  { %3677 = vmatprep.subr.mxu1 %v10198_v47  ;;  %v10209_v47 = vld [vmem:[#allocation137_spill] sm:$0xff] }
 0xb71   :  { %3678 = vmatpush1.msra.mxu1 %v10199_v24  ;;  %v10210_v24 = vld [vmem:[#allocation25_spill] sm:$0xff] }
 0xb72   :  { %3679 = vmatprep.subr.mxu1 %v10200_v43  ;;  %v10211_v43 = vld [vmem:[#allocation139_spill] sm:$0xff] }
 0xb73   :  { %3680 = vmatpush1.msra.mxu1 %v10201_v57  ;;  %v10212_v57 = vld [vmem:[#allocation23_spill] sm:$0xff] }
 0xb74   :  { %3681 = vmatprep.subr.mxu1 %v10202_v5  ;;  %v10213_v5 = vld [vmem:[#allocation141_spill] sm:$0xff] }
 0xb75   :  { %3682 = vmatpush1.msra.mxu1 %v10203_v40  ;;  %v10214_v40 = vld [vmem:[#allocation21_spill] sm:$0xff] }
 0xb76   :  { %3683 = vmatprep.subr.mxu1 %v10204_v53  ;;  %v10215_v53 = vld [vmem:[#allocation143_spill] sm:$0xff] }
 0xb77   :  { %3684 = vmatpush1.msra.mxu1 %v10205_v28  ;;  %v10216_v28 = vld [vmem:[#allocation19_spill] sm:$0xff] }
 0xb78   :  { %3685 = vmatprep.subr.mxu1 %v10206_v1  ;;  %v10217_v1 = vld [vmem:[#allocation145_spill] sm:$0xff] }
 0xb79   :  { %3686 = vmatpush1.msra.mxu1 %v10207_v12  ;;  %v10218_v12 = vld [vmem:[#allocation17_spill] sm:$0xff] }
 0xb7a   :  { %3687 = vmatprep.subr.mxu1 %v10208_v37  ;;  %v10219_v37 = vld [vmem:[#allocation147_spill] sm:$0xff] }
 0xb7b   :  { %3688 = vmatpush1.msra.mxu1 %v10209_v47  ;;  %v10220_v47 = vld [vmem:[#allocation15_spill] sm:$0xff] }
 0xb7c   :  { %3689 = vmatprep.subr.mxu1 %v10210_v24  ;;  %v10221_v24 = vld [vmem:[#allocation149_spill] sm:$0xff] }
 0xb7d   :  { %3690 = vmatpush1.msra.mxu1 %v10211_v43  ;;  %v10222_v43 = vld [vmem:[#allocation13_spill] sm:$0xff] }
 0xb7e   :  { %3691 = vmatprep.subr.mxu1 %v10212_v57  ;;  %v10223_v57 = vld [vmem:[#allocation151_spill] sm:$0xff] }
 0xb7f   :  { %3692 = vmatpush1.msra.mxu1 %v10213_v5  ;;  %v10224_v5 = vld [vmem:[#allocation88_spill] sm:$0xff] }
 0xb80   :  { %3693 = vmatprep.subr.mxu1 %v10214_v40  ;;  %v10225_v40 = vld [vmem:[#allocation153_spill] sm:$0xff] }
 0xb81   :  { %3694 = vmatpush1.msra.mxu1 %v10215_v53  ;;  %v10226_v53 = vld [vmem:[#allocation86_spill] sm:$0xff] }
 0xb82   :  { %3695 = vmatprep.subr.mxu1 %v10216_v28  ;;  %v10227_v28 = vld [vmem:[#allocation155_spill] sm:$0xff] }
 0xb83   :  { %3696 = vmatpush1.msra.mxu1 %v10217_v1  ;;  %v10228_v1 = vld [vmem:[#allocation84_spill] sm:$0xff] }
 0xb84   :  { %3697 = vmatprep.subr.mxu1 %v10218_v12  ;;  %v10229_v12 = vld [vmem:[#allocation157_spill] sm:$0xff] }
 0xb85   :  { %3698 = vmatpush1.msra.mxu1 %v10219_v37  ;;  %v10230_v37 = vld [vmem:[#allocation82_spill] sm:$0xff] }
 0xb86   :  { %3699 = vmatprep.subr.mxu1 %v10220_v47  ;;  %v10231_v47 = vld [vmem:[#allocation159_spill] sm:$0xff] }
 0xb87   :  { %3700 = vmatpush1.msra.mxu1 %v10221_v24  ;;  %v10232_v24 = vld [vmem:[#allocation79_spill] sm:$0xff] }
 0xb88   :  { %3701 = vmatprep.subr.mxu1 %v10222_v43  ;;  %v10233_v43 = vld [vmem:[#allocation161_spill] sm:$0xff] }
 0xb89   :  { %3702 = vmatpush1.msra.mxu1 %v10223_v57  ;;  %v10234_v57 = vld [vmem:[#allocation76_spill] sm:$0xff] }
 0xb8a   :  { %3703 = vmatprep.subr.mxu1 %v10224_v5  ;;  %v10235_v5 = vld [vmem:[#allocation163_spill] sm:$0xff] }
 0xb8b   :  { %3704 = vmatpush2.msra.mxu1 %v10225_v40  ;;  %v10236_v40 = vld [vmem:[#allocation73_spill] sm:$0xff] }
 0xb8c   :  { %3705 = vmatprep.subr.mxu1 %v10226_v53  ;;  %v10237_v53 = vld [vmem:[#allocation165_spill] sm:$0xff] }
 0xb8d   :  { %3706 = vmatpush2.msra.mxu1 %v10227_v28  ;;  %v10238_v28 = vld [vmem:[#allocation70_spill] sm:$0xff] }
 0xb8e   :  { %3707 = vmatprep.subr.mxu1 %v10228_v1  ;;  %v10239_v1 = vld [vmem:[#allocation167_spill] sm:$0xff] }
 0xb8f   :  { %3708 = vmatpush2.msra.mxu1 %v10229_v12  ;;  %v10240_v12 = vld [vmem:[#allocation67_spill] sm:$0xff] }
 0xb90   :  { %3709 = vmatprep.subr.mxu1 %v10230_v37  ;;  %v10241_v37 = vld [vmem:[#allocation169_spill] sm:$0xff] }
 0xb91   :  { %3710 = vmatpush2.msra.mxu1 %v10231_v47  ;;  %v10242_v47 = vld [vmem:[#allocation64_spill] sm:$0xff] }
 0xb92   :  { %3711 = vmatprep.subr.mxu1 %v10232_v24  ;;  %v10243_v24 = vld [vmem:[#allocation171_spill] sm:$0xff] }
 0xb93   :  { %3712 = vmatpush2.msra.mxu1 %v10233_v43  ;;  %v10244_v43 = vld [vmem:[#allocation61_spill] sm:$0xff] }
 0xb94   :  { %3713 = vmatprep.subr.mxu1 %v10234_v57  ;;  %v10245_v57 = vld [vmem:[#allocation173_spill] sm:$0xff] }
 0xb95   :  { %3714 = vmatpush2.msra.mxu1 %v10235_v5  ;;  %v10246_v5 = vld [vmem:[#allocation58_spill] sm:$0xff] }
 0xb96   :  { %3715 = vmatprep.subr.mxu1 %v10236_v40  ;;  %v10247_v40 = vld [vmem:[#allocation175_spill] sm:$0xff] }
 0xb97   :  { %3716 = vmatpush2.msra.mxu1 %v10237_v53  ;;  %v10248_v53 = vld [vmem:[#allocation55_spill] sm:$0xff] }
 0xb98   :  { %3717 = vmatprep.subr.mxu1 %v10238_v28  ;;  %v10249_v28 = vld [vmem:[#allocation177_spill] sm:$0xff] }
 0xb99   :  { %3718 = vmatpush2.msra.mxu1 %v10239_v1  ;;  %v10250_v1 = vld [vmem:[#allocation52_spill] sm:$0xff] }
 0xb9a   :  { %3719 = vmatprep.subr.mxu1 %v10240_v12  ;;  %v10251_v12 = vld [vmem:[#allocation179_spill] sm:$0xff] }
 0xb9b   :  { %3720 = vmatpush2.msra.mxu1 %v10241_v37  ;;  %v10252_v37 = vld [vmem:[#allocation49_spill] sm:$0xff] }
 0xb9c   :  { %3721 = vmatprep.subr.mxu1 %v10242_v47  ;;  %v10253_v47 = vld [vmem:[#allocation181_spill] sm:$0xff] }
 0xb9d   :  { %3722 = vmatpush2.msra.mxu1 %v10243_v24  ;;  %v10254_v24 = vld [vmem:[#allocation46_spill] sm:$0xff] }
 0xb9e   :  { %3723 = vmatprep.subr.mxu1 %v10244_v43  ;;  %v10255_v43 = vld [vmem:[#allocation183_spill] sm:$0xff] }
 0xb9f   :  { %3724 = vmatpush2.msra.mxu1 %v10245_v57  ;;  %v10256_v57 = vld [vmem:[#allocation93_spill] sm:$0xff] }
 0xba0   :  { %3725 = vmatprep.subr.mxu1 %v10246_v5 }
 0xba1   :  { %3726 = vmatpush2.msra.mxu1 %v10247_v40 }
 0xba2   :  { %3727 = vmatprep.subr.mxu1 %v10248_v53 }
 0xba3   :  { %3728 = vmatpush2.msra.mxu1 %v10249_v28 }
 0xba4   :  { %3729 = vmatprep.subr.mxu1 %v10250_v1 }
 0xba5   :  { %3730 = vmatpush2.msra.mxu1 %v10251_v12 }
 0xba6   :  { %3731 = vmatprep.subr.mxu1 %v10252_v37 }
 0xba7   :  { %3732 = vmatpush2.msra.mxu1 %v10253_v47 }
 0xba8   :  { %3733 = vmatprep.subr.mxu1 %v10254_v24  ;;  %v10259_v24 = vld [vmem:[#allocation200_spill] sm:$0xff] }
 0xba9   :  { %3734 = vmatpush2.msra.mxu1 %v10255_v43 }
 0xbaa   :  { %3883 = vmatprep.subr.mxu1 %v10256_v57  ;;  %v10260_v57 = vld [vmem:[#allocation201_spill] sm:$0xff] }
 0xbea   :  { %v3381_v5 = vpop.f32.mrf.mxu1  ;;  %v3452_v39 = vpop.f32.mrf.mxu0 }
 0xbeb   :  { %v3382_v53 = vadd.f32 %v3381_v5, %v10257_v51  ;;  %v3453_v55 = vadd.f32 %v3452_v39, %v10259_v24  ;;  %v10261_v51 = vld [vmem:[#allocation90_spill] sm:$0xff] }
 0xbec   :  { %v3383_v40 = vpop.f32.mrf.mxu1  ;;  %v3454_v20 = vpop.f32.mrf.mxu0 }
 0xbed   :  { %v3384_v28 = vadd.f32 %v3383_v40, %v10258_v9  ;;  %v3530_v19 = vrot.slane %v3382_v53, 6  ;;  %v3455_v56 = vadd.f32 %v3454_v20, %v10260_v57  ;;  %v3550_v16 = vrot.slane %v3453_v55, 6  ;;  %v10262_v53 = vld [vmem:[#allocation193_spill] sm:$0xff] }
 0xbef   :  { %v3531_v1 = vrot.slane %v3384_v28, 6  ;;  %v3534_v12 = vadd.f32 %v3530_v19, %v10098_v61  ;;  %v3551_v5 = vrot.slane %v3455_v56, 6  ;;  %v3554_v40 = vadd.f32 %v3550_v16, %v10261_v51 }
 0xbf1   :  { %v3535_v37 = vadd.f32 %v3531_v1, %v10099_v22  ;;  %v4395_v47 = vmul.f32 -1.442695, %v3534_v12  ;;  %v3555_v28 = vadd.f32 %v3551_v5, %v10262_v53  ;;  %v4397_v9 = vmul.f32 -1.442695, %v3554_v40 }
 0xbf3   :  { %v4396_v43 = vmul.f32 -1.442695, %v3535_v37  ;;  %4811 = vpow2.f32 %v4395_v47  ;;  %v4398_v19 = vmul.f32 -1.442695, %v3555_v28 }
 0xbf5   :  { %4813 = vpow2.f32 %v4396_v43  ;;  %v10263_v43 = vld [vmem:[#allocation203_spill] sm:$0xff] }
 0xbf6   :  { %4815 = vpow2.f32 %v4397_v9 }
 0xbf7   :  { %4817 = vpow2.f32 %v4398_v19 }
 0xc00   :  { %v4812_v61 = vpop.eup %4811 }
 0xc01   :  { %v3542_v12 = vadd.f32 1.0, %v4812_v61 }
 0xc02   :  { %v4814_v1 = vpop.eup %4813 }
 0xc03   :  { %v3543_v22 = vadd.f32 1.0, %v4814_v1  ;;  %4819 = vrcp.f32 %v3542_v12  ;;  %v4816_v39 = vpop.eup %4815 }
 0xc04   :  { %v4818_v47 = vpop.eup %4817  ;;  %v3562_v55 = vadd.f32 1.0, %v4816_v39 }
 0xc05   :  { %4821 = vrcp.f32 %v3543_v22  ;;  %v3563_v16 = vadd.f32 1.0, %v4818_v47 }
 0xc06   :  { %4823 = vrcp.f32 %v3562_v55  ;;  %v3587_v55 = vrot.slane %v7943_v21, 6 }
 0xc07   :  { %4825 = vrcp.f32 %v3563_v16 }
 0xc10   :  { %v4820_v40 = vpop.eup %4819 }
 0xc12   :  { %v4822_v61 = vpop.eup %4821 }
 0xc13   :  { %v4824_v12 = vpop.eup %4823 }
 0xc14   :  { %v4826_v39 = vpop.eup %4825 }
 0xc2a   :  { %v3523_v20 = vpop.f32.mrf.mxu1 }
 0xc2b   :  { %v3524_v56 = vadd.f32 %v3523_v20, %v10263_v43  ;;  %v3580_v20 = vsub.f32 1.0, %v4824_v12 }
 0xc2c   :  { %v3525_v37 = vpop.f32.mrf.mxu1 }
 0xc2d   :  { %v3570_v51 = vrot.slane %v3524_v56, 6  ;;  %v3526_v5 = vadd.f32 %v3525_v37, %v9777_v54  ;;  %v3586_v56 = vrot.slane %v7945_v18, 6  ;;  %v3581_v37 = vsub.f32 1.0, %v4826_v39 }
 0xc2e   :  { %v3591_v54 = vmul.f32 %v4826_v39, %v3587_v55  ;;  %v10286_v39 = vld [vmem:[#allocation112_spill] sm:$0xff]  ;;  %v10291_v55 = vld [vmem:[#allocation87_spill] sm:$0xff] }
 0xc2f   :  { %v3574_v9 = vmul.f32 %v4820_v40, %v3570_v51  ;;  %v3571_v28 = vrot.slane %v3526_v5, 6  ;;  %v3590_v40 = vmul.f32 %v4824_v12, %v3586_v56  ;;  %v10285_v12 = vld [vmem:[#allocation168_spill] sm:$0xff]  ;;  %v10289_v56 = vld [vmem:[#allocation170_spill] sm:$0xff] }
 0xc31   :  { %v3576_v19 = vadd.f32 %v3574_v9, %v10102_v13  ;;  %v3575_v22 = vmul.f32 %v4822_v61, %v3571_v28 }
 0xc33   :  { %4827 = vtanh.f32 %v3576_v19  ;;  %v3577_v1 = vadd.f32 %v3575_v22, %v10103_v6  ;;  %v10283_v22 = vld [vmem:[#allocation14_spill] sm:$0xff] }
 0xc35   :  { %4829 = vtanh.f32 %v3577_v1  ;;  %v10284_v1 = vld [vmem:[#allocation111_spill] sm:$0xff] }
 0xc40   :  { %v4828_v47 = vpop.eup %4827 }
 0xc41   :  { %v3582_v51 = vmul.f32 %v4828_v47, %v3580_v20  ;;  %v10287_v20 = vld [vmem:[#allocation89_spill] sm:$0xff] }
 0xc42   :  { %v4830_v5 = vpop.eup %4829  ;;  %v10288_v47 = vld [vmem:[#allocation113_spill] sm:$0xff] }
 0xc43   :  { %v3583_v16 = vmul.f32 %v4830_v5, %v3581_v37  ;;  %v8159_v9 = vadd.f32 %v3590_v40, %v3582_v51  ;;  %v10290_v37 = vld [vmem:[#allocation114_spill] sm:$0xff]  ;;  %v10292_v51 = vld [vmem:[#allocation115_spill] sm:$0xff]  ;;  %v10293_v5 = vld [vmem:[#allocation172_spill] sm:$0xff] }
 0xc44   :  { %v10294_v40 = vld [vmem:[#allocation116_spill] sm:$0xff] }
 0xc45   :  { %v8161_v28 = vadd.f32 %v3591_v54, %v3583_v16  ;;  %v8165_v19 = vrot.slane %v8159_v9, 2  ;;  %v10280_v54 = vld [vmem:[#allocation109_spill] sm:$0xff] }
 0xc46   :  { %v10295_v16 = vld [vmem:[#allocation85_spill] sm:$0xff] }
 0xc47   :  { %v3597_v61 = vrot.slane %v8161_v28, 2 }
 0xc49   :  { %3664 = vmatprep.mubr.f32.mxu0 %v3597_v61  ;;  %3735 = vmatprep.mubr.f32.mxu1 %v3597_v61 }
 0xc4a   :  { %3665 = vmatmul.mubr.f32.vlgmr.msra.gmra.mxu0 %v8165_v19  ;;  %3736 = vmatmul.mubr.f32.vlgmr.msra.gmra.mxu1 %v8165_v19 }
 0xc4b   :  { %3743 = vmatpush1.msra.mxu0 %v9458_v17  ;;  %3806 = vmatprep.mubr.f32.mxu0 %v3597_v61  ;;  %v10296_v61 = vld [vmem:[#allocation117_spill] sm:$0xff] }
 0xc4c   :  { %3744 = vmatprep.subr.mxu0 %v9459_v44  ;;  %3884 = vmatpush1.msra.mxu1 %v6027_v58  ;;  %v10264_v58 = vld [vmem:[#allocation101_spill] sm:$0xff] }
 0xc4d   :  { %3745 = vmatpush1.msra.mxu0 %v9460_v36  ;;  %3885 = vmatprep.subr.mxu1 %v6033_v35  ;;  %v10265_v35 = vld [vmem:[#allocation158_spill] sm:$0xff] }
 0xc4e   :  { %3746 = vmatprep.subr.mxu0 %v9461_v10  ;;  %3886 = vmatpush1.msra.mxu1 %v6037_v2  ;;  %v10266_v2 = vld [vmem:[#allocation102_spill] sm:$0xff] }
 0xc4f   :  { %3747 = vmatpush1.msra.mxu0 %v9462_v11  ;;  %3887 = vmatprep.subr.mxu1 %v6042_v41  ;;  %v10267_v41 = vld [vmem:[#allocation22_spill] sm:$0xff] }
 0xc50   :  { %3748 = vmatprep.subr.mxu0 %v9463_v31  ;;  %3888 = vmatpush1.msra.mxu1 %v6047_v29  ;;  %v10268_v29 = vld [vmem:[#allocation103_spill] sm:$0xff] }
 0xc51   :  { %3749 = vmatpush1.msra.mxu0 %v9464_v46  ;;  %3889 = vmatprep.subr.mxu1 %v6052_v32  ;;  %v10269_v32 = vld [vmem:[#allocation160_spill] sm:$0xff] }
 0xc52   :  { %3750 = vmatprep.subr.mxu0 %v9465_v4  ;;  %3890 = vmatpush1.msra.mxu1 %v6057_v26  ;;  %v10270_v26 = vld [vmem:[#allocation104_spill] sm:$0xff] }
 0xc53   :  { %3751 = vmatpush1.msra.mxu0 %v9466_v48  ;;  %3891 = vmatprep.subr.mxu1 %v6062_v63  ;;  %v10271_v63 = vld [vmem:[#allocation20_spill] sm:$0xff] }
 0xc54   :  { %3752 = vmatprep.subr.mxu0 %v9467_v3  ;;  %3892 = vmatpush1.msra.mxu1 %v6067_v8  ;;  %v10272_v8 = vld [vmem:[#allocation105_spill] sm:$0xff] }
 0xc55   :  { %3753 = vmatpush1.msra.mxu0 %v9468_v52  ;;  %3893 = vmatprep.subr.mxu1 %v6072_v60  ;;  %v10273_v60 = vld [vmem:[#allocation162_spill] sm:$0xff] }
 0xc56   :  { %3754 = vmatprep.subr.mxu0 %v9469_v49  ;;  %3894 = vmatpush1.msra.mxu1 %v6077_v62  ;;  %v10274_v62 = vld [vmem:[#allocation106_spill] sm:$0xff] }
 0xc57   :  { %3755 = vmatpush1.msra.mxu0 %v9470_v59  ;;  %3895 = vmatprep.subr.mxu1 %v9618_v14  ;;  %v10275_v14 = vld [vmem:[#allocation18_spill] sm:$0xff] }
 0xc58   :  { %3756 = vmatprep.subr.mxu0 %v9471_v34  ;;  %3896 = vmatpush1.msra.mxu1 %v9619_v33  ;;  %v10276_v33 = vld [vmem:[#allocation107_spill] sm:$0xff] }
 0xc59   :  { %3757 = vmatpush1.msra.mxu0 %v9472_v27  ;;  %3897 = vmatprep.subr.mxu1 %v9620_v15  ;;  %v10277_v15 = vld [vmem:[#allocation164_spill] sm:$0xff] }
 0xc5a   :  { %3758 = vmatprep.subr.mxu0 %v9473_v30  ;;  %3898 = vmatpush1.msra.mxu1 %v9621_v45  ;;  %v10278_v45 = vld [vmem:[#allocation108_spill] sm:$0xff] }
 0xc5b   :  { %3759 = vmatpush1.msra.mxu0 %v9474_v7  ;;  %3899 = vmatprep.subr.mxu1 %v9622_v50  ;;  %v10279_v50 = vld [vmem:[#allocation16_spill] sm:$0xff] }
 0xc5c   :  { %3760 = vmatprep.subr.mxu0 %v9475_v38  ;;  %3900 = vmatpush1.msra.mxu1 %v9939_v0  ;;  %v10281_v0 = vld [vmem:[#allocation166_spill] sm:$0xff] }
 0xc5d   :  { %3761 = vmatpush1.msra.mxu0 %v9940_v25  ;;  %3901 = vmatprep.subr.mxu1 %v9941_v42  ;;  %v10282_v42 = vld [vmem:[#allocation110_spill] sm:$0xff] }
 0xc5e   :  { %3762 = vmatprep.subr.mxu0 %v9942_v23  ;;  %3902 = vmatpush1.msra.mxu1 %v10264_v58  ;;  %v10297_v58 = vld [vmem:[#allocation174_spill] sm:$0xff] }
 0xc5f   :  { %3763 = vmatpush1.msra.mxu0 %v10265_v35  ;;  %3903 = vmatprep.subr.mxu1 %v10266_v2  ;;  %v10298_v2 = vld [vmem:[#allocation118_spill] sm:$0xff] }
 0xc60   :  { %3764 = vmatprep.subr.mxu0 %v10267_v41  ;;  %3904 = vmatpush1.msra.mxu1 %v10268_v29  ;;  %v10299_v29 = vld [vmem:[#allocation83_spill] sm:$0xff] }
 0xc61   :  { %3765 = vmatpush1.msra.mxu0 %v10269_v32  ;;  %3905 = vmatprep.subr.mxu1 %v10270_v26  ;;  %v10300_v26 = vld [vmem:[#allocation119_spill] sm:$0xff] }
 0xc62   :  { %3766 = vmatprep.subr.mxu0 %v10271_v63  ;;  %3906 = vmatpush1.msra.mxu1 %v10272_v8  ;;  %v10301_v8 = vld [vmem:[#allocation176_spill] sm:$0xff] }
 0xc63   :  { %3767 = vmatpush1.msra.mxu0 %v10273_v60  ;;  %3907 = vmatprep.subr.mxu1 %v10274_v62  ;;  %v10302_v62 = vld [vmem:[#allocation81_spill] sm:$0xff] }
 0xc64   :  { %3768 = vmatprep.subr.mxu0 %v10275_v14  ;;  %3908 = vmatpush1.msra.mxu1 %v10276_v33  ;;  %v10303_v33 = vld [vmem:[#allocation80_spill] sm:$0xff] }
 0xc65   :  { %3769 = vmatpush1.msra.mxu0 %v10277_v15  ;;  %3909 = vmatprep.subr.mxu1 %v10278_v45  ;;  %v10304_v45 = vld [vmem:[#allocation120_spill] sm:$0xff] }
 0xc66   :  { %3770 = vmatprep.subr.mxu0 %v10279_v50  ;;  %3910 = vmatpush1.msra.mxu1 %v10280_v54  ;;  %v10305_v54 = vld [vmem:[#allocation178_spill] sm:$0xff] }
 0xc67   :  { %3771 = vmatpush1.msra.mxu0 %v10281_v0  ;;  %3911 = vmatprep.subr.mxu1 %v10282_v42  ;;  %v10306_v42 = vld [vmem:[#allocation12_spill] sm:$0xff] }
 0xc68   :  { %3772 = vmatprep.subr.mxu0 %v10283_v22  ;;  %3912 = vmatpush1.msra.mxu1 %v10284_v1  ;;  %v10307_v1 = vld [vmem:[#allocation77_spill] sm:$0xff] }
 0xc69   :  { %3773 = vmatpush1.msra.mxu0 %v10285_v12  ;;  %3913 = vmatprep.subr.mxu1 %v10286_v39  ;;  %v10308_v39 = vld [vmem:[#allocation78_spill] sm:$0xff] }
 0xc6a   :  { %3774 = vmatprep.subr.mxu0 %v10287_v20  ;;  %3914 = vmatpush1.msra.mxu1 %v10288_v47  ;;  %v10309_v47 = vld [vmem:[#allocation180_spill] sm:$0xff] }
 0xc6b   :  { %3775 = vmatpush2.msra.mxu0 %v10289_v56  ;;  %3915 = vmatprep.subr.mxu1 %v10290_v37  ;;  %v10310_v37 = vld [vmem:[#allocation11_spill] sm:$0xff] }
 0xc6c   :  { %3776 = vmatprep.subr.mxu0 %v10291_v55  ;;  %3916 = vmatpush2.msra.mxu1 %v10292_v51  ;;  %v10311_v51 = vld [vmem:[#allocation74_spill] sm:$0xff] }
 0xc6d   :  { %3777 = vmatpush2.msra.mxu0 %v10293_v5  ;;  %3917 = vmatprep.subr.mxu1 %v10294_v40  ;;  %v10312_v40 = vld [vmem:[#allocation75_spill] sm:$0xff] }
 0xc6e   :  { %3778 = vmatprep.subr.mxu0 %v10295_v16  ;;  %3918 = vmatpush2.msra.mxu1 %v10296_v61  ;;  %v10313_v61 = vld [vmem:[#allocation182_spill] sm:$0xff] }
 0xc6f   :  { %3779 = vmatpush2.msra.mxu0 %v10297_v58  ;;  %3919 = vmatprep.subr.mxu1 %v10298_v2  ;;  %v10314_v2 = vld [vmem:[#allocation72_spill] sm:$0xff] }
 0xc70   :  { %3780 = vmatprep.subr.mxu0 %v10299_v29  ;;  %3920 = vmatpush2.msra.mxu1 %v10300_v26  ;;  %v10315_v26 = vld [vmem:[#allocation71_spill] sm:$0xff] }
 0xc71   :  { %3781 = vmatpush2.msra.mxu0 %v10301_v8  ;;  %3921 = vmatprep.subr.mxu1 %v10302_v62  ;;  %v10316_v62 = vld [vmem:[#allocation10_spill] sm:$0xff] }
 0xc72   :  { %3782 = vmatprep.subr.mxu0 %v10303_v33  ;;  %3922 = vmatpush2.msra.mxu1 %v10304_v45  ;;  %v10317_v45 = vld [vmem:[#allocation184_spill] sm:$0xff]  ;;  %v10419_v33 = vld [vmem:[#allocation91_spill] sm:$0xff] }
 0xc73   :  { %3783 = vmatpush2.msra.mxu0 %v10305_v54  ;;  %3923 = vmatprep.subr.mxu1 %v10306_v42  ;;  %v10318_v42 = vld [vmem:[#allocation69_spill] sm:$0xff] }
 0xc74   :  { %3784 = vmatprep.subr.mxu0 %v10307_v1  ;;  %3924 = vmatpush2.msra.mxu1 %v10308_v39  ;;  %v10319_v39 = vld [vmem:[#allocation68_spill] sm:$0xff]  ;;  %v10418_v1 = vld [vmem:[#allocation195_spill] sm:$0xff] }
 0xc75   :  { %3785 = vmatpush2.msra.mxu0 %v10309_v47  ;;  %3925 = vmatprep.subr.mxu1 %v10310_v37  ;;  %v10320_v47 = vld [vmem:[#allocation9_spill] sm:$0xff] }
 0xc76   :  { %3786 = vmatprep.subr.mxu0 %v10311_v51  ;;  %3926 = vmatpush2.msra.mxu1 %v10312_v40  ;;  %v10321_v37 = vld [vmem:[#allocation185_spill] sm:$0xff]  ;;  %v10322_v51 = vld [vmem:[#allocation66_spill] sm:$0xff] }
 0xc77   :  { %3787 = vmatpush2.msra.mxu0 %v10313_v61  ;;  %3927 = vmatprep.subr.mxu1 %v10314_v2  ;;  %v10323_v40 = vld [vmem:[#allocation65_spill] sm:$0xff]  ;;  %v10325_v2 = vld [vmem:[#allocation186_spill] sm:$0xff] }
 0xc78   :  { %3788 = vmatprep.subr.mxu0 %v10315_v26  ;;  %3928 = vmatpush2.msra.mxu1 %v10316_v62  ;;  %v10324_v61 = vld [vmem:[#allocation121_spill] sm:$0xff]  ;;  %v10326_v26 = vld [vmem:[#allocation63_spill] sm:$0xff]  ;;  %v10327_v62 = vld [vmem:[#allocation62_spill] sm:$0xff] }
 0xc79   :  { %3789 = vmatpush2.msra.mxu0 %v10317_v45  ;;  %3929 = vmatprep.subr.mxu1 %v10318_v42  ;;  %v10328_v45 = vld [vmem:[#allocation123_spill] sm:$0xff] }
 0xc7a   :  { %3790 = vmatprep.subr.mxu0 %v10319_v39  ;;  %3930 = vmatpush2.msra.mxu1 %v10320_v47  ;;  %v10329_v42 = vld [vmem:[#allocation187_spill] sm:$0xff]  ;;  %v10330_v39 = vld [vmem:[#allocation60_spill] sm:$0xff] }
 0xc7b   :  { %3791 = vmatpush2.msra.mxu0 %v10321_v37  ;;  %3931 = vmatprep.subr.mxu1 %v10322_v51  ;;  %v10331_v47 = vld [vmem:[#allocation59_spill] sm:$0xff]  ;;  %v10332_v37 = vld [vmem:[#allocation125_spill] sm:$0xff]  ;;  %v10333_v51 = vld [vmem:[#allocation188_spill] sm:$0xff] }
 0xc7c   :  { %3792 = vmatprep.subr.mxu0 %v10323_v40  ;;  %3932 = vmatpush2.msra.mxu1 %v10324_v61  ;;  %v10334_v40 = vld [vmem:[#allocation57_spill] sm:$0xff]  ;;  %v10335_v61 = vld [vmem:[#allocation56_spill] sm:$0xff] }
 0xc7d   :  { %3793 = vmatpush2.msra.mxu0 %v10325_v2  ;;  %3933 = vmatprep.subr.mxu1 %v10326_v26  ;;  %v10336_v2 = vld [vmem:[#allocation127_spill] sm:$0xff]  ;;  %v10337_v26 = vld [vmem:[#allocation189_spill] sm:$0xff] }
 0xc7e   :  { %3794 = vmatprep.subr.mxu0 %v10327_v62  ;;  %3934 = vmatpush2.msra.mxu1 %v10328_v45  ;;  %v10338_v62 = vld [vmem:[#allocation54_spill] sm:$0xff]  ;;  %v10339_v45 = vld [vmem:[#allocation53_spill] sm:$0xff] }
 0xc7f   :  { %3795 = vmatpush2.msra.mxu0 %v10329_v42  ;;  %3935 = vmatprep.subr.mxu1 %v10330_v39  ;;  %v10340_v42 = vld [vmem:[#allocation129_spill] sm:$0xff]  ;;  %v10341_v39 = vld [vmem:[#allocation190_spill] sm:$0xff] }
 0xc80   :  { %3796 = vmatprep.subr.mxu0 %v10331_v47  ;;  %3936 = vmatpush2.msra.mxu1 %v10332_v37  ;;  %v10342_v47 = vld [vmem:[#allocation51_spill] sm:$0xff]  ;;  %v10343_v37 = vld [vmem:[#allocation50_spill] sm:$0xff] }
 0xc81   :  { %3797 = vmatpush2.msra.mxu0 %v10333_v51  ;;  %3937 = vmatprep.subr.mxu1 %v10334_v40  ;;  %v10344_v51 = vld [vmem:[#allocation131_spill] sm:$0xff] }
 0xc82   :  { %3798 = vmatprep.subr.mxu0 %v10335_v61  ;;  %3938 = vmatpush2.msra.mxu1 %v10336_v2  ;;  %v10345_v40 = vld [vmem:[#allocation191_spill] sm:$0xff]  ;;  %v10346_v61 = vld [vmem:[#allocation48_spill] sm:$0xff] }
 0xc83   :  { %3799 = vmatpush2.msra.mxu0 %v10337_v26  ;;  %3939 = vmatprep.subr.mxu1 %v10338_v62  ;;  %v10347_v2 = vld [vmem:[#allocation47_spill] sm:$0xff]  ;;  %v10348_v26 = vld [vmem:[#allocation133_spill] sm:$0xff]  ;;  %v10349_v62 = vld [vmem:[#allocation192_spill] sm:$0xff] }
 0xc84   :  { %3800 = vmatprep.subr.mxu0 %v10339_v45  ;;  %3940 = vmatpush2.msra.mxu1 %v10340_v42  ;;  %v10350_v45 = vld [vmem:[#allocation45_spill] sm:$0xff]  ;;  %v10351_v42 = vld [vmem:[#allocation43_spill] sm:$0xff] }
 0xc85   :  { %3801 = vmatpush2.msra.mxu0 %v10341_v39  ;;  %3941 = vmatprep.subr.mxu1 %v10342_v47  ;;  %v10352_v47 = vld [vmem:[#allocation122_spill] sm:$0xff] }
 0xc86   :  { %3802 = vmatprep.subr.mxu0 %v10343_v37  ;;  %3942 = vmatpush2.msra.mxu1 %v10344_v51  ;;  %v10353_v37 = vld [vmem:[#allocation135_spill] sm:$0xff]  ;;  %v10354_v51 = vld [vmem:[#allocation41_spill] sm:$0xff]  ;;  %v10417_v39 = vld [vmem:[#allocation194_spill] sm:$0xff] }
 0xc87   :  { %3803 = vmatpush2.msra.mxu0 %v10345_v40  ;;  %3943 = vmatprep.subr.mxu1 %v10346_v61  ;;  %v10355_v40 = vld [vmem:[#allocation44_spill] sm:$0xff] }
 0xc88   :  { %3804 = vmatprep.subr.mxu0 %v10347_v2  ;;  %3944 = vmatpush2.msra.mxu1 %v10348_v26  ;;  %v10356_v61 = vld [vmem:[#allocation124_spill] sm:$0xff]  ;;  %v10357_v2 = vld [vmem:[#allocation39_spill] sm:$0xff]  ;;  %v10358_v26 = vld [vmem:[#allocation126_spill] sm:$0xff] }
 0xc89   :  { %3805 = vmatpush2.msra.mxu0 %v10349_v62  ;;  %3945 = vmatprep.subr.mxu1 %v10350_v45  ;;  %v10359_v62 = vld [vmem:[#allocation37_spill] sm:$0xff]  ;;  %v10360_v45 = vld [vmem:[#allocation128_spill] sm:$0xff] }
 0xc8a   :  { %3807 = vmatmul.mubr.f32.vlgmr.msra.gmra.mxu0 %v8165_v19  ;;  %3954 = vmatprep.subr.mxu0 %v10351_v42  ;;  %v10361_v19 = vld [vmem:[#allocation35_spill] sm:$0xff]  ;;  %v10362_v42 = vld [vmem:[#allocation130_spill] sm:$0xff] }
 0xc8b   :  { %3955 = vmatpush1.msra.mxu0 %v10352_v47  ;;  %3946 = vmatpush2.msra.mxu1 %v10353_v37  ;;  %v10363_v47 = vld [vmem:[#allocation33_spill] sm:$0xff]  ;;  %v10364_v37 = vld [vmem:[#allocation132_spill] sm:$0xff] }
 0xc8c   :  { %3956 = vmatprep.subr.mxu0 %v10354_v51  ;;  %4025 = vmatprep.subr.mxu1 %v10355_v40  ;;  %v10365_v51 = vld [vmem:[#allocation31_spill] sm:$0xff]  ;;  %v10366_v40 = vld [vmem:[#allocation134_spill] sm:$0xff] }
 0xc8d   :  { %3957 = vmatpush1.msra.mxu0 %v10356_v61  ;;  %v10367_v61 = vld [vmem:[#allocation29_spill] sm:$0xff] }
 0xc8e   :  { %3958 = vmatprep.subr.mxu0 %v10357_v2  ;;  %v10368_v2 = vld [vmem:[#allocation136_spill] sm:$0xff] }
 0xc8f   :  { %3959 = vmatpush1.msra.mxu0 %v10358_v26  ;;  %v10369_v26 = vld [vmem:[#allocation27_spill] sm:$0xff] }
 0xc90   :  { %3960 = vmatprep.subr.mxu0 %v10359_v62  ;;  %v10370_v62 = vld [vmem:[#allocation137_spill] sm:$0xff] }
 0xc91   :  { %3961 = vmatpush1.msra.mxu0 %v10360_v45  ;;  %v10371_v45 = vld [vmem:[#allocation25_spill] sm:$0xff] }
 0xc92   :  { %3962 = vmatprep.subr.mxu0 %v10361_v19  ;;  %v10372_v19 = vld [vmem:[#allocation139_spill] sm:$0xff] }
 0xc93   :  { %3963 = vmatpush1.msra.mxu0 %v10362_v42  ;;  %v10373_v42 = vld [vmem:[#allocation23_spill] sm:$0xff] }
 0xc94   :  { %3964 = vmatprep.subr.mxu0 %v10363_v47  ;;  %v10374_v47 = vld [vmem:[#allocation141_spill] sm:$0xff] }
 0xc95   :  { %3965 = vmatpush1.msra.mxu0 %v10364_v37  ;;  %v10375_v37 = vld [vmem:[#allocation21_spill] sm:$0xff] }
 0xc96   :  { %3966 = vmatprep.subr.mxu0 %v10365_v51  ;;  %v10376_v51 = vld [vmem:[#allocation143_spill] sm:$0xff] }
 0xc97   :  { %3967 = vmatpush1.msra.mxu0 %v10366_v40  ;;  %v10377_v40 = vld [vmem:[#allocation19_spill] sm:$0xff] }
 0xc98   :  { %3968 = vmatprep.subr.mxu0 %v10367_v61  ;;  %v10378_v61 = vld [vmem:[#allocation145_spill] sm:$0xff] }
 0xc99   :  { %3969 = vmatpush1.msra.mxu0 %v10368_v2  ;;  %v10379_v2 = vld [vmem:[#allocation17_spill] sm:$0xff] }
 0xc9a   :  { %3970 = vmatprep.subr.mxu0 %v10369_v26  ;;  %v10380_v26 = vld [vmem:[#allocation147_spill] sm:$0xff] }
 0xc9b   :  { %3971 = vmatpush1.msra.mxu0 %v10370_v62  ;;  %v10381_v62 = vld [vmem:[#allocation15_spill] sm:$0xff] }
 0xc9c   :  { %3972 = vmatprep.subr.mxu0 %v10371_v45  ;;  %v10382_v45 = vld [vmem:[#allocation149_spill] sm:$0xff] }
 0xc9d   :  { %3973 = vmatpush1.msra.mxu0 %v10372_v19  ;;  %v10383_v19 = vld [vmem:[#allocation13_spill] sm:$0xff] }
 0xc9e   :  { %3974 = vmatprep.subr.mxu0 %v10373_v42  ;;  %v10384_v42 = vld [vmem:[#allocation151_spill] sm:$0xff] }
 0xc9f   :  { %3975 = vmatpush1.msra.mxu0 %v10374_v47  ;;  %v10385_v47 = vld [vmem:[#allocation88_spill] sm:$0xff] }
 0xca0   :  { %3976 = vmatprep.subr.mxu0 %v10375_v37  ;;  %v10386_v37 = vld [vmem:[#allocation153_spill] sm:$0xff] }
 0xca1   :  { %3977 = vmatpush1.msra.mxu0 %v10376_v51  ;;  %v10387_v51 = vld [vmem:[#allocation86_spill] sm:$0xff] }
 0xca2   :  { %3978 = vmatprep.subr.mxu0 %v10377_v40  ;;  %v10388_v40 = vld [vmem:[#allocation155_spill] sm:$0xff] }
 0xca3   :  { %3979 = vmatpush1.msra.mxu0 %v10378_v61  ;;  %v10389_v61 = vld [vmem:[#allocation84_spill] sm:$0xff] }
 0xca4   :  { %3980 = vmatprep.subr.mxu0 %v10379_v2  ;;  %v10390_v2 = vld [vmem:[#allocation157_spill] sm:$0xff] }
 0xca5   :  { %3981 = vmatpush1.msra.mxu0 %v10380_v26  ;;  %v10391_v26 = vld [vmem:[#allocation82_spill] sm:$0xff] }
 0xca6   :  { %3982 = vmatprep.subr.mxu0 %v10381_v62  ;;  %v10392_v62 = vld [vmem:[#allocation159_spill] sm:$0xff] }
 0xca7   :  { %3983 = vmatpush1.msra.mxu0 %v10382_v45  ;;  %v10393_v45 = vld [vmem:[#allocation79_spill] sm:$0xff] }
 0xca8   :  { %3984 = vmatprep.subr.mxu0 %v10383_v19  ;;  %v10394_v19 = vld [vmem:[#allocation161_spill] sm:$0xff] }
 0xca9   :  { %3985 = vmatpush1.msra.mxu0 %v10384_v42  ;;  %v10395_v42 = vld [vmem:[#allocation76_spill] sm:$0xff] }
 0xcaa   :  { %3986 = vmatprep.subr.mxu0 %v10385_v47  ;;  %v10396_v47 = vld [vmem:[#allocation163_spill] sm:$0xff] }
 0xcab   :  { %3987 = vmatpush2.msra.mxu0 %v10386_v37  ;;  %v10397_v37 = vld [vmem:[#allocation73_spill] sm:$0xff] }
 0xcac   :  { %3988 = vmatprep.subr.mxu0 %v10387_v51  ;;  %v10398_v51 = vld [vmem:[#allocation165_spill] sm:$0xff] }
 0xcad   :  { %3989 = vmatpush2.msra.mxu0 %v10388_v40  ;;  %v10399_v40 = vld [vmem:[#allocation70_spill] sm:$0xff] }
 0xcae   :  { %3990 = vmatprep.subr.mxu0 %v10389_v61  ;;  %v10400_v61 = vld [vmem:[#allocation167_spill] sm:$0xff] }
 0xcaf   :  { %3991 = vmatpush2.msra.mxu0 %v10390_v2  ;;  %v10401_v2 = vld [vmem:[#allocation67_spill] sm:$0xff] }
 0xcb0   :  { %3992 = vmatprep.subr.mxu0 %v10391_v26  ;;  %v10402_v26 = vld [vmem:[#allocation169_spill] sm:$0xff] }
 0xcb1   :  { %3993 = vmatpush2.msra.mxu0 %v10392_v62  ;;  %v10403_v62 = vld [vmem:[#allocation64_spill] sm:$0xff] }
 0xcb2   :  { %3994 = vmatprep.subr.mxu0 %v10393_v45  ;;  %v10404_v45 = vld [vmem:[#allocation171_spill] sm:$0xff] }
 0xcb3   :  { %3995 = vmatpush2.msra.mxu0 %v10394_v19  ;;  %v10405_v19 = vld [vmem:[#allocation61_spill] sm:$0xff] }
 0xcb4   :  { %3996 = vmatprep.subr.mxu0 %v10395_v42  ;;  %v10406_v42 = vld [vmem:[#allocation173_spill] sm:$0xff] }
 0xcb5   :  { %3997 = vmatpush2.msra.mxu0 %v10396_v47  ;;  %v10407_v47 = vld [vmem:[#allocation58_spill] sm:$0xff] }
 0xcb6   :  { %3998 = vmatprep.subr.mxu0 %v10397_v37  ;;  %v10408_v37 = vld [vmem:[#allocation175_spill] sm:$0xff] }
 0xcb7   :  { %3999 = vmatpush2.msra.mxu0 %v10398_v51  ;;  %v10409_v51 = vld [vmem:[#allocation55_spill] sm:$0xff] }
 0xcb8   :  { %4000 = vmatprep.subr.mxu0 %v10399_v40  ;;  %v10410_v40 = vld [vmem:[#allocation177_spill] sm:$0xff] }
 0xcb9   :  { %4001 = vmatpush2.msra.mxu0 %v10400_v61  ;;  %v10411_v61 = vld [vmem:[#allocation52_spill] sm:$0xff] }
 0xcba   :  { %4002 = vmatprep.subr.mxu0 %v10401_v2  ;;  %v10412_v2 = vld [vmem:[#allocation179_spill] sm:$0xff] }
 0xcbb   :  { %4003 = vmatpush2.msra.mxu0 %v10402_v26  ;;  %v10413_v26 = vld [vmem:[#allocation49_spill] sm:$0xff] }
 0xcbc   :  { %4004 = vmatprep.subr.mxu0 %v10403_v62  ;;  %v10414_v62 = vld [vmem:[#allocation181_spill] sm:$0xff] }
 0xcbd   :  { %4005 = vmatpush2.msra.mxu0 %v10404_v45  ;;  %v10415_v45 = vld [vmem:[#allocation46_spill] sm:$0xff] }
 0xcbe   :  { %4006 = vmatprep.subr.mxu0 %v10405_v19  ;;  %v10416_v19 = vld [vmem:[#allocation183_spill] sm:$0xff] }
 0xcbf   :  { %4007 = vmatpush2.msra.mxu0 %v10406_v42  ;;  %v4209_v42 = vld [vmem:[#allocation4 + $0x318] sm:$0xff] }
 0xcc0   :  { %4008 = vmatprep.subr.mxu0 %v10407_v47 }
 0xcc1   :  { %4009 = vmatpush2.msra.mxu0 %v10408_v37 }
 0xcc2   :  { %4010 = vmatprep.subr.mxu0 %v10409_v51 }
 0xcc3   :  { %4011 = vmatpush2.msra.mxu0 %v10410_v40 }
 0xcc4   :  { %4012 = vmatprep.subr.mxu0 %v10411_v61 }
 0xcc5   :  { %4013 = vmatpush2.msra.mxu0 %v10412_v2 }
 0xcc6   :  { %4014 = vmatprep.subr.mxu0 %v10413_v26  ;;  %v10420_v26 = vld [vmem:[#allocation92_spill] sm:$0xff] }
 0xcc7   :  { %4015 = vmatpush2.msra.mxu0 %v10414_v62 }
 0xcc8   :  { %4016 = vmatprep.subr.mxu0 %v10415_v45 }
 0xcc9   :  { %4017 = vmatpush2.msra.mxu0 %v10416_v19 }
 0xcca   :  { %4597 = vmatprep.subr.mxu0 %v4209_v42 }
 0xd0a   :  { %v3666_v47 = vpop.f32.mrf.mxu0  ;;  %v3737_v8 = vpop.f32.mrf.mxu1 }
 0xd0b   :  { %v3667_v51 = vadd.f32 %v3666_v47, %v10417_v39  ;;  %v3738_v45 = vadd.f32 %v3737_v8, %v10259_v24  ;;  %v10421_v39 = vld [vmem:[#allocation90_spill] sm:$0xff] }
 0xd0c   :  { %v3668_v37 = vpop.f32.mrf.mxu0  ;;  %v3739_v58 = vpop.f32.mrf.mxu1 }
 0xd0d   :  { %v3669_v40 = vadd.f32 %v3668_v37, %v10418_v1  ;;  %v3815_v54 = vrot.slane %v3667_v51, 4  ;;  %v3740_v42 = vadd.f32 %v3739_v58, %v10260_v57  ;;  %v3835_v16 = vrot.slane %v3738_v45, 4 }
 0xd0f   :  { %v3816_v61 = vrot.slane %v3669_v40, 4  ;;  %v3819_v2 = vadd.f32 %v3815_v54, %v10419_v33  ;;  %v3836_v47 = vrot.slane %v3740_v42, 4  ;;  %v3839_v37 = vadd.f32 %v3835_v16, %v10421_v39 }
 0xd11   :  { %v3820_v29 = vadd.f32 %v3816_v61, %v10420_v26  ;;  %v4399_v62 = vmul.f32 -1.442695, %v3819_v2  ;;  %v3840_v51 = vadd.f32 %v3836_v47, %v10262_v53  ;;  %v4401_v40 = vmul.f32 -1.442695, %v3839_v37  ;;  %v10422_v47 = vld [vmem:[#allocation204_spill] sm:$0xff] }
 0xd13   :  { %v4400_v19 = vmul.f32 -1.442695, %v3820_v29  ;;  %4831 = vpow2.f32 %v4399_v62  ;;  %v4402_v54 = vmul.f32 -1.442695, %v3840_v51 }
 0xd15   :  { %4833 = vpow2.f32 %v4400_v19 }
 0xd16   :  { %4835 = vpow2.f32 %v4401_v40 }
 0xd17   :  { %4837 = vpow2.f32 %v4402_v54 }
 0xd20   :  { %v4832_v33 = vpop.eup %4831 }
 0xd21   :  { %v3827_v2 = vadd.f32 1.0, %v4832_v33 }
 0xd22   :  { %v4834_v61 = vpop.eup %4833 }
 0xd23   :  { %v3828_v26 = vadd.f32 1.0, %v4834_v61  ;;  %4839 = vrcp.f32 %v3827_v2  ;;  %v4836_v29 = vpop.eup %4835 }
 0xd24   :  { %v4838_v8 = vpop.eup %4837  ;;  %v3847_v62 = vadd.f32 1.0, %v4836_v29 }
 0xd25   :  { %4841 = vrcp.f32 %v3828_v26  ;;  %v3848_v16 = vadd.f32 1.0, %v4838_v8  ;;  %v3869_v8 = vrot.slane %v8159_v9, 6 }
 0xd26   :  { %4843 = vrcp.f32 %v3847_v62  ;;  %v3870_v62 = vrot.slane %v8161_v28, 6 }
 0xd27   :  { %4845 = vrcp.f32 %v3848_v16 }
 0xd30   :  { %v4840_v51 = vpop.eup %4839 }
 0xd32   :  { %v4842_v33 = vpop.eup %4841 }
 0xd33   :  { %v4844_v2 = vpop.eup %4843 }
 0xd34   :  { %v4846_v29 = vpop.eup %4845 }
 0xd4a   :  { %v3808_v58 = vpop.f32.mrf.mxu0 }
 0xd4b   :  { %v3809_v45 = vadd.f32 %v3808_v58, %v10263_v43  ;;  %v3865_v58 = vsub.f32 1.0, %v4844_v2 }
 0xd4c   :  { %v3810_v19 = vpop.f32.mrf.mxu0 }
 0xd4d   :  { %v3855_v42 = vrot.slane %v3809_v45, 4  ;;  %v3811_v37 = vadd.f32 %v3810_v19, %v10422_v47  ;;  %v3866_v19 = vsub.f32 1.0, %v4846_v29  ;;  %v3874_v47 = vmul.f32 %v4846_v29, %v3870_v62  ;;  %v10434_v62 = vld [vmem:[#allocation184_spill] sm:$0xff] }
 0xd4f   :  { %v3859_v40 = vmul.f32 %v4840_v51, %v3855_v42  ;;  %v3856_v53 = vrot.slane %v3811_v37, 4  ;;  %v3873_v37 = vmul.f32 %v4844_v2, %v3869_v8  ;;  %v4206_v8 = vld [vmem:[#allocation4 + $0x300] sm:$0xff] }
 0xd51   :  { %v3861_v54 = vadd.f32 %v3859_v40, %v10102_v13  ;;  %v3860_v26 = vmul.f32 %v4842_v33, %v3856_v53  ;;  %v4168_v53 = vsel %vm338_vm0, %v7945_v18, %v8159_v9  ;;  %v4193_v18 = vld [vmem:[#allocation4 + $0x298] sm:$0xff]  ;;  %v4208_v9 = vld [vmem:[#allocation4 + $0x310] sm:$0xff] }
 0xd53   :  { %4847 = vtanh.f32 %v3861_v54  ;;  %v3862_v61 = vadd.f32 %v3860_v26, %v10103_v6  ;;  %v4169_v26 = vsel %vm338_vm0, %v7943_v21, %v8161_v28  ;;  %v4192_v21 = vld [vmem:[#allocation4 + $0x290] sm:$0xff]  ;;  %v4207_v28 = vld [vmem:[#allocation4 + $0x308] sm:$0xff] }
 0xd55   :  { %4849 = vtanh.f32 %v3862_v61 }
 0xd60   :  { %v4848_v45 = vpop.eup %4847 }
 0xd61   :  { %v3867_v42 = vmul.f32 %v4848_v45, %v3865_v58  ;;  %v4191_v58 = vld [vmem:[#allocation4 + $0x288] sm:$0xff]  ;;  %v4189_v45 = vld [vmem:[#allocation4 + $0x278] sm:$0xff] }
 0xd62   :  { %v4850_v51 = vpop.eup %4849 }
 0xd63   :  { %v3868_v16 = vmul.f32 %v4850_v51, %v3866_v19  ;;  %v8375_v40 = vadd.f32 %v3873_v37, %v3867_v42  ;;  %v4204_v19 = vld [vmem:[#allocation4 + $0x2f0] sm:$0xff]  ;;  %v10435_v42 = vld [vmem:[#allocation68_spill] sm:$0xff]  ;;  %v10436_v37 = vld [vmem:[#allocation185_spill] sm:$0xff] }
 0xd64   :  { %v10437_v51 = vld [vmem:[#allocation65_spill] sm:$0xff] }
 0xd65   :  { %v8380_v33 = vadd.f32 %v3874_v47, %v3868_v16  ;;  %v8384_v54 = vsel %vm4162_vm5, %v4168_v53, %v8375_v40  ;;  %v8395_v29 = vrot.slane %v8375_v40, 4  ;;  %v4879_v47 = vld [vmem:[%s8517_s11 + $0x8] sm:$0xff] }
 0xd66   :  { %v10438_v16 = vld [vmem:[#allocation186_spill] sm:$0xff] }
 0xd67   :  { %v3880_v61 = vrot.slane %v8380_v33, 4  ;;  %v8392_v2 = vsel %vm4162_vm5, %v4169_v26, %v8380_v33  ;;  %v10439_v53 = vld [vmem:[#allocation62_spill] sm:$0xff]  ;;  %v10440_v26 = vld [vmem:[#allocation187_spill] sm:$0xff] }
 0xd69   :  { %3947 = vmatprep.mubr.f32.mxu1 %v3880_v61  ;;  %4018 = vmatprep.mubr.f32.mxu0 %v3880_v61 }
 0xd6a   :  { %3948 = vmatmul.mubr.f32.vlgmr.msra.gmra.mxu1 %v8395_v29  ;;  %4019 = vmatmul.mubr.f32.vlgmr.msra.gmra.mxu0 %v8395_v29 }
 0xd6b   :  { %4026 = vmatpush1.msra.mxu1 %v9458_v17  ;;  %4598 = vmatpush3.msra.mxu0 %v4193_v18  ;;  %v4190_v17 = vld [vmem:[#allocation4 + $0x280] sm:$0xff]  ;;  %v10442_v18 = vld [vmem:[#allocation188_spill] sm:$0xff] }
 0xd6c   :  { %4027 = vmatprep.subr.mxu1 %v9459_v44  ;;  %4089 = vmatprep.mubr.f32.mxu1 %v3880_v61  ;;  %v4205_v44 = vld [vmem:[#allocation4 + $0x2f8] sm:$0xff]  ;;  %v10441_v61 = vld [vmem:[#allocation59_spill] sm:$0xff] }
 0xd6d   :  { %4599 = vmatprep.subr.mxu0 %v4208_v9  ;;  %4281 = vmatprep.mubr.f32.mxu0 %v4879_v47  ;;  %v10443_v9 = vld [vmem:[#allocation56_spill] sm:$0xff]  ;;  %v10446_v47 = vld [vmem:[#allocation190_spill] sm:$0xff] }
 0xd6e   :  { %4028 = vmatpush1.msra.mxu1 %v9460_v36  ;;  %4600 = vmatpush3.msra.mxu0 %v4192_v21  ;;  %v4188_v36 = vld [vmem:[#allocation4 + $0x270] sm:$0xff]  ;;  %v10444_v21 = vld [vmem:[#allocation189_spill] sm:$0xff] }
 0xd6f   :  { %4029 = vmatprep.subr.mxu1 %v9461_v10  ;;  %4601 = vmatprep.subr.mxu0 %v4207_v28  ;;  %v4203_v10 = vld [vmem:[#allocation4 + $0x2e8] sm:$0xff]  ;;  %v10445_v28 = vld [vmem:[#allocation53_spill] sm:$0xff] }
 0xd70   :  { %4030 = vmatpush1.msra.mxu1 %v9462_v11  ;;  %4602 = vmatpush3.msra.mxu0 %v4191_v58  ;;  %v4187_v11 = vld [vmem:[#allocation4 + $0x268] sm:$0xff] }
 0xd71   :  { %4031 = vmatprep.subr.mxu1 %v9463_v31  ;;  %4603 = vmatprep.subr.mxu0 %v4206_v8  ;;  %v4202_v31 = vld [vmem:[#allocation4 + $0x2e0] sm:$0xff]  ;;  %v10447_v58 = vld [vmem:[#allocation50_spill] sm:$0xff]  ;;  %v10448_v8 = vld [vmem:[#allocation191_spill] sm:$0xff] }
 0xd72   :  { %4032 = vmatpush1.msra.mxu1 %v9464_v46  ;;  %4604 = vmatpush3.msra.mxu0 %v4190_v17  ;;  %v4186_v46 = vld [vmem:[#allocation4 + $0x260] sm:$0xff]  ;;  %v10449_v17 = vld [vmem:[#allocation47_spill] sm:$0xff] }
 0xd73   :  { %4033 = vmatprep.subr.mxu1 %v9465_v4  ;;  %4605 = vmatprep.subr.mxu0 %v4205_v44  ;;  %v4201_v4 = vld [vmem:[#allocation4 + $0x2d8] sm:$0xff] }
 0xd74   :  { %4034 = vmatpush1.msra.mxu1 %v9466_v48  ;;  %4606 = vmatpush3.msra.mxu0 %v4189_v45  ;;  %v4185_v48 = vld [vmem:[#allocation4 + $0x258] sm:$0xff] }
 0xd75   :  { %4035 = vmatprep.subr.mxu1 %v9467_v3  ;;  %4607 = vmatprep.subr.mxu0 %v4204_v19  ;;  %v4200_v3 = vld [vmem:[#allocation4 + $0x2d0] sm:$0xff]  ;;  %v10450_v44 = vld [vmem:[#allocation192_spill] sm:$0xff] }
 0xd76   :  { %4036 = vmatpush1.msra.mxu1 %v9468_v52  ;;  %4608 = vmatpush3.msra.mxu0 %v4188_v36  ;;  %v4184_v52 = vld [vmem:[#allocation4 + $0x250] sm:$0xff]  ;;  %v10451_v36 = vld [vmem:[#allocation194_spill] sm:$0xff] }
 0xd77   :  { %4037 = vmatprep.subr.mxu1 %v9469_v49  ;;  %4609 = vmatprep.subr.mxu0 %v4203_v10  ;;  %v4199_v49 = vld [vmem:[#allocation4 + $0x2c8] sm:$0xff] }
 0xd78   :  { %4038 = vmatpush1.msra.mxu1 %v9470_v59  ;;  %4610 = vmatpush3.msra.mxu0 %v4187_v11  ;;  %v4183_v59 = vld [vmem:[#allocation4 + $0x248] sm:$0xff] }
 0xd79   :  { %4039 = vmatprep.subr.mxu1 %v9471_v34  ;;  %4611 = vmatprep.subr.mxu0 %v4202_v31  ;;  %v4198_v34 = vld [vmem:[#allocation4 + $0x2c0] sm:$0xff] }
 0xd7a   :  { %4040 = vmatpush1.msra.mxu1 %v9472_v27  ;;  %4612 = vmatpush3.msra.mxu0 %v4186_v46  ;;  %v4182_v27 = vld [vmem:[#allocation4 + $0x240] sm:$0xff] }
 0xd7b   :  { %4041 = vmatprep.subr.mxu1 %v9473_v30  ;;  %4613 = vmatprep.subr.mxu0 %v4201_v4  ;;  %v4197_v30 = vld [vmem:[#allocation4 + $0x2b8] sm:$0xff] }
 0xd7c   :  { %4042 = vmatpush1.msra.mxu1 %v9474_v7  ;;  %4614 = vmatpush3.msra.mxu0 %v4185_v48  ;;  %v4181_v7 = vld [vmem:[#allocation4 + $0x238] sm:$0xff]  ;;  %v10452_v48 = vld [vmem:[#allocation91_spill] sm:$0xff] }
 0xd7d   :  { %4043 = vmatprep.subr.mxu1 %v9475_v38  ;;  %4615 = vmatprep.subr.mxu0 %v4200_v3  ;;  %v4196_v38 = vld [vmem:[#allocation4 + $0x2b0] sm:$0xff] }
 0xd7e   :  { %4044 = vmatpush1.msra.mxu1 %v9940_v25  ;;  %4616 = vmatpush3.msra.mxu0 %v4184_v52  ;;  %v4180_v25 = vld [vmem:[#allocation4 + $0x230] sm:$0xff]  ;;  %v10453_v52 = vld [vmem:[#allocation92_spill] sm:$0xff] }
 0xd7f   :  { %4045 = vmatprep.subr.mxu1 %v9942_v23  ;;  %4617 = vmatprep.subr.mxu0 %v4199_v49  ;;  %v4195_v23 = vld [vmem:[#allocation4 + $0x2a8] sm:$0xff] }
 0xd80   :  { %4046 = vmatpush1.msra.mxu1 %v10265_v35  ;;  %4618 = vmatpush3.msra.mxu0 %v4183_v59  ;;  %v4179_v35 = vld [vmem:[#allocation4 + $0x228] sm:$0xff] }
 0xd81   :  { %4047 = vmatprep.subr.mxu1 %v10267_v41  ;;  %4619 = vmatprep.subr.mxu0 %v4198_v34  ;;  %v4194_v41 = vld [vmem:[#allocation4 + $0x2a0] sm:$0xff] }
 0xd82   :  { %4048 = vmatpush1.msra.mxu1 %v10269_v32  ;;  %4620 = vmatpush3.msra.mxu0 %v4182_v27  ;;  %v4178_v32 = vld [vmem:[#allocation4 + $0x220] sm:$0xff] }
 0xd83   :  { %4049 = vmatprep.subr.mxu1 %v10271_v63  ;;  %4621 = vmatprep.subr.mxu0 %v4197_v30  ;;  %v4880_v63 = vld [vmem:[%s8517_s11] sm:$0xff] }
 0xd84   :  { %4050 = vmatpush1.msra.mxu1 %v10273_v60  ;;  %4622 = vmatpush3.msra.mxu0 %v4181_v7  ;;  %v10423_v60 = vld [vmem:[#allocation85_spill] sm:$0xff] }
 0xd85   :  { %4051 = vmatprep.subr.mxu1 %v10275_v14  ;;  %4623 = vmatprep.subr.mxu0 %v4196_v38  ;;  %v10424_v14 = vld [vmem:[#allocation174_spill] sm:$0xff] }
 0xd86   :  { %4052 = vmatpush1.msra.mxu1 %v10277_v15  ;;  %4624 = vmatpush3.msra.mxu0 %v4180_v25  ;;  %v10425_v15 = vld [vmem:[#allocation83_spill] sm:$0xff] }
 0xd87   :  { %4053 = vmatprep.subr.mxu1 %v10279_v50  ;;  %4625 = vmatprep.subr.mxu0 %v4195_v23  ;;  %v10426_v50 = vld [vmem:[#allocation176_spill] sm:$0xff] }
 0xd88   :  { %4054 = vmatpush1.msra.mxu1 %v10281_v0  ;;  %4626 = vmatpush3.msra.mxu0 %v4179_v35  ;;  %v10427_v0 = vld [vmem:[#allocation80_spill] sm:$0xff] }
 0xd89   :  { %4055 = vmatprep.subr.mxu1 %v10283_v22  ;;  %4627 = vmatprep.subr.mxu0 %v4194_v41  ;;  %v10428_v22 = vld [vmem:[#allocation178_spill] sm:$0xff] }
 0xd8a   :  { %4056 = vmatpush1.msra.mxu1 %v10285_v12  ;;  %4628 = vmatpush3.msra.mxu0 %v4178_v32  ;;  %v10429_v12 = vld [vmem:[#allocation77_spill] sm:$0xff] }
 0xd8b   :  { %4057 = vmatprep.subr.mxu1 %v10287_v20  ;;  %4282 = vmatmul.mubr.f32.vlgmr.msra.gmra.mxu0 %v4880_v63  ;;  %v10430_v20 = vld [vmem:[#allocation180_spill] sm:$0xff] }
 0xd8c   :  { %4058 = vmatpush2.msra.mxu1 %v10289_v56  ;;  %v10431_v56 = vld [vmem:[#allocation74_spill] sm:$0xff] }
 0xd8d   :  { %4059 = vmatprep.subr.mxu1 %v10291_v55  ;;  %v10432_v55 = vld [vmem:[#allocation182_spill] sm:$0xff] }
 0xd8e   :  { %4060 = vmatpush2.msra.mxu1 %v10293_v5  ;;  %v10433_v5 = vld [vmem:[#allocation71_spill] sm:$0xff] }
 0xd8f   :  { %4061 = vmatprep.subr.mxu1 %v10423_v60 }
 0xd90   :  { %4062 = vmatpush2.msra.mxu1 %v10424_v14 }
 0xd91   :  { %4063 = vmatprep.subr.mxu1 %v10425_v15 }
 0xd92   :  { %4064 = vmatpush2.msra.mxu1 %v10426_v50 }
 0xd93   :  { %4065 = vmatprep.subr.mxu1 %v10427_v0 }
 0xd94   :  { %4066 = vmatpush2.msra.mxu1 %v10428_v22 }
 0xd95   :  { %4067 = vmatprep.subr.mxu1 %v10429_v12 }
 0xd96   :  { %4068 = vmatpush2.msra.mxu1 %v10430_v20 }
 0xd97   :  { %4069 = vmatprep.subr.mxu1 %v10431_v56 }
 0xd98   :  { %4070 = vmatpush2.msra.mxu1 %v10432_v55 }
 0xd99   :  { %4071 = vmatprep.subr.mxu1 %v10433_v5 }
 0xd9a   :  { %4072 = vmatpush2.msra.mxu1 %v10434_v62 }
 0xd9b   :  { %4073 = vmatprep.subr.mxu1 %v10435_v42 }
 0xd9c   :  { %4074 = vmatpush2.msra.mxu1 %v10436_v37 }
 0xd9d   :  { %4075 = vmatprep.subr.mxu1 %v10437_v51 }
 0xd9e   :  { %4076 = vmatpush2.msra.mxu1 %v10438_v16  ;;  %v10455_v16 = vld [vmem:[#allocation204_spill] sm:$0xff] }
 0xd9f   :  { %4077 = vmatprep.subr.mxu1 %v10439_v53 }
 0xda0   :  { %4078 = vmatpush2.msra.mxu1 %v10440_v26 }
 0xda1   :  { %4079 = vmatprep.subr.mxu1 %v10441_v61 }
 0xda2   :  { %4080 = vmatpush2.msra.mxu1 %v10442_v18 }
 0xda3   :  { %4081 = vmatprep.subr.mxu1 %v10443_v9 }
 0xda4   :  { %4082 = vmatpush2.msra.mxu1 %v10444_v21 }
 0xda5   :  { %4083 = vmatprep.subr.mxu1 %v10445_v28 }
 0xda6   :  { %4084 = vmatpush2.msra.mxu1 %v10446_v47 }
 0xda7   :  { %4085 = vmatprep.subr.mxu1 %v10447_v58 }
 0xda8   :  { %4086 = vmatpush2.msra.mxu1 %v10448_v8 }
 0xda9   :  { %4087 = vmatprep.subr.mxu1 %v10449_v17 }
 0xdaa   :  { %4088 = vmatpush2.msra.mxu1 %v10450_v44 }
 0xdab   :  { %4090 = vmatmul.mubr.f32.vlgmr.msra.gmra.mxu1 %v8395_v29  ;;  %v8477_v29 = vld [vmem:[%s8511_s5 + $0x14] ss:$0 sm:$0xff] }
 0xe2a   :  { %v3949_v45 = vpop.f32.mrf.mxu1  ;;  %v4020_v4 = vpop.f32.mrf.mxu0 }
 0xe2b   :  { %v3950_v10 = vadd.f32 %v3949_v45, %v10451_v36  ;;  %v4021_v7 = vadd.f32 %v4020_v4, %v10259_v24  ;;  %v10454_v24 = vld [vmem:[#allocation193_spill] sm:$0xff] }
 0xe2c   :  { %v3951_v19 = vpop.f32.mrf.mxu1  ;;  %v4022_v59 = vpop.f32.mrf.mxu0 }
 0xe2d   :  { %v3952_v11 = vadd.f32 %v3951_v19, %v10418_v1  ;;  %v4098_v31 = vrot.slane %v3950_v10, 2  ;;  %v4023_v1 = vadd.f32 %v4022_v59, %v10260_v57  ;;  %v4118_v23 = vrot.slane %v4021_v7, 2 }
 0xe2e   :  { %v4152_v19 = vrot.slane %v8375_v40, 6 }
 0xe2f   :  { %v4099_v46 = vrot.slane %v3952_v11, 2  ;;  %v4102_v3 = vadd.f32 %v4098_v31, %v10452_v48  ;;  %v4119_v41 = vrot.slane %v4023_v1, 2  ;;  %v4122_v63 = vadd.f32 %v4118_v23, %v10421_v39 }
 0xe30   :  { %v4153_v11 = vrot.slane %v8380_v33, 6 }
 0xe31   :  { %v4103_v49 = vadd.f32 %v4099_v46, %v10453_v52  ;;  %v4403_v34 = vmul.f32 -1.442695, %v4102_v3  ;;  %v4123_v60 = vadd.f32 %v4119_v41, %v10454_v24  ;;  %v4405_v14 = vmul.f32 -1.442695, %v4122_v63 }
 0xe33   :  { %v4404_v27 = vmul.f32 -1.442695, %v4103_v49  ;;  %4851 = vpow2.f32 %v4403_v34  ;;  %v4406_v15 = vmul.f32 -1.442695, %v4123_v60 }
 0xe35   :  { %4853 = vpow2.f32 %v4404_v27 }
 0xe40   :  { %v4852_v50 = vpop.eup %4851 }
 0xe41   :  { %v4110_v22 = vadd.f32 1.0, %v4852_v50 }
 0xe42   :  { %v4854_v0 = vpop.eup %4853 }
 0xe43   :  { %v4111_v57 = vadd.f32 1.0, %v4854_v0 }
 0xe4b   :  { %v4629_v30 = vpop.f32.mrf.mxu0 }
 0xe4d   :  { %v4630_v38 = vpop.f32.mrf.mxu0 }
 0xe4e   :  { %v4631_v25 = vadd.f32 %v4630_v38, %v4629_v30 }
 0xe50   :  { %v4284_v35 = vadd.f32 %v4631_v25, %v8477_v29 }
 0xe52   :  { %v4408_v32 = vmul.f32 -1.442695, %v4284_v35 }
 0xe54   :  { %4855 = vpow2.f32 %v4408_v32 }
 0xe55   :  { %4857 = vpow2.f32 %v4405_v14 }
 0xe56   :  { %4859 = vpow2.f32 %v4406_v15 }
 0xe57   :  { %4861 = vrcp.f32 %v4110_v22 }
 0xe58   :  { %4863 = vrcp.f32 %v4111_v57 }
 0xe61   :  { %v4856_v12 = vpop.eup %4855 }
 0xe62   :  { %v4298_v20 = vadd.f32 1.0, %v4856_v12  ;;  %v4858_v56 = vpop.eup %4857 }
 0xe63   :  { %v4860_v55 = vpop.eup %4859  ;;  %v4130_v39 = vadd.f32 1.0, %v4858_v56 }
 0xe64   :  { %4865 = vrcp.f32 %v4298_v20  ;;  %v4131_v37 = vadd.f32 1.0, %v4860_v55  ;;  %v4862_v26 = vpop.eup %4861 }
 0xe65   :  { %v4864_v61 = vpop.eup %4863  ;;  %4867 = vrcp.f32 %v4130_v39 }
 0xe66   :  { %4869 = vrcp.f32 %v4131_v37 }
 0xe6b   :  { %v4091_v5 = vpop.f32.mrf.mxu1 }
 0xe6c   :  { %v4092_v62 = vadd.f32 %v4091_v5, %v10263_v43 }
 0xe6d   :  { %v4093_v42 = vpop.f32.mrf.mxu1 }
 0xe6e   :  { %v4138_v51 = vrot.slane %v4092_v62, 2  ;;  %v4094_v53 = vadd.f32 %v4093_v42, %v10455_v16 }
 0xe70   :  { %v4142_v18 = vmul.f32 %v4862_v26, %v4138_v51  ;;  %v4139_v9 = vrot.slane %v4094_v53, 2 }
 0xe71   :  { %v4866_v21 = vpop.eup %4865 }
 0xe72   :  { %v4304_v28 = vmul.f32 50.0, %v4866_v21  ;;  %v4144_v47 = vadd.f32 %v4142_v18, %v10102_v13  ;;  %v4143_v58 = vmul.f32 %v4864_v61, %v4139_v9  ;;  %v4868_v17 = vpop.eup %4867 }
 0xe73   :  { %v4870_v44 = vpop.eup %4869  ;;  %v4148_v45 = vsub.f32 1.0, %v4868_v17  ;;  %v4156_v31 = vmul.f32 %v4868_v17, %v4152_v19 }
 0xe74   :  { %v4306_v8 = vadd.f32 -15.0, %v4304_v28  ;;  %4871 = vtanh.f32 %v4144_v47  ;;  %v4145_v43 = vadd.f32 %v4143_v58, %v10103_v6  ;;  %v4149_v10 = vsub.f32 1.0, %v4870_v44 }
 0xe75   :  { %v4157_v48 = vmul.f32 %v4870_v44, %v4153_v11 }
 0xe76   :  { %4308 = vst [vmem:[%s8518_s12] sm:$0xff] %v4306_v8  ;;  %4873 = vtanh.f32 %v4145_v43 }
 0xe81   :  { %v4872_v36 = vpop.eup %4871 }
 0xe82   :  { %v4150_v13 = vmul.f32 %v4872_v36, %v4148_v45 }
 0xe83   :  { %v4874_v46 = vpop.eup %4873 }
 0xe84   :  { %v4151_v4 = vmul.f32 %v4874_v46, %v4149_v10  ;;  %v4158_v6 = vadd.f32 %v4156_v31, %v4150_v13 }
 0xe86   :  { %v4159_v3 = vadd.f32 %v4157_v48, %v4151_v4  ;;  %v4172_v52 = vsel %vm4165_vm6, %v8384_v54, %v4158_v6 }
 0xe87   :  { %4176 = vst [vmem:[%s8517_s11 + $0x10] sm:$0xff] %v4172_v52 }
 0xe88   :  { %v4173_v40 = vsel %vm4165_vm6, %v8392_v2, %v4159_v3 }
 0xe89   :  { %4177 = vst [vmem:[%s8517_s11 + $0x18] sm:$0xff] %v4173_v40  ;;  %4286 = vmatprep.mubr.f32.mxu0 %v4173_v40 }
 0xe8a   :  { %4287 = vmatmul.mubr.f32.gmra.mxu0 %v4172_v52 }
 0xf4a   :  { %v4632_v33 = vpop.f32.mrf.mxu0 }
 0xf4c   :  { %v4633_v49 = vpop.f32.mrf.mxu0 }
 0xf4d   :  { %v4634_v59 = vadd.f32 %v4633_v49, %v4632_v33 }
 0xf4f   :  { %v4289_v34 = vadd.f32 %v4634_v59, %v8477_v29 }
 0xf51   :  { %v4409_v27 = vmul.f32 -1.442695, %v4289_v34 }
 0xf53   :  { %4875 = vpow2.f32 %v4409_v27 }
 0xf60   :  { %v4876_v54 = vpop.eup %4875 }
 0xf61   :  { %v4299_v30 = vadd.f32 1.0, %v4876_v54 }
 0xf63   :  { %4877 = vrcp.f32 %v4299_v30 }
 0xf70   :  { %v4878_v7 = vpop.eup %4877 }
 0xf71   :  { %v4305_v38 = vmul.f32 50.0, %v4878_v7 }
 0xf73   :  { %v4307_v1 = vadd.f32 -15.0, %v4305_v38 }
 0xf75   :  { %4309 = vst [vmem:[%s8518_s12 + $0x8] sm:$0xff] %v4307_v1 }
 0xf76   :  { %4334 = vsyncpa [#allocation5], 1 }
 0xf77   :  { %4335 = vsyncmov [#allocation3] }
 0xf7a   :  { %s4336_s11 = vpop.sfrf %4335 }
 0xf7b   :  { %p4410_p5 = scmp.ne.s32.totalorder %s4336_s11, 0 }
 0xf7d   :  { %4340 = shalt.err (%p4410_p5)  }

</bundles_post_ra>
